<compile_context>
chip_gen: v5e
topology: v5e:2x2
jax: 0.10.0
libtpu: 0.0.40
codegen_flags: <defaults>
</compile_context>

<pallas_src>
import functools

import jax
import jax.numpy as jnp
from jax.experimental import pallas as pl
from jax.experimental.pallas import tpu as pltpu


def _round_up(x, m):
    return ((x + m - 1) // m) * m


# --------------------------------------------------------------------------- #
# Kernel: one (batch_block, time_chunk) grid point.
# --------------------------------------------------------------------------- #
def _dkt_chunk_kernel(v_ref, s_ref, h0_ref, wv_ref, wh_ref, b_ref, bsc_ref,
                      score_ref, h_ref, *, unroll):
    c = pl.program_id(1)

    # h_ref's block index is constant along the chunk ("arbitrary") axis, so it
    # stays resident in VMEM and doubles as the hidden-state carry.
    @pl.when(c == 0)
    def _():
        h_ref[...] = h0_ref[...]

    Lc, Bt, _ = v_ref.shape
    Tp = h_ref.shape[-1]

    wv = wv_ref[...]                    # (Tp, 7*Tp)  [top r|z|n, bot r|z|n, score]
    wh = wh_ref[...]                    # (Tp, 4*Tp)  [r|z|n, score]
    b_r, b_z, b_in, b_hn = b_ref[0], b_ref[1], b_ref[2], b_ref[3]   # (1, Tp)
    bsc = bsc_ref[...]                  # (1, 1)

    lane = jax.lax.broadcasted_iota(jnp.int32, (Bt, Lc), 1)

    def step(i, carry):
        h, sc = carry                   # h: (Bt, Tp) f32, sc: (Bt, Lc) f32
        v = v_ref[i]                    # (Bt, Tp), matmul dtype
        mask = (s_ref[i] > 0.5).astype(jnp.float32)                  # (Bt, 1)

        # Two fused, lane-aligned MXU matmuls per step.
        a = jnp.dot(v, wv, preferred_element_type=jnp.float32)       # (Bt, 7*Tp)
        g = jnp.dot(h.astype(wh.dtype), wh,
                    preferred_element_type=jnp.float32)              # (Bt, 4*Tp)

        # Score head Linear([h, v]) on the PRE-update h: rides as the last
        # 128-wide output block of each matmul (only lane 0 is non-zero, the
        # rest is zero padding, so a lane-reduce recovers the dot product).
        score = (jnp.sum(a[:, 6 * Tp:] + g[:, 3 * Tp:],
                         axis=-1, keepdims=True) + bsc)              # (Bt, 1)
        sc = jnp.where(lane == i, score, sc)

        # GRU step; x = [v, v * mask] realised as gi = a_top + mask * a_bot.
        gi = a[:, :3 * Tp] + mask * a[:, 3 * Tp:6 * Tp]
        r = jax.nn.sigmoid(gi[:, :Tp] + g[:, :Tp] + b_r)
        z = jax.nn.sigmoid(gi[:, Tp:2 * Tp] + g[:, Tp:2 * Tp] + b_z)
        n = jnp.tanh(gi[:, 2 * Tp:3 * Tp] + b_in
                     + r * (g[:, 2 * Tp:3 * Tp] + b_hn))
        h_new = (1.0 - z) * n + z * h
        return h_new, sc

    h_fin, sc_fin = jax.lax.fori_loop(
        0, Lc, step,
        (h_ref[...], jnp.zeros((Bt, Lc), jnp.float32)),
        unroll=unroll)

    h_ref[...] = h_fin
    score_ref[0] = sc_fin               # one lane-dense (Bt, Lc) slab per chunk


# --------------------------------------------------------------------------- #
# Parameters
# --------------------------------------------------------------------------- #
def init_dkt_params(tcnt, key):
    """Deterministic init mirroring nn.GRU(2T, T, 1) + nn.Linear(2T, 1)."""
    T = tcnt
    k = 1.0 / jnp.sqrt(jnp.float32(T))
    keys = jax.random.split(key, 6)
    uni = lambda kk, shape: jax.random.uniform(kk, shape, jnp.float32, -k, k)
    return dict(
        weight_ih=uni(keys[0], (3 * T, 2 * T)),   # GRU input weights  (r,z,n)
        weight_hh=uni(keys[1], (3 * T, T)),       # GRU hidden weights (r,z,n)
        bias_ih=uni(keys[2], (3 * T,)),
        bias_hh=uni(keys[3], (3 * T,)),
        score_w=uni(keys[4], (1, 2 * T)),         # nn.Linear(2T, 1).weight
        score_b=uni(keys[5], (1,)),               # nn.Linear(2T, 1).bias
    )


def pack_dkt_params(params, *, matmul_dtype=jnp.float32):
    """One-time repack of PyTorch-layout params into the fused, 128-lane-padded
    kernel layout.  matmul_dtype=jnp.bfloat16 is recommended on v6e / v7x."""
    T = params["weight_hh"].shape[1]
    Tp = _round_up(T, 128)

    wih_t = params["weight_ih"].astype(jnp.float32).T      # (2T, 3T)
    whh_t = params["weight_hh"].astype(jnp.float32).T      # (T, 3T)
    bih = params["bias_ih"].astype(jnp.float32)
    bhh = params["bias_hh"].astype(jnp.float32)
    wsc = params["score_w"].astype(jnp.float32).reshape(2 * T)
    bsc = params["score_b"].astype(jnp.float32).reshape(1, 1)

    def pad_tt(m):  # (T, T) -> (Tp, Tp), zero padding keeps pad lanes inert
        return jnp.pad(m, ((0, Tp - m.shape[0]), (0, Tp - m.shape[1])))

    top = [pad_tt(wih_t[:T, g * T:(g + 1) * T]) for g in range(3)]
    bot = [pad_tt(wih_t[T:, g * T:(g + 1) * T]) for g in range(3)]
    hh = [pad_tt(whh_t[:, g * T:(g + 1) * T]) for g in range(3)]
    sc_v = jnp.zeros((Tp, Tp), jnp.float32).at[:T, 0].set(wsc[T:])
    sc_h = jnp.zeros((Tp, Tp), jnp.float32).at[:T, 0].set(wsc[:T])

    wv = jnp.concatenate(top + bot + [sc_v], axis=1).astype(matmul_dtype)  # (Tp,7Tp)
    wh = jnp.concatenate(hh + [sc_h], axis=1).astype(matmul_dtype)         # (Tp,4Tp)

    def pad_t(x):
        return jnp.pad(x, (0, Tp - x.shape[0]))

    # Pre-folded biases: r/z get bias_ih + bias_hh; n keeps them split
    # (PyTorch: n = tanh(gi_n + b_in + r * (gh_n + b_hn))).
    b = jnp.stack([pad_t(bih[:T] + bhh[:T]),
                   pad_t(bih[T:2 * T] + bhh[T:2 * T]),
                   pad_t(bih[2 * T:]),
                   pad_t(bhh[2 * T:])]).reshape(4, 1, Tp)

    return dict(T=T, Tp=Tp, wv=wv, wh=wh, b=b, bsc=bsc)


# --------------------------------------------------------------------------- #
# Wrappers
# --------------------------------------------------------------------------- #
def _pick_batch_tile(B, max_tile=256):
    for bt in range(min(B, max_tile), 0, -1):
        if B % bt == 0 and (bt % 8 == 0 or bt == B):
            return bt
    return B


def _pick_time_chunk(L, max_chunk=32):
    for lc in range(min(L, max_chunk), 0, -1):
        if L % lc == 0:
            return lc
    return 1


def dkt_forward_seq(packed, v_seq, s_seq, h0=None, *,
                    batch_tile=None, time_chunk=None):
    """Fused forward over a whole sequence for a batch of students.

    v_seq : (L, B, T) topic vectors
    s_seq : (L, B)    response scores
    h0    : (B, T)    initial hidden or None (zeros)
    returns (scores (L, B), h_final (B, T))
    """
    L, B, T = v_seq.shape
    assert T == packed["T"]
    Tp = packed["Tp"]

    Bt = _pick_batch_tile(B) if batch_tile is None else batch_tile
    assert B % Bt == 0 and (Bt % 8 == 0 or Bt == B)
    nb = B // Bt

    Lc = _pick_time_chunk(L) if time_chunk is None else time_chunk
    assert L % Lc == 0
    nc = L // Lc
    unroll = Lc <= 16      # short fixed inner loops: unroll for LLO visibility

    v = jnp.asarray(v_seq, jnp.float32)
    if Tp > T:
        v = jnp.pad(v, ((0, 0), (0, 0), (0, Tp - T)))
    v = v.astype(packed["wv"].dtype)
    s = jnp.asarray(s_seq, jnp.float32).reshape(L, B, 1)
    if h0 is None:
        h0p = jnp.zeros((B, Tp), jnp.float32)
    else:
        h0p = jnp.zeros((B, Tp), jnp.float32).at[:, :T].set(
            jnp.asarray(h0, jnp.float32).reshape(B, T))

    const2 = lambda b, c: (0, 0)
    const3 = lambda b, c: (0, 0, 0)

    in_specs = [
        pl.BlockSpec((Lc, Bt, Tp), lambda b, c: (c, b, 0)),   # v (streamed chunks)
        pl.BlockSpec((Lc, Bt, 1), lambda b, c: (c, b, 0)),    # s (streamed chunks)
        pl.BlockSpec((Bt, Tp), lambda b, c: (b, 0)),          # h0
        pl.BlockSpec((Tp, 7 * Tp), const2),                   # W_v (resident)
        pl.BlockSpec((Tp, 4 * Tp), const2),                   # W_h (resident)
        pl.BlockSpec((4, 1, Tp), const3),                     # biases (resident)
        pl.BlockSpec((1, 1), const2),                         # score bias
    ]
    out_specs = (
        pl.BlockSpec((1, Bt, Lc), lambda b, c: (c, b, 0)),    # scores (per chunk)
        pl.BlockSpec((Bt, Tp), lambda b, c: (b, 0)),          # hidden carry / out
    )
    out_shape = (
        jax.ShapeDtypeStruct((nc, B, Lc), jnp.float32),
        jax.ShapeDtypeStruct((B, Tp), jnp.float32),
    )

    w_item = jnp.dtype(packed["wv"].dtype).itemsize
    vmem_est = (2 * (Lc * Bt * Tp * w_item + Lc * Bt * 4)     # streamed v, s
                + 2 * (7 + 4) * Tp * Tp * w_item              # weights (2 bufs)
                + 2 * Bt * Tp * 4 * 2                         # h0 + h carry
                + 2 * Bt * Lc * 4 + (4 << 20))                # scores + slack
    vmem_limit = int(min(64 << 20, max(2 * vmem_est, 16 << 20)))

    scores, h_final = pl.pallas_call(
        functools.partial(_dkt_chunk_kernel, unroll=unroll),
        out_shape=out_shape,
        grid=(nb, nc),
        in_specs=in_specs,
        out_specs=out_specs,
        compiler_params=pltpu.CompilerParams(
            dimension_semantics=("parallel", "arbitrary"),
            vmem_limit_bytes=vmem_limit),
    )(v, s, h0p, packed["wv"], packed["wh"], packed["b"], packed["bsc"])

    scores = jnp.transpose(scores, (0, 2, 1)).reshape(L, B)   # (L, B)
    return scores, h_final[:, :T]


def dkt_forward(packed, topic, score, time=None, hidden=None):
    """Original DKT.forward API (one student, one GRU step); `time` unused.

    NOTE: correctness shim only — a (1, T) tile uses a fraction of the MXU /
    sublanes; batch students and use dkt_forward_seq for performance.
    """
    T = packed["T"]
    v = jnp.asarray(topic, jnp.float32).reshape(1, 1, T)
    s = jnp.asarray(score, jnp.float32).reshape(1, 1)
    h0 = None if hidden is None else jnp.asarray(hidden, jnp.float32).reshape(1, T)
    scores, h_final = dkt_forward_seq(packed, v, s, h0,
                                      batch_tile=1, time_chunk=1)
    return scores.reshape(1), h_final.reshape(1, 1, T)


# --------------------------------------------------------------------------- #
# Pure-JAX reference (validation)
# --------------------------------------------------------------------------- #
def _dkt_reference_seq(params, v_seq, s_seq, h0):
    T = params["weight_hh"].shape[1]

    def step(h, inp):
        v, s = inp                                                # (B,T), (B,)
        hv = jnp.concatenate([h, v], axis=-1)
        sc = hv @ params["score_w"].T + params["score_b"]         # (B, 1)
        mask = (s > 0.5).astype(v.dtype)[:, None]
        x = jnp.concatenate([v, v * mask], axis=-1)
        gi = x @ params["weight_ih"].T + params["bias_ih"]
        gh = h @ params["weight_hh"].T + params["bias_hh"]
        r = jax.nn.sigmoid(gi[:, :T] + gh[:, :T])
        z = jax.nn.sigmoid(gi[:, T:2 * T] + gh[:, T:2 * T])
        n = jnp.tanh(gi[:, 2 * T:] + r * gh[:, 2 * T:])
        h_new = (1.0 - z) * n + z * h
        return h_new, sc[:, 0]

    h_final, scores = jax.lax.scan(step, h0, (v_seq, s_seq))
    return scores, h_final


# --------------------------------------------------------------------------- #
# Demo / self-test
# --------------------------------------------------------------------------- #
if __name__ == "__main__":
    T = 64    # topic count (args['tcnt'])  -> padded to 128 lanes internally
    B = 16    # batch of students
    L = 8     # sequence length (one in-kernel time chunk)

    key = jax.random.PRNGKey(0)
    kp, kv, ks = jax.random.split(key, 3)

    params = init_dkt_params(T, kp)
    v_seq = jax.random.normal(kv, (L, B, T), jnp.float32)
    s_seq = jax.random.uniform(ks, (L, B), jnp.float32)
    h0 = jnp.zeros((B, T), jnp.float32)
    scores_ref, h_ref = _dkt_reference_seq(params, v_seq, s_seq, h0)

    # f32 matmul path (bit-for-bit semantics of the PyTorch module)
    packed = pack_dkt_params(params)
    scores, h_final = dkt_forward_seq(packed, v_seq, s_seq, None)
    jax.block_until_ready((scores, h_final))
    assert jnp.allclose(scores, scores_ref, atol=1e-4, rtol=1e-4)
    assert jnp.allclose(h_final, h_ref, atol=1e-4, rtol=1e-4)

    # bf16 matmul-operand path (v6e / v7x MXU); elementwise math stays f32,
    # so only the MXU products lose precision -> loose tolerance.
    packed_bf16 = pack_dkt_params(params, matmul_dtype=jnp.bfloat16)
    scores16, h16 = dkt_forward_seq(packed_bf16, v_seq, s_seq, None)
    jax.block_until_ready((scores16, h16))
    assert jnp.allclose(scores16, scores_ref, atol=1e-1, rtol=1e-1)
    assert jnp.allclose(h16, h_ref, atol=1e-1, rtol=1e-1)

    # original single-step DKT.forward API (correctness shim)
    s1, h1 = dkt_forward(packed, v_seq[0, 0], s_seq[0, 0],
                         time=jnp.float32(1.0), hidden=None)
    jax.block_until_ready((s1, h1))
    s1_ref, h1_ref = _dkt_reference_seq(params, v_seq[:1, :1], s_seq[:1, :1],
                                        jnp.zeros((1, T), jnp.float32))
    assert jnp.allclose(s1, s1_ref[0], atol=1e-4, rtol=1e-4)
    assert jnp.allclose(h1.reshape(1, T), h1_ref, atol=1e-4, rtol=1e-4)

    # second step, feeding hidden back (stateful use, like the PyTorch loop)
    s2, h2 = dkt_forward(packed, v_seq[1, 0], s_seq[1, 0], hidden=h1)
    jax.block_until_ready((s2, h2))
    s2_ref, h2_ref = _dkt_reference_seq(params, v_seq[1:2, :1], s_seq[1:2, :1],
                                        h1_ref)
    assert jnp.allclose(s2, s2_ref[0], atol=1e-4, rtol=1e-4)
    assert jnp.allclose(h2.reshape(1, T), h2_ref, atol=1e-4, rtol=1e-4)

    # TODO(synk): the DKT(args) path with tcnt==0 reads data/know_list.txt
    # (host file I/O) to infer the topic count; pass tcnt explicitly instead.
    print("KERNEL_OK")
</pallas_src>

<mosaic_0001>
module attributes {stable_mosaic.version = 11 : i64} {
  func.func @_dkt_chunk_kernel(%arg0: i32, %arg1: i32, %arg2: memref<8x16x128xf32, #tpu.memory_space<vmem>>, %arg3: memref<8x16x1xf32, #tpu.memory_space<vmem>>, %arg4: memref<16x128xf32, #tpu.memory_space<vmem>>, %arg5: memref<128x896xf32, #tpu.memory_space<vmem>>, %arg6: memref<128x512xf32, #tpu.memory_space<vmem>>, %arg7: memref<4x1x128xf32, #tpu.memory_space<vmem>>, %arg8: memref<1x1xf32, #tpu.memory_space<vmem>>, %arg9: memref<1x16x8xf32, #tpu.memory_space<vmem>>, %arg10: memref<16x128xf32, #tpu.memory_space<vmem>>) attributes {dimension_semantics = [#tpu.dimension_semantics<parallel>, #tpu.dimension_semantics<arbitrary>], iteration_bounds = array<i64: 1, 1>, scalar_prefetch = 0 : i64, scratch_operands = 0 : i64, tpu.core_type = #tpu.core_type<tc>, window_params = [{transform_indices = @transform_0, window_bounds = array<i64: 8, 16, 128>}, {transform_indices = @transform_1, window_bounds = array<i64: 8, 16, 1>}, {transform_indices = @transform_2, window_bounds = array<i64: 16, 128>}, {pipeline_mode = #tpu.pipeline_mode<synchronous>, transform_indices = @transform_3, window_bounds = array<i64: 128, 896>}, {pipeline_mode = #tpu.pipeline_mode<synchronous>, transform_indices = @transform_4, window_bounds = array<i64: 128, 512>}, {pipeline_mode = #tpu.pipeline_mode<synchronous>, transform_indices = @transform_5, window_bounds = array<i64: 4, 1, 128>}, {pipeline_mode = #tpu.pipeline_mode<synchronous>, transform_indices = @transform_6, window_bounds = array<i64: 1, 1>}, {transform_indices = @transform_7, window_bounds = array<i64: 1, 16, 8>}, {transform_indices = @transform_8, window_bounds = array<i64: 16, 128>}]} {
    %c0_i32 = arith.constant 0 : i32
    %0 = arith.cmpi eq, %arg1, %c0_i32 : i32
    %1 = arith.extui %0 : i1 to i32
    %c0_i32_0 = arith.constant 0 : i32
    %2 = arith.cmpi ne, %1, %c0_i32_0 : i32
    scf.if %2 {
      %c0_111 = arith.constant 0 : index
      %c0_112 = arith.constant 0 : index
      %525 = vector.load %arg4[%c0_111, %c0_112] : memref<16x128xf32, #tpu.memory_space<vmem>>, vector<16x128xf32>
      %c0_113 = arith.constant 0 : index
      %c0_114 = arith.constant 0 : index
      %526 = vector.load %arg10[%c0_113, %c0_114] : memref<16x128xf32, #tpu.memory_space<vmem>>, vector<16x128xf32>
      tpu.vector_store %arg10[%c0_113, %c0_114], %525 {strides = array<i32>} : memref<16x128xf32, #tpu.memory_space<vmem>>, vector<16x128xf32>,
    } else {
    }
    %c0 = arith.constant 0 : index
    %c0_1 = arith.constant 0 : index
    %3 = vector.load %arg5[%c0, %c0_1] : memref<128x896xf32, #tpu.memory_space<vmem>>, vector<128x896xf32>
    %c0_2 = arith.constant 0 : index
    %c0_3 = arith.constant 0 : index
    %4 = vector.load %arg6[%c0_2, %c0_3] : memref<128x512xf32, #tpu.memory_space<vmem>>, vector<128x512xf32>
    %c0_4 = arith.constant 0 : index
    %c0_5 = arith.constant 0 : index
    %c0_6 = arith.constant 0 : index
    %5 = vector.load %arg7[%c0_4, %c0_5, %c0_6] : memref<4x1x128xf32, #tpu.memory_space<vmem>>, vector<1x1x128xf32>
    %6 = vector.shape_cast %5 : vector<1x1x128xf32> to vector<1x128xf32>
    %c1 = arith.constant 1 : index
    %c0_7 = arith.constant 0 : index
    %c0_8 = arith.constant 0 : index
    %7 = vector.load %arg7[%c1, %c0_7, %c0_8] : memref<4x1x128xf32, #tpu.memory_space<vmem>>, vector<1x1x128xf32>
    %8 = vector.shape_cast %7 : vector<1x1x128xf32> to vector<1x128xf32>
    %c2 = arith.constant 2 : index
    %c0_9 = arith.constant 0 : index
    %c0_10 = arith.constant 0 : index
    %9 = vector.load %arg7[%c2, %c0_9, %c0_10] : memref<4x1x128xf32, #tpu.memory_space<vmem>>, vector<1x1x128xf32>
    %10 = vector.shape_cast %9 : vector<1x1x128xf32> to vector<1x128xf32>
    %c3 = arith.constant 3 : index
    %c0_11 = arith.constant 0 : index
    %c0_12 = arith.constant 0 : index
    %11 = vector.load %arg7[%c3, %c0_11, %c0_12] : memref<4x1x128xf32, #tpu.memory_space<vmem>>, vector<1x1x128xf32>
    %12 = vector.shape_cast %11 : vector<1x1x128xf32> to vector<1x128xf32>
    %c0_13 = arith.constant 0 : index
    %c0_14 = arith.constant 0 : index
    %13 = vector.load %arg8[%c0_13, %c0_14] : memref<1x1xf32, #tpu.memory_space<vmem>>, vector<1x1xf32>
    %14 = tpu.iota {dimensions = array<i32: 1>} : vector<16x8xi32>
    %c0_15 = arith.constant 0 : index
    %c0_16 = arith.constant 0 : index
    %15 = vector.load %arg10[%c0_15, %c0_16] : memref<16x128xf32, #tpu.memory_space<vmem>>, vector<16x128xf32>
    %cst = arith.constant 0.000000e+00 : f32
    %16 = vector.broadcast %cst : f32 to vector<16x8xf32>
    %c0_i32_17 = arith.constant 0 : i32
    %17 = arith.index_cast %c0_i32_17 : i32 to index
    %c0_18 = arith.constant 0 : index
    %c0_19 = arith.constant 0 : index
    %18 = vector.load %arg2[%17, %c0_18, %c0_19] : memref<8x16x128xf32, #tpu.memory_space<vmem>>, vector<1x16x128xf32>
    %19 = vector.shape_cast %18 : vector<1x16x128xf32> to vector<16x128xf32>
    %20 = arith.index_cast %c0_i32_17 : i32 to index
    %c0_20 = arith.constant 0 : index
    %c0_21 = arith.constant 0 : index
    %21 = vector.load %arg3[%20, %c0_20, %c0_21] : memref<8x16x1xf32, #tpu.memory_space<vmem>>, vector<1x16x1xf32>
    %22 = vector.shape_cast %21 : vector<1x16x1xf32> to vector<16x1xf32>
    %cst_22 = arith.constant 5.000000e-01 : f32
    %23 = vector.broadcast %cst_22 : f32 to vector<16x1xf32>
    %24 = arith.cmpf ogt, %22, %23 : vector<16x1xf32>
    %25 = arith.extui %24 : vector<16x1xi1> to vector<16x1xi32>
    %26 = arith.sitofp %25 : vector<16x1xi32> to vector<16x1xf32>
    %cst_23 = arith.constant dense<0.000000e+00> : vector<16x896xf32>
    %27 = tpu.matmul %19, %3, %cst_23 {dimension_numbers = #tpu.dot_dimension_numbers<[1], [0], [0], [1], [0, 0, 1, 1], [], []>} : vector<16x128xf32>, vector<128x896xf32>, vector<16x896xf32> -> vector<16x896xf32>
    %cst_24 = arith.constant dense<0.000000e+00> : vector<16x512xf32>
    %28 = tpu.matmul %15, %4, %cst_24 {dimension_numbers = #tpu.dot_dimension_numbers<[1], [0], [0], [1], [0, 0, 1, 1], [], []>} : vector<16x128xf32>, vector<128x512xf32>, vector<16x512xf32> -> vector<16x512xf32>
    %29 = vector.extract_strided_slice %27 {offsets = [0, 768], sizes = [16, 128], strides = [1, 1]} : vector<16x896xf32> to vector<16x128xf32>
    %30 = vector.extract_strided_slice %28 {offsets = [0, 384], sizes = [16, 128], strides = [1, 1]} : vector<16x512xf32> to vector<16x128xf32>
    %31 = arith.addf %29, %30 : vector<16x128xf32>
    %cst_25 = arith.constant dense<0.000000e+00> : vector<16xf32>
    %32 = vector.multi_reduction <add>, %31, %cst_25 [1] : vector<16x128xf32> to vector<16xf32>
    %33 = vector.shape_cast %32 : vector<16xf32> to vector<16x1xf32>
    %34 = vector.broadcast %13 : vector<1x1xf32> to vector<16x1xf32>
    %35 = arith.addf %33, %34 : vector<16x1xf32>
    %36 = vector.broadcast %c0_i32_17 : i32 to vector<16x8xi32>
    %37 = arith.cmpi eq, %14, %36 : vector<16x8xi32>
    %38 = vector.shape_cast %35 : vector<16x1xf32> to vector<16x1xf32>
    %39 = vector.broadcast %38 : vector<16x1xf32> to vector<16x8xf32>
    %40 = arith.select %37, %39, %16 : vector<16x8xi1>, vector<16x8xf32>
    %41 = vector.extract_strided_slice %27 {offsets = [0, 0], sizes = [16, 384], strides = [1, 1]} : vector<16x896xf32> to vector<16x384xf32>
    %42 = vector.extract_strided_slice %27 {offsets = [0, 384], sizes = [16, 384], strides = [1, 1]} : vector<16x896xf32> to vector<16x384xf32>
    %43 = vector.broadcast %26 : vector<16x1xf32> to vector<16x384xf32>
    %44 = arith.mulf %43, %42 : vector<16x384xf32>
    %45 = arith.addf %41, %44 : vector<16x384xf32>
    %46 = vector.extract_strided_slice %45 {offsets = [0, 0], sizes = [16, 128], strides = [1, 1]} : vector<16x384xf32> to vector<16x128xf32>
    %47 = vector.extract_strided_slice %28 {offsets = [0, 0], sizes = [16, 128], strides = [1, 1]} : vector<16x512xf32> to vector<16x128xf32>
    %48 = arith.addf %46, %47 : vector<16x128xf32>
    %49 = vector.broadcast %6 : vector<1x128xf32> to vector<16x128xf32>
    %50 = arith.addf %48, %49 : vector<16x128xf32>
    %51 = arith.negf %50 : vector<16x128xf32>
    %52 = math.exp %51 : vector<16x128xf32>
    %cst_26 = arith.constant 1.000000e+00 : f32
    %53 = vector.broadcast %cst_26 : f32 to vector<16x128xf32>
    %54 = arith.addf %53, %52 : vector<16x128xf32>
    %55 = arith.divf %53, %54 : vector<16x128xf32>
    %56 = vector.extract_strided_slice %45 {offsets = [0, 128], sizes = [16, 128], strides = [1, 1]} : vector<16x384xf32> to vector<16x128xf32>
    %57 = vector.extract_strided_slice %28 {offsets = [0, 128], sizes = [16, 128], strides = [1, 1]} : vector<16x512xf32> to vector<16x128xf32>
    %58 = arith.addf %56, %57 : vector<16x128xf32>
    %59 = vector.broadcast %8 : vector<1x128xf32> to vector<16x128xf32>
    %60 = arith.addf %58, %59 : vector<16x128xf32>
    %61 = arith.negf %60 : vector<16x128xf32>
    %62 = math.exp %61 : vector<16x128xf32>
    %cst_27 = arith.constant 1.000000e+00 : f32
    %63 = vector.broadcast %cst_27 : f32 to vector<16x128xf32>
    %64 = arith.addf %63, %62 : vector<16x128xf32>
    %65 = arith.divf %63, %64 : vector<16x128xf32>
    %66 = vector.extract_strided_slice %45 {offsets = [0, 256], sizes = [16, 128], strides = [1, 1]} : vector<16x384xf32> to vector<16x128xf32>
    %67 = vector.broadcast %10 : vector<1x128xf32> to vector<16x128xf32>
    %68 = arith.addf %66, %67 : vector<16x128xf32>
    %69 = vector.extract_strided_slice %28 {offsets = [0, 256], sizes = [16, 128], strides = [1, 1]} : vector<16x512xf32> to vector<16x128xf32>
    %70 = vector.broadcast %12 : vector<1x128xf32> to vector<16x128xf32>
    %71 = arith.addf %69, %70 : vector<16x128xf32>
    %72 = arith.mulf %55, %71 : vector<16x128xf32>
    %73 = arith.addf %68, %72 : vector<16x128xf32>
    %74 = math.tanh %73 : vector<16x128xf32>
    %cst_28 = arith.constant 1.000000e+00 : f32
    %75 = vector.broadcast %cst_28 : f32 to vector<16x128xf32>
    %76 = arith.subf %75, %65 : vector<16x128xf32>
    %77 = arith.mulf %76, %74 : vector<16x128xf32>
    %78 = arith.mulf %65, %15 : vector<16x128xf32>
    %79 = arith.addf %77, %78 : vector<16x128xf32>
    %c1_i32 = arith.constant 1 : i32
    %80 = arith.index_cast %c1_i32 : i32 to index
    %c0_29 = arith.constant 0 : index
    %c0_30 = arith.constant 0 : index
    %81 = vector.load %arg2[%80, %c0_29, %c0_30] : memref<8x16x128xf32, #tpu.memory_space<vmem>>, vector<1x16x128xf32>
    %82 = vector.shape_cast %81 : vector<1x16x128xf32> to vector<16x128xf32>
    %83 = arith.index_cast %c1_i32 : i32 to index
    %c0_31 = arith.constant 0 : index
    %c0_32 = arith.constant 0 : index
    %84 = vector.load %arg3[%83, %c0_31, %c0_32] : memref<8x16x1xf32, #tpu.memory_space<vmem>>, vector<1x16x1xf32>
    %85 = vector.shape_cast %84 : vector<1x16x1xf32> to vector<16x1xf32>
    %cst_33 = arith.constant 5.000000e-01 : f32
    %86 = vector.broadcast %cst_33 : f32 to vector<16x1xf32>
    %87 = arith.cmpf ogt, %85, %86 : vector<16x1xf32>
    %88 = arith.extui %87 : vector<16x1xi1> to vector<16x1xi32>
    %89 = arith.sitofp %88 : vector<16x1xi32> to vector<16x1xf32>
    %cst_34 = arith.constant dense<0.000000e+00> : vector<16x896xf32>
    %90 = tpu.matmul %82, %3, %cst_34 {dimension_numbers = #tpu.dot_dimension_numbers<[1], [0], [0], [1], [0, 0, 1, 1], [], []>} : vector<16x128xf32>, vector<128x896xf32>, vector<16x896xf32> -> vector<16x896xf32>
    %cst_35 = arith.constant dense<0.000000e+00> : vector<16x512xf32>
    %91 = tpu.matmul %79, %4, %cst_35 {dimension_numbers = #tpu.dot_dimension_numbers<[1], [0], [0], [1], [0, 0, 1, 1], [], []>} : vector<16x128xf32>, vector<128x512xf32>, vector<16x512xf32> -> vector<16x512xf32>
    %92 = vector.extract_strided_slice %90 {offsets = [0, 768], sizes = [16, 128], strides = [1, 1]} : vector<16x896xf32> to vector<16x128xf32>
    %93 = vector.extract_strided_slice %91 {offsets = [0, 384], sizes = [16, 128], strides = [1, 1]} : vector<16x512xf32> to vector<16x128xf32>
    %94 = arith.addf %92, %93 : vector<16x128xf32>
    %cst_36 = arith.constant dense<0.000000e+00> : vector<16xf32>
    %95 = vector.multi_reduction <add>, %94, %cst_36 [1] : vector<16x128xf32> to vector<16xf32>
    %96 = vector.shape_cast %95 : vector<16xf32> to vector<16x1xf32>
    %97 = vector.broadcast %13 : vector<1x1xf32> to vector<16x1xf32>
    %98 = arith.addf %96, %97 : vector<16x1xf32>
    %99 = vector.broadcast %c1_i32 : i32 to vector<16x8xi32>
    %100 = arith.cmpi eq, %14, %99 : vector<16x8xi32>
    %101 = vector.shape_cast %98 : vector<16x1xf32> to vector<16x1xf32>
    %102 = vector.broadcast %101 : vector<16x1xf32> to vector<16x8xf32>
    %103 = arith.select %100, %102, %40 : vector<16x8xi1>, vector<16x8xf32>
    %104 = vector.extract_strided_slice %90 {offsets = [0, 0], sizes = [16, 384], strides = [1, 1]} : vector<16x896xf32> to vector<16x384xf32>
    %105 = vector.extract_strided_slice %90 {offsets = [0, 384], sizes = [16, 384], strides = [1, 1]} : vector<16x896xf32> to vector<16x384xf32>
    %106 = vector.broadcast %89 : vector<16x1xf32> to vector<16x384xf32>
    %107 = arith.mulf %106, %105 : vector<16x384xf32>
    %108 = arith.addf %104, %107 : vector<16x384xf32>
    %109 = vector.extract_strided_slice %108 {offsets = [0, 0], sizes = [16, 128], strides = [1, 1]} : vector<16x384xf32> to vector<16x128xf32>
    %110 = vector.extract_strided_slice %91 {offsets = [0, 0], sizes = [16, 128], strides = [1, 1]} : vector<16x512xf32> to vector<16x128xf32>
    %111 = arith.addf %109, %110 : vector<16x128xf32>
    %112 = vector.broadcast %6 : vector<1x128xf32> to vector<16x128xf32>
    %113 = arith.addf %111, %112 : vector<16x128xf32>
    %114 = arith.negf %113 : vector<16x128xf32>
    %115 = math.exp %114 : vector<16x128xf32>
    %cst_37 = arith.constant 1.000000e+00 : f32
    %116 = vector.broadcast %cst_37 : f32 to vector<16x128xf32>
    %117 = arith.addf %116, %115 : vector<16x128xf32>
    %118 = arith.divf %116, %117 : vector<16x128xf32>
    %119 = vector.extract_strided_slice %108 {offsets = [0, 128], sizes = [16, 128], strides = [1, 1]} : vector<16x384xf32> to vector<16x128xf32>
    %120 = vector.extract_strided_slice %91 {offsets = [0, 128], sizes = [16, 128], strides = [1, 1]} : vector<16x512xf32> to vector<16x128xf32>
    %121 = arith.addf %119, %120 : vector<16x128xf32>
    %122 = vector.broadcast %8 : vector<1x128xf32> to vector<16x128xf32>
    %123 = arith.addf %121, %122 : vector<16x128xf32>
    %124 = arith.negf %123 : vector<16x128xf32>
    %125 = math.exp %124 : vector<16x128xf32>
    %cst_38 = arith.constant 1.000000e+00 : f32
    %126 = vector.broadcast %cst_38 : f32 to vector<16x128xf32>
    %127 = arith.addf %126, %125 : vector<16x128xf32>
    %128 = arith.divf %126, %127 : vector<16x128xf32>
    %129 = vector.extract_strided_slice %108 {offsets = [0, 256], sizes = [16, 128], strides = [1, 1]} : vector<16x384xf32> to vector<16x128xf32>
    %130 = vector.broadcast %10 : vector<1x128xf32> to vector<16x128xf32>
    %131 = arith.addf %129, %130 : vector<16x128xf32>
    %132 = vector.extract_strided_slice %91 {offsets = [0, 256], sizes = [16, 128], strides = [1, 1]} : vector<16x512xf32> to vector<16x128xf32>
    %133 = vector.broadcast %12 : vector<1x128xf32> to vector<16x128xf32>
    %134 = arith.addf %132, %133 : vector<16x128xf32>
    %135 = arith.mulf %118, %134 : vector<16x128xf32>
    %136 = arith.addf %131, %135 : vector<16x128xf32>
    %137 = math.tanh %136 : vector<16x128xf32>
    %cst_39 = arith.constant 1.000000e+00 : f32
    %138 = vector.broadcast %cst_39 : f32 to vector<16x128xf32>
    %139 = arith.subf %138, %128 : vector<16x128xf32>
    %140 = arith.mulf %139, %137 : vector<16x128xf32>
    %141 = arith.mulf %128, %79 : vector<16x128xf32>
    %142 = arith.addf %140, %141 : vector<16x128xf32>
    %c2_i32 = arith.constant 2 : i32
    %143 = arith.index_cast %c2_i32 : i32 to index
    %c0_40 = arith.constant 0 : index
    %c0_41 = arith.constant 0 : index
    %144 = vector.load %arg2[%143, %c0_40, %c0_41] : memref<8x16x128xf32, #tpu.memory_space<vmem>>, vector<1x16x128xf32>
    %145 = vector.shape_cast %144 : vector<1x16x128xf32> to vector<16x128xf32>
    %146 = arith.index_cast %c2_i32 : i32 to index
    %c0_42 = arith.constant 0 : index
    %c0_43 = arith.constant 0 : index
    %147 = vector.load %arg3[%146, %c0_42, %c0_43] : memref<8x16x1xf32, #tpu.memory_space<vmem>>, vector<1x16x1xf32>
    %148 = vector.shape_cast %147 : vector<1x16x1xf32> to vector<16x1xf32>
    %cst_44 = arith.constant 5.000000e-01 : f32
    %149 = vector.broadcast %cst_44 : f32 to vector<16x1xf32>
    %150 = arith.cmpf ogt, %148, %149 : vector<16x1xf32>
    %151 = arith.extui %150 : vector<16x1xi1> to vector<16x1xi32>
    %152 = arith.sitofp %151 : vector<16x1xi32> to vector<16x1xf32>
    %cst_45 = arith.constant dense<0.000000e+00> : vector<16x896xf32>
    %153 = tpu.matmul %145, %3, %cst_45 {dimension_numbers = #tpu.dot_dimension_numbers<[1], [0], [0], [1], [0, 0, 1, 1], [], []>} : vector<16x128xf32>, vector<128x896xf32>, vector<16x896xf32> -> vector<16x896xf32>
    %cst_46 = arith.constant dense<0.000000e+00> : vector<16x512xf32>
    %154 = tpu.matmul %142, %4, %cst_46 {dimension_numbers = #tpu.dot_dimension_numbers<[1], [0], [0], [1], [0, 0, 1, 1], [], []>} : vector<16x128xf32>, vector<128x512xf32>, vector<16x512xf32> -> vector<16x512xf32>
    %155 = vector.extract_strided_slice %153 {offsets = [0, 768], sizes = [16, 128], strides = [1, 1]} : vector<16x896xf32> to vector<16x128xf32>
    %156 = vector.extract_strided_slice %154 {offsets = [0, 384], sizes = [16, 128], strides = [1, 1]} : vector<16x512xf32> to vector<16x128xf32>
    %157 = arith.addf %155, %156 : vector<16x128xf32>
    %cst_47 = arith.constant dense<0.000000e+00> : vector<16xf32>
    %158 = vector.multi_reduction <add>, %157, %cst_47 [1] : vector<16x128xf32> to vector<16xf32>
    %159 = vector.shape_cast %158 : vector<16xf32> to vector<16x1xf32>
    %160 = vector.broadcast %13 : vector<1x1xf32> to vector<16x1xf32>
    %161 = arith.addf %159, %160 : vector<16x1xf32>
    %162 = vector.broadcast %c2_i32 : i32 to vector<16x8xi32>
    %163 = arith.cmpi eq, %14, %162 : vector<16x8xi32>
    %164 = vector.shape_cast %161 : vector<16x1xf32> to vector<16x1xf32>
    %165 = vector.broadcast %164 : vector<16x1xf32> to vector<16x8xf32>
    %166 = arith.select %163, %165, %103 : vector<16x8xi1>, vector<16x8xf32>
    %167 = vector.extract_strided_slice %153 {offsets = [0, 0], sizes = [16, 384], strides = [1, 1]} : vector<16x896xf32> to vector<16x384xf32>
    %168 = vector.extract_strided_slice %153 {offsets = [0, 384], sizes = [16, 384], strides = [1, 1]} : vector<16x896xf32> to vector<16x384xf32>
    %169 = vector.broadcast %152 : vector<16x1xf32> to vector<16x384xf32>
    %170 = arith.mulf %169, %168 : vector<16x384xf32>
    %171 = arith.addf %167, %170 : vector<16x384xf32>
    %172 = vector.extract_strided_slice %171 {offsets = [0, 0], sizes = [16, 128], strides = [1, 1]} : vector<16x384xf32> to vector<16x128xf32>
    %173 = vector.extract_strided_slice %154 {offsets = [0, 0], sizes = [16, 128], strides = [1, 1]} : vector<16x512xf32> to vector<16x128xf32>
    %174 = arith.addf %172, %173 : vector<16x128xf32>
    %175 = vector.broadcast %6 : vector<1x128xf32> to vector<16x128xf32>
    %176 = arith.addf %174, %175 : vector<16x128xf32>
    %177 = arith.negf %176 : vector<16x128xf32>
    %178 = math.exp %177 : vector<16x128xf32>
    %cst_48 = arith.constant 1.000000e+00 : f32
    %179 = vector.broadcast %cst_48 : f32 to vector<16x128xf32>
    %180 = arith.addf %179, %178 : vector<16x128xf32>
    %181 = arith.divf %179, %180 : vector<16x128xf32>
    %182 = vector.extract_strided_slice %171 {offsets = [0, 128], sizes = [16, 128], strides = [1, 1]} : vector<16x384xf32> to vector<16x128xf32>
    %183 = vector.extract_strided_slice %154 {offsets = [0, 128], sizes = [16, 128], strides = [1, 1]} : vector<16x512xf32> to vector<16x128xf32>
    %184 = arith.addf %182, %183 : vector<16x128xf32>
    %185 = vector.broadcast %8 : vector<1x128xf32> to vector<16x128xf32>
    %186 = arith.addf %184, %185 : vector<16x128xf32>
    %187 = arith.negf %186 : vector<16x128xf32>
    %188 = math.exp %187 : vector<16x128xf32>
    %cst_49 = arith.constant 1.000000e+00 : f32
    %189 = vector.broadcast %cst_49 : f32 to vector<16x128xf32>
    %190 = arith.addf %189, %188 : vector<16x128xf32>
    %191 = arith.divf %189, %190 : vector<16x128xf32>
    %192 = vector.extract_strided_slice %171 {offsets = [0, 256], sizes = [16, 128], strides = [1, 1]} : vector<16x384xf32> to vector<16x128xf32>
    %193 = vector.broadcast %10 : vector<1x128xf32> to vector<16x128xf32>
    %194 = arith.addf %192, %193 : vector<16x128xf32>
    %195 = vector.extract_strided_slice %154 {offsets = [0, 256], sizes = [16, 128], strides = [1, 1]} : vector<16x512xf32> to vector<16x128xf32>
    %196 = vector.broadcast %12 : vector<1x128xf32> to vector<16x128xf32>
    %197 = arith.addf %195, %196 : vector<16x128xf32>
    %198 = arith.mulf %181, %197 : vector<16x128xf32>
    %199 = arith.addf %194, %198 : vector<16x128xf32>
    %200 = math.tanh %199 : vector<16x128xf32>
    %cst_50 = arith.constant 1.000000e+00 : f32
    %201 = vector.broadcast %cst_50 : f32 to vector<16x128xf32>
    %202 = arith.subf %201, %191 : vector<16x128xf32>
    %203 = arith.mulf %202, %200 : vector<16x128xf32>
    %204 = arith.mulf %191, %142 : vector<16x128xf32>
    %205 = arith.addf %203, %204 : vector<16x128xf32>
    %c3_i32 = arith.constant 3 : i32
    %206 = arith.index_cast %c3_i32 : i32 to index
    %c0_51 = arith.constant 0 : index
    %c0_52 = arith.constant 0 : index
    %207 = vector.load %arg2[%206, %c0_51, %c0_52] : memref<8x16x128xf32, #tpu.memory_space<vmem>>, vector<1x16x128xf32>
    %208 = vector.shape_cast %207 : vector<1x16x128xf32> to vector<16x128xf32>
    %209 = arith.index_cast %c3_i32 : i32 to index
    %c0_53 = arith.constant 0 : index
    %c0_54 = arith.constant 0 : index
    %210 = vector.load %arg3[%209, %c0_53, %c0_54] : memref<8x16x1xf32, #tpu.memory_space<vmem>>, vector<1x16x1xf32>
    %211 = vector.shape_cast %210 : vector<1x16x1xf32> to vector<16x1xf32>
    %cst_55 = arith.constant 5.000000e-01 : f32
    %212 = vector.broadcast %cst_55 : f32 to vector<16x1xf32>
    %213 = arith.cmpf ogt, %211, %212 : vector<16x1xf32>
    %214 = arith.extui %213 : vector<16x1xi1> to vector<16x1xi32>
    %215 = arith.sitofp %214 : vector<16x1xi32> to vector<16x1xf32>
    %cst_56 = arith.constant dense<0.000000e+00> : vector<16x896xf32>
    %216 = tpu.matmul %208, %3, %cst_56 {dimension_numbers = #tpu.dot_dimension_numbers<[1], [0], [0], [1], [0, 0, 1, 1], [], []>} : vector<16x128xf32>, vector<128x896xf32>, vector<16x896xf32> -> vector<16x896xf32>
    %cst_57 = arith.constant dense<0.000000e+00> : vector<16x512xf32>
    %217 = tpu.matmul %205, %4, %cst_57 {dimension_numbers = #tpu.dot_dimension_numbers<[1], [0], [0], [1], [0, 0, 1, 1], [], []>} : vector<16x128xf32>, vector<128x512xf32>, vector<16x512xf32> -> vector<16x512xf32>
    %218 = vector.extract_strided_slice %216 {offsets = [0, 768], sizes = [16, 128], strides = [1, 1]} : vector<16x896xf32> to vector<16x128xf32>
    %219 = vector.extract_strided_slice %217 {offsets = [0, 384], sizes = [16, 128], strides = [1, 1]} : vector<16x512xf32> to vector<16x128xf32>
    %220 = arith.addf %218, %219 : vector<16x128xf32>
    %cst_58 = arith.constant dense<0.000000e+00> : vector<16xf32>
    %221 = vector.multi_reduction <add>, %220, %cst_58 [1] : vector<16x128xf32> to vector<16xf32>
    %222 = vector.shape_cast %221 : vector<16xf32> to vector<16x1xf32>
    %223 = vector.broadcast %13 : vector<1x1xf32> to vector<16x1xf32>
    %224 = arith.addf %222, %223 : vector<16x1xf32>
    %225 = vector.broadcast %c3_i32 : i32 to vector<16x8xi32>
    %226 = arith.cmpi eq, %14, %225 : vector<16x8xi32>
    %227 = vector.shape_cast %224 : vector<16x1xf32> to vector<16x1xf32>
    %228 = vector.broadcast %227 : vector<16x1xf32> to vector<16x8xf32>
    %229 = arith.select %226, %228, %166 : vector<16x8xi1>, vector<16x8xf32>
    %230 = vector.extract_strided_slice %216 {offsets = [0, 0], sizes = [16, 384], strides = [1, 1]} : vector<16x896xf32> to vector<16x384xf32>
    %231 = vector.extract_strided_slice %216 {offsets = [0, 384], sizes = [16, 384], strides = [1, 1]} : vector<16x896xf32> to vector<16x384xf32>
    %232 = vector.broadcast %215 : vector<16x1xf32> to vector<16x384xf32>
    %233 = arith.mulf %232, %231 : vector<16x384xf32>
    %234 = arith.addf %230, %233 : vector<16x384xf32>
    %235 = vector.extract_strided_slice %234 {offsets = [0, 0], sizes = [16, 128], strides = [1, 1]} : vector<16x384xf32> to vector<16x128xf32>
    %236 = vector.extract_strided_slice %217 {offsets = [0, 0], sizes = [16, 128], strides = [1, 1]} : vector<16x512xf32> to vector<16x128xf32>
    %237 = arith.addf %235, %236 : vector<16x128xf32>
    %238 = vector.broadcast %6 : vector<1x128xf32> to vector<16x128xf32>
    %239 = arith.addf %237, %238 : vector<16x128xf32>
    %240 = arith.negf %239 : vector<16x128xf32>
    %241 = math.exp %240 : vector<16x128xf32>
    %cst_59 = arith.constant 1.000000e+00 : f32
    %242 = vector.broadcast %cst_59 : f32 to vector<16x128xf32>
    %243 = arith.addf %242, %241 : vector<16x128xf32>
    %244 = arith.divf %242, %243 : vector<16x128xf32>
    %245 = vector.extract_strided_slice %234 {offsets = [0, 128], sizes = [16, 128], strides = [1, 1]} : vector<16x384xf32> to vector<16x128xf32>
    %246 = vector.extract_strided_slice %217 {offsets = [0, 128], sizes = [16, 128], strides = [1, 1]} : vector<16x512xf32> to vector<16x128xf32>
    %247 = arith.addf %245, %246 : vector<16x128xf32>
    %248 = vector.broadcast %8 : vector<1x128xf32> to vector<16x128xf32>
    %249 = arith.addf %247, %248 : vector<16x128xf32>
    %250 = arith.negf %249 : vector<16x128xf32>
    %251 = math.exp %250 : vector<16x128xf32>
    %cst_60 = arith.constant 1.000000e+00 : f32
    %252 = vector.broadcast %cst_60 : f32 to vector<16x128xf32>
    %253 = arith.addf %252, %251 : vector<16x128xf32>
    %254 = arith.divf %252, %253 : vector<16x128xf32>
    %255 = vector.extract_strided_slice %234 {offsets = [0, 256], sizes = [16, 128], strides = [1, 1]} : vector<16x384xf32> to vector<16x128xf32>
    %256 = vector.broadcast %10 : vector<1x128xf32> to vector<16x128xf32>
    %257 = arith.addf %255, %256 : vector<16x128xf32>
    %258 = vector.extract_strided_slice %217 {offsets = [0, 256], sizes = [16, 128], strides = [1, 1]} : vector<16x512xf32> to vector<16x128xf32>
    %259 = vector.broadcast %12 : vector<1x128xf32> to vector<16x128xf32>
    %260 = arith.addf %258, %259 : vector<16x128xf32>
    %261 = arith.mulf %244, %260 : vector<16x128xf32>
    %262 = arith.addf %257, %261 : vector<16x128xf32>
    %263 = math.tanh %262 : vector<16x128xf32>
    %cst_61 = arith.constant 1.000000e+00 : f32
    %264 = vector.broadcast %cst_61 : f32 to vector<16x128xf32>
    %265 = arith.subf %264, %254 : vector<16x128xf32>
    %266 = arith.mulf %265, %263 : vector<16x128xf32>
    %267 = arith.mulf %254, %205 : vector<16x128xf32>
    %268 = arith.addf %266, %267 : vector<16x128xf32>
    %c4_i32 = arith.constant 4 : i32
    %269 = arith.index_cast %c4_i32 : i32 to index
    %c0_62 = arith.constant 0 : index
    %c0_63 = arith.constant 0 : index
    %270 = vector.load %arg2[%269, %c0_62, %c0_63] : memref<8x16x128xf32, #tpu.memory_space<vmem>>, vector<1x16x128xf32>
    %271 = vector.shape_cast %270 : vector<1x16x128xf32> to vector<16x128xf32>
    %272 = arith.index_cast %c4_i32 : i32 to index
    %c0_64 = arith.constant 0 : index
    %c0_65 = arith.constant 0 : index
    %273 = vector.load %arg3[%272, %c0_64, %c0_65] : memref<8x16x1xf32, #tpu.memory_space<vmem>>, vector<1x16x1xf32>
    %274 = vector.shape_cast %273 : vector<1x16x1xf32> to vector<16x1xf32>
    %cst_66 = arith.constant 5.000000e-01 : f32
    %275 = vector.broadcast %cst_66 : f32 to vector<16x1xf32>
    %276 = arith.cmpf ogt, %274, %275 : vector<16x1xf32>
    %277 = arith.extui %276 : vector<16x1xi1> to vector<16x1xi32>
    %278 = arith.sitofp %277 : vector<16x1xi32> to vector<16x1xf32>
    %cst_67 = arith.constant dense<0.000000e+00> : vector<16x896xf32>
    %279 = tpu.matmul %271, %3, %cst_67 {dimension_numbers = #tpu.dot_dimension_numbers<[1], [0], [0], [1], [0, 0, 1, 1], [], []>} : vector<16x128xf32>, vector<128x896xf32>, vector<16x896xf32> -> vector<16x896xf32>
    %cst_68 = arith.constant dense<0.000000e+00> : vector<16x512xf32>
    %280 = tpu.matmul %268, %4, %cst_68 {dimension_numbers = #tpu.dot_dimension_numbers<[1], [0], [0], [1], [0, 0, 1, 1], [], []>} : vector<16x128xf32>, vector<128x512xf32>, vector<16x512xf32> -> vector<16x512xf32>
    %281 = vector.extract_strided_slice %279 {offsets = [0, 768], sizes = [16, 128], strides = [1, 1]} : vector<16x896xf32> to vector<16x128xf32>
    %282 = vector.extract_strided_slice %280 {offsets = [0, 384], sizes = [16, 128], strides = [1, 1]} : vector<16x512xf32> to vector<16x128xf32>
    %283 = arith.addf %281, %282 : vector<16x128xf32>
    %cst_69 = arith.constant dense<0.000000e+00> : vector<16xf32>
    %284 = vector.multi_reduction <add>, %283, %cst_69 [1] : vector<16x128xf32> to vector<16xf32>
    %285 = vector.shape_cast %284 : vector<16xf32> to vector<16x1xf32>
    %286 = vector.broadcast %13 : vector<1x1xf32> to vector<16x1xf32>
    %287 = arith.addf %285, %286 : vector<16x1xf32>
    %288 = vector.broadcast %c4_i32 : i32 to vector<16x8xi32>
    %289 = arith.cmpi eq, %14, %288 : vector<16x8xi32>
    %290 = vector.shape_cast %287 : vector<16x1xf32> to vector<16x1xf32>
    %291 = vector.broadcast %290 : vector<16x1xf32> to vector<16x8xf32>
    %292 = arith.select %289, %291, %229 : vector<16x8xi1>, vector<16x8xf32>
    %293 = vector.extract_strided_slice %279 {offsets = [0, 0], sizes = [16, 384], strides = [1, 1]} : vector<16x896xf32> to vector<16x384xf32>
    %294 = vector.extract_strided_slice %279 {offsets = [0, 384], sizes = [16, 384], strides = [1, 1]} : vector<16x896xf32> to vector<16x384xf32>
    %295 = vector.broadcast %278 : vector<16x1xf32> to vector<16x384xf32>
    %296 = arith.mulf %295, %294 : vector<16x384xf32>
    %297 = arith.addf %293, %296 : vector<16x384xf32>
    %298 = vector.extract_strided_slice %297 {offsets = [0, 0], sizes = [16, 128], strides = [1, 1]} : vector<16x384xf32> to vector<16x128xf32>
    %299 = vector.extract_strided_slice %280 {offsets = [0, 0], sizes = [16, 128], strides = [1, 1]} : vector<16x512xf32> to vector<16x128xf32>
    %300 = arith.addf %298, %299 : vector<16x128xf32>
    %301 = vector.broadcast %6 : vector<1x128xf32> to vector<16x128xf32>
    %302 = arith.addf %300, %301 : vector<16x128xf32>
    %303 = arith.negf %302 : vector<16x128xf32>
    %304 = math.exp %303 : vector<16x128xf32>
    %cst_70 = arith.constant 1.000000e+00 : f32
    %305 = vector.broadcast %cst_70 : f32 to vector<16x128xf32>
    %306 = arith.addf %305, %304 : vector<16x128xf32>
    %307 = arith.divf %305, %306 : vector<16x128xf32>
    %308 = vector.extract_strided_slice %297 {offsets = [0, 128], sizes = [16, 128], strides = [1, 1]} : vector<16x384xf32> to vector<16x128xf32>
    %309 = vector.extract_strided_slice %280 {offsets = [0, 128], sizes = [16, 128], strides = [1, 1]} : vector<16x512xf32> to vector<16x128xf32>
    %310 = arith.addf %308, %309 : vector<16x128xf32>
    %311 = vector.broadcast %8 : vector<1x128xf32> to vector<16x128xf32>
    %312 = arith.addf %310, %311 : vector<16x128xf32>
    %313 = arith.negf %312 : vector<16x128xf32>
    %314 = math.exp %313 : vector<16x128xf32>
    %cst_71 = arith.constant 1.000000e+00 : f32
    %315 = vector.broadcast %cst_71 : f32 to vector<16x128xf32>
    %316 = arith.addf %315, %314 : vector<16x128xf32>
    %317 = arith.divf %315, %316 : vector<16x128xf32>
    %318 = vector.extract_strided_slice %297 {offsets = [0, 256], sizes = [16, 128], strides = [1, 1]} : vector<16x384xf32> to vector<16x128xf32>
    %319 = vector.broadcast %10 : vector<1x128xf32> to vector<16x128xf32>
    %320 = arith.addf %318, %319 : vector<16x128xf32>
    %321 = vector.extract_strided_slice %280 {offsets = [0, 256], sizes = [16, 128], strides = [1, 1]} : vector<16x512xf32> to vector<16x128xf32>
    %322 = vector.broadcast %12 : vector<1x128xf32> to vector<16x128xf32>
    %323 = arith.addf %321, %322 : vector<16x128xf32>
    %324 = arith.mulf %307, %323 : vector<16x128xf32>
    %325 = arith.addf %320, %324 : vector<16x128xf32>
    %326 = math.tanh %325 : vector<16x128xf32>
    %cst_72 = arith.constant 1.000000e+00 : f32
    %327 = vector.broadcast %cst_72 : f32 to vector<16x128xf32>
    %328 = arith.subf %327, %317 : vector<16x128xf32>
    %329 = arith.mulf %328, %326 : vector<16x128xf32>
    %330 = arith.mulf %317, %268 : vector<16x128xf32>
    %331 = arith.addf %329, %330 : vector<16x128xf32>
    %c5_i32 = arith.constant 5 : i32
    %332 = arith.index_cast %c5_i32 : i32 to index
    %c0_73 = arith.constant 0 : index
    %c0_74 = arith.constant 0 : index
    %333 = vector.load %arg2[%332, %c0_73, %c0_74] : memref<8x16x128xf32, #tpu.memory_space<vmem>>, vector<1x16x128xf32>
    %334 = vector.shape_cast %333 : vector<1x16x128xf32> to vector<16x128xf32>
    %335 = arith.index_cast %c5_i32 : i32 to index
    %c0_75 = arith.constant 0 : index
    %c0_76 = arith.constant 0 : index
    %336 = vector.load %arg3[%335, %c0_75, %c0_76] : memref<8x16x1xf32, #tpu.memory_space<vmem>>, vector<1x16x1xf32>
    %337 = vector.shape_cast %336 : vector<1x16x1xf32> to vector<16x1xf32>
    %cst_77 = arith.constant 5.000000e-01 : f32
    %338 = vector.broadcast %cst_77 : f32 to vector<16x1xf32>
    %339 = arith.cmpf ogt, %337, %338 : vector<16x1xf32>
    %340 = arith.extui %339 : vector<16x1xi1> to vector<16x1xi32>
    %341 = arith.sitofp %340 : vector<16x1xi32> to vector<16x1xf32>
    %cst_78 = arith.constant dense<0.000000e+00> : vector<16x896xf32>
    %342 = tpu.matmul %334, %3, %cst_78 {dimension_numbers = #tpu.dot_dimension_numbers<[1], [0], [0], [1], [0, 0, 1, 1], [], []>} : vector<16x128xf32>, vector<128x896xf32>, vector<16x896xf32> -> vector<16x896xf32>
    %cst_79 = arith.constant dense<0.000000e+00> : vector<16x512xf32>
    %343 = tpu.matmul %331, %4, %cst_79 {dimension_numbers = #tpu.dot_dimension_numbers<[1], [0], [0], [1], [0, 0, 1, 1], [], []>} : vector<16x128xf32>, vector<128x512xf32>, vector<16x512xf32> -> vector<16x512xf32>
    %344 = vector.extract_strided_slice %342 {offsets = [0, 768], sizes = [16, 128], strides = [1, 1]} : vector<16x896xf32> to vector<16x128xf32>
    %345 = vector.extract_strided_slice %343 {offsets = [0, 384], sizes = [16, 128], strides = [1, 1]} : vector<16x512xf32> to vector<16x128xf32>
    %346 = arith.addf %344, %345 : vector<16x128xf32>
    %cst_80 = arith.constant dense<0.000000e+00> : vector<16xf32>
    %347 = vector.multi_reduction <add>, %346, %cst_80 [1] : vector<16x128xf32> to vector<16xf32>
    %348 = vector.shape_cast %347 : vector<16xf32> to vector<16x1xf32>
    %349 = vector.broadcast %13 : vector<1x1xf32> to vector<16x1xf32>
    %350 = arith.addf %348, %349 : vector<16x1xf32>
    %351 = vector.broadcast %c5_i32 : i32 to vector<16x8xi32>
    %352 = arith.cmpi eq, %14, %351 : vector<16x8xi32>
    %353 = vector.shape_cast %350 : vector<16x1xf32> to vector<16x1xf32>
    %354 = vector.broadcast %353 : vector<16x1xf32> to vector<16x8xf32>
    %355 = arith.select %352, %354, %292 : vector<16x8xi1>, vector<16x8xf32>
    %356 = vector.extract_strided_slice %342 {offsets = [0, 0], sizes = [16, 384], strides = [1, 1]} : vector<16x896xf32> to vector<16x384xf32>
    %357 = vector.extract_strided_slice %342 {offsets = [0, 384], sizes = [16, 384], strides = [1, 1]} : vector<16x896xf32> to vector<16x384xf32>
    %358 = vector.broadcast %341 : vector<16x1xf32> to vector<16x384xf32>
    %359 = arith.mulf %358, %357 : vector<16x384xf32>
    %360 = arith.addf %356, %359 : vector<16x384xf32>
    %361 = vector.extract_strided_slice %360 {offsets = [0, 0], sizes = [16, 128], strides = [1, 1]} : vector<16x384xf32> to vector<16x128xf32>
    %362 = vector.extract_strided_slice %343 {offsets = [0, 0], sizes = [16, 128], strides = [1, 1]} : vector<16x512xf32> to vector<16x128xf32>
    %363 = arith.addf %361, %362 : vector<16x128xf32>
    %364 = vector.broadcast %6 : vector<1x128xf32> to vector<16x128xf32>
    %365 = arith.addf %363, %364 : vector<16x128xf32>
    %366 = arith.negf %365 : vector<16x128xf32>
    %367 = math.exp %366 : vector<16x128xf32>
    %cst_81 = arith.constant 1.000000e+00 : f32
    %368 = vector.broadcast %cst_81 : f32 to vector<16x128xf32>
    %369 = arith.addf %368, %367 : vector<16x128xf32>
    %370 = arith.divf %368, %369 : vector<16x128xf32>
    %371 = vector.extract_strided_slice %360 {offsets = [0, 128], sizes = [16, 128], strides = [1, 1]} : vector<16x384xf32> to vector<16x128xf32>
    %372 = vector.extract_strided_slice %343 {offsets = [0, 128], sizes = [16, 128], strides = [1, 1]} : vector<16x512xf32> to vector<16x128xf32>
    %373 = arith.addf %371, %372 : vector<16x128xf32>
    %374 = vector.broadcast %8 : vector<1x128xf32> to vector<16x128xf32>
    %375 = arith.addf %373, %374 : vector<16x128xf32>
    %376 = arith.negf %375 : vector<16x128xf32>
    %377 = math.exp %376 : vector<16x128xf32>
    %cst_82 = arith.constant 1.000000e+00 : f32
    %378 = vector.broadcast %cst_82 : f32 to vector<16x128xf32>
    %379 = arith.addf %378, %377 : vector<16x128xf32>
    %380 = arith.divf %378, %379 : vector<16x128xf32>
    %381 = vector.extract_strided_slice %360 {offsets = [0, 256], sizes = [16, 128], strides = [1, 1]} : vector<16x384xf32> to vector<16x128xf32>
    %382 = vector.broadcast %10 : vector<1x128xf32> to vector<16x128xf32>
    %383 = arith.addf %381, %382 : vector<16x128xf32>
    %384 = vector.extract_strided_slice %343 {offsets = [0, 256], sizes = [16, 128], strides = [1, 1]} : vector<16x512xf32> to vector<16x128xf32>
    %385 = vector.broadcast %12 : vector<1x128xf32> to vector<16x128xf32>
    %386 = arith.addf %384, %385 : vector<16x128xf32>
    %387 = arith.mulf %370, %386 : vector<16x128xf32>
    %388 = arith.addf %383, %387 : vector<16x128xf32>
    %389 = math.tanh %388 : vector<16x128xf32>
    %cst_83 = arith.constant 1.000000e+00 : f32
    %390 = vector.broadcast %cst_83 : f32 to vector<16x128xf32>
    %391 = arith.subf %390, %380 : vector<16x128xf32>
    %392 = arith.mulf %391, %389 : vector<16x128xf32>
    %393 = arith.mulf %380, %331 : vector<16x128xf32>
    %394 = arith.addf %392, %393 : vector<16x128xf32>
    %c6_i32 = arith.constant 6 : i32
    %395 = arith.index_cast %c6_i32 : i32 to index
    %c0_84 = arith.constant 0 : index
    %c0_85 = arith.constant 0 : index
    %396 = vector.load %arg2[%395, %c0_84, %c0_85] : memref<8x16x128xf32, #tpu.memory_space<vmem>>, vector<1x16x128xf32>
    %397 = vector.shape_cast %396 : vector<1x16x128xf32> to vector<16x128xf32>
    %398 = arith.index_cast %c6_i32 : i32 to index
    %c0_86 = arith.constant 0 : index
    %c0_87 = arith.constant 0 : index
    %399 = vector.load %arg3[%398, %c0_86, %c0_87] : memref<8x16x1xf32, #tpu.memory_space<vmem>>, vector<1x16x1xf32>
    %400 = vector.shape_cast %399 : vector<1x16x1xf32> to vector<16x1xf32>
    %cst_88 = arith.constant 5.000000e-01 : f32
    %401 = vector.broadcast %cst_88 : f32 to vector<16x1xf32>
    %402 = arith.cmpf ogt, %400, %401 : vector<16x1xf32>
    %403 = arith.extui %402 : vector<16x1xi1> to vector<16x1xi32>
    %404 = arith.sitofp %403 : vector<16x1xi32> to vector<16x1xf32>
    %cst_89 = arith.constant dense<0.000000e+00> : vector<16x896xf32>
    %405 = tpu.matmul %397, %3, %cst_89 {dimension_numbers = #tpu.dot_dimension_numbers<[1], [0], [0], [1], [0, 0, 1, 1], [], []>} : vector<16x128xf32>, vector<128x896xf32>, vector<16x896xf32> -> vector<16x896xf32>
    %cst_90 = arith.constant dense<0.000000e+00> : vector<16x512xf32>
    %406 = tpu.matmul %394, %4, %cst_90 {dimension_numbers = #tpu.dot_dimension_numbers<[1], [0], [0], [1], [0, 0, 1, 1], [], []>} : vector<16x128xf32>, vector<128x512xf32>, vector<16x512xf32> -> vector<16x512xf32>
    %407 = vector.extract_strided_slice %405 {offsets = [0, 768], sizes = [16, 128], strides = [1, 1]} : vector<16x896xf32> to vector<16x128xf32>
    %408 = vector.extract_strided_slice %406 {offsets = [0, 384], sizes = [16, 128], strides = [1, 1]} : vector<16x512xf32> to vector<16x128xf32>
    %409 = arith.addf %407, %408 : vector<16x128xf32>
    %cst_91 = arith.constant dense<0.000000e+00> : vector<16xf32>
    %410 = vector.multi_reduction <add>, %409, %cst_91 [1] : vector<16x128xf32> to vector<16xf32>
    %411 = vector.shape_cast %410 : vector<16xf32> to vector<16x1xf32>
    %412 = vector.broadcast %13 : vector<1x1xf32> to vector<16x1xf32>
    %413 = arith.addf %411, %412 : vector<16x1xf32>
    %414 = vector.broadcast %c6_i32 : i32 to vector<16x8xi32>
    %415 = arith.cmpi eq, %14, %414 : vector<16x8xi32>
    %416 = vector.shape_cast %413 : vector<16x1xf32> to vector<16x1xf32>
    %417 = vector.broadcast %416 : vector<16x1xf32> to vector<16x8xf32>
    %418 = arith.select %415, %417, %355 : vector<16x8xi1>, vector<16x8xf32>
    %419 = vector.extract_strided_slice %405 {offsets = [0, 0], sizes = [16, 384], strides = [1, 1]} : vector<16x896xf32> to vector<16x384xf32>
    %420 = vector.extract_strided_slice %405 {offsets = [0, 384], sizes = [16, 384], strides = [1, 1]} : vector<16x896xf32> to vector<16x384xf32>
    %421 = vector.broadcast %404 : vector<16x1xf32> to vector<16x384xf32>
    %422 = arith.mulf %421, %420 : vector<16x384xf32>
    %423 = arith.addf %419, %422 : vector<16x384xf32>
    %424 = vector.extract_strided_slice %423 {offsets = [0, 0], sizes = [16, 128], strides = [1, 1]} : vector<16x384xf32> to vector<16x128xf32>
    %425 = vector.extract_strided_slice %406 {offsets = [0, 0], sizes = [16, 128], strides = [1, 1]} : vector<16x512xf32> to vector<16x128xf32>
    %426 = arith.addf %424, %425 : vector<16x128xf32>
    %427 = vector.broadcast %6 : vector<1x128xf32> to vector<16x128xf32>
    %428 = arith.addf %426, %427 : vector<16x128xf32>
    %429 = arith.negf %428 : vector<16x128xf32>
    %430 = math.exp %429 : vector<16x128xf32>
    %cst_92 = arith.constant 1.000000e+00 : f32
    %431 = vector.broadcast %cst_92 : f32 to vector<16x128xf32>
    %432 = arith.addf %431, %430 : vector<16x128xf32>
    %433 = arith.divf %431, %432 : vector<16x128xf32>
    %434 = vector.extract_strided_slice %423 {offsets = [0, 128], sizes = [16, 128], strides = [1, 1]} : vector<16x384xf32> to vector<16x128xf32>
    %435 = vector.extract_strided_slice %406 {offsets = [0, 128], sizes = [16, 128], strides = [1, 1]} : vector<16x512xf32> to vector<16x128xf32>
    %436 = arith.addf %434, %435 : vector<16x128xf32>
    %437 = vector.broadcast %8 : vector<1x128xf32> to vector<16x128xf32>
    %438 = arith.addf %436, %437 : vector<16x128xf32>
    %439 = arith.negf %438 : vector<16x128xf32>
    %440 = math.exp %439 : vector<16x128xf32>
    %cst_93 = arith.constant 1.000000e+00 : f32
    %441 = vector.broadcast %cst_93 : f32 to vector<16x128xf32>
    %442 = arith.addf %441, %440 : vector<16x128xf32>
    %443 = arith.divf %441, %442 : vector<16x128xf32>
    %444 = vector.extract_strided_slice %423 {offsets = [0, 256], sizes = [16, 128], strides = [1, 1]} : vector<16x384xf32> to vector<16x128xf32>
    %445 = vector.broadcast %10 : vector<1x128xf32> to vector<16x128xf32>
    %446 = arith.addf %444, %445 : vector<16x128xf32>
    %447 = vector.extract_strided_slice %406 {offsets = [0, 256], sizes = [16, 128], strides = [1, 1]} : vector<16x512xf32> to vector<16x128xf32>
    %448 = vector.broadcast %12 : vector<1x128xf32> to vector<16x128xf32>
    %449 = arith.addf %447, %448 : vector<16x128xf32>
    %450 = arith.mulf %433, %449 : vector<16x128xf32>
    %451 = arith.addf %446, %450 : vector<16x128xf32>
    %452 = math.tanh %451 : vector<16x128xf32>
    %cst_94 = arith.constant 1.000000e+00 : f32
    %453 = vector.broadcast %cst_94 : f32 to vector<16x128xf32>
    %454 = arith.subf %453, %443 : vector<16x128xf32>
    %455 = arith.mulf %454, %452 : vector<16x128xf32>
    %456 = arith.mulf %443, %394 : vector<16x128xf32>
    %457 = arith.addf %455, %456 : vector<16x128xf32>
    %c7_i32 = arith.constant 7 : i32
    %458 = arith.index_cast %c7_i32 : i32 to index
    %c0_95 = arith.constant 0 : index
    %c0_96 = arith.constant 0 : index
    %459 = vector.load %arg2[%458, %c0_95, %c0_96] : memref<8x16x128xf32, #tpu.memory_space<vmem>>, vector<1x16x128xf32>
    %460 = vector.shape_cast %459 : vector<1x16x128xf32> to vector<16x128xf32>
    %461 = arith.index_cast %c7_i32 : i32 to index
    %c0_97 = arith.constant 0 : index
    %c0_98 = arith.constant 0 : index
    %462 = vector.load %arg3[%461, %c0_97, %c0_98] : memref<8x16x1xf32, #tpu.memory_space<vmem>>, vector<1x16x1xf32>
    %463 = vector.shape_cast %462 : vector<1x16x1xf32> to vector<16x1xf32>
    %cst_99 = arith.constant 5.000000e-01 : f32
    %464 = vector.broadcast %cst_99 : f32 to vector<16x1xf32>
    %465 = arith.cmpf ogt, %463, %464 : vector<16x1xf32>
    %466 = arith.extui %465 : vector<16x1xi1> to vector<16x1xi32>
    %467 = arith.sitofp %466 : vector<16x1xi32> to vector<16x1xf32>
    %cst_100 = arith.constant dense<0.000000e+00> : vector<16x896xf32>
    %468 = tpu.matmul %460, %3, %cst_100 {dimension_numbers = #tpu.dot_dimension_numbers<[1], [0], [0], [1], [0, 0, 1, 1], [], []>} : vector<16x128xf32>, vector<128x896xf32>, vector<16x896xf32> -> vector<16x896xf32>
    %cst_101 = arith.constant dense<0.000000e+00> : vector<16x512xf32>
    %469 = tpu.matmul %457, %4, %cst_101 {dimension_numbers = #tpu.dot_dimension_numbers<[1], [0], [0], [1], [0, 0, 1, 1], [], []>} : vector<16x128xf32>, vector<128x512xf32>, vector<16x512xf32> -> vector<16x512xf32>
    %470 = vector.extract_strided_slice %468 {offsets = [0, 768], sizes = [16, 128], strides = [1, 1]} : vector<16x896xf32> to vector<16x128xf32>
    %471 = vector.extract_strided_slice %469 {offsets = [0, 384], sizes = [16, 128], strides = [1, 1]} : vector<16x512xf32> to vector<16x128xf32>
    %472 = arith.addf %470, %471 : vector<16x128xf32>
    %cst_102 = arith.constant dense<0.000000e+00> : vector<16xf32>
    %473 = vector.multi_reduction <add>, %472, %cst_102 [1] : vector<16x128xf32> to vector<16xf32>
    %474 = vector.shape_cast %473 : vector<16xf32> to vector<16x1xf32>
    %475 = vector.broadcast %13 : vector<1x1xf32> to vector<16x1xf32>
    %476 = arith.addf %474, %475 : vector<16x1xf32>
    %477 = vector.broadcast %c7_i32 : i32 to vector<16x8xi32>
    %478 = arith.cmpi eq, %14, %477 : vector<16x8xi32>
    %479 = vector.shape_cast %476 : vector<16x1xf32> to vector<16x1xf32>
    %480 = vector.broadcast %479 : vector<16x1xf32> to vector<16x8xf32>
    %481 = arith.select %478, %480, %418 : vector<16x8xi1>, vector<16x8xf32>
    %482 = vector.extract_strided_slice %468 {offsets = [0, 0], sizes = [16, 384], strides = [1, 1]} : vector<16x896xf32> to vector<16x384xf32>
    %483 = vector.extract_strided_slice %468 {offsets = [0, 384], sizes = [16, 384], strides = [1, 1]} : vector<16x896xf32> to vector<16x384xf32>
    %484 = vector.broadcast %467 : vector<16x1xf32> to vector<16x384xf32>
    %485 = arith.mulf %484, %483 : vector<16x384xf32>
    %486 = arith.addf %482, %485 : vector<16x384xf32>
    %487 = vector.extract_strided_slice %486 {offsets = [0, 0], sizes = [16, 128], strides = [1, 1]} : vector<16x384xf32> to vector<16x128xf32>
    %488 = vector.extract_strided_slice %469 {offsets = [0, 0], sizes = [16, 128], strides = [1, 1]} : vector<16x512xf32> to vector<16x128xf32>
    %489 = arith.addf %487, %488 : vector<16x128xf32>
    %490 = vector.broadcast %6 : vector<1x128xf32> to vector<16x128xf32>
    %491 = arith.addf %489, %490 : vector<16x128xf32>
    %492 = arith.negf %491 : vector<16x128xf32>
    %493 = math.exp %492 : vector<16x128xf32>
    %cst_103 = arith.constant 1.000000e+00 : f32
    %494 = vector.broadcast %cst_103 : f32 to vector<16x128xf32>
    %495 = arith.addf %494, %493 : vector<16x128xf32>
    %496 = arith.divf %494, %495 : vector<16x128xf32>
    %497 = vector.extract_strided_slice %486 {offsets = [0, 128], sizes = [16, 128], strides = [1, 1]} : vector<16x384xf32> to vector<16x128xf32>
    %498 = vector.extract_strided_slice %469 {offsets = [0, 128], sizes = [16, 128], strides = [1, 1]} : vector<16x512xf32> to vector<16x128xf32>
    %499 = arith.addf %497, %498 : vector<16x128xf32>
    %500 = vector.broadcast %8 : vector<1x128xf32> to vector<16x128xf32>
    %501 = arith.addf %499, %500 : vector<16x128xf32>
    %502 = arith.negf %501 : vector<16x128xf32>
    %503 = math.exp %502 : vector<16x128xf32>
    %cst_104 = arith.constant 1.000000e+00 : f32
    %504 = vector.broadcast %cst_104 : f32 to vector<16x128xf32>
    %505 = arith.addf %504, %503 : vector<16x128xf32>
    %506 = arith.divf %504, %505 : vector<16x128xf32>
    %507 = vector.extract_strided_slice %486 {offsets = [0, 256], sizes = [16, 128], strides = [1, 1]} : vector<16x384xf32> to vector<16x128xf32>
    %508 = vector.broadcast %10 : vector<1x128xf32> to vector<16x128xf32>
    %509 = arith.addf %507, %508 : vector<16x128xf32>
    %510 = vector.extract_strided_slice %469 {offsets = [0, 256], sizes = [16, 128], strides = [1, 1]} : vector<16x512xf32> to vector<16x128xf32>
    %511 = vector.broadcast %12 : vector<1x128xf32> to vector<16x128xf32>
    %512 = arith.addf %510, %511 : vector<16x128xf32>
    %513 = arith.mulf %496, %512 : vector<16x128xf32>
    %514 = arith.addf %509, %513 : vector<16x128xf32>
    %515 = math.tanh %514 : vector<16x128xf32>
    %cst_105 = arith.constant 1.000000e+00 : f32
    %516 = vector.broadcast %cst_105 : f32 to vector<16x128xf32>
    %517 = arith.subf %516, %506 : vector<16x128xf32>
    %518 = arith.mulf %517, %515 : vector<16x128xf32>
    %519 = arith.mulf %506, %457 : vector<16x128xf32>
    %520 = arith.addf %518, %519 : vector<16x128xf32>
    %c8_i32 = arith.constant 8 : i32
    %c0_106 = arith.constant 0 : index
    %c0_107 = arith.constant 0 : index
    %521 = vector.load %arg10[%c0_106, %c0_107] : memref<16x128xf32, #tpu.memory_space<vmem>>, vector<16x128xf32>
    tpu.vector_store %arg10[%c0_106, %c0_107], %520 {strides = array<i32>} : memref<16x128xf32, #tpu.memory_space<vmem>>, vector<16x128xf32>,
    %c0_108 = arith.constant 0 : index
    %c0_109 = arith.constant 0 : index
    %c0_110 = arith.constant 0 : index
    %522 = vector.load %arg9[%c0_108, %c0_109, %c0_110] : memref<1x16x8xf32, #tpu.memory_space<vmem>>, vector<1x16x8xf32>
    %523 = vector.shape_cast %522 : vector<1x16x8xf32> to vector<16x8xf32>
    %524 = vector.shape_cast %481 : vector<16x8xf32> to vector<1x16x8xf32>
    tpu.vector_store %arg9[%c0_108, %c0_109, %c0_110], %524 {strides = array<i32>} : memref<1x16x8xf32, #tpu.memory_space<vmem>>, vector<1x16x8xf32>,
    return
  }
  func.func @transform_0(%arg0: i32, %arg1: i32) -> (i32, i32, i32) {
    %c0_i32 = arith.constant 0 : i32
    %c0_i32_0 = arith.constant 0 : i32
    return %arg1, %arg0, %c0_i32 : i32, i32, i32
  }
  func.func @transform_1(%arg0: i32, %arg1: i32) -> (i32, i32, i32) {
    %c0_i32 = arith.constant 0 : i32
    %c0_i32_0 = arith.constant 0 : i32
    return %arg1, %arg0, %c0_i32 : i32, i32, i32
  }
  func.func @transform_2(%arg0: i32, %arg1: i32) -> (i32, i32) {
    %c0_i32 = arith.constant 0 : i32
    %c0_i32_0 = arith.constant 0 : i32
    return %arg0, %c0_i32 : i32, i32
  }
  func.func @transform_3(%arg0: i32, %arg1: i32) -> (i32, i32) {
    %c0_i32 = arith.constant 0 : i32
    %c0_i32_0 = arith.constant 0 : i32
    %c0_i32_1 = arith.constant 0 : i32
    return %c0_i32, %c0_i32_0 : i32, i32
  }
  func.func @transform_4(%arg0: i32, %arg1: i32) -> (i32, i32) {
    %c0_i32 = arith.constant 0 : i32
    %c0_i32_0 = arith.constant 0 : i32
    %c0_i32_1 = arith.constant 0 : i32
    return %c0_i32, %c0_i32_0 : i32, i32
  }
  func.func @transform_5(%arg0: i32, %arg1: i32) -> (i32, i32, i32) {
    %c0_i32 = arith.constant 0 : i32
    %c0_i32_0 = arith.constant 0 : i32
    %c0_i32_1 = arith.constant 0 : i32
    %c0_i32_2 = arith.constant 0 : i32
    return %c0_i32, %c0_i32_0, %c0_i32_1 : i32, i32, i32
  }
  func.func @transform_6(%arg0: i32, %arg1: i32) -> (i32, i32) {
    %c0_i32 = arith.constant 0 : i32
    %c0_i32_0 = arith.constant 0 : i32
    %c0_i32_1 = arith.constant 0 : i32
    return %c0_i32, %c0_i32_0 : i32, i32
  }
  func.func @transform_7(%arg0: i32, %arg1: i32) -> (i32, i32, i32) {
    %c0_i32 = arith.constant 0 : i32
    %c0_i32_0 = arith.constant 0 : i32
    return %arg1, %arg0, %c0_i32 : i32, i32, i32
  }
  func.func @transform_8(%arg0: i32, %arg1: i32) -> (i32, i32) {
    %c0_i32 = arith.constant 0 : i32
    %c0_i32_0 = arith.constant 0 : i32
    return %arg0, %c0_i32 : i32, i32
  }
}

</mosaic_0001>

<bundles_post_ra>
// kernel: tpu_custom_call.1
= control target key start
LH: loop header
LB: loop body
LE: loop exit
PB: predicated region body
PF: predicated region fallthrough
CT: control target
= control target key end

     0   :  { %s8300_s0 = inlined_call_operand.vmem [shape: f32[8,16,128], index: 0, kind: input, shape index: {}]   ;;  %s8301_s1 = inlined_call_operand.vmem [shape: f32[8,16,1], index: 1, kind: input, shape index: {}]   ;;  %s8302_s2 = inlined_call_operand.hbm [shape: f32[16,128], index: 2, kind: input, shape index: {}]   ;;  %s8303_s3 = inlined_call_operand.hbm [shape: f32[128,896], index: 3, kind: input, shape index: {}]   ;;  %s8304_s4 = inlined_call_operand.hbm [shape: f32[128,512], index: 4, kind: input, shape index: {}]   ;;  %s8305_s5 = inlined_call_operand.vmem [shape: f32[4,1,128], index: 5, kind: input, shape index: {}]   ;;  %s8306_s6 = inlined_call_operand.<no memory space> [shape: f32[1,1], index: 6, kind: input, shape index: {}]   ;;  %s8307_s7 = inlined_call_operand.vmem [shape: f32[1,16,8], index: 7, kind: output, shape index: {0}]   ;;  %s8308_s8 = inlined_call_operand.hbm [shape: f32[16,128], index: 8, kind: output, shape index: {1}]  }
   0x1   :  { %v14_v0 = vstv %s8306_s6 }
   0x2   :  { %15 = vst [vmem:[#allocation2] sm:$0x1] %v14_v0 }
   0x3   :  { %16 = vsyncpa [#allocation4], 0 }
   0x4   :  { %17 = vsyncpa [#allocation7], 0  ;;  %s40_s9 = sshll.u32 %s8303_s3, 4  ;;  %s41_s9 = int_to_ptr.hbm [resolvable:$true] %s40_s9 }
   0x5   :  { %18 = vsyncpa [#allocation5], 0  ;;  %s4507_s10 = smov [#allocation6]   ;;  %s27_s14 = sshll.u32 %s8302_s2, 4  ;;  %s28_s14 = int_to_ptr.hbm [resolvable:$true] %s27_s14 }
   0x6   :  { %s42_s11 = sshll.u32 %s4507_s10, 4  ;;  %s4508_s15 = smov 896   ;;  %s43_s11 = int_to_ptr.vmem [resolvable:$true] %s42_s11 }
   0x7   :  { %s4509_s16 = smov 56   ;;  %s4510_s6 = smov [#allocation3]  }
   0x8   :  { %48 = dma.hbm_to_vmem [thread:$0]  %s41_s9, 14336, %s43_s11, [#allocation7], %s4508_s15, %s4508_s15, %s4509_s16  }
   0x9   :  { %s29_s17 = sshll.u32 %s4510_s6, 4  ;;  %s4511_s18 = smov 128   ;;  %s30_s17 = int_to_ptr.vmem [resolvable:$true] %s29_s17 }
   0xa   :  { %s4512_s19 = smov 8   ;;  %s53_s21 = sshll.u32 %s8304_s4, 4  ;;  %s54_s21 = int_to_ptr.hbm [resolvable:$true] %s53_s21 }
   0xb   :  { %35 = dma.hbm_to_vmem [thread:$0]  %s28_s14, 256, %s30_s17, [#allocation4], %s4511_s18, %s4511_s18, %s4512_s19  }
   0xc   :  { %s4513_s22 = smov [#allocation8]   ;;  %s4514_s23 = smov 512  }
   0xd   :  { %s55_s2 = sshll.u32 %s4513_s22, 4  ;;  %s4515_s24 = smov 32   ;;  %s56_s2 = int_to_ptr.vmem [resolvable:$true] %s55_s2 }
   0xe   :  { %61 = dma.hbm_to_vmem [thread:$0]  %s54_s21, 8192, %s56_s2, [#allocation7], %s4514_s23, %s4514_s23, %s4515_s24  }
   0xf   :  { %4501 = dma.done.wait [#allocation4], 256  }
  0x10   :  { %4502 = vsyncadd [#allocation4], 4294967040 }
  0x11   :  { %4503 = dma.done.wait [#allocation7], 22528  }
  0x12   :  { %4504 = vsyncadd [#allocation7], 4294944768  ;;  %v4579_v1 = vld [vmem:[#allocation6 + $0x348] sm:$0xff]  ;;  %v4581_v2 = vld [vmem:[#allocation6 + $0x358] sm:$0xff] }
  0x13   :  { %v4583_v3 = vld [vmem:[#allocation6 + $0x360] sm:$0xff]  ;;  %284 = vmatpush.msra.mxu0 %v4579_v1  ;;  %330 = vmatpush.msra.mxu2 %v4581_v2  ;;  %v4587_v4 = vld [vmem:[#allocation6 + $0x310] sm:$0xff]  ;;  %v4591_v6 = vld [vmem:[#allocation6 + $0x328] sm:$0xff] }
  0x14   :  { %v4589_v5 = vld [vmem:[#allocation6 + $0x320] sm:$0xff]  ;;  %353 = vmatpush.msra.mxu3 %v4583_v3  ;;  %v4594_v7 = vld [vmem:[#allocation6 + $0x2d8] sm:$0xff]  ;;  %v4596_v8 = vld [vmem:[#allocation6 + $0x2e8] sm:$0xff] }
  0x15   :  { %285 = vmatpush.msra.mxu0 %v4587_v4  ;;  %331 = vmatpush.msra.mxu2 %v4589_v5  ;;  %v4600_v9 = vld [vmem:[#allocation6 + $0x2f0] sm:$0xff]  ;;  %v4606_v11 = vld [vmem:[#allocation6 + $0x2a0] sm:$0xff]  ;;  %v4610_v13 = vld [vmem:[#allocation6 + $0x318] sm:$0xff] }
  0x16   :  { %v4602_v10 = vld [vmem:[#allocation6 + $0x350] sm:$0xff]  ;;  %354 = vmatpush.msra.mxu3 %v4591_v6  ;;  %v4614_v14 = vld [vmem:[#allocation6 + $0x2b8] sm:$0xff]  ;;  %v4616_v15 = vld [vmem:[#allocation6 + $0x2e0] sm:$0xff] }
  0x17   :  { %307 = vmatpush.msra.mxu1 %v4602_v10  ;;  %v4608_v12 = vld [vmem:[#allocation6 + $0x2b0] sm:$0xff]  ;;  %286 = vmatpush.msra.mxu0 %v4594_v7  ;;  %v4620_v16 = vld [vmem:[#allocation6 + $0x268] sm:$0xff]  ;;  %v4622_v17 = vld [vmem:[#allocation6 + $0x278] sm:$0xff] }
  0x18   :  { %332 = vmatpush.msra.mxu2 %v4596_v8  ;;  %355 = vmatpush.msra.mxu3 %v4600_v9  ;;  %v4626_v18 = vld [vmem:[#allocation6 + $0x280] sm:$0xff]  ;;  %v4628_v19 = vld [vmem:[#allocation6 + $0x2a8] sm:$0xff]  ;;  %v4632_v20 = vld [vmem:[#allocation6 + $0x230] sm:$0xff] }
  0x19   :  { %308 = vmatpush.msra.mxu1 %v4610_v13  ;;  %287 = vmatpush.msra.mxu0 %v4606_v11  ;;  %v4634_v21 = vld [vmem:[#allocation6 + $0x240] sm:$0xff]  ;;  %v4638_v22 = vld [vmem:[#allocation6 + $0x248] sm:$0xff]  ;;  %v4640_v23 = vld [vmem:[#allocation6 + $0x270] sm:$0xff] }
  0x1a   :  { %333 = vmatpush.msra.mxu2 %v4608_v12  ;;  %356 = vmatpush.msra.mxu3 %v4614_v14  ;;  %v4644_v24 = vld [vmem:[#allocation6 + $0x1f8] sm:$0xff]  ;;  %v4646_v25 = vld [vmem:[#allocation6 + $0x208] sm:$0xff]  ;;  %v4650_v26 = vld [vmem:[#allocation6 + $0x210] sm:$0xff] }
  0x1b   :  { %309 = vmatpush.msra.mxu1 %v4616_v15  ;;  %288 = vmatpush.msra.mxu0 %v4620_v16  ;;  %v4652_v27 = vld [vmem:[#allocation6 + $0x238] sm:$0xff]  ;;  %v4656_v28 = vld [vmem:[#allocation6 + $0x1c0] sm:$0xff]  ;;  %v4658_v29 = vld [vmem:[#allocation6 + $0x1d0] sm:$0xff] }
  0x1c   :  { %334 = vmatpush.msra.mxu2 %v4622_v17  ;;  %357 = vmatpush.msra.mxu3 %v4626_v18  ;;  %v4662_v30 = vld [vmem:[#allocation6 + $0x1d8] sm:$0xff]  ;;  %v4664_v31 = vld [vmem:[#allocation6 + $0x200] sm:$0xff]  ;;  %v4668_v32 = vld [vmem:[#allocation6 + $0x188] sm:$0xff] }
  0x1d   :  { %310 = vmatpush.msra.mxu1 %v4628_v19  ;;  %289 = vmatpush.msra.mxu0 %v4632_v20  ;;  %v4670_v33 = vld [vmem:[#allocation6 + $0x198] sm:$0xff]  ;;  %v4674_v34 = vld [vmem:[#allocation6 + $0x1a0] sm:$0xff]  ;;  %v4676_v35 = vld [vmem:[#allocation6 + $0x1c8] sm:$0xff] }
  0x1e   :  { %335 = vmatpush.msra.mxu2 %v4634_v21  ;;  %358 = vmatpush.msra.mxu3 %v4638_v22  ;;  %v4680_v36 = vld [vmem:[#allocation6 + $0x150] sm:$0xff]  ;;  %v4682_v37 = vld [vmem:[#allocation6 + $0x160] sm:$0xff]  ;;  %v4686_v38 = vld [vmem:[#allocation6 + $0x168] sm:$0xff] }
  0x1f   :  { %311 = vmatpush.msra.mxu1 %v4640_v23  ;;  %290 = vmatpush.msra.mxu0 %v4644_v24  ;;  %v4688_v39 = vld [vmem:[#allocation6 + $0x190] sm:$0xff]  ;;  %v4692_v40 = vld [vmem:[#allocation6 + $0x118] sm:$0xff]  ;;  %v4694_v41 = vld [vmem:[#allocation6 + $0x128] sm:$0xff] }
  0x20   :  { %336 = vmatpush.msra.mxu2 %v4646_v25  ;;  %359 = vmatpush.msra.mxu3 %v4650_v26  ;;  %v4698_v42 = vld [vmem:[#allocation6 + $0x130] sm:$0xff]  ;;  %v4700_v43 = vld [vmem:[#allocation6 + $0x158] sm:$0xff]  ;;  %v4704_v44 = vld [vmem:[#allocation6 + $0xe0] sm:$0xff] }
  0x21   :  { %312 = vmatpush.msra.mxu1 %v4652_v27  ;;  %291 = vmatpush.msra.mxu0 %v4656_v28  ;;  %v4706_v45 = vld [vmem:[#allocation6 + $0xf0] sm:$0xff]  ;;  %v4710_v46 = vld [vmem:[#allocation6 + $0xf8] sm:$0xff]  ;;  %v4712_v47 = vld [vmem:[#allocation6 + $0x120] sm:$0xff] }
  0x22   :  { %337 = vmatpush.msra.mxu2 %v4658_v29  ;;  %360 = vmatpush.msra.mxu3 %v4662_v30  ;;  %8804 = vst [vmem:[#allocation13_spill] sm:$0xff] %v4706_v45  ;;  %v4716_v48 = vld [vmem:[#allocation6 + $0xa8] sm:$0xff]  ;;  %v4718_v49 = vld [vmem:[#allocation6 + $0xb8] sm:$0xff]  ;;  %v4722_v50 = vld [vmem:[#allocation6 + $0xc0] sm:$0xff] }
  0x23   :  { %313 = vmatpush.msra.mxu1 %v4664_v31  ;;  %292 = vmatpush.msra.mxu0 %v4668_v32  ;;  %8805 = vst [vmem:[#allocation14_spill] sm:$0xff] %v4710_v46  ;;  %v4724_v51 = vld [vmem:[#allocation6 + $0xe8] sm:$0xff]  ;;  %v4728_v52 = vld [vmem:[#allocation6 + $0x70] sm:$0xff]  ;;  %v4730_v53 = vld [vmem:[#allocation6 + $0x80] sm:$0xff] }
  0x24   :  { %338 = vmatpush.msra.mxu2 %v4670_v33  ;;  %361 = vmatpush.msra.mxu3 %v4674_v34  ;;  %8806 = vst [vmem:[#allocation15_spill] sm:$0xff] %v4718_v49  ;;  %v4734_v54 = vld [vmem:[#allocation6 + $0x88] sm:$0xff]  ;;  %v4736_v55 = vld [vmem:[#allocation6 + $0xb0] sm:$0xff]  ;;  %v4740_v56 = vld [vmem:[#allocation6 + $0x38] sm:$0xff] }
  0x25   :  { %314 = vmatpush.msra.mxu1 %v4676_v35  ;;  %293 = vmatpush.msra.mxu0 %v4680_v36  ;;  %8807 = vst [vmem:[#allocation16_spill] sm:$0xff] %v4722_v50  ;;  %v4742_v57 = vld [vmem:[#allocation6 + $0x48] sm:$0xff]  ;;  %v4746_v58 = vld [vmem:[#allocation6 + $0x50] sm:$0xff]  ;;  %v4748_v59 = vld [vmem:[#allocation6 + $0x78] sm:$0xff] }
  0x26   :  { %339 = vmatpush.msra.mxu2 %v4682_v37  ;;  %362 = vmatpush.msra.mxu3 %v4686_v38  ;;  %8808 = vst [vmem:[#allocation17_spill] sm:$0xff] %v4728_v52  ;;  %v4752_v60 = vld [vmem:[#allocation6] sm:$0xff]  ;;  %v4754_v61 = vld [vmem:[#allocation6 + $0x10] sm:$0xff]  ;;  %v4758_v62 = vld [vmem:[#allocation6 + $0x18] sm:$0xff] }
  0x27   :  { %315 = vmatpush.msra.mxu1 %v4688_v39  ;;  %294 = vmatpush.msra.mxu0 %v4692_v40  ;;  %8809 = vst [vmem:[#allocation18_spill] sm:$0xff] %v4730_v53  ;;  %v4760_v63 = vld [vmem:[#allocation6 + $0x368] sm:$0xff]  ;;  %v4764_v0 = vld [vmem:[#allocation6 + $0x378] sm:$0xff] }
  0x28   :  { %340 = vmatpush.msra.mxu2 %v4694_v41  ;;  %363 = vmatpush.msra.mxu3 %v4698_v42  ;;  %8810 = vst [vmem:[#allocation19_spill] sm:$0xff] %v4734_v54 }
  0x29   :  { %316 = vmatpush.msra.mxu1 %v4700_v43  ;;  %295 = vmatpush.msra.mxu0 %v4704_v44  ;;  %8811 = vst [vmem:[#allocation20_spill] sm:$0xff] %v4736_v55 }
  0x2a   :  { %341 = vmatpush.msra.mxu2 %v4706_v45  ;;  %364 = vmatpush.msra.mxu3 %v4710_v46  ;;  %8812 = vst [vmem:[#allocation21_spill] sm:$0xff] %v4740_v56  ;;  %v4964_v45 = vld [vmem:[#allocation6 + $0x20] sm:$0xff]  ;;  %v5032_v46 = vld [vmem:[#allocation8 + $0x178] sm:$0xff] }
  0x2b   :  { %317 = vmatpush.msra.mxu1 %v4712_v47  ;;  %296 = vmatpush.msra.mxu0 %v4716_v48  ;;  %8813 = vst [vmem:[#allocation22_spill] sm:$0xff] %v4742_v57 }
  0x2c   :  { %342 = vmatpush.msra.mxu2 %v4718_v49  ;;  %365 = vmatpush.msra.mxu3 %v4722_v50  ;;  %8814 = vst [vmem:[#allocation23_spill] sm:$0xff] %v4746_v58  ;;  %v4772_v49 = vld [vmem:[#allocation6 + $0x330] sm:$0xff]  ;;  %v4782_v50 = vld [vmem:[#allocation6 + $0x8] sm:$0xff] }
  0x2d   :  { %318 = vmatpush.msra.mxu1 %v4724_v51  ;;  %297 = vmatpush.msra.mxu0 %v4728_v52  ;;  %8815 = vst [vmem:[#allocation24_spill] sm:$0xff] %v4748_v59  ;;  %v5118_v52 = vld [vmem:[#allocation8 + $0xd0] sm:$0xff] }
  0x2e   :  { %343 = vmatpush.msra.mxu2 %v4730_v53  ;;  %366 = vmatpush.msra.mxu3 %v4734_v54  ;;  %8816 = vst [vmem:[#allocation25_spill] sm:$0xff] %v4752_v60  ;;  %v4766_v54 = vld [vmem:[#allocation8 + $0x1e0] sm:$0xff] }
  0x2f   :  { %319 = vmatpush.msra.mxu1 %v4736_v55  ;;  %8817 = vst [vmem:[#allocation26_spill] sm:$0xff] %v4754_v61  ;;  %298 = vmatpush.msra.mxu0 %v4740_v56  ;;  %v4770_v53 = vld [vmem:[#allocation6 + $0x40] sm:$0xff]  ;;  %v4899_v56 = vld [vmem:[#allocation6 + $0x1b0] sm:$0xff]  ;;  %v5081_v55 = vld [vmem:[#allocation8 + $0xc8] sm:$0xff] }
  0x30   :  { %344 = vmatpush.msra.mxu2 %v4742_v57  ;;  %8818 = vst [vmem:[#allocation27_spill] sm:$0xff] %v4758_v62  ;;  %367 = vmatpush.msra.mxu3 %v4746_v58  ;;  %v4776_v57 = vld [vmem:[#allocation6 + $0x340] sm:$0xff] }
  0x31   :  { %8819 = vst [vmem:[#allocation28_spill] sm:$0xff] %v4760_v63  ;;  %320 = vmatpush.msra.mxu1 %v4748_v59  ;;  %299 = vmatpush.msra.mxu0 %v4752_v60  ;;  %v4778_v58 = vld [vmem:[#allocation8 + $0x1c0] sm:$0xff]  ;;  %v4784_v60 = vld [vmem:[#allocation6 + $0x2f8] sm:$0xff] }
  0x32   :  { %8820 = vst [vmem:[#allocation29_spill] sm:$0xff] %v4764_v0  ;;  %345 = vmatpush.msra.mxu2 %v4754_v61  ;;  %368 = vmatpush.msra.mxu3 %v4758_v62  ;;  %v4788_v61 = vld [vmem:[#allocation6 + $0x308] sm:$0xff]  ;;  %v4790_v62 = vld [vmem:[#allocation8 + $0x1a0] sm:$0xff] }
  0x33   :  { %8821 = vst [vmem:[#allocation30_spill] sm:$0xff] %v4766_v54  ;;  %376 = vmatpush.msrb.mxu0 %v4760_v63  ;;  %321 = vmatpush.msra.mxu1 %v4770_v53  ;;  %v4794_v63 = vld [vmem:[#allocation6 + $0x370] sm:$0xff] }
  0x34   :  { %8822 = vst [vmem:[#allocation31_spill] sm:$0xff] %v4770_v53  ;;  %422 = vmatpush.msrb.mxu2 %v4764_v0  ;;  %445 = vmatpush.msrb.mxu3 %v4766_v54  ;;  %v4796_v0 = vld [vmem:[#allocation6 + $0x2c0] sm:$0xff]  ;;  %v4800_v54 = vld [vmem:[#allocation6 + $0x2d0] sm:$0xff] }
  0x35   :  { %8823 = vst [vmem:[#allocation32_spill] sm:$0xff] %v4772_v49  ;;  %377 = vmatpush.msrb.mxu0 %v4772_v49  ;;  %322 = vmatpush.msra.mxu1 %v4782_v50  ;;  %v4802_v53 = vld [vmem:[#allocation8 + $0x180] sm:$0xff]  ;;  %v4806_v49 = vld [vmem:[#allocation6 + $0x338] sm:$0xff] }
  0x36   :  { %8824 = vst [vmem:[#allocation33_spill] sm:$0xff] %v4776_v57  ;;  %423 = vmatpush.msrb.mxu2 %v4776_v57  ;;  %446 = vmatpush.msrb.mxu3 %v4778_v58  ;;  %v4808_v57 = vld [vmem:[#allocation6 + $0x288] sm:$0xff] }
  0x37   :  { %8825 = vst [vmem:[#allocation34_spill] sm:$0xff] %v4778_v58  ;;  %378 = vmatpush.msrb.mxu0 %v4784_v60  ;;  %399 = vmatpush.msrb.mxu1 %v4794_v63  ;;  %v4812_v58 = vld [vmem:[#allocation6 + $0x298] sm:$0xff] }
  0x38   :  { %8826 = vst [vmem:[#allocation35_spill] sm:$0xff] %v4782_v50  ;;  %424 = vmatpush.msrb.mxu2 %v4788_v61  ;;  %447 = vmatpush.msrb.mxu3 %v4790_v62  ;;  %v4814_v50 = vld [vmem:[#allocation8 + $0x160] sm:$0xff] }
  0x39   :  { %8827 = vst [vmem:[#allocation36_spill] sm:$0xff] %v4784_v60  ;;  %379 = vmatpush.msrb.mxu0 %v4796_v0  ;;  %v4818_v60 = vld [vmem:[#allocation6 + $0x300] sm:$0xff]  ;;  %400 = vmatpush.msrb.mxu1 %v4806_v49 }
  0x3a   :  { %8828 = vst [vmem:[#allocation37_spill] sm:$0xff] %v4788_v61  ;;  %425 = vmatpush.msrb.mxu2 %v4800_v54  ;;  %448 = vmatpush.msrb.mxu3 %v4802_v53  ;;  %v4820_v61 = vld [vmem:[#allocation6 + $0x250] sm:$0xff] }
  0x3b   :  { %8829 = vst [vmem:[#allocation38_spill] sm:$0xff] %v4790_v62  ;;  %380 = vmatpush.msrb.mxu0 %v4808_v57  ;;  %v4824_v62 = vld [vmem:[#allocation6 + $0x260] sm:$0xff]  ;;  %401 = vmatpush.msrb.mxu1 %v4818_v60 }
  0x3c   :  { %8830 = vst [vmem:[#allocation39_spill] sm:$0xff] %v4794_v63  ;;  %v4826_v63 = vld [vmem:[#allocation8 + $0x140] sm:$0xff]  ;;  %426 = vmatpush.msrb.mxu2 %v4812_v58  ;;  %449 = vmatpush.msrb.mxu3 %v4814_v50 }
  0x3d   :  { %8831 = vst [vmem:[#allocation40_spill] sm:$0xff] %v4796_v0  ;;  %v4830_v0 = vld [vmem:[#allocation6 + $0x2c8] sm:$0xff]  ;;  %381 = vmatpush.msrb.mxu0 %v4820_v61 }
  0x3e   :  { %8832 = vst [vmem:[#allocation41_spill] sm:$0xff] %v4800_v54  ;;  %v4832_v54 = vld [vmem:[#allocation6 + $0x218] sm:$0xff]  ;;  %427 = vmatpush.msrb.mxu2 %v4824_v62  ;;  %450 = vmatpush.msrb.mxu3 %v4826_v63 }
  0x3f   :  { %8833 = vst [vmem:[#allocation42_spill] sm:$0xff] %v4802_v53  ;;  %v4836_v53 = vld [vmem:[#allocation6 + $0x228] sm:$0xff]  ;;  %402 = vmatpush.msrb.mxu1 %v4830_v0  ;;  %382 = vmatpush.msrb.mxu0 %v4832_v54 }
  0x40   :  { %8834 = vst [vmem:[#allocation43_spill] sm:$0xff] %v4806_v49  ;;  %v4838_v49 = vld [vmem:[#allocation8 + $0x120] sm:$0xff]  ;;  %428 = vmatpush.msrb.mxu2 %v4836_v53 }
  0x41   :  { %8835 = vst [vmem:[#allocation44_spill] sm:$0xff] %v4808_v57  ;;  %v4842_v57 = vld [vmem:[#allocation6 + $0x290] sm:$0xff]  ;;  %451 = vmatpush.msrb.mxu3 %v4838_v49 }
  0x42   :  { %8836 = vst [vmem:[#allocation45_spill] sm:$0xff] %v4812_v58  ;;  %v4844_v58 = vld [vmem:[#allocation6 + $0x1e0] sm:$0xff]  ;;  %403 = vmatpush.msrb.mxu1 %v4842_v57 }
  0x43   :  { %8837 = vst [vmem:[#allocation46_spill] sm:$0xff] %v4814_v50  ;;  %v4848_v50 = vld [vmem:[#allocation6 + $0x1f0] sm:$0xff]  ;;  %383 = vmatpush.msrb.mxu0 %v4844_v58 }
  0x44   :  { %8838 = vst [vmem:[#allocation47_spill] sm:$0xff] %v4818_v60  ;;  %v4850_v60 = vld [vmem:[#allocation8 + $0x100] sm:$0xff]  ;;  %429 = vmatpush.msrb.mxu2 %v4848_v50 }
  0x45   :  { %8839 = vst [vmem:[#allocation48_spill] sm:$0xff] %v4820_v61  ;;  %v276_v61 = vld [vmem:[%s8301_s1] sm:$0xff]  ;;  %452 = vmatpush.msrb.mxu3 %v4850_v60 }
  0x46   :  { %8840 = vst [vmem:[#allocation49_spill] sm:$0xff] %v4824_v62  ;;  %v4862_v62 = vld [vmem:[#allocation6 + $0x258] sm:$0xff]  ;;  %vm278_vm0 = vcmp.gt.f32.partialorder %v276_v61, 0.5  ;;  %v8356_v61 = vmov 0.0  }
  0x47   :  { %8841 = vst [vmem:[#allocation50_spill] sm:$0xff] %v4826_v63  ;;  %v4860_v63 = vld [vmem:[%s8300_s0] sm:$0xff]  ;;  %404 = vmatpush.msrb.mxu1 %v4862_v62  ;;  %v3599_v59 = vsel %vm278_vm0, 1.0, %v8356_v61 }
  0x48   :  { %8842 = vst [vmem:[#allocation51_spill] sm:$0xff] %v4830_v0  ;;  %v4868_v0 = vld [vmem:[#allocation6 + $0x1b8] sm:$0xff]  ;;  %369 = vmatmul.f32.vlgmr.msra.gmra.mxu3 %v4860_v63  ;;  %v4905_v61 = vld [vmem:[#allocation6 + $0x110] sm:$0xff]  ;;  %300 = vmatmul.f32.vlgmr.msra.gmra.mxu0 %v4860_v63 }
  0x49   :  { %8843 = vst [vmem:[#allocation52_spill] sm:$0xff] %v4832_v54  ;;  %v4866_v54 = vld [vmem:[#allocation6 + $0x1a8] sm:$0xff]  ;;  %430 = vmatpush.msrb.mxu2 %v4868_v0  ;;  %323 = vmatmul.f32.vlgmr.msra.gmra.mxu1 %v4860_v63 }
  0x4a   :  { %8844 = vst [vmem:[#allocation53_spill] sm:$0xff] %v4836_v53  ;;  %v4874_v53 = vld [vmem:[#allocation6 + $0x220] sm:$0xff]  ;;  %384 = vmatpush.msrb.mxu0 %v4866_v54  ;;  %346 = vmatmul.f32.vlgmr.msra.gmra.mxu2 %v4860_v63 }
  0x4b   :  { %8845 = vst [vmem:[#allocation54_spill] sm:$0xff] %v4838_v49  ;;  %v4872_v49 = vld [vmem:[#allocation8 + $0xe0] sm:$0xff]  ;;  %405 = vmatpush.msrb.mxu1 %v4874_v53 }
  0x4c   :  { %8846 = vst [vmem:[#allocation55_spill] sm:$0xff] %v4842_v57  ;;  %v4878_v57 = vld [vmem:[#allocation6 + $0x170] sm:$0xff]  ;;  %453 = vmatpush.msrb.mxu3 %v4872_v49 }
  0x4d   :  { %8847 = vst [vmem:[#allocation56_spill] sm:$0xff] %v4844_v58  ;;  %v4880_v58 = vld [vmem:[#allocation6 + $0x180] sm:$0xff]  ;;  %385 = vmatpush.msrb.mxu0 %v4878_v57 }
  0x4e   :  { %8848 = vst [vmem:[#allocation57_spill] sm:$0xff] %v4848_v50  ;;  %v4884_v50 = vld [vmem:[#allocation8 + $0xc0] sm:$0xff]  ;;  %431 = vmatpush.msrb.mxu2 %v4880_v58 }
  0x4f   :  { %8849 = vst [vmem:[#allocation58_spill] sm:$0xff] %v4850_v60  ;;  %v4888_v60 = vld [vmem:[#allocation6 + $0x1e8] sm:$0xff]  ;;  %454 = vmatpush.msrb.mxu3 %v4884_v50 }
  0x50   :  { %8850 = vst [vmem:[#allocation59_spill] sm:$0xff] %v4862_v62  ;;  %v4891_v62 = vld [vmem:[#allocation6 + $0x138] sm:$0xff]  ;;  %406 = vmatpush.msrb.mxu1 %v4888_v60 }
  0x51   :  { %8851 = vst [vmem:[#allocation60_spill] sm:$0xff] %v4866_v54  ;;  %v4895_v54 = vld [vmem:[#allocation6 + $0x148] sm:$0xff]  ;;  %386 = vmatpush.msrb.mxu0 %v4891_v62 }
  0x52   :  { %8852 = vst [vmem:[#allocation61_spill] sm:$0xff] %v4868_v0  ;;  %v4897_v0 = vld [vmem:[#allocation8 + $0xa0] sm:$0xff]  ;;  %432 = vmatpush.msrb.mxu2 %v4895_v54  ;;  %407 = vmatpush.msrb.mxu1 %v4899_v56 }
  0x53   :  { %8853 = vst [vmem:[#allocation62_spill] sm:$0xff] %v4872_v49  ;;  %v8361_v49 = vmov 0   ;;  %455 = vmatpush.msrb.mxu3 %v4897_v0 }
  0x54   :  { %8854 = vst [vmem:[#allocation63_spill] sm:$0xff] %v4874_v53  ;;  %3687 = vset.pattern.permute.xlu0 %v8361_v49  ;;  %v4903_v53 = vld [vmem:[#allocation6 + $0x100] sm:$0xff]  ;;  %v4924_v49 = vld [vmem:[#allocation6 + $0xc8] sm:$0xff]  ;;  %433 = vmatpush.msrb.mxu2 %v4905_v61 }
  0x55   :  { %8855 = vst [vmem:[#allocation64_spill] sm:$0xff] %v4878_v57  ;;  %563 = vperm.xlu0 %3687, %v3599_v59   ;;  %v4908_v57 = vld [vmem:[#allocation8 + $0x80] sm:$0xff]  ;;  %v4922_v59 = vld [vmem:[%s8300_s0 + $0x8] sm:$0xff]  ;;  %387 = vmatpush.msrb.mxu0 %v4903_v53 }
  0x56   :  { %8856 = vst [vmem:[#allocation65_spill] sm:$0xff] %v4880_v58  ;;  %v4910_v58 = vld [vmem:[#allocation6 + $0x178] sm:$0xff]  ;;  %456 = vmatpush.msrb.mxu3 %v4908_v57  ;;  %303 = vmatmul.f32.gmra.mxu0 %v4922_v59 }
  0x57   :  { %8857 = vst [vmem:[#allocation66_spill] sm:$0xff] %v4884_v50  ;;  %v277_v50 = vld [vmem:[%s8301_s1 + $0x8] sm:$0xff]  ;;  %408 = vmatpush.msrb.mxu1 %v4910_v58  ;;  %372 = vmatmul.f32.gmra.mxu3 %v4922_v59 }
  0x58   :  { %8858 = vst [vmem:[#allocation67_spill] sm:$0xff] %v4888_v60  ;;  %vm279_vm1 = vcmp.gt.f32.partialorder %v277_v50, 0.5  ;;  %388 = vmatpush.msrb.mxu0 %v4924_v49  ;;  %v4948_v50 = vld [vmem:[#allocation6 + $0x108] sm:$0xff]  ;;  %v4961_v60 = vld [vmem:[#allocation6 + $0xd0] sm:$0xff]  ;;  %326 = vmatmul.f32.gmra.mxu1 %v4922_v59 }
  0x59   :  { %8859 = vst [vmem:[#allocation68_spill] sm:$0xff] %v4891_v62  ;;  %v4930_v62 = vld [vmem:[#allocation8 + $0x60] sm:$0xff]  ;;  %349 = vmatmul.f32.gmra.mxu2 %v4922_v59 }
  0x5a   :  { %8860 = vst [vmem:[#allocation69_spill] sm:$0xff] %v4895_v54  ;;  %v4928_v54 = vld [vmem:[#allocation6 + $0xd8] sm:$0xff]  ;;  %457 = vmatpush.msrb.mxu3 %v4930_v62 }
  0x5b   :  { %8861 = vst [vmem:[#allocation70_spill] sm:$0xff] %v4897_v0  ;;  %v4936_v0 = vld [vmem:[#allocation6 + $0x140] sm:$0xff]  ;;  %434 = vmatpush.msrb.mxu2 %v4928_v54 }
  0x5c   :  { %8862 = vst [vmem:[#allocation71_spill] sm:$0xff] %v4899_v56  ;;  %v4938_v56 = vld [vmem:[#allocation6 + $0x90] sm:$0xff]  ;;  %409 = vmatpush.msrb.mxu1 %v4936_v0 }
  0x5d   :  { %8863 = vst [vmem:[#allocation72_spill] sm:$0xff] %v4903_v53  ;;  %v4944_v53 = vld [vmem:[#allocation8 + $0x40] sm:$0xff]  ;;  %389 = vmatpush.msrb.mxu0 %v4938_v56 }
  0x5e   :  { %8864 = vst [vmem:[#allocation73_spill] sm:$0xff] %v4905_v61  ;;  %v4942_v61 = vld [vmem:[#allocation6 + $0xa0] sm:$0xff]  ;;  %458 = vmatpush.msrb.mxu3 %v4944_v53  ;;  %410 = vmatpush.msrb.mxu1 %v4948_v50 }
  0x5f   :  { %8865 = vst [vmem:[#allocation74_spill] sm:$0xff] %v4908_v57  ;;  %v8875_v57 = vmov 0.0   ;;  %435 = vmatpush.msrb.mxu2 %v4942_v61 }
  0x60   :  { %8866 = vst [vmem:[#allocation75_spill] sm:$0xff] %v4910_v58  ;;  %v4953_v58 = vld [vmem:[#allocation6 + $0x58] sm:$0xff]  ;;  %411 = vmatpush.msrb.mxu1 %v4961_v60 }
  0x61   :  { %8867 = vst [vmem:[#allocation76_spill] sm:$0xff] %v4924_v49  ;;  %v3600_v49 = vsel %vm279_vm1, 1.0, %v8875_v57  ;;  %390 = vmatpush.msrb.mxu0 %v4953_v58 }
  0x62   :  { %8868 = vst [vmem:[#allocation77_spill] sm:$0xff] %v4928_v54  ;;  %v4955_v54 = vld [vmem:[#allocation6 + $0x68] sm:$0xff]  ;;  %568 = vperm.xlu0 %3687, %v3600_v49   ;;  %v4979_v49 = vld [vmem:[#allocation3] sm:$0xff] }
  0x63   :  { %8869 = vst [vmem:[#allocation78_spill] sm:$0xff] %v4930_v62  ;;  %v4959_v62 = vld [vmem:[#allocation8 + $0x20] sm:$0xff]  ;;  %436 = vmatpush.msrb.mxu2 %v4955_v54  ;;  %391 = vmatpush.msrb.mxu0 %v4964_v45 }
  0x64   :  { %8870 = vst [vmem:[#allocation79_spill] sm:$0xff] %v4936_v0  ;;  %459 = vmatpush.msrb.mxu3 %v4959_v62  ;;  %v4983_v0 = vld [vmem:[#allocation8 + $0x1e8] sm:$0xff]  ;;  %392 = vmatmul.f32.vlgmr.msrb.gmra.mxu0 %v4860_v63 }
  0x65   :  { %8871 = vst [vmem:[#allocation80_spill] sm:$0xff] %v4938_v56  ;;  %v3627_v56 = vld [vmem:[%s8301_s1 + $0x30] sm:$0xff]  ;;  %468 = vmatpush.msra.mxu0 %v4983_v0 }
  0x66   :  { %8872 = vst [vmem:[#allocation81_spill] sm:$0xff] %v4942_v61  ;;  %v4971_v61 = vld [vmem:[#allocation6 + $0x30] sm:$0xff]  ;;  %vm1523_vm2 = vcmp.gt.f32.partialorder %v3627_v56, 0.5 }
  0x67   :  { %8873 = vst [vmem:[#allocation82_spill] sm:$0xff] %v4944_v53  ;;  %v4973_v53 = vld [vmem:[#allocation8] sm:$0xff]  ;;  %437 = vmatpush.msrb.mxu2 %v4971_v61  ;;  %v3629_v56 = vsel %vm1523_vm2, 1.0, %v8875_v57 }
  0x68   :  { %8874 = vst [vmem:[#allocation83_spill] sm:$0xff] %v4948_v50  ;;  %v4977_v50 = vld [vmem:[#allocation6 + $0x98] sm:$0xff]  ;;  %460 = vmatpush.msrb.mxu3 %v4973_v53  ;;  %438 = vmatmul.f32.vlgmr.msrb.gmra.mxu2 %v4860_v63 }
  0x69   :  { %8876 = vst [vmem:[#allocation84_spill] sm:$0xff] %v4953_v58  ;;  %v4985_v58 = vld [vmem:[#allocation8 + $0x1f8] sm:$0xff]  ;;  %412 = vmatpush.msrb.mxu1 %v4977_v50  ;;  %461 = vmatmul.f32.vlgmr.msrb.gmra.mxu3 %v4979_v49 }
  0x6a   :  { %8877 = vst [vmem:[#allocation85_spill] sm:$0xff] %v4955_v54  ;;  %v4993_v54 = vld [vmem:[#allocation8 + $0x1c8] sm:$0xff]  ;;  %514 = vmatpush.msra.mxu2 %v4985_v58  ;;  %1805 = vperm.xlu0 %3687, %v3629_v56  }
  0x6b   :  { %8878 = vst [vmem:[#allocation86_spill] sm:$0xff] %v4959_v62  ;;  %v4991_v62 = vld [vmem:[#allocation6 + $0x60] sm:$0xff]  ;;  %469 = vmatpush.msra.mxu0 %v4993_v54  ;;  %v5028_v56 = vld [vmem:[#allocation8 + $0x168] sm:$0xff]  ;;  %709 = vmatpush.msra.mxu3 %v4579_v1  ;;  %v5167_v1 = vld [vmem:[#allocation8 + $0x30] sm:$0xff] }
  0x6c   :  { %8879 = vst [vmem:[#allocation87_spill] sm:$0xff] %v4961_v60  ;;  %413 = vmatpush.msrb.mxu1 %v4991_v62  ;;  %v3638_v60 = vld [vmem:[%s8301_s1 + $0x48] sm:$0xff]  ;;  %395 = vmatmul.f32.gmra.mxu0 %v4922_v59 }
  0x6d   :  { %8880 = vst [vmem:[#allocation88_spill] sm:$0xff] %v4964_v45  ;;  %v4997_v45 = vld [vmem:[#allocation8 + $0x1d8] sm:$0xff]  ;;  %vm1934_vm3 = vcmp.gt.f32.partialorder %v3638_v60, 0.5  ;;  %710 = vmatpush.msra.mxu3 %v4587_v4 }
  0x6e   :  { %8881 = vst [vmem:[#allocation89_spill] sm:$0xff] %v4971_v61  ;;  %v5004_v61 = vld [vmem:[#allocation8 + $0x1a8] sm:$0xff]  ;;  %515 = vmatpush.msra.mxu2 %v4997_v45  ;;  %v3640_v60 = vsel %vm1934_vm3, 1.0, %v8875_v57  ;;  %v8922_v4 = vld [vmem:[#allocation14_spill] sm:$0xff] }
  0x6f   :  { %8882 = vst [vmem:[#allocation90_spill] sm:$0xff] %v4973_v53  ;;  %v5002_v53 = vld [vmem:[#allocation6 + $0x28] sm:$0xff]  ;;  %470 = vmatpush.msra.mxu0 %v5004_v61  ;;  %711 = vmatpush.msra.mxu3 %v4594_v7 }
  0x70   :  { %8883 = vst [vmem:[#allocation91_spill] sm:$0xff] %v4977_v50  ;;  %v5008_v50 = vld [vmem:[#allocation8 + $0x1b8] sm:$0xff]  ;;  %414 = vmatpush.msrb.mxu1 %v5002_v53  ;;  %441 = vmatmul.f32.gmra.mxu2 %v4922_v59  ;;  %v8925_v7 = vld [vmem:[#allocation24_spill] sm:$0xff] }
  0x71   :  { %8884 = vst [vmem:[#allocation92_spill] sm:$0xff] %v4983_v0  ;;  %v5010_v0 = vld [vmem:[#allocation8 + $0x1f0] sm:$0xff]  ;;  %516 = vmatpush.msra.mxu2 %v5008_v50  ;;  %415 = vmatmul.f32.vlgmr.msrb.gmra.mxu1 %v4860_v63  ;;  %v3668_v63 = vld [vmem:[%s8301_s1 + $0x78] sm:$0xff] }
  0x72   :  { %8885 = vst [vmem:[#allocation93_spill] sm:$0xff] %v4985_v58  ;;  %v5013_v58 = vld [vmem:[#allocation8 + $0x188] sm:$0xff]  ;;  %491 = vmatpush.msra.mxu1 %v5010_v0  ;;  %2220 = vperm.xlu0 %3687, %v3640_v60   ;;  %v5075_v60 = vld [vmem:[#allocation8 + $0xf8] sm:$0xff]  ;;  %vm3164_vm6 = vcmp.gt.f32.partialorder %v3668_v63, 0.5 }
  0x73   :  { %8886 = vst [vmem:[#allocation94_spill] sm:$0xff] %v4991_v62  ;;  %v5020_v62 = vld [vmem:[#allocation8 + $0x198] sm:$0xff]  ;;  %471 = vmatpush.msra.mxu0 %v5013_v58  ;;  %v3670_v63 = vsel %vm3164_vm6, 1.0, %v8875_v57  ;;  %712 = vmatpush.msra.mxu3 %v4606_v11  ;;  %v8929_v11 = vld [vmem:[#allocation31_spill] sm:$0xff] }
  0x74   :  { %8887 = vst [vmem:[#allocation95_spill] sm:$0xff] %v4993_v54  ;;  %v5022_v54 = vld [vmem:[#allocation8 + $0x1d0] sm:$0xff]  ;;  %517 = vmatpush.msra.mxu2 %v5020_v62 }
  0x75   :  { %8888 = vst [vmem:[#allocation96_spill] sm:$0xff] %v4997_v45  ;;  %v5026_v45 = vld [vmem:[#allocation3 + $0x8] sm:$0xff]  ;;  %492 = vmatpush.msra.mxu1 %v5022_v54  ;;  %472 = vmatpush.msra.mxu0 %v5028_v56 }
  0x76   :  { %8889 = vst [vmem:[#allocation97_spill] sm:$0xff] %v5002_v53  ;;  %v5034_v53 = vld [vmem:[#allocation8 + $0x1b0] sm:$0xff]  ;;  %464 = vmatmul.f32.gmra.mxu3 %v5026_v45  ;;  %518 = vmatpush.msra.mxu2 %v5032_v46 }
  0x77   :  { %8890 = vst [vmem:[#allocation98_spill] sm:$0xff] %v5004_v61  ;;  %v5042_v61 = vld [vmem:[#allocation8 + $0x158] sm:$0xff]  ;;  %493 = vmatpush.msra.mxu1 %v5034_v53  ;;  %713 = vmatpush.msra.mxu3 %v4620_v16  ;;  %v8933_v16 = vld [vmem:[#allocation35_spill] sm:$0xff] }
  0x78   :  { %8891 = vst [vmem:[#allocation99_spill] sm:$0xff] %v5008_v50  ;;  %v5040_v50 = vld [vmem:[#allocation8 + $0x148] sm:$0xff]  ;;  %519 = vmatpush.msra.mxu2 %v5042_v61 }
  0x79   :  { %8892 = vst [vmem:[#allocation100_spill] sm:$0xff] %v5010_v0  ;;  %473 = vmatpush.msra.mxu0 %v5040_v50  ;;  %v3657_v0 = vld [vmem:[%s8301_s1 + $0x60] sm:$0xff]  ;;  %418 = vmatmul.f32.gmra.mxu1 %v4922_v59 }
  0x7a   :  { %8893 = vst [vmem:[#allocation101_spill] sm:$0xff] %v5013_v58  ;;  %v5046_v58 = vld [vmem:[#allocation8 + $0x190] sm:$0xff]  ;;  %vm2753_vm4 = vcmp.gt.f32.partialorder %v3657_v0, 0.5  ;;  %v5096_v0 = vld [vmem:[#allocation8 + $0xd8] sm:$0xff]  ;;  %v5144_v59 = vld [vmem:[#allocation8 + $0x28] sm:$0xff]  ;;  %714 = vmatpush.msra.mxu3 %v4632_v20 }
  0x7b   :  { %8894 = vst [vmem:[#allocation102_spill] sm:$0xff] %v5020_v62  ;;  %v5051_v62 = vld [vmem:[#allocation8 + $0x128] sm:$0xff]  ;;  %494 = vmatpush.msra.mxu1 %v5046_v58 }
  0x7c   :  { %8895 = vst [vmem:[#allocation103_spill] sm:$0xff] %v5022_v54  ;;  %v5053_v54 = vld [vmem:[#allocation8 + $0x138] sm:$0xff]  ;;  %474 = vmatpush.msra.mxu0 %v5051_v62  ;;  %715 = vmatpush.msra.mxu3 %v4644_v24  ;;  %v8940_v24 = vld [vmem:[#allocation29_spill] sm:$0xff] }
  0x7d   :  { %8896 = vst [vmem:[#allocation104_spill] sm:$0xff] %v5028_v56  ;;  %v5057_v56 = vld [vmem:[#allocation8 + $0x170] sm:$0xff]  ;;  %520 = vmatpush.msra.mxu2 %v5053_v54 }
  0x7e   :  { %8897 = vst [vmem:[#allocation105_spill] sm:$0xff] %v5032_v46  ;;  %v5060_v46 = vld [vmem:[#allocation8 + $0x108] sm:$0xff]  ;;  %495 = vmatpush.msra.mxu1 %v5057_v56  ;;  %716 = vmatpush.msra.mxu3 %v4656_v28  ;;  %v8944_v28 = vld [vmem:[#allocation33_spill] sm:$0xff] }
  0x7f   :  { %8898 = vst [vmem:[#allocation106_spill] sm:$0xff] %v5034_v53  ;;  %v5062_v53 = vld [vmem:[#allocation8 + $0x118] sm:$0xff]  ;;  %475 = vmatpush.msra.mxu0 %v5060_v46 }
  0x80   :  { %8899 = vst [vmem:[#allocation107_spill] sm:$0xff] %v5040_v50  ;;  %v5069_v50 = vld [vmem:[#allocation8 + $0x150] sm:$0xff]  ;;  %521 = vmatpush.msra.mxu2 %v5062_v53  ;;  %717 = vmatpush.msra.mxu3 %v4668_v32 }
  0x81   :  { %8900 = vst [vmem:[#allocation108_spill] sm:$0xff] %v5042_v61  ;;  %v5073_v61 = vld [vmem:[#allocation8 + $0xe8] sm:$0xff]  ;;  %496 = vmatpush.msra.mxu1 %v5069_v50  ;;  %v8948_v32 = vld [vmem:[#allocation37_spill] sm:$0xff] }
  0x82   :  { %8901 = vst [vmem:[#allocation109_spill] sm:$0xff] %v5046_v58  ;;  %v5079_v58 = vld [vmem:[#allocation8 + $0x130] sm:$0xff]  ;;  %476 = vmatpush.msra.mxu0 %v5073_v61  ;;  %522 = vmatpush.msra.mxu2 %v5075_v60 }
  0x83   :  { %8902 = vst [vmem:[#allocation110_spill] sm:$0xff] %v5051_v62  ;;  %v8912_v62 = vmov 0   ;;  %497 = vmatpush.msra.mxu1 %v5079_v58  ;;  %718 = vmatpush.msra.mxu3 %v4680_v36  ;;  %v8952_v36 = vld [vmem:[#allocation41_spill] sm:$0xff] }
  0x84   :  { %8903 = vst [vmem:[#allocation111_spill] sm:$0xff] %v5053_v54  ;;  %v3667_v54 = vld [vmem:[%s8301_s1 + $0x70] sm:$0xff]  ;;  %3689 = vset.pattern.permute.xlu2 %v8912_v62  ;;  %477 = vmatpush.msra.mxu0 %v5081_v55 }
  0x85   :  { %8904 = vst [vmem:[#allocation112_spill] sm:$0xff] %v5057_v56  ;;  %v3659_v56 = vsel %vm2753_vm4, 1.0, %v8875_v57  ;;  %v5107_v62 = vld [vmem:[#allocation8 + $0xb8] sm:$0xff]  ;;  %vm3163_vm5 = vcmp.gt.f32.partialorder %v3667_v54, 0.5  ;;  %523 = vmatpush.msra.mxu2 %v5096_v0  ;;  %v5122_v54 = vld [vmem:[#allocation8 + $0x68] sm:$0xff]  ;;  %719 = vmatpush.msra.mxu3 %v4692_v40  ;;  %v8956_v40 = vld [vmem:[#allocation45_spill] sm:$0xff] }
  0x86   :  { %8905 = vst [vmem:[#allocation113_spill] sm:$0xff] %v5060_v46  ;;  %v5098_v46 = vld [vmem:[#allocation8 + $0x110] sm:$0xff]  ;;  %3035 = vperm.xlu0 %3687, %v3659_v56   ;;  %v5129_v56 = vld [vmem:[#allocation8 + $0x78] sm:$0xff] }
  0x87   :  { %8906 = vst [vmem:[#allocation114_spill] sm:$0xff] %v5062_v53  ;;  %v3617_v53 = vld [vmem:[%s8301_s1 + $0x20] sm:$0xff]  ;;  %498 = vmatpush.msra.mxu1 %v5098_v46  ;;  %524 = vmatpush.msra.mxu2 %v5107_v62 }
  0x88   :  { %8907 = vst [vmem:[#allocation115_spill] sm:$0xff] %v5069_v50  ;;  %v5102_v50 = vld [vmem:[#allocation8 + $0xa8] sm:$0xff]  ;;  %vm1113_vm7 = vcmp.gt.f32.partialorder %v3617_v53, 0.5  ;;  %v3669_v53 = vsel %vm3163_vm5, 1.0, %v8875_v57  ;;  %720 = vmatpush.msra.mxu3 %v4704_v44  ;;  %v8959_v44 = vld [vmem:[#allocation42_spill] sm:$0xff] }
  0x89   :  { %8908 = vst [vmem:[#allocation116_spill] sm:$0xff] %v5073_v61  ;;  %v5109_v61 = vld [vmem:[#allocation8 + $0xf0] sm:$0xff]  ;;  %478 = vmatpush.msra.mxu0 %v5102_v50 }
  0x8a   :  { %8909 = vst [vmem:[#allocation117_spill] sm:$0xff] %v5075_v60  ;;  %v5113_v60 = vld [vmem:[#allocation8 + $0x88] sm:$0xff]  ;;  %499 = vmatpush.msra.mxu1 %v5109_v61  ;;  %721 = vmatpush.msra.mxu3 %v4716_v48 }
  0x8b   :  { %8910 = vst [vmem:[#allocation118_spill] sm:$0xff] %v5079_v58  ;;  %v5116_v58 = vld [vmem:[#allocation8 + $0x98] sm:$0xff]  ;;  %479 = vmatpush.msra.mxu0 %v5113_v60 }
  0x8c   :  { %8911 = vst [vmem:[#allocation119_spill] sm:$0xff] %v5081_v55  ;;  %525 = vmatpush.msra.mxu2 %v5116_v58  ;;  %500 = vmatpush.msra.mxu1 %v5118_v52  ;;  %v5138_v55 = vld [vmem:[#allocation8 + $0x58] sm:$0xff] }
  0x8d   :  { %8913 = vst [vmem:[#allocation120_spill] sm:$0xff] %v5096_v0  ;;  %v3619_v0 = vsel %vm1113_vm7, 1.0, %v8875_v57  ;;  %480 = vmatpush.msra.mxu0 %v5122_v54 }
  0x8e   :  { %8914 = vst [vmem:[#allocation121_spill] sm:$0xff] %v5098_v46  ;;  %v3690_v46 = vpack.i.bf16 %v3670_v63, %v3669_v53  ;;  %1395 = vperm.xlu2 %3689, %v3619_v0   ;;  %526 = vmatpush.msra.mxu2 %v5129_v56  ;;  %v5154_v53 = vld [vmem:[#allocation8 + $0x8] sm:$0xff]  ;;  %v5157_v0 = vld [vmem:[#allocation8 + $0x18] sm:$0xff]  ;;  %v5161_v63 = vld [vmem:[#allocation8 + $0x50] sm:$0xff] }
  0x8f   :  { %8915 = vst [vmem:[#allocation122_spill] sm:$0xff] %v5102_v50  ;;  %v5131_v50 = vld [vmem:[#allocation8 + $0xb0] sm:$0xff] }
  0x90   :  { %8916 = vst [vmem:[#allocation123_spill] sm:$0xff] %v5107_v62  ;;  %v5135_v62 = vld [vmem:[#allocation8 + $0x48] sm:$0xff]  ;;  %501 = vmatpush.msra.mxu1 %v5131_v50  ;;  %527 = vmatpush.msra.mxu2 %v5138_v55 }
  0x91   :  { %8917 = vst [vmem:[#allocation124_spill] sm:$0xff] %v5109_v61  ;;  %v5140_v61 = vld [vmem:[#allocation8 + $0x90] sm:$0xff]  ;;  %481 = vmatpush.msra.mxu0 %v5135_v62  ;;  %3691 = vperm.xlu0 %3687, %v3690_v46  }
  0x92   :  { %8918 = vst [vmem:[#allocation125_spill] sm:$0xff] %v5113_v60  ;;  %v5149_v60 = vld [vmem:[#allocation8 + $0x70] sm:$0xff]  ;;  %502 = vmatpush.msra.mxu1 %v5140_v61 }
  0x93   :  { %8919 = vst [vmem:[#allocation126_spill] sm:$0xff] %v5116_v58  ;;  %v5147_v58 = vld [vmem:[#allocation8 + $0x38] sm:$0xff]  ;;  %482 = vmatpush.msra.mxu0 %v5144_v59  ;;  %v5171_v46 = vld [vmem:[#allocation8 + $0x10] sm:$0xff] }
  0x94   :  { %528 = vmatpush.msra.mxu2 %v5147_v58  ;;  %503 = vmatpush.msra.mxu1 %v5149_v60 }
  0x95   :  { %483 = vmatpush.msra.mxu0 %v5154_v53 }
  0x96   :  { %529 = vmatpush.msra.mxu2 %v5157_v0  ;;  %484 = vmatmul.f32.vlgmr.msra.gmra.mxu0 %v4979_v49 }
  0x97   :  { %504 = vmatpush.msra.mxu1 %v5161_v63  ;;  %530 = vmatmul.f32.vlgmr.msra.gmra.mxu2 %v4979_v49 }
  0x98   :  { %732 = vmatpush.msrb.mxu0 %v4602_v10  ;;  %778 = vmatpush.msrb.mxu2 %v4583_v3  ;;  %v8921_v3 = vld [vmem:[#allocation20_spill] sm:$0xff]  ;;  %v8928_v10 = vld [vmem:[#allocation25_spill] sm:$0xff] }
  0x99   :  { %505 = vmatpush.msra.mxu1 %v5167_v1 }
  0x9a   :  { %733 = vmatpush.msrb.mxu0 %v4610_v13  ;;  %779 = vmatpush.msrb.mxu2 %v4591_v6  ;;  %v8924_v6 = vld [vmem:[#allocation21_spill] sm:$0xff]  ;;  %v8931_v13 = vld [vmem:[#allocation18_spill] sm:$0xff] }
  0x9b   :  { %506 = vmatpush.msra.mxu1 %v5171_v46 }
  0x9c   :  { %507 = vmatmul.f32.vlgmr.msra.gmra.mxu1 %v4979_v49  ;;  %734 = vmatpush.msrb.mxu0 %v4616_v15  ;;  %v3618_v15 = vld [vmem:[%s8301_s1 + $0x28] sm:$0xff] }
  0x9d   :  { %755 = vmatpush.msrb.mxu1 %v4581_v2  ;;  %780 = vmatpush.msrb.mxu2 %v4600_v9  ;;  %v8920_v2 = vld [vmem:[#allocation17_spill] sm:$0xff]  ;;  %v8927_v9 = vld [vmem:[#allocation15_spill] sm:$0xff]  ;;  %vm1114_vm8 = vcmp.gt.f32.partialorder %v3618_v15, 0.5  ;;  %v8963_v49 = vld [vmem:[#allocation46_spill] sm:$0xff] }
  0x9e   :  { %487 = vmatmul.f32.gmra.mxu0 %v5026_v45  ;;  %722 = vmatpush.msra.mxu3 %v8920_v2  ;;  %v3620_v20 = vsel %vm1114_vm8, 1.0, %v8875_v57  ;;  %v8964_v2 = vld [vmem:[#allocation53_spill] sm:$0xff]  ;;  %v3648_v15 = vld [vmem:[%s8301_s1 + $0x58] sm:$0xff] }
  0x9f   :  { %533 = vmatmul.f32.gmra.mxu2 %v5026_v45  ;;  %756 = vmatpush.msrb.mxu1 %v4589_v5  ;;  %v8923_v5 = vld [vmem:[#allocation13_spill] sm:$0xff]  ;;  %vm2344_vm10 = vcmp.gt.f32.partialorder %v3648_v15, 0.5 }
  0xa0   :  { %735 = vmatpush.msrb.mxu0 %v4628_v19  ;;  %781 = vmatpush.msrb.mxu2 %v4614_v14  ;;  %v8932_v14 = vld [vmem:[#allocation19_spill] sm:$0xff] }
  0xa1   :  { %757 = vmatpush.msrb.mxu1 %v4596_v8  ;;  %723 = vmatpush.msra.mxu3 %v8924_v6  ;;  %v8926_v8 = vld [vmem:[#allocation16_spill] sm:$0xff]  ;;  %v8936_v19 = vld [vmem:[#allocation39_spill] sm:$0xff]  ;;  %v8968_v6 = vld [vmem:[#allocation50_spill] sm:$0xff] }
  0xa2   :  { %736 = vmatpush.msrb.mxu0 %v4640_v23  ;;  %782 = vmatpush.msrb.mxu2 %v4626_v18  ;;  %v8935_v18 = vld [vmem:[#allocation22_spill] sm:$0xff] }
  0xa3   :  { %758 = vmatpush.msrb.mxu1 %v4608_v12  ;;  %724 = vmatpush.msra.mxu3 %v8928_v10  ;;  %v8930_v12 = vld [vmem:[#allocation28_spill] sm:$0xff]  ;;  %v8939_v23 = vld [vmem:[#allocation26_spill] sm:$0xff]  ;;  %v8972_v10 = vmov 0  }
  0xa4   :  { %510 = vmatmul.f32.gmra.mxu1 %v5026_v45  ;;  %737 = vmatpush.msrb.mxu0 %v4652_v27  ;;  %v8943_v27 = vld [vmem:[#allocation27_spill] sm:$0xff]  ;;  %v8960_v45 = vld [vmem:[#allocation49_spill] sm:$0xff] }
  0xa5   :  { %759 = vmatpush.msrb.mxu1 %v4622_v17  ;;  %783 = vmatpush.msrb.mxu2 %v4638_v22  ;;  %v8934_v17 = vld [vmem:[#allocation32_spill] sm:$0xff]  ;;  %v8938_v22 = vld [vmem:[#allocation23_spill] sm:$0xff] }
  0xa6   :  { %738 = vmatpush.msrb.mxu0 %v4664_v31  ;;  %801 = vmatpush.msrb.mxu3 %v8930_v12  ;;  %v8947_v31 = vld [vmem:[#allocation30_spill] sm:$0xff]  ;;  %v8974_v12 = vld [vmem:[#allocation72_spill] sm:$0xff] }
  0xa7   :  { %760 = vmatpush.msrb.mxu1 %v4634_v21  ;;  %784 = vmatpush.msrb.mxu2 %v4650_v26  ;;  %v8937_v21 = vld [vmem:[#allocation36_spill] sm:$0xff] }
  0xa8   :  { %739 = vmatpush.msrb.mxu0 %v4676_v35  ;;  %802 = vmatpush.msrb.mxu3 %v8934_v17  ;;  %v8942_v26 = vld [vmem:[#allocation40_spill] sm:$0xff]  ;;  %v8951_v35 = vld [vmem:[#allocation34_spill] sm:$0xff] }
  0xa9   :  { %761 = vmatpush.msrb.mxu1 %v4646_v25  ;;  %785 = vmatpush.msrb.mxu2 %v4662_v30  ;;  %v8941_v25 = vld [vmem:[#allocation43_spill] sm:$0xff]  ;;  %v8946_v30 = vld [vmem:[#allocation44_spill] sm:$0xff] }
  0xaa   :  { %740 = vmatpush.msrb.mxu0 %v4688_v39  ;;  %803 = vmatpush.msrb.mxu3 %v8937_v21  ;;  %v8955_v39 = vld [vmem:[#allocation38_spill] sm:$0xff]  ;;  %v8978_v17 = vld [vmem:[#allocation76_spill] sm:$0xff]  ;;  %v8981_v21 = vld [vmem:[#allocation83_spill] sm:$0xff] }
  0xab   :  { %762 = vmatpush.msrb.mxu1 %v4658_v29  ;;  %786 = vmatpush.msrb.mxu2 %v4674_v34  ;;  %v8945_v29 = vld [vmem:[#allocation47_spill] sm:$0xff]  ;;  %v8950_v34 = vld [vmem:[#allocation48_spill] sm:$0xff] }
  0xac   :  { %741 = vmatpush.msrb.mxu0 %v4700_v43  ;;  %1400 = vperm.xlu2 %3689, %v3620_v20   ;;  %v8958_v43 = vld [vmem:[#allocation56_spill] sm:$0xff]  ;;  %v3650_v20 = vsel %vm2344_vm10, 1.0, %v8875_v57 }
  0xad   :  { %763 = vmatpush.msrb.mxu1 %v4670_v33  ;;  %787 = vmatpush.msrb.mxu2 %v4686_v38  ;;  %v8949_v33 = vld [vmem:[#allocation51_spill] sm:$0xff]  ;;  %v8954_v38 = vld [vmem:[#allocation52_spill] sm:$0xff] }
  0xae   :  { %742 = vmatpush.msrb.mxu0 %v4712_v47  ;;  %804 = vmatpush.msrb.mxu3 %v8942_v26  ;;  %v8961_v47 = vld [vmem:[#allocation63_spill] sm:$0xff]  ;;  %v8986_v26 = vld [vmem:[#allocation77_spill] sm:$0xff] }
  0xaf   :  { %764 = vmatpush.msrb.mxu1 %v4682_v37  ;;  %788 = vmatpush.msrb.mxu2 %v4698_v42  ;;  %v8953_v37 = vld [vmem:[#allocation55_spill] sm:$0xff]  ;;  %v3637_v42 = vld [vmem:[%s8301_s1 + $0x40] sm:$0xff] }
  0xb0   :  { %743 = vmatpush.msrb.mxu0 %v4724_v51  ;;  %805 = vmatpush.msrb.mxu3 %v8946_v30  ;;  %vm1933_vm9 = vcmp.gt.f32.partialorder %v3637_v42, 0.5  ;;  %v8962_v51 = vld [vmem:[#allocation60_spill] sm:$0xff]  ;;  %v8990_v30 = vld [vmem:[#allocation81_spill] sm:$0xff] }
  0xb1   :  { %765 = vmatpush.msrb.mxu1 %v4694_v41  ;;  %789 = vmatpush.msrb.mxu2 %v8922_v4  ;;  %v8957_v41 = vld [vmem:[#allocation59_spill] sm:$0xff]  ;;  %v3639_v48 = vsel %vm1933_vm9, 1.0, %v8875_v57  ;;  %v8966_v4 = vld [vmem:[#allocation64_spill] sm:$0xff] }
  0xb2   :  { %744 = vmatpush.msrb.mxu0 %v8921_v3  ;;  %806 = vmatpush.msrb.mxu3 %v8950_v34  ;;  %v8965_v3 = vld [vmem:[#allocation67_spill] sm:$0xff]  ;;  %v8994_v34 = vld [vmem:[#allocation70_spill] sm:$0xff] }
  0xb3   :  { %766 = vmatpush.msrb.mxu1 %v8923_v5  ;;  %790 = vmatpush.msrb.mxu2 %v8926_v8  ;;  %v8967_v5 = vld [vmem:[#allocation57_spill] sm:$0xff]  ;;  %v8970_v8 = vld [vmem:[#allocation68_spill] sm:$0xff] }
  0xb4   :  { %745 = vmatpush.msrb.mxu0 %v8925_v7  ;;  %807 = vmatpush.msrb.mxu3 %v8954_v38  ;;  %v8969_v7 = vld [vmem:[#allocation71_spill] sm:$0xff]  ;;  %v8998_v38 = vld [vmem:[#allocation78_spill] sm:$0xff] }
  0xb5   :  { %767 = vmatpush.msrb.mxu1 %v8927_v9  ;;  %791 = vmatpush.msrb.mxu2 %v8932_v14  ;;  %v8971_v9 = vld [vmem:[#allocation61_spill] sm:$0xff]  ;;  %v8976_v14 = vld [vmem:[#allocation54_spill] sm:$0xff] }
  0xb6   :  { %746 = vmatpush.msrb.mxu0 %v8929_v11  ;;  %808 = vmatpush.msrb.mxu3 %v8958_v43  ;;  %v8973_v11 = vld [vmem:[#allocation75_spill] sm:$0xff] }
  0xb7   :  { %768 = vmatpush.msrb.mxu1 %v8931_v13  ;;  %792 = vmatpush.msrb.mxu2 %v8938_v22  ;;  %v8975_v13 = vld [vmem:[#allocation65_spill] sm:$0xff]  ;;  %v8982_v22 = vld [vmem:[#allocation80_spill] sm:$0xff] }
  0xb8   :  { %747 = vmatpush.msrb.mxu0 %v8933_v16  ;;  %809 = vmatpush.msrb.mxu3 %v8962_v51  ;;  %v8977_v16 = vld [vmem:[#allocation79_spill] sm:$0xff] }
  0xb9   :  { %769 = vmatpush.msrb.mxu1 %v8935_v18  ;;  %793 = vmatpush.msrb.mxu2 %v8943_v27  ;;  %v8979_v18 = vld [vmem:[#allocation69_spill] sm:$0xff]  ;;  %v8987_v27 = vld [vmem:[#allocation62_spill] sm:$0xff] }
  0xba   :  { %824 = vmatpush.msra.mxu0 %v8936_v19  ;;  %2215 = vperm.xlu2 %3689, %v3639_v48   ;;  %v8980_v19 = vld [vmem:[#allocation58_spill] sm:$0xff] }
  0xbb   :  { %770 = vmatpush.msrb.mxu1 %v8939_v23  ;;  %870 = vmatpush.msra.mxu2 %v8947_v31  ;;  %v8983_v23 = vld [vmem:[#allocation73_spill] sm:$0xff]  ;;  %v8991_v31 = vld [vmem:[#allocation66_spill] sm:$0xff] }
  0xbc   :  { %825 = vmatpush.msra.mxu0 %v8941_v25  ;;  %810 = vmatpush.msrb.mxu3 %v8966_v4  ;;  %v8985_v25 = vld [vmem:[#allocation84_spill] sm:$0xff] }
  0xbd   :  { %847 = vmatpush.msra.mxu1 %v8940_v24  ;;  %871 = vmatpush.msra.mxu2 %v8951_v35  ;;  %v8984_v24 = vld [vmem:[#allocation87_spill] sm:$0xff]  ;;  %v8995_v35 = vld [vmem:[#allocation97_spill] sm:$0xff] }
  0xbe   :  { %826 = vmatpush.msra.mxu0 %v8945_v29  ;;  %811 = vmatpush.msrb.mxu3 %v8970_v8  ;;  %v8989_v29 = vld [vmem:[#allocation88_spill] sm:$0xff] }
  0xbf   :  { %848 = vmatpush.msra.mxu1 %v8944_v28  ;;  %872 = vmatpush.msra.mxu2 %v8955_v39  ;;  %v8988_v28 = vld [vmem:[#allocation91_spill] sm:$0xff]  ;;  %v8999_v39 = vld [vmem:[#allocation82_spill] sm:$0xff] }
  0xc0   :  { %827 = vmatpush.msra.mxu0 %v8949_v33  ;;  %3688 = vset.pattern.permute.xlu1 %v8972_v10  ;;  %v8993_v33 = vld [vmem:[#allocation85_spill] sm:$0xff]  ;;  %v9002_v10 = vld [vmem:[#allocation92_spill] sm:$0xff] }
  0xc1   :  { %849 = vmatpush.msra.mxu1 %v8948_v32  ;;  %873 = vmatpush.msra.mxu2 %v8959_v44  ;;  %v8992_v32 = vld [vmem:[#allocation94_spill] sm:$0xff] }
  0xc2   :  { %828 = vmatpush.msra.mxu0 %v8953_v37  ;;  %812 = vmatpush.msrb.mxu3 %v8974_v12  ;;  %v8997_v37 = vld [vmem:[#allocation74_spill] sm:$0xff]  ;;  %v9003_v12 = vld [vmem:[#allocation100_spill] sm:$0xff] }
  0xc3   :  { %850 = vmatpush.msra.mxu1 %v8952_v36  ;;  %874 = vmatpush.msra.mxu2 %v8963_v49  ;;  %v8996_v36 = vld [vmem:[#allocation89_spill] sm:$0xff] }
  0xc4   :  { %829 = vmatpush.msra.mxu0 %v8957_v41  ;;  %813 = vmatpush.msrb.mxu3 %v8978_v17  ;;  %v9001_v41 = vld [vmem:[#allocation90_spill] sm:$0xff]  ;;  %v9007_v17 = vld [vmem:[#allocation96_spill] sm:$0xff] }
  0xc5   :  { %851 = vmatpush.msra.mxu1 %v8956_v40  ;;  %875 = vmatpush.msra.mxu2 %v8968_v6  ;;  %v9000_v40 = vld [vmem:[#allocation86_spill] sm:$0xff]  ;;  %v301_v43 = vpop.f32.mrf.mxu0 }
  0xc6   :  { %830 = vmatpush.msra.mxu0 %v8961_v47  ;;  %814 = vmatpush.msrb.mxu3 %v8982_v22  ;;  %v5333_v6 = vld [vmem:[%s8300_s0 + $0x10] sm:$0xff] }
  0xc7   :  { %852 = vmatpush.msra.mxu1 %v8960_v45  ;;  %876 = vmatpush.msra.mxu2 %v8976_v14  ;;  %v5318_v45 = vpop.permute.xlu0 %563  ;;  %v9005_v14 = vld [vmem:[#allocation95_spill] sm:$0xff] }
  0xc8   :  { %831 = vmatpush.msra.mxu0 %v8965_v3  ;;  %2630 = vperm.xlu2 %3689, %v3650_v20   ;;  %v5328_v3 = vpop.f32.mrf.mxu1  ;;  %v5352_v20 = vld [vmem:[#allocation6 + $0x348] sm:$0xff] }
  0xc9   :  { %853 = vmatpush.msra.mxu1 %v8964_v2  ;;  %877 = vmatpush.msra.mxu2 %v8980_v19  ;;  %v5326_v2 = vld [vmem:[%s8305_s5] ss:$0 sm:$0xff]  ;;  %v9008_v19 = vld [vmem:[#allocation98_spill] sm:$0xff] }
  0xca   :  { %832 = vmatpush.msra.mxu0 %v8969_v7  ;;  %815 = vmatpush.msrb.mxu3 %v8985_v25 }
  0xcb   :  { %854 = vmatpush.msra.mxu1 %v8967_v5  ;;  %878 = vmatpush.msra.mxu2 %v8987_v27  ;;  %v370_v42 = vpop.f32.mrf.mxu3  ;;  %v9011_v27 = vld [vmem:[#allocation101_spill] sm:$0xff] }
  0xcc   :  { %833 = vmatpush.msra.mxu0 %v8973_v11  ;;  %816 = vmatpush.msrb.mxu3 %v8989_v29  ;;  %v571_v47 = vmul.f32 %v5318_v45, %v370_v42  ;;  %v5365_v29 = vld [vmem:[#allocation6 + $0x310] sm:$0xff]  ;;  %v9018_v42 = vld [vmem:[#allocation115_spill] sm:$0xff] }
  0xcd   :  { %855 = vmatpush.msra.mxu1 %v8971_v9  ;;  %879 = vmatpush.msra.mxu2 %v8991_v31  ;;  %v5321_v48 = vpop.f32.mrf.mxu2  ;;  %v9013_v31 = vld [vmem:[#allocation102_spill] sm:$0xff] }
  0xce   :  { %834 = vmatpush.msra.mxu0 %v8977_v16  ;;  %v577_v51 = vadd.f32 %v571_v47, %v301_v43  ;;  %725 = vmatmul.f32.vlgmr.msra.gmra.mxu3 %v5333_v6  ;;  %v9006_v16 = vld [vmem:[#allocation103_spill] sm:$0xff]  ;;  %v9019_v43 = vld [vmem:[#allocation108_spill] sm:$0xff]  ;;  %v9020_v47 = vld [vmem:[#allocation110_spill] sm:$0xff] }
  0xcf   :  { %856 = vmatpush.msra.mxu1 %v8975_v13  ;;  %880 = vmatpush.msra.mxu2 %v8994_v34  ;;  %v9004_v13 = vld [vmem:[#allocation93_spill] sm:$0xff]  ;;  %v9014_v34 = vld [vmem:[#allocation104_spill] sm:$0xff] }
  0xd0   :  { %835 = vmatpush.msra.mxu0 %v8981_v21  ;;  %771 = vmatmul.f32.vlgmr.msrb.gmra.mxu1 %v5333_v6 }
  0xd1   :  { %857 = vmatpush.msra.mxu1 %v8979_v18  ;;  %881 = vmatpush.msra.mxu2 %v8997_v37  ;;  %v9015_v37 = vld [vmem:[#allocation112_spill] sm:$0xff] }
  0xd2   :  { %836 = vmatpush.msra.mxu0 %v8984_v24  ;;  %893 = vmatpush.msra.mxu3 %v9002_v10  ;;  %v9010_v24 = vld [vmem:[#allocation99_spill] sm:$0xff]  ;;  %v9024_v10 = vld [vmem:[#allocation121_spill] sm:$0xff] }
  0xd3   :  { %858 = vmatpush.msra.mxu1 %v8983_v23  ;;  %882 = vmatpush.msra.mxu2 %v8998_v38  ;;  %v304_v49 = vpop.f32.mrf.mxu0  ;;  %v9009_v23 = vld [vmem:[#allocation106_spill] sm:$0xff]  ;;  %v9016_v38 = vld [vmem:[#allocation105_spill] sm:$0xff] }
  0xd4   :  { %837 = vmatpush.msra.mxu0 %v8988_v28  ;;  %v5335_v7 = vpop.permute.xlu0 %568  ;;  %894 = vmatpush.msra.mxu3 %v9005_v14  ;;  %v5363_v28 = vld [vmem:[%s8300_s0 + $0x18] sm:$0xff] }
  0xd5   :  { %859 = vmatpush.msra.mxu1 %v8986_v26  ;;  %883 = vmatpush.msra.mxu2 %v8999_v39  ;;  %v5357_v25 = vpop.f32.mrf.mxu1  ;;  %v3607_v39 = vld [vmem:[%s8301_s1 + $0x10] sm:$0xff]  ;;  %v9026_v14 = vld [vmem:[#allocation116_spill] sm:$0xff] }
  0xd6   :  { %838 = vmatpush.msra.mxu0 %v8992_v32  ;;  %794 = vmatmul.f32.vlgmr.msrb.gmra.mxu2 %v5333_v6  ;;  %vm703_vm11 = vcmp.gt.f32.partialorder %v3607_v39, 0.5 }
  0xd7   :  { %860 = vmatpush.msra.mxu1 %v8990_v30  ;;  %884 = vmatpush.msra.mxu2 %v9000_v40  ;;  %v9012_v30 = vld [vmem:[#allocation109_spill] sm:$0xff] }
  0xd8   :  { %839 = vmatpush.msra.mxu0 %v8995_v35  ;;  %895 = vmatpush.msra.mxu3 %v9008_v19  ;;  %v9028_v19 = vld [vmem:[#allocation117_spill] sm:$0xff] }
  0xd9   :  { %861 = vmatpush.msra.mxu1 %v8993_v33  ;;  %885 = vmatpush.msra.mxu2 %v9001_v41  ;;  %v9017_v41 = vld [vmem:[#allocation107_spill] sm:$0xff] }
  0xda   :  { %v373_v44 = vpop.f32.mrf.mxu3  ;;  %748 = vmatmul.f32.vlgmr.msrb.gmra.mxu0 %v5333_v6  ;;  %896 = vmatpush.msra.mxu3 %v9011_v27  ;;  %v9030_v27 = vld [vmem:[#allocation120_spill] sm:$0xff] }
  0xdb   :  { %862 = vmatpush.msra.mxu1 %v8996_v36  ;;  %v574_v9 = vmul.f32 %v5335_v7, %v373_v44  ;;  %916 = vmatpush.msrb.mxu0 %v9003_v12  ;;  %v3609_v44 = vsel %vm703_vm11, 1.0, %v8875_v57 }
  0xdc   :  { %v5347_v15 = vpop.f32.mrf.mxu2  ;;  %1119 = vmatpush.msrb.mxu2 %v5352_v20  ;;  %728 = vmatmul.f32.gmra.mxu3 %v5363_v28 }
  0xdd   :  { %939 = vmatpush.msrb.mxu1 %v9004_v13  ;;  %917 = vmatpush.msrb.mxu0 %v9006_v16  ;;  %v580_v18 = vadd.f32 %v574_v9, %v304_v49  ;;  %v9021_v49 = vld [vmem:[#allocation118_spill] sm:$0xff]  ;;  %v3608_v16 = vld [vmem:[%s8301_s1 + $0x18] sm:$0xff] }
  0xde   :  { %1120 = vmatpush.msrb.mxu2 %v5365_v29  ;;  %774 = vmatmul.f32.gmra.mxu1 %v5363_v28  ;;  %vm704_vm12 = vcmp.gt.f32.partialorder %v3608_v16, 0.5 }
  0xdf   :  { %940 = vmatpush.msrb.mxu1 %v9007_v17  ;;  %918 = vmatpush.msrb.mxu0 %v9009_v23 }
  0xe0   :  { %897 = vmatpush.msra.mxu3 %v9014_v34  ;;  %797 = vmatmul.f32.gmra.mxu2 %v5363_v28  ;;  %v9032_v34 = vld [vmem:[#allocation123_spill] sm:$0xff] }
  0xe1   :  { %v393_v21 = vpop.f32.mrf.mxu0  ;;  %941 = vmatpush.msrb.mxu1 %v9010_v24  ;;  %919 = vmatpush.msrb.mxu0 %v9012_v30  ;;  %v9029_v24 = vld [vmem:[#allocation119_spill] sm:$0xff] }
  0xe2   :  { %751 = vmatmul.f32.gmra.mxu0 %v5363_v28  ;;  %898 = vmatpush.msra.mxu3 %v9017_v41  ;;  %v572_v13 = vmul.f32 %v5318_v45, %v393_v21  ;;  %v5419_v21 = vld [vmem:[#allocation6 + $0x2a0] sm:$0xff] }
  0xe3   :  { %942 = vmatpush.msrb.mxu1 %v9013_v31  ;;  %920 = vmatpush.msrb.mxu0 %v9015_v37  ;;  %v5431_v31 = vld [vmem:[%s8305_s5 + $0x1] ss:$0 sm:$0xff]  ;;  %v5437_v37 = vld [vmem:[#allocation6 + $0x268] sm:$0xff] }
  0xe4   :  { %899 = vmatpush.msra.mxu3 %v9020_v47  ;;  %985 = vperm.xlu1 %3688, %v3609_v44   ;;  %v578_v30 = vadd.f32 %v572_v13, %v5328_v3  ;;  %v5505_v13 = vld [vmem:[#allocation6 + $0x360] sm:$0xff] }
  0xe5   :  { %943 = vmatpush.msrb.mxu1 %v9016_v38  ;;  %921 = vmatpush.msrb.mxu0 %v9018_v42  ;;  %v9034_v38 = vld [vmem:[#allocation126_spill] sm:$0xff]  ;;  %v3628_v42 = vld [vmem:[%s8301_s1 + $0x38] sm:$0xff] }
  0xe6   :  { %817 = vmatmul.f32.vlgmr.msrb.gmra.mxu3 %v5333_v6  ;;  %863 = vmatmul.f32.vlgmr.msra.gmra.mxu1 %v5333_v6  ;;  %vm1524_vm13 = vcmp.gt.f32.partialorder %v3628_v42, 0.5 }
  0xe7   :  { %944 = vmatpush.msrb.mxu1 %v9019_v43  ;;  %922 = vmatpush.msrb.mxu0 %v9021_v49  ;;  %v3630_v44 = vsel %vm1524_vm13, 1.0, %v8875_v57 }
  0xe9   :  { %923 = vmatpush.msrb.mxu0 %v9024_v10 }
  0xea   :  { %840 = vmatmul.f32.vlgmr.msra.gmra.mxu0 %v5333_v6  ;;  %v3610_v6 = vsel %vm704_vm12, 1.0, %v8875_v57 }
  0xeb   :  { %v5382_v40 = vpop.f32.mrf.mxu2 }
  0xec   :  { %v462_v4 = vpop.f32.mrf.mxu3  ;;  %990 = vperm.xlu1 %3688, %v3610_v6  }
  0xed   :  { %v583_v5 = vadd.f32 %v577_v51, %v462_v4  ;;  %v5391_v51 = vld [vmem:[#allocation6 + $0x2d8] sm:$0xff]  ;;  %v396_v4 = vpop.f32.mrf.mxu0 }
  0xee   :  { %1121 = vmatpush.msrb.mxu2 %v5391_v51  ;;  %v5397_v9 = vpop.f32.mrf.mxu1  ;;  %v575_v39 = vmul.f32 %v5335_v7, %v396_v4  ;;  %820 = vmatmul.f32.gmra.mxu3 %v5363_v28 }
  0xef   :  { %v588_v8 = vadd.f32 %v5326_v2, %v583_v5  ;;  %v9022_v5 = vld [vmem:[#allocation111_spill] sm:$0xff]  ;;  %866 = vmatmul.f32.gmra.mxu1 %v5363_v28 }
  0xf0   :  { %945 = vmatpush.msrb.mxu1 %v9022_v5  ;;  %1122 = vmatpush.msrb.mxu2 %v5419_v21  ;;  %v581_v4 = vadd.f32 %v575_v39, %v5357_v25  ;;  %v5554_v39 = vld [vmem:[#allocation6 + $0x2f0] sm:$0xff] }
  0xf1   :  { %v3601_v11 = vmul.f32 -1.442695, %v588_v8  ;;  %v9023_v8 = vld [vmem:[#allocation113_spill] sm:$0xff] }
  0xf2   :  { %900 = vmatpush.msra.mxu3 %v9023_v8  ;;  %1123 = vmatpush.msrb.mxu2 %v5437_v37  ;;  %v5609_v8 = vld [vmem:[#allocation6 + $0xa8] sm:$0xff] }
  0xf3   :  { %3700 = vpow2.f32 %v3601_v11  ;;  %v9025_v11 = vld [vmem:[#allocation114_spill] sm:$0xff]  ;;  %v5415_v23 = vpop.f32.mrf.mxu2  ;;  %843 = vmatmul.f32.gmra.mxu0 %v5363_v28  ;;  %v5462_v28 = vld [vmem:[#allocation6 + $0x230] sm:$0xff] }
  0xf4   :  { %946 = vmatpush.msrb.mxu1 %v9025_v11  ;;  %901 = vmatpush.msra.mxu3 %v9026_v14  ;;  %v5502_v11 = vld [vmem:[#allocation6 + $0x350] sm:$0xff]  ;;  %v573_v14 = vmul.f32 %v5318_v45, %v5397_v9  ;;  %v5522_v45 = vld [vmem:[#allocation6 + $0x318] sm:$0xff]  ;;  %v5525_v9 = vld [vmem:[#allocation6 + $0x328] sm:$0xff] }
  0xf5   :  { %1124 = vmatpush.msrb.mxu2 %v5462_v28  ;;  %1810 = vperm.xlu1 %3688, %v3630_v44   ;;  %v5563_v44 = vld [vmem:[#allocation6 + $0x118] sm:$0xff] }
  0xf6   :  { %947 = vmatpush.msrb.mxu1 %v9028_v19  ;;  %902 = vmatpush.msra.mxu3 %v9029_v24  ;;  %v5443_v41 = vpop.f32.mrf.mxu1  ;;  %v5516_v19 = vld [vmem:[#allocation6 + $0x1c0] sm:$0xff] }
  0xf7   :  { %v5519_v24 = vld [vmem:[#allocation6 + $0x320] sm:$0xff] }
  0xf8   :  { %948 = vmatpush.msrb.mxu1 %v9030_v27  ;;  %v3658_v27 = vld [vmem:[%s8301_s1 + $0x68] sm:$0xff] }
  0xf9   :  { %v465_v22 = vpop.f32.mrf.mxu3  ;;  %v3701_v33 = vpop.eup %3700  ;;  %vm2754_vm4 = vcmp.gt.f32.partialorder %v3658_v27, 0.5 }
  0xfa   :  { %v584_v26 = vadd.f32 %v580_v18, %v465_v22  ;;  %v5375_v35 = vadd.f32 1.0, %v3701_v33  ;;  %v9027_v18 = vld [vmem:[#allocation124_spill] sm:$0xff]  ;;  %949 = vmatpush.msrb.mxu1 %v9032_v34 }
  0xfb   :  { %924 = vmatpush.msrb.mxu0 %v9027_v18  ;;  %v5537_v34 = vld [vmem:[#allocation6 + $0x2e8] sm:$0xff] }
  0xfc   :  { %v589_v32 = vadd.f32 %v5326_v2, %v584_v26  ;;  %3702 = vrcp.f32 %v5375_v35  ;;  %950 = vmatpush.msrb.mxu1 %v9034_v38  ;;  %vm603_vm15 = vweird.f32 %v5375_v35 }
  0xfd   :  { %925 = vmatpush.msrb.mxu0 %v5118_v52 }
  0xfe   :  { %v3602_v36 = vmul.f32 -1.442695, %v589_v32  ;;  %v9031_v32 = vld [vmem:[#allocation122_spill] sm:$0xff]  ;;  %951 = vmatpush.msrb.mxu1 %v5129_v56 }
  0xff   :  { %903 = vmatpush.msra.mxu3 %v9031_v32  ;;  %926 = vmatpush.msrb.mxu0 %v5131_v50 }
 0x100   :  { %3704 = vpow2.f32 %v3602_v36  ;;  %v9033_v36 = vld [vmem:[#allocation125_spill] sm:$0xff]  ;;  %952 = vmatpush.msrb.mxu1 %v5138_v55 }
 0x101   :  { %904 = vmatpush.msra.mxu3 %v9033_v36  ;;  %927 = vmatpush.msrb.mxu0 %v5140_v61  ;;  %v579_v36 = vadd.f32 %v573_v14, %v5321_v48  ;;  %v5612_v14 = vld [vmem:[#allocation6 + $0x208] sm:$0xff] }
 0x102   :  { %v5403_v12 = vpop.eup %3702  ;;  %953 = vmatpush.msrb.mxu1 %v5147_v58  ;;  %v3647_v58 = vld [vmem:[%s8301_s1 + $0x50] sm:$0xff]  ;;  %s3580_s1 = sshll.u32 %s8308_s8, 4  ;;  %s3581_s1 = int_to_ptr.hbm [resolvable:$true] %s3580_s1 }
 0x103   :  { %v599_v26 = vmul.f32 %v5403_v12, %v5375_v35  ;;  %905 = vmatpush.msra.mxu3 %v5122_v54  ;;  %928 = vmatpush.msrb.mxu0 %v5149_v60  ;;  %vm604_vm14 = vweird.f32 %v5403_v12  ;;  %vm2343_vm0 = vcmp.gt.f32.partialorder %v3647_v58, 0.5 }
 0x104   :  { %954 = vmatpush.msrb.mxu1 %v5157_v0  ;;  %vm5497_vm1 = vmor %vm603_vm15, %vm604_vm14  ;;  %v3649_v10 = vsel %vm2343_vm0, 1.0, %v8875_v57 }
 0x105   :  { %v600_v3 = vsub.f32 1.0, %v599_v26  ;;  %906 = vmatpush.msra.mxu3 %v5135_v62  ;;  %929 = vmatpush.msrb.mxu0 %v5161_v63  ;;  %v609_v63 = vand.u32 2147483648, %v5375_v35 }
 0x106   :  { %v3705_v17 = vpop.eup %3704  ;;  %1188 = vmatpush.msra.mxu1 %v5505_v13  ;;  %2625 = vperm.xlu1 %3688, %v3649_v10  }
 0x107   :  { %v5413_v22 = vadd.f32 1.0, %v3705_v17  ;;  %v601_v47 = vmul.f32 %v5403_v12, %v600_v3  ;;  %907 = vmatpush.msra.mxu3 %v5144_v59  ;;  %930 = vmatpush.msrb.mxu0 %v5167_v1  ;;  %v607_v59 = vand.u32 2147483647, %v5375_v35  ;;  %v5489_v1 = vld [vmem:[#allocation6 + $0x1f8] sm:$0xff]  ;;  %v610_v6 = vor.u32 1.1754944e-38, %v609_v63  ;;  %v5593_v63 = vld [vmem:[#allocation6 + $0xe0] sm:$0xff] }
 0x108   :  { %1125 = vmatpush.msrb.mxu2 %v5489_v1  ;;  %1189 = vmatpush.msra.mxu1 %v5525_v9  ;;  %v5547_v3 = vld [vmem:[%s8305_s5 + $0x2] ss:$0 sm:$0xff] }
 0x109   :  { %3706 = vrcp.f32 %v5413_v22  ;;  %v602_v62 = vadd.f32 %v5403_v12, %v601_v47  ;;  %908 = vmatpush.msra.mxu3 %v5154_v53  ;;  %931 = vmatpush.msrb.mxu0 %v5171_v46  ;;  %v5487_v53 = vld [vmem:[%s8305_s5 + $0x3] ss:$0 sm:$0xff]  ;;  %v5492_v46 = vld [vmem:[#allocation6 + $0x358] sm:$0xff]  ;;  %vm608_vm2 = vcmp.eq.f32.partialorder %v607_v59, 8.507059e+37  ;;  %9038 = vst [vmem:[#allocation20_spill] sm:$0xff] %v5547_v3  ;;  %v624_v48 = vand.u32 2147483648, %v5413_v22 }
 0x10a   :  { %9035 = vst [vmem:[#allocation17_spill] sm:$0xff] %v5487_v53  ;;  %1126 = vmatpush.msrb.mxu2 %v5516_v19  ;;  %1190 = vmatpush.msra.mxu1 %v5554_v39  ;;  %vm618_vm5 = vweird.f32 %v5413_v22  ;;  %v5566_v47 = vld [vmem:[#allocation6 + $0x2a8] sm:$0xff] }
 0x10b   :  { %1165 = vmatpush.msra.mxu0 %v5492_v46  ;;  %1142 = vmatpush.msrb.mxu3 %v5502_v11  ;;  %v606_v17 = vsel %vm5497_vm1, %v5403_v12, %v602_v62  ;;  %v676_v62 = vadd.f32 %v5547_v3, %v579_v36  ;;  %v625_v59 = vor.u32 1.1754944e-38, %v624_v48  ;;  %v5638_v48 = vld [vmem:[#allocation6 + $0x210] sm:$0xff] }
 0x10c   :  { %v611_v32 = vsel %vm608_vm2, %v610_v6, %v606_v17  ;;  %v5615_v17 = vld [vmem:[#allocation6 + $0x238] sm:$0xff] }
 0x10d   :  { %1166 = vmatpush.msra.mxu0 %v5519_v24  ;;  %1143 = vmatpush.msrb.mxu3 %v5522_v45 }
 0x10f   :  { %v5453_v61 = vpop.eup %3706  ;;  %1167 = vmatpush.msra.mxu0 %v5537_v34 }
 0x110   :  { %v614_v49 = vmul.f32 %v5453_v61, %v5413_v22  ;;  %vm619_vm3 = vweird.f32 %v5453_v61 }
 0x111   :  { %vm5571_vm6 = vmor %vm618_vm5, %vm619_vm3 }
 0x112   :  { %v615_v25 = vsub.f32 1.0, %v614_v49 }
 0x113   :  { %v485_v33 = vpop.f32.mrf.mxu0 }
 0x114   :  { %v628_v52 = vadd.f32 %v578_v30, %v485_v33  ;;  %v616_v18 = vmul.f32 %v5453_v61, %v615_v25  ;;  %v5533_v30 = vld [vmem:[#allocation6 + $0x188] sm:$0xff]  ;;  %v576_v25 = vmul.f32 %v5335_v7, %v5443_v41  ;;  %v5604_v7 = vld [vmem:[#allocation6 + $0x280] sm:$0xff] }
 0x115   :  { %1127 = vmatpush.msrb.mxu2 %v5533_v30 }
 0x116   :  { %v633_v50 = vadd.f32 %v5431_v31, %v628_v52  ;;  %v5540_v52 = vld [vmem:[#allocation6 + $0x2e0] sm:$0xff]  ;;  %v617_v38 = vadd.f32 %v5453_v61, %v616_v18  ;;  %v582_v18 = vadd.f32 %v576_v25, %v5347_v15 }
 0x117   :  { %1144 = vmatpush.msrb.mxu3 %v5540_v52  ;;  %v5632_v15 = vld [vmem:[#allocation6 + $0x200] sm:$0xff] }
 0x118   :  { %v3603_v43 = vmul.f32 -1.442695, %v633_v50  ;;  %v5558_v50 = vld [vmem:[#allocation6 + $0x2b0] sm:$0xff] }
 0x119   :  { %v508_v55 = vpop.f32.mrf.mxu1  ;;  %1168 = vmatpush.msra.mxu0 %v5558_v50  ;;  %1145 = vmatpush.msrb.mxu3 %v5566_v47 }
 0x11a   :  { %3708 = vpow2.f32 %v3603_v43  ;;  %v531_v54 = vpop.f32.mrf.mxu2  ;;  %v681_v12 = vadd.f32 %v5487_v53, %v508_v55  ;;  %v622_v43 = vand.u32 2147483647, %v5413_v22  ;;  %v5577_v22 = vld [vmem:[#allocation6 + $0x278] sm:$0xff] }
 0x11b   :  { %v488_v60 = vpop.f32.mrf.mxu0  ;;  %v537_v56 = vadd.f32 %v531_v54, %v5382_v40  ;;  %1169 = vmatpush.msra.mxu0 %v5577_v22 }
 0x11c   :  { %v629_v5 = vadd.f32 %v581_v4, %v488_v60  ;;  %v683_v42 = vmul.f32 %v681_v12, %v611_v32  ;;  %v3660_v60 = vsel %vm2754_vm4, 1.0, %v8875_v57  ;;  %v621_v57 = vsel %vm5571_vm6, %v5453_v61, %v617_v38  ;;  %v5623_v12 = vld [vmem:[#allocation6 + $0x248] sm:$0xff]  ;;  %v5635_v38 = vld [vmem:[#allocation6 + $0x38] sm:$0xff] }
 0x11d   :  { %539 = vadd.xlane.f32.xlu2 %v537_v56  ;;  %v5580_v56 = vld [vmem:[#allocation6 + $0x2b8] sm:$0xff]  ;;  %vm623_vm7 = vcmp.eq.f32.partialorder %v622_v43, 8.507059e+37  ;;  %3040 = vperm.xlu1 %3688, %v3660_v60   ;;  %v677_v4 = vadd.f32 %v5547_v3, %v582_v18  ;;  %v5680_v3 = vld [vmem:[#allocation6 + $0xf0] sm:$0xff] }
 0x11e   :  { %v634_v40 = vadd.f32 %v5431_v31, %v629_v5  ;;  %1191 = vmatpush.msra.mxu1 %v5580_v56  ;;  %v685_v41 = vadd.f32 %v683_v42, %v676_v62  ;;  %v626_v10 = vsel %vm623_vm7, %v625_v59, %v621_v57  ;;  %v5643_v43 = vld [vmem:[#allocation6 + $0x198] sm:$0xff]  ;;  %v5652_v62 = vld [vmem:[#allocation6] sm:$0xff]  ;;  %v5663_v59 = vld [vmem:[#allocation6 + $0x190] sm:$0xff]  ;;  %9042 = vst [vmem:[#allocation13_spill] sm:$0xff] %v5680_v3 }
 0x120   :  { %v3709_v0 = vpop.eup %3708  ;;  %v3604_v35 = vmul.f32 -1.442695, %v634_v40  ;;  %v5596_v40 = vld [vmem:[#allocation6 + $0x270] sm:$0xff]  ;;  %1192 = vmatpush.msra.mxu1 %v5604_v7 }
 0x121   :  { %v5510_v16 = vadd.f32 1.0, %v3709_v0  ;;  %v511_v54 = vpop.f32.mrf.mxu1  ;;  %1146 = vmatpush.msrb.mxu3 %v5596_v40  ;;  %v5601_v0 = vld [vmem:[#allocation6 + $0x240] sm:$0xff] }
 0x122   :  { %3710 = vpow2.f32 %v3604_v35  ;;  %v534_v26 = vpop.f32.mrf.mxu2  ;;  %1170 = vmatpush.msra.mxu0 %v5601_v0  ;;  %v682_v61 = vadd.f32 %v5487_v53, %v511_v54  ;;  %1193 = vmatpush.msra.mxu1 %v5623_v12  ;;  %v5683_v53 = vld [vmem:[#allocation6 + $0x120] sm:$0xff] }
 0x123   :  { %3712 = vrcp.f32 %v5510_v16  ;;  %v538_v33 = vadd.f32 %v534_v26, %v5415_v23  ;;  %v5551_v23 = vld [vmem:[#allocation6 + $0x150] sm:$0xff]  ;;  %1147 = vmatpush.msrb.mxu3 %v5615_v17  ;;  %v654_v6 = vand.u32 2147483648, %v5510_v16  ;;  %v652_v32 = vand.u32 2147483647, %v5510_v16 }
 0x124   :  { %1128 = vmatpush.msrb.mxu2 %v5551_v23  ;;  %1171 = vmatpush.msra.mxu0 %v5612_v14  ;;  %v5620_v26 = vld [vmem:[#allocation6 + $0x70] sm:$0xff]  ;;  %v684_v36 = vmul.f32 %v682_v61, %v626_v10  ;;  %vm648_vm9 = vweird.f32 %v5510_v16 }
 0x125   :  { %541 = vadd.xlane.f32.xlu0 %v538_v33  ;;  %v5629_v33 = vld [vmem:[#allocation6 + $0x1d0] sm:$0xff]  ;;  %1148 = vmatpush.msrb.mxu3 %v5632_v15  ;;  %v655_v60 = vor.u32 1.1754944e-38, %v654_v6  ;;  %vm653_vm11 = vcmp.eq.f32.partialorder %v652_v32, 8.507059e+37  ;;  %v5672_v6 = vld [vmem:[#allocation6 + $0x158] sm:$0xff] }
 0x126   :  { %1129 = vmatpush.msrb.mxu2 %v5563_v44  ;;  %1172 = vmatpush.msra.mxu0 %v5629_v33  ;;  %v686_v61 = vadd.f32 %v684_v36, %v677_v4  ;;  %v5677_v36 = vld [vmem:[#allocation6 + $0x168] sm:$0xff] }
 0x127   :  { %1194 = vmatpush.msra.mxu1 %v5638_v48 }
 0x128   :  { %v3711_v49 = vpop.eup %3710  ;;  %1130 = vmatpush.msrb.mxu2 %v5593_v63  ;;  %1173 = vmatpush.msra.mxu0 %v5643_v43 }
 0x129   :  { %v5583_v5 = vpop.eup %3712  ;;  %v5588_v55 = vadd.f32 1.0, %v3711_v49  ;;  %v5646_v49 = vld [vmem:[#allocation6 + $0x1c8] sm:$0xff] }
 0x12a   :  { %v644_v58 = vmul.f32 %v5583_v5, %v5510_v16  ;;  %1131 = vmatpush.msrb.mxu2 %v5609_v8  ;;  %vm649_vm8 = vweird.f32 %v5583_v5  ;;  %1149 = vmatpush.msrb.mxu3 %v5646_v49  ;;  %v5655_v16 = vld [vmem:[#allocation6 + $0x1d8] sm:$0xff] }
 0x12b   :  { %3714 = vrcp.f32 %v5588_v55  ;;  %vm650_vm10 = vmor %vm648_vm9, %vm649_vm8  ;;  %1195 = vmatpush.msra.mxu1 %v5655_v16  ;;  %v669_v32 = vand.u32 2147483648, %v5588_v55  ;;  %vm663_vm13 = vweird.f32 %v5588_v55 }
 0x12c   :  { %v645_v35 = vsub.f32 1.0, %v644_v58  ;;  %1132 = vmatpush.msrb.mxu2 %v5620_v26  ;;  %3716 = vtanh.f32 %v685_v41  ;;  %v5660_v58 = vld [vmem:[#allocation6 + $0x160] sm:$0xff]  ;;  %1150 = vmatpush.msrb.mxu3 %v5663_v59 }
 0x12d   :  { %1174 = vmatpush.msra.mxu0 %v5660_v58  ;;  %3718 = vtanh.f32 %v686_v61  ;;  %v670_v61 = vor.u32 1.1754944e-38, %v669_v32  ;;  %v5709_v32 = vld [vmem:[#allocation6 + $0x80] sm:$0xff] }
 0x12e   :  { %v646_v27 = vmul.f32 %v5583_v5, %v645_v35  ;;  %1133 = vmatpush.msrb.mxu2 %v5635_v38  ;;  %v5666_v35 = vld [vmem:[#allocation6 + $0x1a0] sm:$0xff]  ;;  %1151 = vmatpush.msrb.mxu3 %v5672_v6  ;;  %9046 = vst [vmem:[#allocation15_spill] sm:$0xff] %v5709_v32 }
 0x12f   :  { %1196 = vmatpush.msra.mxu1 %v5666_v35 }
 0x130   :  { %v647_v42 = vadd.f32 %v5583_v5, %v646_v27  ;;  %1134 = vmatpush.msrb.mxu2 %v5652_v62  ;;  %1152 = vmatpush.msrb.mxu3 %v5683_v53 }
 0x131   :  { %v3715_v54 = vpop.eup %3714  ;;  %1197 = vmatpush.msra.mxu1 %v5677_v36 }
 0x132   :  { %v651_v25 = vsel %vm650_vm10, %v5583_v5, %v647_v42  ;;  %v659_v57 = vmul.f32 %v3715_v54, %v5588_v55  ;;  %v5669_v5 = vld [vmem:[#allocation6 + $0x128] sm:$0xff]  ;;  %v3717_v27 = vpop.eup %3716  ;;  %v667_v42 = vand.u32 2147483647, %v5588_v55  ;;  %vm664_vm12 = vweird.f32 %v3715_v54 }
 0x133   :  { %v656_v41 = vsel %vm653_vm11, %v655_v60, %v651_v25  ;;  %9041 = vst [vmem:[#allocation14_spill] sm:$0xff] %v5669_v5  ;;  %1175 = vmatpush.msra.mxu0 %v5669_v5  ;;  %v3907_v25 = vld [vmem:[#allocation3] sm:$0xff]  ;;  %vm665_vm14 = vmor %vm663_vm13, %vm664_vm12 }
 0x134   :  { %v689_v10 = vsub.f32 1.0, %v656_v41  ;;  %v660_v18 = vsub.f32 1.0, %v659_v57  ;;  %v693_v57 = vmul.f32 %v3907_v25, %v656_v41  ;;  %v5686_v5 = vld [vmem:[#allocation6 + $0x130] sm:$0xff]  ;;  %v5695_v41 = vld [vmem:[#allocation6 + $0xe8] sm:$0xff]  ;;  %v5699_v25 = vld [vmem:[#allocation6 + $0xf8] sm:$0xff]  ;;  %vm668_vm15 = vcmp.eq.f32.partialorder %v667_v42, 8.507059e+37 }
 0x135   :  { %1176 = vmatpush.msra.mxu0 %v5680_v3  ;;  %1198 = vmatpush.msra.mxu1 %v5686_v5  ;;  %v5712_v42 = vld [vmem:[#allocation6 + $0xb0] sm:$0xff] }
 0x136   :  { %v691_v4 = vmul.f32 %v3717_v27, %v689_v10  ;;  %v661_v60 = vmul.f32 %v3715_v54, %v660_v18  ;;  %v5692_v27 = vld [vmem:[#allocation6 + $0xb8] sm:$0xff]  ;;  %1153 = vmatpush.msrb.mxu3 %v5695_v41 }
 0x137   :  { %9044 = vst [vmem:[#allocation24_spill] sm:$0xff] %v5692_v27  ;;  %1177 = vmatpush.msra.mxu0 %v5692_v27  ;;  %1199 = vmatpush.msra.mxu1 %v5699_v25  ;;  %v5727_v27 = vld [vmem:[#allocation6 + $0x88] sm:$0xff] }
 0x138   :  { %v662_v10 = vadd.f32 %v3715_v54, %v661_v60  ;;  %v5690_v18 = vadd.f32 %v693_v57, %v691_v4  ;;  %v5706_v60 = vld [vmem:[#allocation6 + $0x368] sm:$0xff]  ;;  %1154 = vmatpush.msrb.mxu3 %v5712_v42  ;;  %v5715_v57 = vld [vmem:[#allocation6 + $0xc0] sm:$0xff] }
 0x139   :  { %9045 = vst [vmem:[#allocation16_spill] sm:$0xff] %v5706_v60  ;;  %1178 = vmatpush.msra.mxu0 %v5709_v32  ;;  %1200 = vmatpush.msra.mxu1 %v5715_v57  ;;  %v5724_v32 = vld [vmem:[#allocation6 + $0x78] sm:$0xff] }
 0x13a   :  { %9043 = vst [vmem:[#allocation21_spill] sm:$0xff] %v5690_v18  ;;  %v666_v3 = vsel %vm665_vm14, %v3715_v54, %v662_v10  ;;  %886 = vmatmul.f32.vlgmr.msra.gmra.mxu2 %v5690_v18  ;;  %909 = vmatmul.f32.vlgmr.msra.gmra.mxu3 %v5690_v18  ;;  %v3719_v54 = vpop.eup %3718  ;;  %v3918_v10 = vld [vmem:[#allocation3 + $0x8] sm:$0xff] }
 0x13b   :  { %v671_v55 = vsel %vm668_vm15, %v670_v61, %v666_v3  ;;  %932 = vmatmul.f32.vlgmr.msrb.gmra.mxu0 %v5690_v18  ;;  %955 = vmatmul.f32.vlgmr.msrb.gmra.mxu1 %v5690_v18  ;;  %9047 = vst [vmem:[#allocation25_spill] sm:$0xff] %v5715_v57  ;;  %v5718_v18 = vld [vmem:[#allocation6 + $0x330] sm:$0xff] }
 0x13c   :  { %v690_v4 = vsub.f32 1.0, %v671_v55  ;;  %1211 = vmatpush.msra.mxu2 %v5706_v60  ;;  %v694_v61 = vmul.f32 %v3918_v10, %v671_v55  ;;  %9048 = vst [vmem:[#allocation31_spill] sm:$0xff] %v5718_v18  ;;  %v5721_v60 = vld [vmem:[#allocation6 + $0x48] sm:$0xff]  ;;  %1155 = vmatpush.msrb.mxu3 %v5724_v32  ;;  %v5735_v55 = vld [vmem:[#allocation6 + $0x10] sm:$0xff]  ;;  %v5741_v10 = vld [vmem:[#allocation6 + $0x40] sm:$0xff] }
 0x13d   :  { %9049 = vst [vmem:[#allocation28_spill] sm:$0xff] %v5721_v60  ;;  %1179 = vmatpush.msra.mxu0 %v5721_v60  ;;  %1201 = vmatpush.msra.mxu1 %v5727_v27  ;;  %v5775_v60 = vld [vmem:[#allocation6 + $0x2d0] sm:$0xff] }
 0x13e   :  { %v692_v3 = vmul.f32 %v3719_v54, %v690_v4  ;;  %1212 = vmatpush.msra.mxu2 %v5718_v18  ;;  %v5732_v4 = vld [vmem:[#allocation6 + $0x2f8] sm:$0xff]  ;;  %9052 = vst [vmem:[#allocation35_spill] sm:$0xff] %v5735_v55  ;;  %1156 = vmatpush.msrb.mxu3 %v5741_v10  ;;  %v5757_v18 = vld [vmem:[#allocation6 + $0x8] sm:$0xff] }
 0x13f   :  { %9051 = vst [vmem:[#allocation19_spill] sm:$0xff] %v5732_v4  ;;  %1180 = vmatpush.msra.mxu0 %v5735_v55  ;;  %v5738_v54 = vld [vmem:[#allocation6 + $0x378] sm:$0xff]  ;;  %v5772_v55 = vld [vmem:[#allocation6 + $0x250] sm:$0xff] }
 0x140   :  { %v5730_v57 = vadd.f32 %v694_v61, %v692_v3  ;;  %1213 = vmatpush.msra.mxu2 %v5732_v4  ;;  %9053 = vst [vmem:[#allocation32_spill] sm:$0xff] %v5738_v54  ;;  %v5748_v3 = vld [vmem:[#allocation6 + $0x2c0] sm:$0xff]  ;;  %v5754_v4 = vld [vmem:[#allocation6 + $0x50] sm:$0xff]  ;;  %1157 = vmatpush.msrb.mxu3 %v5757_v18 }
 0x141   :  { %1257 = vmatpush.msrb.mxu0 %v5738_v54  ;;  %9054 = vst [vmem:[#allocation22_spill] sm:$0xff] %v5748_v3  ;;  %v5751_v61 = vld [vmem:[#allocation6 + $0x340] sm:$0xff]  ;;  %1202 = vmatpush.msra.mxu1 %v5754_v4  ;;  %v5760_v54 = vld [vmem:[#allocation6 + $0x288] sm:$0xff] }
 0x142   :  { %9050 = vst [vmem:[#allocation18_spill] sm:$0xff] %v5730_v57  ;;  %889 = vmatmul.f32.gmra.mxu2 %v5730_v57  ;;  %912 = vmatmul.f32.gmra.mxu3 %v5730_v57 }
 0x143   :  { %935 = vmatmul.f32.gmra.mxu0 %v5730_v57  ;;  %958 = vmatmul.f32.gmra.mxu1 %v5730_v57  ;;  %9055 = vst [vmem:[#allocation39_spill] sm:$0xff] %v5751_v61  ;;  %v5763_v57 = vld [vmem:[#allocation6 + $0x308] sm:$0xff] }
 0x144   :  { %1214 = vmatpush.msra.mxu2 %v5748_v3  ;;  %1258 = vmatpush.msrb.mxu0 %v5751_v61  ;;  %9056 = vst [vmem:[#allocation36_spill] sm:$0xff] %v5754_v4  ;;  %v5766_v3 = vld [vmem:[#allocation6 + $0x18] sm:$0xff]  ;;  %v5769_v61 = vld [vmem:[#allocation6 + $0x370] sm:$0xff] }
 0x145   :  { %9057 = vst [vmem:[#allocation23_spill] sm:$0xff] %v5757_v18  ;;  %1203 = vmatpush.msra.mxu1 %v5766_v3  ;;  %1234 = vmatpush.msra.mxu3 %v5769_v61 }
 0x146   :  { %9058 = vst [vmem:[#allocation26_spill] sm:$0xff] %v5760_v54  ;;  %1215 = vmatpush.msra.mxu2 %v5760_v54  ;;  %1259 = vmatpush.msrb.mxu0 %v5763_v57  ;;  %v5778_v54 = vld [vmem:[#allocation8 + $0x1e0] sm:$0xff] }
 0x147   :  { %9059 = vst [vmem:[#allocation29_spill] sm:$0xff] %v5763_v57  ;;  %1280 = vmatpush.msrb.mxu1 %v5778_v54  ;;  %v5781_v57 = vld [vmem:[#allocation6 + $0x338] sm:$0xff] }
 0x148   :  { %9060 = vst [vmem:[#allocation43_spill] sm:$0xff] %v5766_v3  ;;  %1216 = vmatpush.msra.mxu2 %v5772_v55  ;;  %1260 = vmatpush.msrb.mxu0 %v5775_v60  ;;  %v5784_v3 = vld [vmem:[#allocation6 + $0x218] sm:$0xff] }
 0x149   :  { %9061 = vst [vmem:[#allocation40_spill] sm:$0xff] %v5769_v61  ;;  %1235 = vmatpush.msra.mxu3 %v5781_v57  ;;  %v5787_v61 = vld [vmem:[#allocation6 + $0x298] sm:$0xff] }
 0x14a   :  { %9062 = vst [vmem:[#allocation27_spill] sm:$0xff] %v5772_v55  ;;  %1217 = vmatpush.msra.mxu2 %v5784_v3  ;;  %1261 = vmatpush.msrb.mxu0 %v5787_v61  ;;  %v5790_v55 = vld [vmem:[#allocation8 + $0x1c0] sm:$0xff] }
 0x14b   :  { %9063 = vst [vmem:[#allocation33_spill] sm:$0xff] %v5775_v60  ;;  %1281 = vmatpush.msrb.mxu1 %v5790_v55  ;;  %v5793_v60 = vld [vmem:[#allocation6 + $0x300] sm:$0xff] }
 0x14c   :  { %9064 = vst [vmem:[#allocation47_spill] sm:$0xff] %v5778_v54  ;;  %1236 = vmatpush.msra.mxu3 %v5793_v60  ;;  %v5796_v54 = vld [vmem:[#allocation6 + $0x1e0] sm:$0xff] }
 0x14d   :  { %9065 = vst [vmem:[#allocation44_spill] sm:$0xff] %v5781_v57  ;;  %1218 = vmatpush.msra.mxu2 %v5796_v54  ;;  %v5799_v57 = vld [vmem:[#allocation6 + $0x260] sm:$0xff] }
 0x14e   :  { %9066 = vst [vmem:[#allocation30_spill] sm:$0xff] %v5784_v3  ;;  %1262 = vmatpush.msrb.mxu0 %v5799_v57  ;;  %v5802_v3 = vld [vmem:[#allocation8 + $0x1a0] sm:$0xff] }
 0x14f   :  { %9067 = vst [vmem:[#allocation37_spill] sm:$0xff] %v5787_v61  ;;  %1282 = vmatpush.msrb.mxu1 %v5802_v3  ;;  %v5805_v61 = vld [vmem:[#allocation6 + $0x2c8] sm:$0xff] }
 0x150   :  { %9068 = vst [vmem:[#allocation51_spill] sm:$0xff] %v5790_v55  ;;  %1237 = vmatpush.msra.mxu3 %v5805_v61  ;;  %v5808_v55 = vld [vmem:[#allocation6 + $0x1a8] sm:$0xff] }
 0x151   :  { %9069 = vst [vmem:[#allocation48_spill] sm:$0xff] %v5793_v60  ;;  %1219 = vmatpush.msra.mxu2 %v5808_v55  ;;  %v5811_v60 = vld [vmem:[#allocation6 + $0x228] sm:$0xff] }
 0x152   :  { %9070 = vst [vmem:[#allocation34_spill] sm:$0xff] %v5796_v54  ;;  %1263 = vmatpush.msrb.mxu0 %v5811_v60  ;;  %v5814_v54 = vld [vmem:[#allocation8 + $0x180] sm:$0xff] }
 0x153   :  { %9071 = vst [vmem:[#allocation41_spill] sm:$0xff] %v5799_v57  ;;  %1283 = vmatpush.msrb.mxu1 %v5814_v54  ;;  %v5817_v57 = vld [vmem:[#allocation6 + $0x290] sm:$0xff] }
 0x154   :  { %9072 = vst [vmem:[#allocation55_spill] sm:$0xff] %v5802_v3  ;;  %1238 = vmatpush.msra.mxu3 %v5817_v57  ;;  %v5820_v3 = vld [vmem:[#allocation6 + $0x170] sm:$0xff] }
 0x155   :  { %9073 = vst [vmem:[#allocation52_spill] sm:$0xff] %v5805_v61  ;;  %1220 = vmatpush.msra.mxu2 %v5820_v3  ;;  %v5823_v61 = vld [vmem:[#allocation6 + $0x1f0] sm:$0xff] }
 0x156   :  { %9074 = vst [vmem:[#allocation38_spill] sm:$0xff] %v5808_v55  ;;  %1264 = vmatpush.msrb.mxu0 %v5823_v61  ;;  %v5826_v55 = vld [vmem:[#allocation8 + $0x160] sm:$0xff] }
 0x157   :  { %9075 = vst [vmem:[#allocation45_spill] sm:$0xff] %v5811_v60  ;;  %1284 = vmatpush.msrb.mxu1 %v5826_v55  ;;  %v5829_v60 = vld [vmem:[#allocation6 + $0x258] sm:$0xff] }
 0x158   :  { %9076 = vst [vmem:[#allocation59_spill] sm:$0xff] %v5814_v54  ;;  %1239 = vmatpush.msra.mxu3 %v5829_v60  ;;  %v5832_v54 = vld [vmem:[#allocation6 + $0x138] sm:$0xff] }
 0x159   :  { %9077 = vst [vmem:[#allocation56_spill] sm:$0xff] %v5817_v57  ;;  %1221 = vmatpush.msra.mxu2 %v5832_v54  ;;  %v5835_v57 = vld [vmem:[#allocation6 + $0x1b8] sm:$0xff] }
 0x15a   :  { %9078 = vst [vmem:[#allocation42_spill] sm:$0xff] %v5820_v3  ;;  %1265 = vmatpush.msrb.mxu0 %v5835_v57  ;;  %v5838_v3 = vld [vmem:[#allocation8 + $0x140] sm:$0xff] }
 0x15b   :  { %9079 = vst [vmem:[#allocation49_spill] sm:$0xff] %v5823_v61  ;;  %1285 = vmatpush.msrb.mxu1 %v5838_v3  ;;  %v5841_v61 = vld [vmem:[#allocation6 + $0x220] sm:$0xff] }
 0x15c   :  { %9080 = vst [vmem:[#allocation63_spill] sm:$0xff] %v5826_v55  ;;  %1240 = vmatpush.msra.mxu3 %v5841_v61  ;;  %v5844_v55 = vld [vmem:[#allocation6 + $0x100] sm:$0xff] }
 0x15d   :  { %9081 = vst [vmem:[#allocation60_spill] sm:$0xff] %v5829_v60  ;;  %1222 = vmatpush.msra.mxu2 %v5844_v55  ;;  %v5847_v60 = vld [vmem:[#allocation6 + $0x180] sm:$0xff] }
 0x15e   :  { %9082 = vst [vmem:[#allocation46_spill] sm:$0xff] %v5832_v54  ;;  %1266 = vmatpush.msrb.mxu0 %v5847_v60  ;;  %v5850_v54 = vld [vmem:[#allocation8 + $0x120] sm:$0xff] }
 0x15f   :  { %9083 = vst [vmem:[#allocation53_spill] sm:$0xff] %v5835_v57  ;;  %1286 = vmatpush.msrb.mxu1 %v5850_v54  ;;  %v5853_v57 = vld [vmem:[#allocation6 + $0x1e8] sm:$0xff] }
 0x160   :  { %9084 = vst [vmem:[#allocation67_spill] sm:$0xff] %v5838_v3  ;;  %1241 = vmatpush.msra.mxu3 %v5853_v57  ;;  %v5856_v3 = vld [vmem:[#allocation6 + $0xc8] sm:$0xff] }
 0x161   :  { %9085 = vst [vmem:[#allocation64_spill] sm:$0xff] %v5841_v61  ;;  %1223 = vmatpush.msra.mxu2 %v5856_v3  ;;  %v5859_v61 = vld [vmem:[#allocation6 + $0x148] sm:$0xff] }
 0x162   :  { %9086 = vst [vmem:[#allocation57_spill] sm:$0xff] %v5844_v55  ;;  %1267 = vmatpush.msrb.mxu0 %v5859_v61  ;;  %v5862_v55 = vld [vmem:[#allocation8 + $0x100] sm:$0xff] }
 0x163   :  { %9087 = vst [vmem:[#allocation50_spill] sm:$0xff] %v5847_v60  ;;  %1287 = vmatpush.msrb.mxu1 %v5862_v55  ;;  %v5865_v60 = vld [vmem:[#allocation6 + $0x1b0] sm:$0xff] }
 0x164   :  { %9088 = vst [vmem:[#allocation71_spill] sm:$0xff] %v5850_v54  ;;  %1242 = vmatpush.msra.mxu3 %v5865_v60  ;;  %v5868_v54 = vld [vmem:[#allocation6 + $0x90] sm:$0xff] }
 0x165   :  { %9089 = vst [vmem:[#allocation68_spill] sm:$0xff] %v5853_v57  ;;  %1224 = vmatpush.msra.mxu2 %v5868_v54  ;;  %v5871_v57 = vld [vmem:[#allocation6 + $0x110] sm:$0xff] }
 0x166   :  { %9090 = vst [vmem:[#allocation61_spill] sm:$0xff] %v5856_v3  ;;  %1268 = vmatpush.msrb.mxu0 %v5871_v57  ;;  %v5874_v3 = vld [vmem:[#allocation8 + $0xe0] sm:$0xff] }
 0x167   :  { %9091 = vst [vmem:[#allocation75_spill] sm:$0xff] %v5859_v61  ;;  %1288 = vmatpush.msrb.mxu1 %v5874_v3  ;;  %v5877_v61 = vld [vmem:[#allocation6 + $0x178] sm:$0xff] }
 0x168   :  { %9092 = vst [vmem:[#allocation72_spill] sm:$0xff] %v5862_v55  ;;  %1243 = vmatpush.msra.mxu3 %v5877_v61  ;;  %v5880_v55 = vld [vmem:[#allocation6 + $0x58] sm:$0xff] }
 0x169   :  { %9093 = vst [vmem:[#allocation65_spill] sm:$0xff] %v5865_v60  ;;  %1225 = vmatpush.msra.mxu2 %v5880_v55  ;;  %v5883_v60 = vld [vmem:[#allocation6 + $0xd8] sm:$0xff] }
 0x16a   :  { %9094 = vst [vmem:[#allocation54_spill] sm:$0xff] %v5868_v54  ;;  %1269 = vmatpush.msrb.mxu0 %v5883_v60  ;;  %v5886_v54 = vld [vmem:[#allocation8 + $0xc0] sm:$0xff] }
 0x16b   :  { %9095 = vst [vmem:[#allocation79_spill] sm:$0xff] %v5871_v57  ;;  %1289 = vmatpush.msrb.mxu1 %v5886_v54  ;;  %v5889_v57 = vld [vmem:[#allocation6 + $0x140] sm:$0xff] }
 0x16c   :  { %9096 = vst [vmem:[#allocation76_spill] sm:$0xff] %v5874_v3  ;;  %1244 = vmatpush.msra.mxu3 %v5889_v57  ;;  %v5892_v3 = vld [vmem:[#allocation6 + $0x20] sm:$0xff] }
 0x16d   :  { %9097 = vst [vmem:[#allocation69_spill] sm:$0xff] %v5877_v61  ;;  %1226 = vmatpush.msra.mxu2 %v5892_v3  ;;  %v5895_v61 = vld [vmem:[#allocation6 + $0xa0] sm:$0xff] }
 0x16e   :  { %9098 = vst [vmem:[#allocation58_spill] sm:$0xff] %v5880_v55  ;;  %1270 = vmatpush.msrb.mxu0 %v5895_v61  ;;  %v5898_v55 = vld [vmem:[#allocation8 + $0xa0] sm:$0xff] }
 0x16f   :  { %9099 = vst [vmem:[#allocation83_spill] sm:$0xff] %v5883_v60  ;;  %1290 = vmatpush.msrb.mxu1 %v5898_v55  ;;  %v5901_v60 = vld [vmem:[#allocation6 + $0x108] sm:$0xff] }
 0x170   :  { %9100 = vst [vmem:[#allocation80_spill] sm:$0xff] %v5886_v54  ;;  %1245 = vmatpush.msra.mxu3 %v5901_v60  ;;  %v5904_v54 = vld [vmem:[#allocation6 + $0x68] sm:$0xff] }
 0x171   :  { %9101 = vst [vmem:[#allocation73_spill] sm:$0xff] %v5889_v57  ;;  %1271 = vmatpush.msrb.mxu0 %v5904_v54  ;;  %v5907_v57 = vld [vmem:[#allocation8 + $0x80] sm:$0xff] }
 0x172   :  { %9102 = vst [vmem:[#allocation87_spill] sm:$0xff] %v5892_v3  ;;  %1291 = vmatpush.msrb.mxu1 %v5907_v57  ;;  %v5910_v3 = vld [vmem:[#allocation6 + $0xd0] sm:$0xff] }
 0x173   :  { %9103 = vst [vmem:[#allocation84_spill] sm:$0xff] %v5895_v61  ;;  %1246 = vmatpush.msra.mxu3 %v5910_v3  ;;  %v5913_v61 = vld [vmem:[#allocation6 + $0x30] sm:$0xff] }
 0x174   :  { %9104 = vst [vmem:[#allocation77_spill] sm:$0xff] %v5898_v55  ;;  %1272 = vmatpush.msrb.mxu0 %v5913_v61  ;;  %v5916_v55 = vld [vmem:[#allocation8 + $0x60] sm:$0xff] }
 0x175   :  { %9105 = vst [vmem:[#allocation62_spill] sm:$0xff] %v5901_v60  ;;  %1292 = vmatpush.msrb.mxu1 %v5916_v55  ;;  %v5919_v60 = vld [vmem:[#allocation6 + $0x98] sm:$0xff] }
 0x176   :  { %9106 = vst [vmem:[#allocation91_spill] sm:$0xff] %v5904_v54  ;;  %1247 = vmatpush.msra.mxu3 %v5919_v60  ;;  %v5922_v54 = vld [vmem:[#allocation8 + $0x40] sm:$0xff] }
 0x177   :  { %9107 = vst [vmem:[#allocation88_spill] sm:$0xff] %v5907_v57  ;;  %1293 = vmatpush.msrb.mxu1 %v5922_v54  ;;  %v5925_v57 = vld [vmem:[#allocation6 + $0x60] sm:$0xff] }
 0x178   :  { %9108 = vst [vmem:[#allocation81_spill] sm:$0xff] %v5910_v3  ;;  %1248 = vmatpush.msra.mxu3 %v5925_v57  ;;  %v5928_v3 = vld [vmem:[#allocation8 + $0x20] sm:$0xff] }
 0x179   :  { %9109 = vst [vmem:[#allocation66_spill] sm:$0xff] %v5913_v61  ;;  %1294 = vmatpush.msrb.mxu1 %v5928_v3  ;;  %v5931_v61 = vld [vmem:[#allocation6 + $0x28] sm:$0xff] }
 0x17a   :  { %9110 = vst [vmem:[#allocation94_spill] sm:$0xff] %v5916_v55  ;;  %1249 = vmatpush.msra.mxu3 %v5931_v61  ;;  %v5934_v55 = vld [vmem:[#allocation8] sm:$0xff] }
 0x17b   :  { %9111 = vst [vmem:[#allocation85_spill] sm:$0xff] %v5919_v60  ;;  %1295 = vmatpush.msrb.mxu1 %v5934_v55  ;;  %v5937_v60 = vpop.permute.xlu2 %1395 }
 0x17c   :  { %9112 = vst [vmem:[#allocation70_spill] sm:$0xff] %v5922_v54  ;;  %v5941_v54 = vpop.permute.xlu0 %1805 }
 0x17d   :  { %9113 = vst [vmem:[#allocation97_spill] sm:$0xff] %v5925_v57 }
 0x17e   :  { %9114 = vst [vmem:[#allocation89_spill] sm:$0xff] %v5928_v3  ;;  %v5948_v3 = vld [vmem:[%s8300_s0 + $0x20] sm:$0xff] }
 0x17f   :  { %9115 = vst [vmem:[#allocation74_spill] sm:$0xff] %v5934_v55  ;;  %1135 = vmatmul.f32.vlgmr.msrb.gmra.mxu2 %v5948_v3  ;;  %1181 = vmatmul.f32.vlgmr.msra.gmra.mxu0 %v5948_v3  ;;  %v5954_v55 = vld [vmem:[#allocation8 + $0x1e8] sm:$0xff] }
 0x180   :  { %9116 = vst [vmem:[#allocation78_spill] sm:$0xff] %v5937_v60  ;;  %1303 = vmatpush.msrb.mxu2 %v5954_v55  ;;  %1158 = vmatmul.f32.vlgmr.msrb.gmra.mxu3 %v5948_v3  ;;  %v5972_v60 = vld [vmem:[#allocation8 + $0x1a8] sm:$0xff] }
 0x181   :  { %9118 = vst [vmem:[#allocation86_spill] sm:$0xff] %v5941_v54  ;;  %1204 = vmatmul.f32.vlgmr.msra.gmra.mxu1 %v5948_v3  ;;  %v5968_v54 = vld [vmem:[#allocation8 + $0x1f0] sm:$0xff] }
 0x182   :  { %9121 = vst [vmem:[#allocation100_spill] sm:$0xff] %v5954_v55  ;;  %1326 = vmatpush.msrb.mxu3 %v5968_v54  ;;  %1529 = vmatpush.msra.mxu1 %v5352_v20  ;;  %v5978_v55 = vld [vmem:[#allocation8 + $0x1d0] sm:$0xff] }
 0x183   :  { %v5939_v4 = vpop.permute.xlu2 %1400  ;;  %9125 = vst [vmem:[#allocation96_spill] sm:$0xff] %v5972_v60  ;;  %v5988_v20 = vld [vmem:[#allocation8 + $0x1b0] sm:$0xff] }
 0x184   :  { %9117 = vst [vmem:[#allocation82_spill] sm:$0xff] %v5939_v4  ;;  %v5950_v57 = vpop.permute.xlu0 %2220  ;;  %v5957_v4 = vld [vmem:[#allocation8 + $0x1f8] sm:$0xff]  ;;  %1327 = vmatpush.msrb.mxu3 %v5978_v55  ;;  %1530 = vmatpush.msra.mxu1 %v5365_v29 }
 0x185   :  { %9120 = vst [vmem:[#allocation92_spill] sm:$0xff] %v5950_v57  ;;  %1349 = vmatpush.msra.mxu0 %v5957_v4  ;;  %v5965_v57 = vld [vmem:[#allocation8 + $0x1d8] sm:$0xff] }
 0x186   :  { %9122 = vst [vmem:[#allocation93_spill] sm:$0xff] %v5957_v4  ;;  %v5975_v4 = vld [vmem:[#allocation8 + $0x1b8] sm:$0xff]  ;;  %1328 = vmatpush.msrb.mxu3 %v5988_v20  ;;  %1531 = vmatpush.msra.mxu1 %v5391_v51 }
 0x187   :  { %9124 = vst [vmem:[#allocation103_spill] sm:$0xff] %v5965_v57  ;;  %1350 = vmatpush.msra.mxu0 %v5965_v57  ;;  %v5982_v57 = vld [vmem:[#allocation8 + $0x188] sm:$0xff]  ;;  %v5997_v29 = vld [vmem:[#allocation8 + $0x178] sm:$0xff] }
 0x188   :  { %9126 = vst [vmem:[#allocation98_spill] sm:$0xff] %v5975_v4  ;;  %1532 = vmatpush.msra.mxu1 %v5419_v21  ;;  %v6009_v51 = vld [vmem:[#allocation8 + $0x158] sm:$0xff]  ;;  %v6022_v21 = vld [vmem:[#allocation8 + $0x150] sm:$0xff] }
 0x189   :  { %1351 = vmatpush.msra.mxu0 %v5975_v4  ;;  %9127 = vst [vmem:[#allocation106_spill] sm:$0xff] %v5978_v55  ;;  %v6002_v55 = vld [vmem:[#allocation8 + $0x190] sm:$0xff] }
 0x18a   :  { %9128 = vst [vmem:[#allocation99_spill] sm:$0xff] %v5982_v57  ;;  %1329 = vmatpush.msrb.mxu3 %v6002_v55  ;;  %1533 = vmatpush.msra.mxu1 %v5437_v37  ;;  %v6032_v37 = vld [vmem:[#allocation2] ss:$0 sm:$0xff] }
 0x18b   :  { %v5943_v18 = vpop.permute.xlu2 %2215  ;;  %9131 = vst [vmem:[#allocation102_spill] sm:$0xff] %v5997_v29 }
 0x18c   :  { %9119 = vst [vmem:[#allocation90_spill] sm:$0xff] %v5943_v18  ;;  %v5962_v18 = vld [vmem:[#allocation8 + $0x1c8] sm:$0xff]  ;;  %1534 = vmatpush.msra.mxu1 %v5462_v28  ;;  %v6041_v28 = vld [vmem:[#allocation8 + $0xf8] sm:$0xff] }
 0x18d   :  { %9123 = vst [vmem:[#allocation95_spill] sm:$0xff] %v5962_v18  ;;  %1304 = vmatpush.msrb.mxu2 %v5962_v18  ;;  %v5985_v18 = vld [vmem:[#allocation8 + $0x198] sm:$0xff] }
 0x18e   :  { %9129 = vst [vmem:[#allocation101_spill] sm:$0xff] %v5985_v18  ;;  %1352 = vmatpush.msra.mxu0 %v5985_v18  ;;  %v6006_v18 = vld [vmem:[#allocation8 + $0x148] sm:$0xff]  ;;  %1535 = vmatpush.msra.mxu1 %v5489_v1  ;;  %v6053_v1 = vld [vmem:[#allocation8 + $0xd8] sm:$0xff] }
 0x18f   :  { %1305 = vmatpush.msrb.mxu2 %v5972_v60  ;;  %v5994_v60 = vld [vmem:[#allocation8 + $0x168] sm:$0xff]  ;;  %9133 = vst [vmem:[#allocation112_spill] sm:$0xff] %v6002_v55  ;;  %v6059_v55 = vld [vmem:[#allocation8 + $0xf0] sm:$0xff] }
 0x190   :  { %1353 = vmatpush.msra.mxu0 %v5997_v29  ;;  %9134 = vst [vmem:[#allocation105_spill] sm:$0xff] %v6009_v51  ;;  %v6019_v29 = vld [vmem:[#allocation8 + $0x138] sm:$0xff]  ;;  %1536 = vmatpush.msra.mxu1 %v5516_v19  ;;  %v6063_v19 = vld [vmem:[#allocation8 + $0xa8] sm:$0xff] }
 0x191   :  { %1306 = vmatpush.msrb.mxu2 %v5982_v57  ;;  %v6000_v57 = vpop.permute.xlu0 %3035  ;;  %9137 = vst [vmem:[#allocation108_spill] sm:$0xff] %v6019_v29 }
 0x192   :  { %9132 = vst [vmem:[#allocation104_spill] sm:$0xff] %v6000_v57  ;;  %1354 = vmatpush.msra.mxu0 %v6009_v51  ;;  %v6016_v57 = vld [vmem:[#allocation8 + $0x128] sm:$0xff]  ;;  %1537 = vmatpush.msra.mxu1 %v5533_v30  ;;  %v6078_v30 = vpop.f32.mrf.mxu3 }
 0x193   :  { %v5992_v4 = vpop.permute.xlu2 %2630  ;;  %1307 = vmatpush.msrb.mxu2 %v5994_v60  ;;  %9136 = vst [vmem:[#allocation115_spill] sm:$0xff] %v6016_v57  ;;  %v6026_v51 = vld [vmem:[#allocation8 + $0x108] sm:$0xff] }
 0x194   :  { %9130 = vst [vmem:[#allocation109_spill] sm:$0xff] %v5992_v4  ;;  %v6012_v4 = vld [vmem:[#allocation8 + $0x170] sm:$0xff]  ;;  %1355 = vmatpush.msra.mxu0 %v6019_v29  ;;  %v6038_v29 = vld [vmem:[#allocation8 + $0xe8] sm:$0xff]  ;;  %1538 = vmatpush.msra.mxu1 %v5551_v23  ;;  %v6097_v23 = vld [vmem:[#allocation8 + $0x58] sm:$0xff] }
 0x195   :  { %1308 = vmatpush.msrb.mxu2 %v6006_v18  ;;  %9135 = vst [vmem:[#allocation107_spill] sm:$0xff] %v6012_v4  ;;  %1330 = vmatpush.msrb.mxu3 %v6012_v4  ;;  %v6029_v4 = vld [vmem:[#allocation8 + $0x118] sm:$0xff] }
 0x196   :  { %9138 = vst [vmem:[#allocation110_spill] sm:$0xff] %v6022_v21  ;;  %1356 = vmatpush.msra.mxu0 %v6029_v4  ;;  %1539 = vmatpush.msra.mxu1 %v5563_v44 }
 0x197   :  { %1309 = vmatpush.msrb.mxu2 %v6016_v57  ;;  %1331 = vmatpush.msrb.mxu3 %v6022_v21  ;;  %9139 = vst [vmem:[#allocation118_spill] sm:$0xff] %v6026_v51  ;;  %v6034_v57 = vld [vmem:[#allocation8 + $0x130] sm:$0xff] }
 0x198   :  { %9140 = vst [vmem:[#allocation111_spill] sm:$0xff] %v6029_v4  ;;  %1357 = vmatpush.msra.mxu0 %v6041_v28  ;;  %v6044_v21 = vld [vmem:[#allocation8 + $0x110] sm:$0xff]  ;;  %1540 = vmatpush.msra.mxu1 %v5593_v63  ;;  %v6117_v63 = vld [vmem:[#allocation8 + $0x8] sm:$0xff] }
 0x199   :  { %1310 = vmatpush.msrb.mxu2 %v6026_v51  ;;  %9141 = vst [vmem:[#allocation113_spill] sm:$0xff] %v6032_v37  ;;  %1332 = vmatpush.msrb.mxu3 %v6034_v57  ;;  %v6048_v51 = vpop.f32.mrf.mxu1 }
 0x19a   :  { %9142 = vst [vmem:[#allocation121_spill] sm:$0xff] %v6034_v57  ;;  %v6050_v57 = vld [vmem:[#allocation8 + $0xc8] sm:$0xff]  ;;  %1358 = vmatpush.msra.mxu0 %v6053_v1  ;;  %1541 = vmatpush.msra.mxu1 %v5609_v8  ;;  %v6127_v8 = vpop.f32.mrf.mxu3 }
 0x19b   :  { %9143 = vst [vmem:[#allocation114_spill] sm:$0xff] %v6038_v29  ;;  %1311 = vmatpush.msrb.mxu2 %v6038_v29  ;;  %1333 = vmatpush.msrb.mxu3 %v6044_v21  ;;  %v540_v4 = vpop.xlane.xlu2 %539  ;;  %v6056_v29 = vpop.permute.xlu0 %3691 }
 0x19c   :  { %9144 = vst [vmem:[#allocation116_spill] sm:$0xff] %v6041_v28  ;;  %v546_v28 = vadd.f32 %v6032_v37, %v540_v4  ;;  %v6072_v4 = vld [vmem:[#allocation8 + $0x88] sm:$0xff]  ;;  %1542 = vmatpush.msra.mxu1 %v5620_v26  ;;  %v3616_v26 = vld [vmem:[%s8300_s0 + $0x28] sm:$0xff] }
 0x19d   :  { %9145 = vst [vmem:[#allocation124_spill] sm:$0xff] %v6044_v21  ;;  %1312 = vmatpush.msrb.mxu2 %v6050_v57  ;;  %1334 = vmatpush.msrb.mxu3 %v6059_v55  ;;  %v6066_v21 = vld [vmem:[#allocation8 + $0xb8] sm:$0xff] }
 0x19e   :  { %9146 = vst [vmem:[#allocation117_spill] sm:$0xff] %v6053_v1  ;;  %1359 = vmatpush.msra.mxu0 %v6066_v21  ;;  %551 = vperm.xlu1 %3688, %v546_v28   ;;  %v6069_v1 = vld [vmem:[#allocation8 + $0xd0] sm:$0xff]  ;;  %v6084_v28 = vld [vmem:[#allocation8 + $0x68] sm:$0xff] }
 0x19f   :  { %9147 = vst [vmem:[#allocation119_spill] sm:$0xff] %v6056_v29  ;;  %1313 = vmatpush.msrb.mxu2 %v6063_v19  ;;  %1335 = vmatpush.msrb.mxu3 %v6069_v1  ;;  %v6075_v29 = vld [vmem:[#allocation8 + $0x98] sm:$0xff] }
 0x1a0   :  { %9148 = vst [vmem:[#allocation120_spill] sm:$0xff] %v6059_v55  ;;  %1360 = vmatpush.msra.mxu0 %v6075_v29  ;;  %v6081_v55 = vld [vmem:[#allocation8 + $0xb0] sm:$0xff]  ;;  %1543 = vmatpush.msra.mxu1 %v5635_v38  ;;  %v749_v38 = vpop.f32.mrf.mxu0 }
 0x1a1   :  { %9149 = vst [vmem:[#allocation122_spill] sm:$0xff] %v6066_v21  ;;  %1314 = vmatpush.msrb.mxu2 %v6072_v4  ;;  %1336 = vmatpush.msrb.mxu3 %v6081_v55  ;;  %v6087_v21 = vld [vmem:[#allocation8 + $0x78] sm:$0xff] }
 0x1a2   :  { %9150 = vst [vmem:[#allocation123_spill] sm:$0xff] %v6069_v1  ;;  %1361 = vmatpush.msra.mxu0 %v6087_v21  ;;  %v6091_v1 = vld [vmem:[#allocation8 + $0x90] sm:$0xff]  ;;  %1544 = vmatpush.msra.mxu1 %v5652_v62  ;;  %v6141_v62 = vpop.permute.xlu1 %985 }
 0x1a3   :  { %9151 = vst [vmem:[#allocation125_spill] sm:$0xff] %v6072_v4  ;;  %1315 = vmatpush.msrb.mxu2 %v6084_v28  ;;  %1337 = vmatpush.msrb.mxu3 %v6091_v1 }
 0x1a4   :  { %9152 = vst [vmem:[#allocation126_spill] sm:$0xff] %v6075_v29  ;;  %v6094_v29 = vld [vmem:[#allocation8 + $0x48] sm:$0xff]  ;;  %1362 = vmatpush.msra.mxu0 %v6097_v23  ;;  %1138 = vmatmul.f32.gmra.mxu2 %v3616_v26 }
 0x1a5   :  { %9153 = vst [vmem:[#allocation127_spill] sm:$0xff] %v6081_v55  ;;  %1316 = vmatpush.msrb.mxu2 %v6094_v29  ;;  %v542_v55 = vpop.xlane.xlu0 %541  ;;  %1161 = vmatmul.f32.gmra.mxu3 %v3616_v26 }
 0x1a6   :  { %9154 = vst [vmem:[#allocation128_spill] sm:$0xff] %v6084_v28  ;;  %v6101_v28 = vld [vmem:[#allocation8 + $0x70] sm:$0xff]  ;;  %v547_v44 = vadd.f32 %v6032_v37, %v542_v55  ;;  %v6120_v55 = vld [vmem:[#allocation8 + $0x18] sm:$0xff]  ;;  %1184 = vmatmul.f32.gmra.mxu0 %v3616_v26  ;;  %1207 = vmatmul.f32.gmra.mxu1 %v3616_v26 }
 0x1a7   :  { %9155 = vst [vmem:[#allocation129_spill] sm:$0xff] %v6087_v21  ;;  %1338 = vmatpush.msrb.mxu3 %v6101_v28  ;;  %v6105_v21 = vpop.f32.mrf.mxu1  ;;  %v6124_v37 = vld [vmem:[#allocation8 + $0x30] sm:$0xff] }
 0x1a8   :  { %9156 = vst [vmem:[#allocation130_spill] sm:$0xff] %v6091_v1  ;;  %v6107_v1 = vld [vmem:[#allocation8 + $0x28] sm:$0xff]  ;;  %556 = vperm.xlu1 %3688, %v547_v44  }
 0x1a9   :  { %9157 = vst [vmem:[#allocation131_spill] sm:$0xff] %v6094_v29  ;;  %1317 = vmatpush.msrb.mxu2 %v6107_v1  ;;  %v6110_v29 = vld [vmem:[#allocation8 + $0x38] sm:$0xff] }
 0x1aa   :  { %9158 = vst [vmem:[#allocation132_spill] sm:$0xff] %v6097_v23  ;;  %1363 = vmatpush.msra.mxu0 %v6110_v29  ;;  %v6114_v23 = vld [vmem:[#allocation8 + $0x50] sm:$0xff] }
 0x1ab   :  { %9159 = vst [vmem:[#allocation133_spill] sm:$0xff] %v6101_v28  ;;  %1339 = vmatpush.msrb.mxu3 %v6114_v23  ;;  %1318 = vmatpush.msrb.mxu2 %v6117_v63 }
 0x1ac   :  { %9160 = vst [vmem:[#allocation134_spill] sm:$0xff] %v6107_v1  ;;  %1364 = vmatpush.msra.mxu0 %v6120_v55  ;;  %1227 = vmatmul.f32.vlgmr.msra.gmra.mxu2 %v5948_v3 }
 0x1ad   :  { %9161 = vst [vmem:[#allocation135_spill] sm:$0xff] %v6110_v29  ;;  %1340 = vmatpush.msrb.mxu3 %v6124_v37  ;;  %v6130_v29 = vld [vmem:[#allocation8 + $0x10] sm:$0xff]  ;;  %1552 = vmatpush.msra.mxu2 %v5502_v11  ;;  %v752_v11 = vpop.f32.mrf.mxu0 }
 0x1ae   :  { %9162 = vst [vmem:[#allocation136_spill] sm:$0xff] %v6114_v23  ;;  %v818_v23 = vpop.f32.mrf.mxu3  ;;  %1250 = vmatmul.f32.vlgmr.msra.gmra.mxu3 %v5948_v3  ;;  %1273 = vmatmul.f32.vlgmr.msrb.gmra.mxu0 %v5948_v3 }
 0x1af   :  { %9163 = vst [vmem:[#allocation137_spill] sm:$0xff] %v6117_v63  ;;  %1341 = vmatpush.msrb.mxu3 %v6130_v29  ;;  %v6134_v44 = vpop.f32.mrf.mxu1  ;;  %1598 = vmatpush.msrb.mxu0 %v5505_v13  ;;  %v994_v1 = vmul.f32 %v6141_v62, %v818_v23 }
 0x1b0   :  { %9164 = vst [vmem:[#allocation138_spill] sm:$0xff] %v6120_v55  ;;  %v795_v55 = vpop.f32.mrf.mxu2  ;;  %1553 = vmatpush.msra.mxu2 %v5522_v45 }
 0x1b1   :  { %9165 = vst [vmem:[#allocation139_spill] sm:$0xff] %v6124_v37  ;;  %1575 = vmatpush.msra.mxu3 %v5492_v46  ;;  %1599 = vmatpush.msrb.mxu0 %v5525_v9  ;;  %v993_v63 = vmul.f32 %v6141_v62, %v795_v55  ;;  %v1000_v13 = vadd.f32 %v994_v1, %v749_v38  ;;  %v6160_v9 = vpop.permute.xlu1 %990  ;;  %v9167_v1 = vld [vmem:[#allocation14_spill] sm:$0xff] }
 0x1b2   :  { %9166 = vst [vmem:[#allocation140_spill] sm:$0xff] %v6130_v29  ;;  %1554 = vmatpush.msra.mxu2 %v5540_v52 }
 0x1b3   :  { %1576 = vmatpush.msra.mxu3 %v5519_v24  ;;  %1600 = vmatpush.msrb.mxu0 %v5554_v39  ;;  %v999_v46 = vadd.f32 %v993_v63, %v6078_v30 }
 0x1b4   :  { %1555 = vmatpush.msra.mxu2 %v5566_v47 }
 0x1b5   :  { %1577 = vmatpush.msra.mxu3 %v5537_v34  ;;  %1230 = vmatmul.f32.gmra.mxu2 %v3616_v26 }
 0x1b6   :  { %v821_v28 = vpop.f32.mrf.mxu3  ;;  %1253 = vmatmul.f32.gmra.mxu3 %v3616_v26  ;;  %1556 = vmatpush.msra.mxu2 %v5596_v40 }
 0x1b7   :  { %v867_v37 = vpop.f32.mrf.mxu1  ;;  %1601 = vmatpush.msrb.mxu0 %v5580_v56  ;;  %1578 = vmatpush.msra.mxu3 %v5558_v50  ;;  %v997_v47 = vmul.f32 %v6160_v9, %v821_v28  ;;  %v9173_v28 = vld [vmem:[#allocation36_spill] sm:$0xff] }
 0x1b8   :  { %v798_v29 = vpop.f32.mrf.mxu2  ;;  %1276 = vmatmul.f32.gmra.mxu0 %v3616_v26  ;;  %1557 = vmatpush.msra.mxu2 %v5615_v17 }
 0x1b9   :  { %1602 = vmatpush.msrb.mxu0 %v5604_v7  ;;  %v996_v39 = vmul.f32 %v6160_v9, %v798_v29  ;;  %1579 = vmatpush.msra.mxu3 %v5577_v22  ;;  %v841_v22 = vpop.f32.mrf.mxu0  ;;  %v1003_v29 = vadd.f32 %v997_v47, %v752_v11 }
 0x1ba   :  { %1558 = vmatpush.msra.mxu2 %v5632_v15 }
 0x1bb   :  { %1603 = vmatpush.msrb.mxu0 %v5623_v12  ;;  %1580 = vmatpush.msra.mxu3 %v5601_v0  ;;  %v1002_v15 = vadd.f32 %v996_v39, %v6127_v8  ;;  %v9176_v8 = vld [vmem:[#allocation35_spill] sm:$0xff] }
 0x1bc   :  { %1559 = vmatpush.msra.mxu2 %v5646_v49 }
 0x1bd   :  { %1604 = vmatpush.msrb.mxu0 %v5638_v48  ;;  %1581 = vmatpush.msra.mxu3 %v5612_v14  ;;  %v6186_v14 = vld [vmem:[%s8305_s5] ss:$0 sm:$0xff] }
 0x1be   :  { %v910_v45 = vpop.f32.mrf.mxu3  ;;  %1560 = vmatpush.msra.mxu2 %v5663_v59 }
 0x1bf   :  { %v956_v4 = vpop.f32.mrf.mxu1  ;;  %v1047_v34 = vadd.f32 %v1000_v13, %v910_v45  ;;  %1605 = vmatpush.msrb.mxu0 %v5655_v16  ;;  %1582 = vmatpush.msra.mxu3 %v5629_v33 }
 0x1c0   :  { %v887_v24 = vpop.f32.mrf.mxu2  ;;  %1561 = vmatpush.msra.mxu2 %v5672_v6 }
 0x1c1   :  { %v1005_v52 = vadd.f32 %v999_v46, %v887_v24  ;;  %v1049_v40 = vadd.f32 %v5431_v31, %v1047_v34  ;;  %1606 = vmatpush.msrb.mxu0 %v5666_v35  ;;  %1583 = vmatpush.msra.mxu3 %v5643_v43 }
 0x1c2   :  { %1562 = vmatpush.msra.mxu2 %v5683_v53  ;;  %v9168_v53 = vld [vmem:[#allocation13_spill] sm:$0xff] }
 0x1c3   :  { %v1007_v56 = vadd.f32 %v5326_v2, %v1005_v52  ;;  %v3613_v7 = vmul.f32 -1.442695, %v1049_v40  ;;  %v962_v2 = vadd.f32 %v956_v4, %v6134_v44  ;;  %1607 = vmatpush.msrb.mxu0 %v5677_v36  ;;  %1584 = vmatpush.msra.mxu3 %v5660_v58  ;;  %v9169_v58 = vld [vmem:[#allocation25_spill] sm:$0xff]  ;;  %v9171_v36 = vld [vmem:[#allocation15_spill] sm:$0xff]  ;;  %v995_v44 = vmul.f32 %v6141_v62, %v841_v22 }
 0x1c4   :  { %1563 = vmatpush.msra.mxu2 %v5695_v41 }
 0x1c5   :  { %v3611_v17 = vmul.f32 -1.442695, %v1007_v56  ;;  %1608 = vmatpush.msrb.mxu0 %v5686_v5  ;;  %1585 = vmatpush.msra.mxu3 %v9167_v1  ;;  %v9170_v5 = vld [vmem:[#allocation24_spill] sm:$0xff]  ;;  %v1001_v34 = vadd.f32 %v995_v44, %v6048_v51  ;;  %v9177_v56 = vld [vmem:[#allocation17_spill] sm:$0xff] }
 0x1c6   :  { %v913_v12 = vpop.f32.mrf.mxu3  ;;  %1564 = vmatpush.msra.mxu2 %v5712_v42  ;;  %v9172_v42 = vld [vmem:[#allocation23_spill] sm:$0xff]  ;;  %v9178_v51 = vld [vmem:[#allocation20_spill] sm:$0xff] }
 0x1c7   :  { %v959_v3 = vpop.f32.mrf.mxu1  ;;  %3720 = vpow2.f32 %v3611_v17  ;;  %v1048_v49 = vadd.f32 %v1003_v29, %v913_v12  ;;  %1609 = vmatpush.msrb.mxu0 %v5699_v25  ;;  %1586 = vmatpush.msra.mxu3 %v9168_v53 }
 0x1c8   :  { %v963_v50 = vadd.f32 %v959_v3, %v867_v37  ;;  %3722 = vpow2.f32 %v3613_v7  ;;  %v890_v0 = vpop.f32.mrf.mxu2  ;;  %1565 = vmatpush.msra.mxu2 %v5724_v32  ;;  %v9174_v32 = vld [vmem:[#allocation28_spill] sm:$0xff] }
 0x1c9   :  { %v1006_v48 = vadd.f32 %v1002_v15, %v890_v0  ;;  %v1050_v59 = vadd.f32 %v5431_v31, %v1048_v49  ;;  %v844_v31 = vpop.f32.mrf.mxu0  ;;  %1610 = vmatpush.msrb.mxu0 %v9169_v58  ;;  %1587 = vmatpush.msra.mxu3 %v9170_v5  ;;  %v1089_v15 = vadd.f32 %v9178_v51, %v1001_v34  ;;  %v9185_v34 = vld [vmem:[#allocation47_spill] sm:$0xff] }
 0x1ca   :  { %966 = vadd.xlane.f32.xlu2 %v963_v50  ;;  %1566 = vmatpush.msra.mxu2 %v5741_v10  ;;  %v998_v17 = vmul.f32 %v6160_v9, %v844_v31 }
 0x1cb   :  { %v1008_v16 = vadd.f32 %v6186_v14, %v1006_v48  ;;  %v3614_v37 = vmul.f32 -1.442695, %v1050_v59  ;;  %1611 = vmatpush.msrb.mxu0 %v5727_v27  ;;  %1588 = vmatpush.msra.mxu3 %v9171_v36  ;;  %v9175_v27 = vld [vmem:[#allocation43_spill] sm:$0xff] }
 0x1cc   :  { %1567 = vmatpush.msra.mxu2 %v9172_v42 }
 0x1cd   :  { %v3721_v33 = vpop.eup %3720  ;;  %v3612_v6 = vmul.f32 -1.442695, %v1008_v16  ;;  %1612 = vmatpush.msrb.mxu0 %v9173_v28  ;;  %1589 = vmatpush.msra.mxu3 %v9174_v32 }
 0x1ce   :  { %v3723_v43 = vpop.eup %3722  ;;  %v1015_v35 = vadd.f32 1.0, %v3721_v33  ;;  %v9204_v33 = vld [vmem:[#allocation63_spill] sm:$0xff] }
 0x1cf   :  { %v6196_v4 = vadd.f32 1.0, %v3723_v43  ;;  %3724 = vpow2.f32 %v3612_v6  ;;  %1613 = vmatpush.msrb.mxu0 %v9175_v27  ;;  %1590 = vmatpush.msra.mxu3 %v9176_v8  ;;  %v1004_v43 = vadd.f32 %v998_v17, %v6105_v21  ;;  %v9181_v27 = vld [vmem:[#allocation21_spill] sm:$0xff]  ;;  %v9191_v17 = vld [vmem:[#allocation19_spill] sm:$0xff] }
 0x1d0   :  { %3726 = vrcp.f32 %v1015_v35  ;;  %v1028_v46 = vand.u32 2147483648, %v1015_v35  ;;  %v1026_v45 = vand.u32 2147483647, %v1015_v35  ;;  %vm1022_vm1 = vweird.f32 %v1015_v35 }
 0x1d1   :  { %3728 = vrcp.f32 %v6196_v4  ;;  %v933_v11 = vpop.f32.mrf.mxu0  ;;  %v1070_v0 = vand.u32 2147483648, %v6196_v4  ;;  %vm1064_vm5 = vweird.f32 %v6196_v4  ;;  %v1068_v9 = vand.u32 2147483647, %v6196_v4 }
 0x1d2   :  { %964 = vadd.xlane.f32.xlu1 %v962_v2  ;;  %3730 = vpow2.f32 %v3614_v37  ;;  %v1029_v62 = vor.u32 1.1754944e-38, %v1028_v46  ;;  %v1091_v40 = vadd.f32 %v9177_v56, %v933_v11  ;;  %vm1027_vm3 = vcmp.eq.f32.partialorder %v1026_v45, 8.507059e+37 }
 0x1d3   :  { %vm1069_vm10 = vcmp.eq.f32.partialorder %v1068_v9, 8.507059e+37  ;;  %v9201_v9 = vld [vmem:[#allocation27_spill] sm:$0xff] }
 0x1d5   :  { %v3725_v41 = vpop.eup %3724 }
 0x1d6   :  { %v3727_v25 = vpop.eup %3726  ;;  %v6209_v30 = vadd.f32 1.0, %v3725_v41 }
 0x1d7   :  { %v6213_v23 = vpop.eup %3728  ;;  %v1018_v63 = vmul.f32 %v3727_v25, %v1015_v35  ;;  %vm1023_vm0 = vweird.f32 %v3727_v25 }
 0x1d8   :  { %v3731_v55 = vpop.eup %3730  ;;  %v1060_v10 = vmul.f32 %v6213_v23, %v6196_v4  ;;  %3732 = vrcp.f32 %v6209_v30  ;;  %vm1024_vm2 = vmor %vm1022_vm1, %vm1023_vm0  ;;  %vm1065_vm4 = vweird.f32 %v6213_v23  ;;  %v1043_v48 = vand.u32 2147483648, %v6209_v30 }
 0x1d9   :  { %v1019_v26 = vsub.f32 1.0, %v1018_v63  ;;  %v6221_v38 = vadd.f32 1.0, %v3731_v55  ;;  %v1041_v59 = vand.u32 2147483647, %v6209_v30  ;;  %vm6238_vm7 = vmor %vm1064_vm5, %vm1065_vm4  ;;  %v936_v35 = vpop.f32.mrf.mxu0  ;;  %vm1037_vm8 = vweird.f32 %v6209_v30 }
 0x1da   :  { %v1061_v13 = vsub.f32 1.0, %v1060_v10  ;;  %v1071_v4 = vor.u32 1.1754944e-38, %v1070_v0  ;;  %v1044_v53 = vor.u32 1.1754944e-38, %v1043_v48  ;;  %v1092_v5 = vadd.f32 %v9177_v56, %v936_v35  ;;  %v9188_v56 = vld [vmem:[#allocation18_spill] sm:$0xff]  ;;  %v9199_v48 = vld [vmem:[#allocation33_spill] sm:$0xff] }
 0x1db   :  { %v1020_v24 = vmul.f32 %v3727_v25, %v1019_v26  ;;  %3734 = vrcp.f32 %v6221_v38  ;;  %vm1042_vm11 = vcmp.eq.f32.partialorder %v1041_v59, 8.507059e+37  ;;  %v1085_v32 = vand.u32 2147483648, %v6221_v38  ;;  %v9197_v0 = vld [vmem:[#allocation26_spill] sm:$0xff]  ;;  %v9203_v59 = vld [vmem:[#allocation37_spill] sm:$0xff] }
 0x1dc   :  { %v1062_v52 = vmul.f32 %v6213_v23, %v1061_v13  ;;  %vm1079_vm13 = vweird.f32 %v6221_v38  ;;  %v9183_v13 = vld [vmem:[#allocation40_spill] sm:$0xff]  ;;  %v6293_v35 = vld [vmem:[%s8300_s0 + $0x30] sm:$0xff] }
 0x1dd   :  { %v1021_v39 = vadd.f32 %v3727_v25, %v1020_v24  ;;  %v1086_v26 = vor.u32 1.1754944e-38, %v1085_v32  ;;  %v9219_v32 = vld [vmem:[#allocation73_spill] sm:$0xff] }
 0x1de   :  { %v3733_v47 = vpop.eup %3732  ;;  %v1063_v22 = vadd.f32 %v6213_v23, %v1062_v52  ;;  %v9184_v52 = vld [vmem:[#allocation32_spill] sm:$0xff] }
 0x1df   :  { %v1025_v3 = vsel %vm1024_vm2, %v3727_v25, %v1021_v39  ;;  %v1033_v50 = vmul.f32 %v3733_v47, %v6209_v30  ;;  %vm1038_vm6 = vweird.f32 %v3733_v47  ;;  %v1090_v25 = vadd.f32 %v9178_v51, %v1004_v43  ;;  %v9186_v39 = vld [vmem:[#allocation31_spill] sm:$0xff]  ;;  %v9206_v43 = vld [vmem:[#allocation64_spill] sm:$0xff] }
 0x1e0   :  { %v1030_v7 = vsel %vm1027_vm3, %v1029_v62, %v1025_v3  ;;  %v1067_v1 = vsel %vm6238_vm7, %v6213_v23, %v1063_v22  ;;  %vm1039_vm9 = vmor %vm1037_vm8, %vm1038_vm6  ;;  %v1083_v23 = vand.u32 2147483647, %v6221_v38  ;;  %v9189_v3 = vld [vmem:[#allocation39_spill] sm:$0xff] }
 0x1e1   :  { %v3735_v2 = vpop.eup %3734  ;;  %v1093_v29 = vmul.f32 %v1091_v40, %v1030_v7  ;;  %v1034_v12 = vsub.f32 1.0, %v1033_v50  ;;  %v1072_v21 = vsel %vm1069_vm10, %v1071_v4, %v1067_v1  ;;  %v9190_v50 = vld [vmem:[#allocation51_spill] sm:$0xff]  ;;  %v9192_v7 = vld [vmem:[#allocation48_spill] sm:$0xff] }
 0x1e2   :  { %v1075_v49 = vmul.f32 %v3735_v2, %v6221_v38  ;;  %vm1080_vm12 = vweird.f32 %v3735_v2  ;;  %v1099_v30 = vsub.f32 1.0, %v1072_v21  ;;  %v1103_v8 = vmul.f32 %v1072_v21, %v9181_v27  ;;  %v9182_v38 = vld [vmem:[#allocation16_spill] sm:$0xff]  ;;  %v9194_v51 = vld [vmem:[#allocation55_spill] sm:$0xff]  ;;  %v9215_v21 = vld [vmem:[#allocation69_spill] sm:$0xff] }
 0x1e3   :  { %v1035_v16 = vmul.f32 %v3733_v47, %v1034_v12  ;;  %v1095_v6 = vadd.f32 %v1093_v29, %v1089_v15  ;;  %vm1081_vm14 = vmor %vm1079_vm13, %vm1080_vm12  ;;  %vm1084_vm15 = vcmp.eq.f32.partialorder %v1083_v23, 8.507059e+37  ;;  %v9195_v15 = vld [vmem:[#allocation22_spill] sm:$0xff]  ;;  %v9196_v29 = vld [vmem:[#allocation52_spill] sm:$0xff] }
 0x1e4   :  { %v1076_v37 = vsub.f32 1.0, %v1075_v49  ;;  %v9198_v12 = vld [vmem:[#allocation56_spill] sm:$0xff]  ;;  %v9200_v49 = vld [vmem:[#allocation59_spill] sm:$0xff]  ;;  %v9221_v23 = vld [vmem:[#allocation57_spill] sm:$0xff] }
 0x1e5   :  { %v1036_v31 = vadd.f32 %v3733_v47, %v1035_v16  ;;  %3736 = vtanh.f32 %v1095_v6  ;;  %v9202_v16 = vld [vmem:[#allocation60_spill] sm:$0xff]  ;;  %v9205_v6 = vld [vmem:[#allocation30_spill] sm:$0xff]  ;;  %v9208_v1 = vld [vmem:[#allocation67_spill] sm:$0xff] }
 0x1e6   :  { %v1077_v58 = vmul.f32 %v3735_v2, %v1076_v37  ;;  %v9207_v37 = vld [vmem:[#allocation41_spill] sm:$0xff]  ;;  %v9210_v4 = vld [vmem:[#allocation68_spill] sm:$0xff] }
 0x1e7   :  { %v1040_v36 = vsel %vm1039_vm9, %v3733_v47, %v1036_v31  ;;  %v9187_v47 = vld [vmem:[#allocation44_spill] sm:$0xff]  ;;  %v9209_v31 = vld [vmem:[#allocation34_spill] sm:$0xff]  ;;  %v9225_v27 = vld [vmem:[#allocation81_spill] sm:$0xff] }
 0x1e8   :  { %v1045_v41 = vsel %vm1042_vm11, %v1044_v53, %v1040_v36  ;;  %v1078_v42 = vadd.f32 %v3735_v2, %v1077_v58  ;;  %v9211_v53 = vld [vmem:[#allocation38_spill] sm:$0xff]  ;;  %v9212_v58 = vld [vmem:[#allocation65_spill] sm:$0xff] }
 0x1e9   :  { %v1094_v28 = vmul.f32 %v1092_v5, %v1045_v41  ;;  %v9213_v5 = vld [vmem:[#allocation42_spill] sm:$0xff]  ;;  %v9214_v36 = vld [vmem:[#allocation45_spill] sm:$0xff]  ;;  %v9216_v41 = vld [vmem:[#allocation71_spill] sm:$0xff] }
 0x1ea   :  { %v1082_v44 = vsel %vm1081_vm14, %v3735_v2, %v1078_v42  ;;  %v9193_v2 = vld [vmem:[#allocation29_spill] sm:$0xff]  ;;  %v9217_v42 = vld [vmem:[#allocation46_spill] sm:$0xff] }
 0x1eb   :  { %v3737_v63 = vpop.eup %3736  ;;  %v1096_v55 = vadd.f32 %v1094_v28, %v1090_v25  ;;  %v1087_v46 = vsel %vm1084_vm15, %v1086_v26, %v1082_v44  ;;  %v6313_v25 = vld [vmem:[%s8300_s0 + $0x38] sm:$0xff]  ;;  %v9218_v28 = vld [vmem:[#allocation49_spill] sm:$0xff]  ;;  %v6328_v44 = vpop.permute.xlu1 %1810  ;;  %v9228_v26 = vld [vmem:[#allocation54_spill] sm:$0xff] }
 0x1ec   :  { %v1101_v10 = vmul.f32 %v3737_v63, %v1099_v30  ;;  %v1100_v24 = vsub.f32 1.0, %v1087_v46  ;;  %v1104_v40 = vmul.f32 %v1087_v46, %v9188_v56  ;;  %v9220_v30 = vld [vmem:[#allocation72_spill] sm:$0xff]  ;;  %v9222_v63 = vld [vmem:[#allocation53_spill] sm:$0xff]  ;;  %9227 = vst [vmem:[#allocation14_spill] sm:$0xff] %v6328_v44 }
 0x1ed   :  { %3738 = vtanh.f32 %v1096_v55  ;;  %v9223_v55 = vld [vmem:[#allocation62_spill] sm:$0xff]  ;;  %v9229_v46 = vld [vmem:[#allocation85_spill] sm:$0xff]  ;;  %v9239_v56 = vld [vmem:[#allocation88_spill] sm:$0xff] }
 0x1ee   :  { %v6253_v11 = vadd.f32 %v1103_v8, %v1101_v10  ;;  %v9224_v10 = vld [vmem:[#allocation61_spill] sm:$0xff]  ;;  %v9226_v8 = vld [vmem:[#allocation76_spill] sm:$0xff] }
 0x1ef   :  { %v6586_v44 = vld [vmem:[#allocation6 + $0xf0] sm:$0xff] }
 0x1f0   :  { %1296 = vmatmul.f32.vlgmr.msrb.gmra.mxu1 %v6253_v11  ;;  %1319 = vmatmul.f32.vlgmr.msrb.gmra.mxu2 %v6253_v11  ;;  %9317 = vst [vmem:[#allocation26_spill] sm:$0xff] %v6586_v44 }
 0x1f1   :  { %1342 = vmatmul.f32.vlgmr.msrb.gmra.mxu3 %v6253_v11  ;;  %1365 = vmatmul.f32.vlgmr.msra.gmra.mxu0 %v6253_v11 }
 0x1f2   :  { %1621 = vmatpush.msrb.mxu1 %v9182_v38  ;;  %1644 = vmatpush.msrb.mxu2 %v9183_v13  ;;  %v9230_v38 = vld [vmem:[#allocation50_spill] sm:$0xff]  ;;  %v9231_v13 = vld [vmem:[#allocation80_spill] sm:$0xff] }
 0x1f3   :  { %v3739_v45 = vpop.eup %3738  ;;  %1667 = vmatpush.msrb.mxu3 %v9184_v52  ;;  %1690 = vmatpush.msra.mxu0 %v9185_v34  ;;  %v9234_v52 = vld [vmem:[#allocation75_spill] sm:$0xff]  ;;  %v9235_v34 = vld [vmem:[#allocation77_spill] sm:$0xff] }
 0x1f4   :  { %1622 = vmatpush.msrb.mxu1 %v9186_v39  ;;  %1645 = vmatpush.msrb.mxu2 %v9187_v47  ;;  %v1102_v62 = vmul.f32 %v3739_v45, %v1100_v24  ;;  %v9232_v24 = vld [vmem:[#allocation58_spill] sm:$0xff]  ;;  %v9233_v45 = vld [vmem:[#allocation97_spill] sm:$0xff]  ;;  %v9236_v39 = vld [vmem:[#allocation87_spill] sm:$0xff] }
 0x1f5   :  { %1668 = vmatpush.msrb.mxu3 %v9189_v3  ;;  %1691 = vmatpush.msra.mxu0 %v9190_v50  ;;  %v9237_v47 = vld [vmem:[#allocation100_spill] sm:$0xff]  ;;  %v9241_v3 = vld [vmem:[#allocation83_spill] sm:$0xff]  ;;  %v9242_v50 = vld [vmem:[#allocation94_spill] sm:$0xff] }
 0x1f6   :  { %1623 = vmatpush.msrb.mxu1 %v9191_v17  ;;  %1646 = vmatpush.msrb.mxu2 %v9192_v7  ;;  %v6270_v22 = vadd.f32 %v1104_v40, %v1102_v62  ;;  %v9238_v62 = vld [vmem:[#allocation79_spill] sm:$0xff]  ;;  %v9243_v17 = vld [vmem:[#allocation106_spill] sm:$0xff]  ;;  %v9245_v7 = vld [vmem:[#allocation96_spill] sm:$0xff] }
 0x1f7   :  { %1669 = vmatpush.msrb.mxu3 %v9193_v2  ;;  %1692 = vmatpush.msra.mxu0 %v9194_v51  ;;  %v9240_v40 = vld [vmem:[#allocation95_spill] sm:$0xff]  ;;  %v9246_v2 = vld [vmem:[#allocation84_spill] sm:$0xff]  ;;  %v9247_v51 = vld [vmem:[#allocation70_spill] sm:$0xff] }
 0x1f8   :  { %1624 = vmatpush.msrb.mxu1 %v9195_v15  ;;  %1647 = vmatpush.msrb.mxu2 %v9196_v29  ;;  %v9248_v15 = vld [vmem:[#allocation99_spill] sm:$0xff]  ;;  %v9250_v29 = vld [vmem:[#allocation66_spill] sm:$0xff] }
 0x1f9   :  { %1299 = vmatmul.f32.gmra.mxu1 %v6270_v22  ;;  %1322 = vmatmul.f32.gmra.mxu2 %v6270_v22 }
 0x1fa   :  { %1345 = vmatmul.f32.gmra.mxu3 %v6270_v22  ;;  %1368 = vmatmul.f32.gmra.mxu0 %v6270_v22 }
 0x1fb   :  { %1625 = vmatpush.msrb.mxu1 %v9197_v0  ;;  %1648 = vmatpush.msrb.mxu2 %v9198_v12  ;;  %v9251_v0 = vld [vmem:[#allocation93_spill] sm:$0xff] }
 0x1fc   :  { %1670 = vmatpush.msrb.mxu3 %v9199_v48  ;;  %1693 = vmatpush.msra.mxu0 %v9200_v49  ;;  %v9252_v12 = vld [vmem:[#allocation89_spill] sm:$0xff]  ;;  %v9253_v48 = vld [vmem:[#allocation112_spill] sm:$0xff]  ;;  %v9255_v49 = vld [vmem:[#allocation74_spill] sm:$0xff] }
 0x1fd   :  { %1626 = vmatpush.msrb.mxu1 %v9201_v9  ;;  %1649 = vmatpush.msrb.mxu2 %v9202_v16  ;;  %v9256_v9 = vld [vmem:[#allocation115_spill] sm:$0xff]  ;;  %v6369_v16 = vld [vmem:[#allocation6 + $0x348] sm:$0xff] }
 0x1fe   :  { %1671 = vmatpush.msrb.mxu3 %v9203_v59  ;;  %1694 = vmatpush.msra.mxu0 %v9204_v33  ;;  %v9258_v59 = vld [vmem:[#allocation107_spill] sm:$0xff] }
 0x1ff   :  { %1627 = vmatpush.msrb.mxu1 %v9205_v6  ;;  %1650 = vmatpush.msrb.mxu2 %v9206_v43  ;;  %v9260_v6 = vld [vmem:[#allocation118_spill] sm:$0xff]  ;;  %v9261_v43 = vld [vmem:[#allocation101_spill] sm:$0xff] }
 0x200   :  { %1672 = vmatpush.msrb.mxu3 %v9207_v37  ;;  %1695 = vmatpush.msra.mxu0 %v9208_v1  ;;  %v9262_v37 = vld [vmem:[#allocation110_spill] sm:$0xff] }
 0x201   :  { %1628 = vmatpush.msrb.mxu1 %v9209_v31  ;;  %1651 = vmatpush.msrb.mxu2 %v9210_v4  ;;  %v9263_v1 = vld [vmem:[#allocation114_spill] sm:$0xff] }
 0x202   :  { %1545 = vmatmul.f32.vlgmr.msra.gmra.mxu1 %v6293_v35  ;;  %1568 = vmatmul.f32.vlgmr.msra.gmra.mxu2 %v6293_v35  ;;  %v6383_v31 = vld [vmem:[#allocation6 + $0x2d8] sm:$0xff] }
 0x203   :  { %1614 = vmatmul.f32.vlgmr.msrb.gmra.mxu0 %v6293_v35  ;;  %1629 = vmatpush.msrb.mxu1 %v9211_v53  ;;  %v9264_v4 = vld [vmem:[#allocation102_spill] sm:$0xff]  ;;  %v9265_v53 = vld [vmem:[#allocation121_spill] sm:$0xff] }
 0x204   :  { %1652 = vmatpush.msrb.mxu2 %v9212_v58  ;;  %1591 = vmatmul.f32.vlgmr.msra.gmra.mxu3 %v6293_v35  ;;  %v6389_v58 = vld [vmem:[#allocation6 + $0x2a0] sm:$0xff] }
 0x205   :  { %1630 = vmatpush.msrb.mxu1 %v9213_v5  ;;  %1673 = vmatpush.msrb.mxu3 %v9214_v36  ;;  %v9266_v5 = vld [vmem:[#allocation105_spill] sm:$0xff]  ;;  %v9267_v36 = vld [vmem:[#allocation124_spill] sm:$0xff] }
 0x206   :  { %1653 = vmatpush.msrb.mxu2 %v9215_v21  ;;  %1696 = vmatpush.msra.mxu0 %v9216_v41  ;;  %v6395_v21 = vld [vmem:[#allocation6 + $0x268] sm:$0xff] }
 0x207   :  { %1631 = vmatpush.msrb.mxu1 %v9217_v42  ;;  %1674 = vmatpush.msrb.mxu3 %v9218_v28  ;;  %v9268_v41 = vld [vmem:[#allocation108_spill] sm:$0xff] }
 0x208   :  { %1654 = vmatpush.msrb.mxu2 %v9219_v32  ;;  %1697 = vmatpush.msra.mxu0 %v9220_v30  ;;  %v9269_v42 = vld [vmem:[#allocation120_spill] sm:$0xff]  ;;  %v6403_v32 = vld [vmem:[#allocation6 + $0x230] sm:$0xff]  ;;  %v9272_v30 = vld [vmem:[#allocation111_spill] sm:$0xff] }
 0x209   :  { %1632 = vmatpush.msrb.mxu1 %v9221_v23  ;;  %1675 = vmatpush.msrb.mxu3 %v9222_v63  ;;  %v9273_v23 = vld [vmem:[#allocation123_spill] sm:$0xff]  ;;  %v6409_v63 = vld [vmem:[#allocation6 + $0x1f8] sm:$0xff] }
 0x20a   :  { %1655 = vmatpush.msrb.mxu2 %v9223_v55  ;;  %1548 = vmatmul.f32.gmra.mxu1 %v6313_v25  ;;  %v9275_v55 = vld [vmem:[#allocation116_spill] sm:$0xff] }
 0x20b   :  { %1571 = vmatmul.f32.gmra.mxu2 %v6313_v25  ;;  %1617 = vmatmul.f32.gmra.mxu0 %v6313_v25 }
 0x20c   :  { %1633 = vmatpush.msrb.mxu1 %v9224_v10  ;;  %1656 = vmatpush.msrb.mxu2 %v9225_v27  ;;  %v9276_v10 = vld [vmem:[#allocation127_spill] sm:$0xff] }
 0x20d   :  { %1594 = vmatmul.f32.gmra.mxu3 %v6313_v25  ;;  %1698 = vmatpush.msra.mxu0 %v9226_v8  ;;  %v9277_v27 = vld [vmem:[#allocation131_spill] sm:$0xff]  ;;  %v9278_v8 = vld [vmem:[#allocation117_spill] sm:$0xff] }
 0x20e   :  { %1634 = vmatpush.msrb.mxu1 %v9228_v26  ;;  %1657 = vmatpush.msrb.mxu2 %v9229_v46  ;;  %v6417_v26 = vld [vmem:[#allocation6 + $0x1c0] sm:$0xff]  ;;  %v9279_v46 = vld [vmem:[#allocation134_spill] sm:$0xff] }
 0x20f   :  { %1676 = vmatpush.msrb.mxu3 %v9230_v38  ;;  %1699 = vmatpush.msra.mxu0 %v9231_v13  ;;  %v9280_v38 = vld [vmem:[#allocation130_spill] sm:$0xff] }
 0x210   :  { %1635 = vmatpush.msrb.mxu1 %v9232_v24  ;;  %1658 = vmatpush.msrb.mxu2 %v9233_v45  ;;  %v9281_v13 = vld [vmem:[#allocation122_spill] sm:$0xff]  ;;  %v6423_v24 = vld [vmem:[#allocation6 + $0x188] sm:$0xff]  ;;  %v9282_v45 = vld [vmem:[#allocation137_spill] sm:$0xff] }
 0x211   :  { %1677 = vmatpush.msrb.mxu3 %v9234_v52  ;;  %1700 = vmatpush.msra.mxu0 %v9235_v34  ;;  %v9283_v52 = vld [vmem:[#allocation133_spill] sm:$0xff]  ;;  %v9284_v34 = vld [vmem:[#allocation126_spill] sm:$0xff] }
 0x212   :  { %1636 = vmatpush.msrb.mxu1 %v9236_v39  ;;  %1659 = vmatpush.msrb.mxu2 %v5931_v61  ;;  %v6350_v61 = vpop.permute.xlu1 %2625 }
 0x213   :  { %1637 = vmatmul.f32.vlgmr.msrb.gmra.mxu1 %v6293_v35  ;;  %1660 = vmatmul.f32.vlgmr.msrb.gmra.mxu2 %v6293_v35  ;;  %9244 = vst [vmem:[#allocation13_spill] sm:$0xff] %v6350_v61  ;;  %v6580_v61 = vld [vmem:[#allocation6 + $0x128] sm:$0xff] }
 0x214   :  { %1713 = vmatpush.msra.mxu1 %v9237_v47  ;;  %1678 = vmatpush.msrb.mxu3 %v9238_v62  ;;  %v6434_v47 = vld [vmem:[#allocation6 + $0x150] sm:$0xff]  ;;  %v9285_v62 = vld [vmem:[#allocation136_spill] sm:$0xff]  ;;  %9315 = vst [vmem:[#allocation22_spill] sm:$0xff] %v6580_v61 }
 0x215   :  { %1701 = vmatpush.msra.mxu0 %v9239_v56  ;;  %1736 = vmatpush.msra.mxu2 %v5968_v54  ;;  %v9249_v54 = vld [vmem:[#allocation91_spill] sm:$0xff]  ;;  %v6438_v56 = vld [vmem:[#allocation6 + $0x318] sm:$0xff] }
 0x216   :  { %1714 = vmatpush.msra.mxu1 %v9240_v40  ;;  %1679 = vmatpush.msrb.mxu3 %v9241_v3  ;;  %v9286_v40 = vld [vmem:[#allocation129_spill] sm:$0xff]  ;;  %v6442_v3 = vld [vmem:[#allocation6 + $0x118] sm:$0xff] }
 0x217   :  { %1702 = vmatpush.msra.mxu0 %v9242_v50  ;;  %1737 = vmatpush.msra.mxu2 %v9243_v17  ;;  %v6446_v50 = vld [vmem:[#allocation6 + $0x2e0] sm:$0xff]  ;;  %v9287_v17 = vld [vmem:[#allocation132_spill] sm:$0xff] }
 0x218   :  { %1715 = vmatpush.msra.mxu1 %v9245_v7  ;;  %1680 = vmatpush.msrb.mxu3 %v9246_v2  ;;  %v6450_v7 = vld [vmem:[#allocation6 + $0xe0] sm:$0xff] }
 0x219   :  { %1703 = vmatpush.msra.mxu0 %v9247_v51  ;;  %1738 = vmatpush.msra.mxu2 %v5988_v20  ;;  %v9254_v20 = vld [vmem:[#allocation103_spill] sm:$0xff] }
 0x21a   :  { %1716 = vmatpush.msra.mxu1 %v9248_v15  ;;  %1681 = vmatpush.msrb.mxu3 %v9249_v54  ;;  %v6374_v33 = vpop.permute.xlu1 %3040  ;;  %v9288_v2 = vld [vmem:[#allocation139_spill] sm:$0xff]  ;;  %v6454_v15 = vld [vmem:[#allocation6 + $0x2a8] sm:$0xff] }
 0x21b   :  { %1640 = vmatmul.f32.gmra.mxu1 %v6313_v25  ;;  %1663 = vmatmul.f32.gmra.mxu2 %v6313_v25  ;;  %9259 = vst [vmem:[#allocation25_spill] sm:$0xff] %v6374_v33  ;;  %v9289_v54 = vld [vmem:[#allocation135_spill] sm:$0xff]  ;;  %v6577_v33 = vld [vmem:[#allocation6 + $0xf8] sm:$0xff] }
 0x21c   :  { %1717 = vmatpush.msra.mxu1 %v5994_v60  ;;  %1682 = vmatpush.msrb.mxu3 %v9250_v29  ;;  %v9257_v60 = vld [vmem:[#allocation98_spill] sm:$0xff]  ;;  %9314 = vst [vmem:[#allocation55_spill] sm:$0xff] %v6577_v33 }
 0x21d   :  { %1704 = vmatpush.msra.mxu0 %v9252_v12  ;;  %1739 = vmatpush.msra.mxu2 %v9253_v48  ;;  %v9291_v12 = vld [vmem:[#allocation140_spill] sm:$0xff]  ;;  %v6463_v48 = vld [vmem:[#allocation6 + $0x270] sm:$0xff] }
 0x21e   :  { %1759 = vmatpush.msra.mxu3 %v9251_v0  ;;  %1718 = vmatpush.msra.mxu1 %v6006_v18  ;;  %v6377_v18 = vld [vmem:[#allocation6 + $0x310] sm:$0xff]  ;;  %v6459_v0 = vld [vmem:[#allocation6 + $0xa8] sm:$0xff] }
 0x21f   :  { %1705 = vmatpush.msra.mxu0 %v9255_v49  ;;  %1740 = vmatpush.msra.mxu2 %v9258_v59  ;;  %v6471_v59 = vld [vmem:[#allocation6 + $0x238] sm:$0xff] }
 0x220   :  { %1760 = vmatpush.msra.mxu3 %v9254_v20  ;;  %1719 = vmatpush.msra.mxu1 %v9256_v9  ;;  %v9292_v20 = vld [vmem:[#allocation138_spill] sm:$0xff]  ;;  %v6467_v9 = vld [vmem:[#allocation6 + $0x360] sm:$0xff] }
 0x221   :  { %1939 = vmatpush.msrb.mxu0 %v6369_v16  ;;  %1741 = vmatpush.msra.mxu2 %v9262_v37  ;;  %v6480_v37 = vld [vmem:[#allocation6 + $0x358] sm:$0xff] }
 0x222   :  { %1761 = vmatpush.msra.mxu3 %v9257_v60  ;;  %1720 = vmatpush.msra.mxu1 %v9260_v6  ;;  %v6400_v28 = vpop.permute.xlu1 %551  ;;  %v6474_v6 = vld [vmem:[#allocation6 + $0x70] sm:$0xff] }
 0x223   :  { %1940 = vmatpush.msrb.mxu0 %v6377_v18  ;;  %1742 = vmatpush.msra.mxu2 %v9265_v53  ;;  %9270 = vst [vmem:[#allocation24_spill] sm:$0xff] %v6400_v28  ;;  %v6489_v53 = vld [vmem:[#allocation6 + $0x38] sm:$0xff]  ;;  %v6583_v28 = vld [vmem:[#allocation6 + $0xc0] sm:$0xff] }
 0x224   :  { %1762 = vmatpush.msra.mxu3 %v9261_v43  ;;  %1721 = vmatpush.msra.mxu1 %v9263_v1  ;;  %v6477_v43 = vld [vmem:[#allocation6 + $0x328] sm:$0xff]  ;;  %v6483_v1 = vld [vmem:[#allocation6 + $0x200] sm:$0xff]  ;;  %9316 = vst [vmem:[#allocation52_spill] sm:$0xff] %v6583_v28 }
 0x225   :  { %1941 = vmatpush.msrb.mxu0 %v6383_v31  ;;  %1743 = vmatpush.msra.mxu2 %v9267_v36  ;;  %v6495_v36 = vld [vmem:[#allocation6 + $0x320] sm:$0xff] }
 0x226   :  { %1763 = vmatpush.msra.mxu3 %v9264_v4  ;;  %1722 = vmatpush.msra.mxu1 %v6050_v57  ;;  %v9271_v57 = vld [vmem:[#allocation125_spill] sm:$0xff] }
 0x227   :  { %1942 = vmatpush.msrb.mxu0 %v6389_v58  ;;  %1744 = vmatpush.msra.mxu2 %v9269_v42  ;;  %v6486_v4 = vld [vmem:[#allocation6 + $0x2f0] sm:$0xff]  ;;  %v6501_v42 = vld [vmem:[#allocation6] sm:$0xff] }
 0x228   :  { %1764 = vmatpush.msra.mxu3 %v9266_v5  ;;  %1723 = vmatpush.msra.mxu1 %v6063_v19  ;;  %v9274_v19 = vld [vmem:[#allocation128_spill] sm:$0xff] }
 0x229   :  { %1943 = vmatpush.msrb.mxu0 %v6395_v21  ;;  %1745 = vmatpush.msra.mxu2 %v9273_v23  ;;  %v6492_v5 = vld [vmem:[#allocation6 + $0x1c8] sm:$0xff]  ;;  %v6510_v23 = vld [vmem:[#allocation6 + $0x280] sm:$0xff] }
 0x22a   :  { %1765 = vmatpush.msra.mxu3 %v9268_v41  ;;  %1724 = vmatpush.msra.mxu1 %v9271_v57  ;;  %v6432_v39 = vpop.permute.xlu1 %556  ;;  %v6498_v41 = vld [vmem:[#allocation6 + $0x2b8] sm:$0xff]  ;;  %v6504_v57 = vld [vmem:[#allocation6 + $0x190] sm:$0xff]  ;;  %9293 = vst [vmem:[#allocation15_spill] sm:$0xff] %v6510_v23 }
 0x22b   :  { %1944 = vmatpush.msrb.mxu0 %v6403_v32  ;;  %1746 = vmatpush.msra.mxu2 %v9276_v10  ;;  %v6519_v10 = vpop.f32.mrf.mxu0 }
 0x22c   :  { %1766 = vmatpush.msra.mxu3 %v9272_v30  ;;  %1725 = vmatpush.msra.mxu1 %v9274_v19  ;;  %v6507_v30 = vld [vmem:[#allocation6 + $0x2e8] sm:$0xff]  ;;  %v6513_v19 = vld [vmem:[#allocation6 + $0x158] sm:$0xff] }
 0x22d   :  { %1945 = vmatpush.msrb.mxu0 %v6409_v63  ;;  %1683 = vmatmul.f32.vlgmr.msrb.gmra.mxu3 %v6293_v35  ;;  %v6428_v35 = vld [vmem:[#allocation6 + $0x350] sm:$0xff]  ;;  %9294 = vst [vmem:[#allocation23_spill] sm:$0xff] %v6513_v19 }
 0x22e   :  { %1767 = vmatpush.msra.mxu3 %v9275_v55  ;;  %1726 = vmatpush.msra.mxu1 %v9277_v27  ;;  %v6516_v55 = vld [vmem:[#allocation6 + $0x2b0] sm:$0xff]  ;;  %v6521_v27 = vld [vmem:[#allocation6 + $0x248] sm:$0xff] }
 0x22f   :  { %1946 = vmatpush.msrb.mxu0 %v6417_v26  ;;  %1747 = vmatpush.msra.mxu2 %v9280_v38  ;;  %9295 = vst [vmem:[#allocation36_spill] sm:$0xff] %v6516_v55  ;;  %v6530_v38 = vld [vmem:[#allocation6 + $0x210] sm:$0xff] }
 0x230   :  { %1768 = vmatpush.msra.mxu3 %v9278_v8  ;;  %1727 = vmatpush.msra.mxu1 %v9279_v46  ;;  %9296 = vst [vmem:[#allocation28_spill] sm:$0xff] %v6521_v27  ;;  %v6524_v8 = vld [vmem:[#allocation6 + $0x120] sm:$0xff]  ;;  %v6527_v46 = vld [vmem:[#allocation6 + $0x278] sm:$0xff] }
 0x231   :  { %1947 = vmatpush.msrb.mxu0 %v6423_v24  ;;  %1748 = vmatpush.msra.mxu2 %v9283_v52  ;;  %9297 = vst [vmem:[#allocation43_spill] sm:$0xff] %v6524_v8  ;;  %v6539_v52 = vld [vmem:[#allocation6 + $0x1d8] sm:$0xff] }
 0x232   :  { %1769 = vmatpush.msra.mxu3 %v9281_v13  ;;  %1728 = vmatpush.msra.mxu1 %v9282_v45  ;;  %9298 = vst [vmem:[#allocation35_spill] sm:$0xff] %v6527_v46  ;;  %v6533_v13 = vld [vmem:[#allocation6 + $0xe8] sm:$0xff]  ;;  %v6536_v45 = vld [vmem:[#allocation6 + $0x240] sm:$0xff] }
 0x233   :  { %1948 = vmatpush.msrb.mxu0 %v6434_v47  ;;  %1749 = vmatpush.msra.mxu2 %v9285_v62  ;;  %9299 = vst [vmem:[#allocation17_spill] sm:$0xff] %v6530_v38  ;;  %v6545_v62 = vld [vmem:[#allocation6 + $0x208] sm:$0xff] }
 0x234   :  { %1962 = vmatpush.msrb.mxu1 %v6428_v35  ;;  %1770 = vmatpush.msra.mxu3 %v9284_v34  ;;  %9300 = vst [vmem:[#allocation20_spill] sm:$0xff] %v6533_v13  ;;  %v6542_v34 = vld [vmem:[#allocation6 + $0xb0] sm:$0xff] }
 0x235   :  { %1949 = vmatpush.msrb.mxu0 %v6442_v3  ;;  %1686 = vmatmul.f32.gmra.mxu3 %v6313_v25  ;;  %v9290_v25 = vld [vmem:[#allocation113_spill] sm:$0xff]  ;;  %9301 = vst [vmem:[#allocation21_spill] sm:$0xff] %v6536_v45 }
 0x236   :  { %1963 = vmatpush.msrb.mxu1 %v6438_v56  ;;  %1771 = vmatpush.msra.mxu3 %v9286_v40  ;;  %9302 = vst [vmem:[#allocation16_spill] sm:$0xff] %v6539_v52  ;;  %v6548_v40 = vld [vmem:[#allocation6 + $0x1a0] sm:$0xff] }
 0x237   :  { %1950 = vmatpush.msrb.mxu0 %v6450_v7  ;;  %1750 = vmatpush.msra.mxu2 %v9288_v2  ;;  %9303 = vst [vmem:[#allocation40_spill] sm:$0xff] %v6542_v34  ;;  %v6551_v2 = vld [vmem:[#allocation6 + $0x78] sm:$0xff] }
 0x238   :  { %1964 = vmatpush.msrb.mxu1 %v6446_v50  ;;  %1772 = vmatpush.msra.mxu3 %v9287_v17  ;;  %9304 = vst [vmem:[#allocation32_spill] sm:$0xff] %v6545_v62  ;;  %v1136_v17 = vpop.f32.mrf.mxu2 }
 0x239   :  { %1951 = vmatpush.msrb.mxu0 %v6459_v0  ;;  %1751 = vmatpush.msra.mxu2 %v9291_v12  ;;  %9305 = vst [vmem:[#allocation47_spill] sm:$0xff] %v6548_v40  ;;  %v6566_v12 = vpop.f32.mrf.mxu0 }
 0x23a   :  { %1965 = vmatpush.msrb.mxu1 %v6454_v15  ;;  %1773 = vmatpush.msra.mxu3 %v9289_v54  ;;  %9306 = vst [vmem:[#allocation31_spill] sm:$0xff] %v6551_v2  ;;  %v6557_v54 = vld [vmem:[#allocation6 + $0x168] sm:$0xff] }
 0x23b   :  { %1952 = vmatpush.msrb.mxu0 %v6474_v6  ;;  %1985 = vmatpush.msrb.mxu2 %v6480_v37  ;;  %9308 = vst [vmem:[#allocation18_spill] sm:$0xff] %v6557_v54 }
 0x23c   :  { %1966 = vmatpush.msrb.mxu1 %v6463_v48  ;;  %1774 = vmatpush.msra.mxu3 %v9292_v20  ;;  %v6568_v20 = vld [vmem:[#allocation6 + $0x130] sm:$0xff] }
 0x23d   :  { %v967_v51 = vpop.xlane.xlu2 %966  ;;  %1953 = vmatpush.msrb.mxu0 %v6489_v53  ;;  %1986 = vmatpush.msrb.mxu2 %v6495_v36  ;;  %9311 = vst [vmem:[#allocation19_spill] sm:$0xff] %v6568_v20 }
 0x23e   :  { %v969_v29 = vadd.f32 %v9290_v25, %v967_v51  ;;  %2008 = vmatpush.msrb.mxu3 %v6467_v9  ;;  %1967 = vmatpush.msrb.mxu1 %v6471_v59  ;;  %v6554_v51 = vld [vmem:[#allocation6 + $0x1d0] sm:$0xff] }
 0x23f   :  { %1954 = vmatpush.msrb.mxu0 %v6501_v42  ;;  %1987 = vmatpush.msrb.mxu2 %v6507_v30  ;;  %9307 = vst [vmem:[#allocation44_spill] sm:$0xff] %v6554_v51 }
 0x240   :  { %978 = vperm.xlu0 %3687, %v969_v29   ;;  %2009 = vmatpush.msrb.mxu3 %v6477_v43  ;;  %v6563_v29 = vld [vmem:[#allocation6 + $0x198] sm:$0xff] }
 0x241   :  { %1968 = vmatpush.msrb.mxu1 %v6483_v1  ;;  %1988 = vmatpush.msrb.mxu2 %v6516_v55  ;;  %9310 = vst [vmem:[#allocation51_spill] sm:$0xff] %v6563_v29 }
 0x242   :  { %2010 = vmatpush.msrb.mxu3 %v6486_v4 }
 0x243   :  { %1969 = vmatpush.msrb.mxu1 %v6492_v5  ;;  %1989 = vmatpush.msrb.mxu2 %v6527_v46 }
 0x244   :  { %2011 = vmatpush.msrb.mxu3 %v6498_v41 }
 0x245   :  { %v965_v49 = vpop.xlane.xlu1 %964  ;;  %1970 = vmatpush.msrb.mxu1 %v6504_v57  ;;  %1990 = vmatpush.msrb.mxu2 %v6536_v45 }
 0x246   :  { %v968_v60 = vadd.f32 %v9290_v25, %v965_v49  ;;  %2012 = vmatpush.msrb.mxu3 %v6510_v23  ;;  %v6560_v25 = vld [vmem:[#allocation6 + $0x40] sm:$0xff]  ;;  %v6571_v49 = vld [vmem:[#allocation6 + $0x8] sm:$0xff] }
 0x247   :  { %1971 = vmatpush.msrb.mxu1 %v6513_v19  ;;  %1991 = vmatpush.msrb.mxu2 %v6545_v62  ;;  %9309 = vst [vmem:[#allocation39_spill] sm:$0xff] %v6560_v25 }
 0x248   :  { %973 = vperm.xlu2 %3689, %v968_v60   ;;  %2013 = vmatpush.msrb.mxu3 %v6521_v27  ;;  %9312 = vst [vmem:[#allocation48_spill] sm:$0xff] %v6571_v49  ;;  %v6574_v60 = vld [vmem:[#allocation6 + $0x160] sm:$0xff] }
 0x249   :  { %1972 = vmatpush.msrb.mxu1 %v6524_v8  ;;  %1992 = vmatpush.msrb.mxu2 %v6554_v51  ;;  %9313 = vst [vmem:[#allocation29_spill] sm:$0xff] %v6574_v60  ;;  %v9325_v51 = vld [vmem:[#allocation78_spill] sm:$0xff] }
 0x24a   :  { %2014 = vmatpush.msrb.mxu3 %v6530_v38  ;;  %v9326_v8 = vld [vmem:[#allocation82_spill] sm:$0xff] }
 0x24b   :  { %1973 = vmatpush.msrb.mxu1 %v6533_v13  ;;  %1993 = vmatpush.msrb.mxu2 %v6563_v29  ;;  %v6607_v29 = vld [vmem:[#allocation6 + $0x10] sm:$0xff] }
 0x24c   :  { %2015 = vmatpush.msrb.mxu3 %v6539_v52  ;;  %9324 = vst [vmem:[#allocation63_spill] sm:$0xff] %v6607_v29 }
 0x24d   :  { %1974 = vmatpush.msrb.mxu1 %v6542_v34  ;;  %1994 = vmatpush.msrb.mxu2 %v6574_v60  ;;  %v1139_v60 = vpop.f32.mrf.mxu2 }
 0x24e   :  { %2016 = vmatpush.msrb.mxu3 %v6548_v40 }
 0x24f   :  { %1975 = vmatpush.msrb.mxu1 %v6551_v2  ;;  %1995 = vmatpush.msrb.mxu2 %v6580_v61  ;;  %v6598_v61 = vld [vmem:[#allocation6 + $0x80] sm:$0xff] }
 0x250   :  { %2017 = vmatpush.msrb.mxu3 %v6557_v54  ;;  %9321 = vst [vmem:[#allocation27_spill] sm:$0xff] %v6598_v61 }
 0x251   :  { %1976 = vmatpush.msrb.mxu1 %v6560_v25  ;;  %1996 = vmatpush.msrb.mxu2 %v6586_v44  ;;  %v6601_v25 = vld [vmem:[#allocation6 + $0x18] sm:$0xff]  ;;  %v1205_v44 = vpop.f32.mrf.mxu1 }
 0x252   :  { %2018 = vmatpush.msrb.mxu3 %v6568_v20  ;;  %v6592_v20 = vld [vmem:[#allocation6 + $0xb8] sm:$0xff]  ;;  %9322 = vst [vmem:[#allocation60_spill] sm:$0xff] %v6601_v25 }
 0x253   :  { %1977 = vmatpush.msrb.mxu1 %v6571_v49  ;;  %v6589_v49 = vld [vmem:[#allocation6 + $0x88] sm:$0xff]  ;;  %9319 = vst [vmem:[#allocation33_spill] sm:$0xff] %v6592_v20  ;;  %1997 = vmatpush.msrb.mxu2 %v6592_v20 }
 0x254   :  { %2019 = vmatpush.msrb.mxu3 %v6577_v33  ;;  %9318 = vst [vmem:[#allocation56_spill] sm:$0xff] %v6589_v49  ;;  %v6595_v33 = vld [vmem:[#allocation6 + $0x50] sm:$0xff] }
 0x255   :  { %9320 = vst [vmem:[#allocation59_spill] sm:$0xff] %v6595_v33  ;;  %1998 = vmatpush.msrb.mxu2 %v6598_v61  ;;  %v1228_v20 = vpop.f32.mrf.mxu2  ;;  %v1403_v61 = vmul.f32 %v9325_v51, %v1205_v44 }
 0x256   :  { %2020 = vmatpush.msrb.mxu3 %v6583_v28  ;;  %v1274_v28 = vpop.f32.mrf.mxu0 }
 0x257   :  { %v1409_v34 = vadd.f32 %v1403_v61, %v1136_v17  ;;  %v6617_v61 = vld [vmem:[%s8305_s5 + $0x1] ss:$0 sm:$0xff] }
 0x258   :  { %2021 = vmatpush.msrb.mxu3 %v6589_v49  ;;  %v6604_v49 = vld [vmem:[#allocation6 + $0x48] sm:$0xff]  ;;  %9327 = vst [vmem:[#allocation30_spill] sm:$0xff] %v6617_v61 }
 0x259   :  { %9323 = vst [vmem:[#allocation37_spill] sm:$0xff] %v6604_v49  ;;  %1999 = vmatpush.msrb.mxu2 %v6604_v49  ;;  %v1208_v2 = vpop.f32.mrf.mxu1 }
 0x25a   :  { %2022 = vmatpush.msrb.mxu3 %v6595_v33  ;;  %v1159_v33 = vpop.f32.mrf.mxu3  ;;  %v1406_v46 = vmul.f32 %v9326_v8, %v1208_v2 }
 0x25b   :  { %2000 = vmatpush.msrb.mxu2 %v6607_v29 }
 0x25c   :  { %2023 = vmatpush.msrb.mxu3 %v6601_v25  ;;  %v1404_v25 = vmul.f32 %v9325_v51, %v1228_v20  ;;  %v1412_v44 = vadd.f32 %v1406_v46, %v1139_v60 }
 0x25d   :  { %v1231_v40 = vpop.f32.mrf.mxu2 }
 0x25e   :  { %v1277_v54 = vpop.f32.mrf.mxu0  ;;  %v1410_v27 = vadd.f32 %v1404_v25, %v1159_v33  ;;  %v1407_v17 = vmul.f32 %v9326_v8, %v1231_v40 }
 0x262   :  { %v1162_v62 = vpop.f32.mrf.mxu3 }
 0x26d   :  { %v1297_v52 = vpop.f32.mrf.mxu1 }
 0x26e   :  { %v1415_v13 = vadd.f32 %v1409_v34, %v1297_v52  ;;  %v1366_v45 = vpop.f32.mrf.mxu0 }
 0x26f   :  { %v1372_v38 = vadd.f32 %v1366_v45, %v1274_v28  ;;  %v1251_v28 = vpop.f32.mrf.mxu3 }
 0x270   :  { %v1417_v49 = vadd.f32 %v6186_v14, %v1415_v13 }
 0x271   :  { %1374 = vadd.xlane.f32.xlu1 %v1372_v38 }
 0x272   :  { %v3621_v29 = vmul.f32 -1.442695, %v1417_v49 }
 0x273   :  { %v1320_v19 = vpop.f32.mrf.mxu2 }
 0x274   :  { %3740 = vpow2.f32 %v3621_v29  ;;  %v1457_v55 = vadd.f32 %v1410_v27, %v1320_v19  ;;  %v1413_v29 = vadd.f32 %v1407_v17, %v1162_v62 }
 0x276   :  { %v1459_v52 = vadd.f32 %v6617_v61, %v1457_v55  ;;  %v1300_v34 = vpop.f32.mrf.mxu1 }
 0x277   :  { %v1416_v45 = vadd.f32 %v1412_v44, %v1300_v34  ;;  %v1369_v13 = vpop.f32.mrf.mxu0  ;;  %v1254_v60 = vpop.f32.mrf.mxu3  ;;  %v1405_v34 = vmul.f32 %v9325_v51, %v1251_v28 }
 0x278   :  { %v3623_v38 = vmul.f32 -1.442695, %v1459_v52  ;;  %v1373_v2 = vadd.f32 %v1369_v13, %v1277_v54 }
 0x279   :  { %v1418_v33 = vadd.f32 %v6186_v14, %v1416_v45 }
 0x27a   :  { %v3741_v25 = vpop.eup %3740  ;;  %3742 = vpow2.f32 %v3623_v38  ;;  %1376 = vadd.xlane.f32.xlu0 %v1373_v2 }
 0x27b   :  { %v1425_v19 = vadd.f32 1.0, %v3741_v25  ;;  %v3622_v27 = vmul.f32 -1.442695, %v1418_v33  ;;  %v1411_v33 = vadd.f32 %v1405_v34, %v6519_v10 }
 0x27c   :  { %v1323_v46 = vpop.f32.mrf.mxu2 }
 0x27d   :  { %3744 = vrcp.f32 %v1425_v19  ;;  %v1458_v55 = vadd.f32 %v1413_v29, %v1323_v46  ;;  %v1438_v38 = vand.u32 2147483648, %v1425_v19  ;;  %v1436_v17 = vand.u32 2147483647, %v1425_v19 }
 0x27e   :  { %3746 = vpow2.f32 %v3622_v27  ;;  %vm1432_vm1 = vweird.f32 %v1425_v19 }
 0x27f   :  { %v1460_v49 = vadd.f32 %v6617_v61, %v1458_v55  ;;  %v1343_v25 = vpop.f32.mrf.mxu3  ;;  %v1439_v55 = vor.u32 1.1754944e-38, %v1438_v38  ;;  %vm1437_vm3 = vcmp.eq.f32.partialorder %v1436_v17, 8.507059e+37 }
 0x280   :  { %v3743_v20 = vpop.eup %3742 }
 0x281   :  { %v1467_v44 = vadd.f32 1.0, %v3743_v20  ;;  %v3624_v40 = vmul.f32 -1.442695, %v1460_v49  ;;  %v6630_v49 = vld [vmem:[%s8305_s5 + $0x3] ss:$0 sm:$0xff] }
 0x283   :  { %v3745_v52 = vpop.eup %3744  ;;  %3748 = vrcp.f32 %v1467_v44  ;;  %v1478_v17 = vand.u32 2147483647, %v1467_v44  ;;  %vm1474_vm5 = vweird.f32 %v1467_v44 }
 0x284   :  { %v3747_v54 = vpop.eup %3746  ;;  %v1428_v14 = vmul.f32 %v3745_v52, %v1425_v19  ;;  %3750 = vpow2.f32 %v3624_v40  ;;  %vm1433_vm0 = vweird.f32 %v3745_v52  ;;  %v1501_v40 = vadd.f32 %v6630_v49, %v1343_v25 }
 0x285   :  { %v1426_v45 = vadd.f32 1.0, %v3747_v54  ;;  %vm1434_vm2 = vmor %vm1432_vm1, %vm1433_vm0  ;;  %v6636_v54 = vld [vmem:[%s8305_s5 + $0x2] ss:$0 sm:$0xff]  ;;  %vm1479_vm8 = vcmp.eq.f32.partialorder %v1478_v17, 8.507059e+37 }
 0x286   :  { %v1429_v13 = vsub.f32 1.0, %v1428_v14  ;;  %v1499_v19 = vadd.f32 %v6636_v54, %v1411_v33  ;;  %v1480_v14 = vand.u32 2147483648, %v1467_v44 }
 0x287   :  { %3752 = vrcp.f32 %v1426_v45  ;;  %v1451_v61 = vand.u32 2147483647, %v1426_v45  ;;  %v1453_v23 = vand.u32 2147483648, %v1426_v45  ;;  %vm1447_vm9 = vweird.f32 %v1426_v45 }
 0x288   :  { %v1430_v62 = vmul.f32 %v3745_v52, %v1429_v13 }
 0x289   :  { %v3749_v2 = vpop.eup %3748  ;;  %vm1452_vm11 = vcmp.eq.f32.partialorder %v1451_v61, 8.507059e+37 }
 0x28a   :  { %v3751_v27 = vpop.eup %3750  ;;  %v1470_v46 = vmul.f32 %v3749_v2, %v1467_v44  ;;  %v1431_v29 = vadd.f32 %v3745_v52, %v1430_v62  ;;  %vm1475_vm4 = vweird.f32 %v3749_v2  ;;  %v1408_v62 = vmul.f32 %v9326_v8, %v1254_v60 }
 0x28b   :  { %v6625_v20 = vadd.f32 1.0, %v3751_v27  ;;  %vm1476_vm6 = vmor %vm1474_vm5, %vm1475_vm4  ;;  %v1454_v44 = vor.u32 1.1754944e-38, %v1453_v23 }
 0x28c   :  { %v1471_v51 = vsub.f32 1.0, %v1470_v46  ;;  %v1435_v28 = vsel %vm1434_vm2, %v3745_v52, %v1431_v29  ;;  %v1481_v29 = vor.u32 1.1754944e-38, %v1480_v14 }
 0x28d   :  { %v3753_v10 = vpop.eup %3752  ;;  %v1440_v34 = vsel %vm1437_vm3, %v1439_v55, %v1435_v28  ;;  %3754 = vrcp.f32 %v6625_v20  ;;  %vm1489_vm13 = vweird.f32 %v6625_v20 }
 0x28e   :  { %v1472_v52 = vmul.f32 %v3749_v2, %v1471_v51  ;;  %v1503_v13 = vmul.f32 %v1501_v40, %v1440_v34  ;;  %v1443_v38 = vmul.f32 %v3753_v10, %v1426_v45  ;;  %vm1448_vm7 = vweird.f32 %v3753_v10  ;;  %v1346_v40 = vpop.f32.mrf.mxu3 }
 0x28f   :  { %v1414_v51 = vadd.f32 %v1408_v62, %v6566_v12  ;;  %vm1449_vm10 = vmor %vm1447_vm9, %vm1448_vm7  ;;  %v1495_v62 = vand.u32 2147483648, %v6625_v20  ;;  %v1493_v45 = vand.u32 2147483647, %v6625_v20 }
 0x290   :  { %v1473_v25 = vadd.f32 %v3749_v2, %v1472_v52  ;;  %v1505_v27 = vadd.f32 %v1503_v13, %v1499_v19  ;;  %v1444_v46 = vsub.f32 1.0, %v1443_v38 }
 0x291   :  { %v1500_v52 = vadd.f32 %v6636_v54, %v1414_v51  ;;  %vm1494_vm15 = vcmp.eq.f32.partialorder %v1493_v45, 8.507059e+37  ;;  %v6664_v51 = vld [vmem:[#allocation8 + $0x1e0] sm:$0xff] }
 0x292   :  { %v1477_v33 = vsel %vm1476_vm6, %v3749_v2, %v1473_v25  ;;  %3756 = vtanh.f32 %v1505_v27  ;;  %v1445_v55 = vmul.f32 %v3753_v10, %v1444_v46  ;;  %v1502_v2 = vadd.f32 %v6630_v49, %v1346_v40  ;;  %v6703_v45 = vld [vmem:[#allocation8 + $0x180] sm:$0xff] }
 0x293   :  { %v3755_v28 = vpop.eup %3754  ;;  %v1482_v34 = vsel %vm1479_vm8, %v1481_v29, %v1477_v33  ;;  %v1496_v29 = vor.u32 1.1754944e-38, %v1495_v62  ;;  %v6692_v62 = vld [vmem:[#allocation6 + $0x2c0] sm:$0xff] }
 0x294   :  { %v1485_v8 = vmul.f32 %v3755_v28, %v6625_v20  ;;  %v1446_v60 = vadd.f32 %v3753_v10, %v1445_v55  ;;  %v1509_v13 = vsub.f32 1.0, %v1482_v34  ;;  %vm1490_vm12 = vweird.f32 %v3755_v28  ;;  %v6658_v20 = vld [vmem:[#allocation6 + $0x370] sm:$0xff] }
 0x295   :  { %v1513_v23 = vmul.f32 %v1482_v34, %v6253_v11  ;;  %vm1491_vm14 = vmor %vm1489_vm13, %vm1490_vm12  ;;  %v6655_v11 = vld [vmem:[#allocation6 + $0x368] sm:$0xff]  ;;  %v6667_v34 = vld [vmem:[#allocation6 + $0x330] sm:$0xff] }
 0x296   :  { %v1486_v19 = vsub.f32 1.0, %v1485_v8  ;;  %v1450_v14 = vsel %vm1449_vm10, %v3753_v10, %v1446_v60  ;;  %v6670_v8 = vld [vmem:[#allocation6 + $0x338] sm:$0xff] }
 0x297   :  { %v1455_v38 = vsel %vm1452_vm11, %v1454_v44, %v1450_v14  ;;  %v6673_v44 = vld [vmem:[#allocation6 + $0x340] sm:$0xff] }
 0x298   :  { %v3757_v25 = vpop.eup %3756  ;;  %v1487_v12 = vmul.f32 %v3755_v28, %v1486_v19  ;;  %v1504_v17 = vmul.f32 %v1502_v2, %v1455_v38  ;;  %v6676_v19 = vld [vmem:[#allocation8 + $0x1c0] sm:$0xff]  ;;  %v6679_v2 = vld [vmem:[#allocation6 + $0x2f8] sm:$0xff]  ;;  %v6686_v38 = vld [vmem:[#allocation6 + $0x308] sm:$0xff] }
 0x299   :  { %v1511_v27 = vmul.f32 %v3757_v25, %v1509_v13  ;;  %v6689_v25 = vld [vmem:[#allocation8 + $0x1a0] sm:$0xff] }
 0x29a   :  { %v1488_v61 = vadd.f32 %v3755_v28, %v1487_v12  ;;  %v1506_v10 = vadd.f32 %v1504_v17, %v1500_v52  ;;  %v6682_v52 = vld [vmem:[#allocation6 + $0x300] sm:$0xff]  ;;  %v270_v12 = vlaneseq  ;;  %v6695_v17 = vld [vmem:[#allocation6 + $0x2c8] sm:$0xff] }
 0x29b   :  { %v6649_v46 = vadd.f32 %v1513_v23, %v1511_v27 }
 0x29c   :  { %v1492_v33 = vsel %vm1491_vm14, %v3755_v28, %v1488_v61  ;;  %3758 = vtanh.f32 %v1506_v10  ;;  %v6661_v28 = vld [vmem:[#allocation6 + $0x378] sm:$0xff]  ;;  %v6710_v23 = vand.u32 127, %v270_v12  ;;  %v6712_v61 = vld [vmem:[#allocation6 + $0x288] sm:$0xff]  ;;  %v6715_v10 = vld [vmem:[#allocation6 + $0x290] sm:$0xff] }
 0x29d   :  { %1706 = vmatmul.f32.vlgmr.msra.gmra.mxu0 %v6649_v46  ;;  %1729 = vmatmul.f32.vlgmr.msra.gmra.mxu1 %v6649_v46  ;;  %v1497_v55 = vsel %vm1494_vm15, %v1496_v29, %v1492_v33  ;;  %v6718_v29 = vld [vmem:[#allocation6 + $0x298] sm:$0xff]  ;;  %v6721_v33 = vld [vmem:[#allocation8 + $0x160] sm:$0xff] }
 0x29e   :  { %1752 = vmatmul.f32.vlgmr.msra.gmra.mxu2 %v6649_v46  ;;  %1775 = vmatmul.f32.vlgmr.msra.gmra.mxu3 %v6649_v46  ;;  %v1510_v40 = vsub.f32 1.0, %v1497_v55  ;;  %v1514_v13 = vmul.f32 %v1497_v55, %v6270_v22  ;;  %v6700_v22 = vld [vmem:[#allocation6 + $0x2d0] sm:$0xff]  ;;  %9328 = vst [vmem:[#allocation64_spill] sm:$0xff] %v6710_v23  ;;  %vm548_vm0 = vcmp.eq.s32.totalorder %v6710_v23, 0  ;;  %v6740_v12 = vld [vmem:[#allocation6 + $0x220] sm:$0xff]  ;;  %vm970_vm1 = vcmp.eq.s32.totalorder %v6710_v23, 1 }
 0x29f   :  { %2031 = vmatpush.msra.mxu0 %v6655_v11  ;;  %2054 = vmatpush.msra.mxu1 %v6658_v20  ;;  %9329 = vst [vmem:[#allocation41_spill] sm:$0xff] %v6718_v29  ;;  %v6724_v55 = vld [vmem:[#allocation6 + $0x250] sm:$0xff]  ;;  %v6790_v23 = vld [vmem:[#allocation6 + $0x138] sm:$0xff] }
 0x2a0   :  { %2077 = vmatpush.msra.mxu2 %v6661_v28  ;;  %2100 = vmatpush.msra.mxu3 %v6664_v51  ;;  %9330 = vst [vmem:[#allocation67_spill] sm:$0xff] %v6721_v33 }
 0x2a1   :  { %2032 = vmatpush.msra.mxu0 %v6667_v34  ;;  %2055 = vmatpush.msra.mxu1 %v6670_v8  ;;  %9335 = vst [vmem:[#allocation42_spill] sm:$0xff] %v6740_v12 }
 0x2a2   :  { %v3759_v60 = vpop.eup %3758  ;;  %2078 = vmatpush.msra.mxu2 %v6673_v44  ;;  %2101 = vmatpush.msra.mxu3 %v6676_v19  ;;  %9346 = vst [vmem:[#allocation61_spill] sm:$0xff] %v6790_v23 }
 0x2a3   :  { %v1512_v14 = vmul.f32 %v3759_v60, %v1510_v40  ;;  %2033 = vmatpush.msra.mxu0 %v6679_v2  ;;  %2056 = vmatpush.msra.mxu1 %v6682_v52  ;;  %v6727_v40 = vld [vmem:[#allocation6 + $0x258] sm:$0xff]  ;;  %v6730_v60 = vld [vmem:[#allocation6 + $0x260] sm:$0xff] }
 0x2a4   :  { %2079 = vmatpush.msra.mxu2 %v6686_v38  ;;  %2102 = vmatpush.msra.mxu3 %v6689_v25  ;;  %9331 = vst [vmem:[#allocation34_spill] sm:$0xff] %v6727_v40 }
 0x2a5   :  { %2034 = vmatpush.msra.mxu0 %v6692_v62  ;;  %2057 = vmatpush.msra.mxu1 %v6695_v17  ;;  %v6698_v27 = vadd.f32 %v1514_v13, %v1512_v14  ;;  %9332 = vst [vmem:[#allocation68_spill] sm:$0xff] %v6730_v60  ;;  %v6733_v14 = vld [vmem:[#allocation8 + $0x140] sm:$0xff]  ;;  %v6737_v13 = vld [vmem:[#allocation6 + $0x218] sm:$0xff] }
 0x2a6   :  { %2080 = vmatpush.msra.mxu2 %v6700_v22  ;;  %2103 = vmatpush.msra.mxu3 %v6703_v45  ;;  %9333 = vst [vmem:[#allocation38_spill] sm:$0xff] %v6733_v14 }
 0x2a7   :  { %1709 = vmatmul.f32.gmra.mxu0 %v6698_v27  ;;  %1732 = vmatmul.f32.gmra.mxu1 %v6698_v27  ;;  %9334 = vst [vmem:[#allocation65_spill] sm:$0xff] %v6737_v13 }
 0x2a8   :  { %1755 = vmatmul.f32.gmra.mxu2 %v6698_v27  ;;  %1778 = vmatmul.f32.gmra.mxu3 %v6698_v27 }
 0x2a9   :  { %2035 = vmatpush.msra.mxu0 %v6712_v61  ;;  %2058 = vmatpush.msra.mxu1 %v6715_v10 }
 0x2aa   :  { %2081 = vmatpush.msra.mxu2 %v6718_v29  ;;  %2104 = vmatpush.msra.mxu3 %v6721_v33  ;;  %v6746_v33 = vld [vmem:[%s8300_s0 + $0x40] sm:$0xff] }
 0x2ab   :  { %2036 = vmatpush.msra.mxu0 %v6724_v55  ;;  %2059 = vmatpush.msra.mxu1 %v6727_v40  ;;  %v6752_v29 = vld [vmem:[#allocation6 + $0x228] sm:$0xff] }
 0x2ac   :  { %2082 = vmatpush.msra.mxu2 %v6730_v60  ;;  %2105 = vmatpush.msra.mxu3 %v6733_v14  ;;  %v560_v60 = vsel %vm548_vm0, %v6432_v39, 0.0  ;;  %9336 = vst [vmem:[#allocation45_spill] sm:$0xff] %v6752_v29  ;;  %v6761_v40 = vld [vmem:[#allocation6 + $0x1e8] sm:$0xff] }
 0x2ad   :  { %2037 = vmatpush.msra.mxu0 %v6737_v13  ;;  %2060 = vmatpush.msra.mxu1 %v6740_v12  ;;  %v6755_v13 = vld [vmem:[#allocation8 + $0x120] sm:$0xff]  ;;  %9338 = vst [vmem:[#allocation71_spill] sm:$0xff] %v6761_v40 }
 0x2ae   :  { %2083 = vmatpush.msra.mxu2 %v6752_v29  ;;  %9337 = vst [vmem:[#allocation69_spill] sm:$0xff] %v6755_v13  ;;  %2106 = vmatpush.msra.mxu3 %v6755_v13  ;;  %v6758_v12 = vld [vmem:[#allocation6 + $0x1e0] sm:$0xff]  ;;  %v6771_v29 = vld [vmem:[#allocation6 + $0x1a8] sm:$0xff]  ;;  %v6774_v13 = vld [vmem:[#allocation6 + $0x1b0] sm:$0xff] }
 0x2af   :  { %2038 = vmatpush.msra.mxu0 %v6758_v12  ;;  %2061 = vmatpush.msra.mxu1 %v6761_v40  ;;  %9340 = vst [vmem:[#allocation49_spill] sm:$0xff] %v6771_v29  ;;  %v6778_v40 = vld [vmem:[#allocation6 + $0x170] sm:$0xff] }
 0x2b0   :  { %1955 = vmatmul.f32.vlgmr.msrb.gmra.mxu0 %v6746_v33  ;;  %1978 = vmatmul.f32.vlgmr.msrb.gmra.mxu1 %v6746_v33  ;;  %9341 = vst [vmem:[#allocation73_spill] sm:$0xff] %v6774_v13 }
 0x2b1   :  { %2024 = vmatmul.f32.vlgmr.msrb.gmra.mxu3 %v6746_v33  ;;  %2039 = vmatpush.msra.mxu0 %v6771_v29  ;;  %9342 = vst [vmem:[#allocation72_spill] sm:$0xff] %v6778_v40  ;;  %v6813_v29 = vld [vmem:[#allocation6 + $0x108] sm:$0xff] }
 0x2b2   :  { %v979_v14 = vpop.permute.xlu0 %978  ;;  %2062 = vmatpush.msra.mxu1 %v6774_v13  ;;  %2001 = vmatmul.f32.vlgmr.msrb.gmra.mxu2 %v6746_v33  ;;  %v6798_v13 = vld [vmem:[#allocation6 + $0x1b8] sm:$0xff]  ;;  %9352 = vst [vmem:[#allocation80_spill] sm:$0xff] %v6813_v29 }
 0x2b3   :  { %v6766_v39 = vsel %vm970_vm1, %v979_v14, %v560_v60  ;;  %2040 = vmatpush.msra.mxu0 %v6778_v40  ;;  %v6781_v60 = vld [vmem:[#allocation6 + $0x1f0] sm:$0xff]  ;;  %v6784_v14 = vld [vmem:[#allocation6 + $0x178] sm:$0xff]  ;;  %9347 = vst [vmem:[#allocation81_spill] sm:$0xff] %v6798_v13 }
 0x2b4   :  { %9339 = vst [vmem:[#allocation46_spill] sm:$0xff] %v6766_v39  ;;  %2084 = vmatpush.msra.mxu2 %v6781_v60  ;;  %2063 = vmatpush.msra.mxu1 %v6784_v14  ;;  %v6787_v39 = vld [vmem:[#allocation8 + $0x100] sm:$0xff]  ;;  %v6796_v40 = vld [vmem:[%s8300_s0 + $0x48] sm:$0xff] }
 0x2b5   :  { %9343 = vst [vmem:[#allocation57_spill] sm:$0xff] %v6781_v60  ;;  %2107 = vmatpush.msra.mxu3 %v6787_v39  ;;  %2041 = vmatpush.msra.mxu0 %v6790_v23  ;;  %v6801_v60 = vld [vmem:[#allocation6 + $0x140] sm:$0xff] }
 0x2b6   :  { %9344 = vst [vmem:[#allocation53_spill] sm:$0xff] %v6784_v14  ;;  %2085 = vmatpush.msra.mxu2 %v6798_v13  ;;  %2064 = vmatpush.msra.mxu1 %v6801_v60  ;;  %v6804_v14 = vld [vmem:[#allocation8 + $0xe0] sm:$0xff]  ;;  %v6835_v13 = vld [vmem:[#allocation6 + $0x148] sm:$0xff] }
 0x2b7   :  { %9345 = vst [vmem:[#allocation62_spill] sm:$0xff] %v6787_v39  ;;  %2108 = vmatpush.msra.mxu3 %v6804_v14  ;;  %v6807_v39 = vld [vmem:[#allocation6 + $0x100] sm:$0xff] }
 0x2b8   :  { %9348 = vst [vmem:[#allocation76_spill] sm:$0xff] %v6801_v60  ;;  %2042 = vmatpush.msra.mxu0 %v6807_v39  ;;  %v6810_v23 = vld [vmem:[#allocation6 + $0x180] sm:$0xff]  ;;  %2065 = vmatpush.msra.mxu1 %v6813_v29  ;;  %v6819_v60 = vld [vmem:[#allocation6 + $0xc8] sm:$0xff]  ;;  %v6829_v29 = vld [vmem:[#allocation6 + $0x90] sm:$0xff] }
 0x2b9   :  { %9349 = vst [vmem:[#allocation54_spill] sm:$0xff] %v6804_v14  ;;  %2086 = vmatpush.msra.mxu2 %v6810_v23  ;;  %1958 = vmatmul.f32.gmra.mxu0 %v6796_v40  ;;  %v6822_v14 = vld [vmem:[#allocation6 + $0xd0] sm:$0xff] }
 0x2ba   :  { %9350 = vst [vmem:[#allocation85_spill] sm:$0xff] %v6807_v39  ;;  %1981 = vmatmul.f32.gmra.mxu1 %v6796_v40  ;;  %2027 = vmatmul.f32.gmra.mxu3 %v6796_v40  ;;  %v6832_v39 = vld [vmem:[#allocation6 + $0x98] sm:$0xff] }
 0x2bb   :  { %9351 = vst [vmem:[#allocation50_spill] sm:$0xff] %v6810_v23  ;;  %2043 = vmatpush.msra.mxu0 %v6819_v60  ;;  %2066 = vmatpush.msra.mxu1 %v6822_v14  ;;  %v6826_v23 = vld [vmem:[#allocation8 + $0xc0] sm:$0xff] }
 0x2bc   :  { %9353 = vst [vmem:[#allocation58_spill] sm:$0xff] %v6819_v60  ;;  %2004 = vmatmul.f32.gmra.mxu2 %v6796_v40  ;;  %2109 = vmatpush.msra.mxu3 %v6826_v23  ;;  %v6838_v60 = vld [vmem:[#allocation8 + $0xa0] sm:$0xff] }
 0x2bd   :  { %9354 = vst [vmem:[#allocation97_spill] sm:$0xff] %v6822_v14  ;;  %2044 = vmatpush.msra.mxu0 %v6829_v29  ;;  %2067 = vmatpush.msra.mxu1 %v6832_v39  ;;  %v6841_v14 = vld [vmem:[#allocation6 + $0x58] sm:$0xff] }
 0x2be   :  { %9355 = vst [vmem:[#allocation75_spill] sm:$0xff] %v6826_v23  ;;  %2087 = vmatpush.msra.mxu2 %v6835_v13  ;;  %2110 = vmatpush.msra.mxu3 %v6838_v60  ;;  %v6844_v23 = vld [vmem:[#allocation6 + $0x60] sm:$0xff] }
 0x2bf   :  { %9356 = vst [vmem:[#allocation77_spill] sm:$0xff] %v6829_v29  ;;  %2045 = vmatpush.msra.mxu0 %v6841_v14  ;;  %2068 = vmatpush.msra.mxu1 %v6844_v23  ;;  %v6847_v29 = vld [vmem:[#allocation6 + $0x110] sm:$0xff] }
 0x2c0   :  { %9357 = vst [vmem:[#allocation87_spill] sm:$0xff] %v6832_v39  ;;  %2088 = vmatpush.msra.mxu2 %v6847_v29  ;;  %v6850_v39 = vld [vmem:[#allocation8 + $0x80] sm:$0xff] }
 0x2c1   :  { %9358 = vst [vmem:[#allocation100_spill] sm:$0xff] %v6835_v13  ;;  %2111 = vmatpush.msra.mxu3 %v6850_v39  ;;  %v6853_v13 = vld [vmem:[#allocation6 + $0x20] sm:$0xff] }
 0x2c2   :  { %9359 = vst [vmem:[#allocation79_spill] sm:$0xff] %v6838_v60  ;;  %2046 = vmatpush.msra.mxu0 %v6853_v13  ;;  %v6856_v60 = vld [vmem:[#allocation6 + $0x28] sm:$0xff] }
 0x2c3   :  { %9360 = vst [vmem:[#allocation88_spill] sm:$0xff] %v6841_v14  ;;  %2069 = vmatpush.msra.mxu1 %v6856_v60  ;;  %2047 = vmatmul.f32.vlgmr.msra.gmra.mxu0 %v6746_v33  ;;  %v6876_v14 = vld [vmem:[#allocation6 + $0xa0] sm:$0xff] }
 0x2c4   :  { %9361 = vst [vmem:[#allocation95_spill] sm:$0xff] %v6844_v23  ;;  %2070 = vmatmul.f32.vlgmr.msra.gmra.mxu1 %v6746_v33  ;;  %v6861_v23 = vld [vmem:[#allocation8 + $0x1e8] sm:$0xff] }
 0x2c5   :  { %9362 = vst [vmem:[#allocation83_spill] sm:$0xff] %v6847_v29  ;;  %2123 = vmatpush.msrb.mxu0 %v6861_v23  ;;  %v6864_v29 = vld [vmem:[#allocation6 + $0xd8] sm:$0xff] }
 0x2c6   :  { %9363 = vst [vmem:[#allocation94_spill] sm:$0xff] %v6850_v39  ;;  %2089 = vmatpush.msra.mxu2 %v6864_v29  ;;  %v6867_v39 = vld [vmem:[#allocation8 + $0x60] sm:$0xff] }
 0x2c7   :  { %9364 = vst [vmem:[#allocation106_spill] sm:$0xff] %v6853_v13  ;;  %2112 = vmatpush.msra.mxu3 %v6867_v39  ;;  %v6870_v13 = vld [vmem:[#allocation8 + $0x1f0] sm:$0xff] }
 0x2c8   :  { %9365 = vst [vmem:[#allocation96_spill] sm:$0xff] %v6856_v60  ;;  %2146 = vmatpush.msrb.mxu1 %v6870_v13  ;;  %v6873_v60 = vld [vmem:[#allocation8 + $0x1c8] sm:$0xff]  ;;  %2090 = vmatpush.msra.mxu2 %v6876_v14 }
 0x2c9   :  { %9366 = vst [vmem:[#allocation84_spill] sm:$0xff] %v6861_v23  ;;  %2124 = vmatpush.msrb.mxu0 %v6873_v60  ;;  %v6879_v23 = vld [vmem:[#allocation8 + $0x40] sm:$0xff] }
 0x2ca   :  { %9367 = vst [vmem:[#allocation70_spill] sm:$0xff] %v6864_v29  ;;  %2113 = vmatpush.msra.mxu3 %v6879_v23  ;;  %v6882_v29 = vld [vmem:[#allocation8 + $0x1d0] sm:$0xff] }
 0x2cb   :  { %9368 = vst [vmem:[#allocation99_spill] sm:$0xff] %v6867_v39  ;;  %2147 = vmatpush.msrb.mxu1 %v6882_v29  ;;  %v6885_v39 = vld [vmem:[#allocation8 + $0x1a8] sm:$0xff]  ;;  %2050 = vmatmul.f32.gmra.mxu0 %v6796_v40 }
 0x2cc   :  { %9369 = vst [vmem:[#allocation91_spill] sm:$0xff] %v6870_v13  ;;  %2125 = vmatpush.msrb.mxu0 %v6885_v39  ;;  %v6888_v13 = vld [vmem:[#allocation6 + $0x68] sm:$0xff]  ;;  %2073 = vmatmul.f32.gmra.mxu1 %v6796_v40 }
 0x2cd   :  { %9370 = vst [vmem:[#allocation66_spill] sm:$0xff] %v6873_v60  ;;  %2091 = vmatpush.msra.mxu2 %v6888_v13  ;;  %v6891_v60 = vld [vmem:[#allocation8 + $0x20] sm:$0xff] }
 0x2ce   :  { %9371 = vst [vmem:[#allocation93_spill] sm:$0xff] %v6876_v14  ;;  %2114 = vmatpush.msra.mxu3 %v6891_v60  ;;  %v6894_v14 = vld [vmem:[#allocation8 + $0x1b0] sm:$0xff] }
 0x2cf   :  { %9372 = vst [vmem:[#allocation89_spill] sm:$0xff] %v6879_v23  ;;  %2148 = vmatpush.msrb.mxu1 %v6894_v14  ;;  %v6897_v23 = vld [vmem:[#allocation8 + $0x188] sm:$0xff] }
 0x2d0   :  { %9373 = vst [vmem:[#allocation112_spill] sm:$0xff] %v6882_v29  ;;  %2126 = vmatpush.msrb.mxu0 %v6897_v23  ;;  %v6900_v29 = vld [vmem:[#allocation6 + $0x30] sm:$0xff] }
 0x2d1   :  { %9374 = vst [vmem:[#allocation103_spill] sm:$0xff] %v6885_v39  ;;  %2092 = vmatpush.msra.mxu2 %v6900_v29  ;;  %v6920_v39 = vld [vmem:[#allocation8 + $0x1d8] sm:$0xff] }
 0x2d2   :  { %9375 = vst [vmem:[#allocation74_spill] sm:$0xff] %v6888_v13  ;;  %v6905_v13 = vld [vmem:[#allocation8 + $0x168] sm:$0xff]  ;;  %2093 = vmatmul.f32.vlgmr.msra.gmra.mxu2 %v6746_v33  ;;  %v6982_v33 = vld [vmem:[#allocation8 + $0xd0] sm:$0xff] }
 0x2d3   :  { %9376 = vst [vmem:[#allocation115_spill] sm:$0xff] %v6891_v60  ;;  %2127 = vmatpush.msrb.mxu0 %v6905_v13  ;;  %v6908_v60 = vld [vmem:[#allocation8 + $0x1f8] sm:$0xff] }
 0x2d4   :  { %9377 = vst [vmem:[#allocation98_spill] sm:$0xff] %v6894_v14  ;;  %2169 = vmatpush.msrb.mxu2 %v6908_v60  ;;  %v6911_v14 = vld [vmem:[#allocation8] sm:$0xff] }
 0x2d5   :  { %9378 = vst [vmem:[#allocation107_spill] sm:$0xff] %v6897_v23  ;;  %2115 = vmatpush.msra.mxu3 %v6911_v14  ;;  %v6914_v23 = vld [vmem:[#allocation8 + $0x190] sm:$0xff] }
 0x2d6   :  { %9379 = vst [vmem:[#allocation118_spill] sm:$0xff] %v6900_v29  ;;  %2149 = vmatpush.msrb.mxu1 %v6914_v23  ;;  %v6917_v29 = vld [vmem:[#allocation8 + $0x148] sm:$0xff]  ;;  %2170 = vmatpush.msrb.mxu2 %v6920_v39 }
 0x2d7   :  { %9380 = vst [vmem:[#allocation101_spill] sm:$0xff] %v6905_v13  ;;  %2128 = vmatpush.msrb.mxu0 %v6917_v29  ;;  %2349 = vmatpush.msrb.mxu3 %v6369_v16  ;;  %v6924_v13 = vld [vmem:[#allocation8 + $0x170] sm:$0xff]  ;;  %v6940_v16 = vld [vmem:[#allocation8 + $0x198] sm:$0xff] }
 0x2d8   :  { %9381 = vst [vmem:[#allocation110_spill] sm:$0xff] %v6908_v60  ;;  %2150 = vmatpush.msrb.mxu1 %v6924_v13  ;;  %v6927_v60 = vld [vmem:[#allocation8 + $0x128] sm:$0xff] }
 0x2d9   :  { %9382 = vst [vmem:[#allocation114_spill] sm:$0xff] %v6911_v14  ;;  %2129 = vmatpush.msrb.mxu0 %v6927_v60  ;;  %v6930_v14 = vld [vmem:[#allocation8 + $0x1b8] sm:$0xff]  ;;  %2350 = vmatpush.msrb.mxu3 %v6377_v18 }
 0x2da   :  { %9383 = vst [vmem:[#allocation102_spill] sm:$0xff] %v6917_v29  ;;  %2171 = vmatpush.msrb.mxu2 %v6930_v14  ;;  %v6934_v29 = vld [vmem:[#allocation8 + $0x150] sm:$0xff]  ;;  %v6950_v18 = vld [vmem:[#allocation8 + $0x178] sm:$0xff] }
 0x2db   :  { %9384 = vst [vmem:[#allocation121_spill] sm:$0xff] %v6920_v39  ;;  %2151 = vmatpush.msrb.mxu1 %v6934_v29  ;;  %v6937_v39 = vld [vmem:[#allocation8 + $0x108] sm:$0xff]  ;;  %2351 = vmatpush.msrb.mxu3 %v6383_v31  ;;  %v6960_v31 = vld [vmem:[#allocation8 + $0x158] sm:$0xff] }
 0x2dc   :  { %9385 = vst [vmem:[#allocation105_spill] sm:$0xff] %v6927_v60  ;;  %2130 = vmatpush.msrb.mxu0 %v6937_v39  ;;  %2172 = vmatpush.msrb.mxu2 %v6940_v16  ;;  %v6944_v60 = vld [vmem:[#allocation8 + $0x130] sm:$0xff] }
 0x2dd   :  { %9386 = vst [vmem:[#allocation124_spill] sm:$0xff] %v6930_v14  ;;  %2152 = vmatpush.msrb.mxu1 %v6944_v60  ;;  %v6947_v14 = vld [vmem:[#allocation8 + $0xe8] sm:$0xff]  ;;  %2352 = vmatpush.msrb.mxu3 %v6389_v58  ;;  %v6968_v58 = vld [vmem:[#allocation8 + $0x138] sm:$0xff] }
 0x2de   :  { %9387 = vst [vmem:[#allocation108_spill] sm:$0xff] %v6937_v39  ;;  %2131 = vmatpush.msrb.mxu0 %v6947_v14  ;;  %2173 = vmatpush.msrb.mxu2 %v6950_v18  ;;  %v6954_v39 = vld [vmem:[#allocation8 + $0x110] sm:$0xff] }
 0x2df   :  { %9388 = vst [vmem:[#allocation120_spill] sm:$0xff] %v6940_v16  ;;  %2153 = vmatpush.msrb.mxu1 %v6954_v39  ;;  %v6957_v16 = vld [vmem:[#allocation8 + $0xc8] sm:$0xff]  ;;  %2353 = vmatpush.msrb.mxu3 %v6395_v21  ;;  %v6978_v21 = vld [vmem:[#allocation8 + $0x118] sm:$0xff] }
 0x2e0   :  { %9389 = vst [vmem:[#allocation125_spill] sm:$0xff] %v6947_v14  ;;  %2132 = vmatpush.msrb.mxu0 %v6957_v16  ;;  %2174 = vmatpush.msrb.mxu2 %v6960_v31  ;;  %v6965_v14 = vld [vmem:[#allocation8 + $0xa8] sm:$0xff] }
 0x2e1   :  { %9390 = vst [vmem:[#allocation111_spill] sm:$0xff] %v6954_v39  ;;  %2354 = vmatpush.msrb.mxu3 %v6403_v32  ;;  %v6972_v39 = vld [vmem:[#allocation8 + $0xf0] sm:$0xff]  ;;  %v6988_v32 = vld [vmem:[#allocation8 + $0xf8] sm:$0xff]  ;;  %2096 = vmatmul.f32.gmra.mxu2 %v6796_v40 }
 0x2e2   :  { %9391 = vst [vmem:[#allocation123_spill] sm:$0xff] %v6957_v16  ;;  %2133 = vmatpush.msrb.mxu0 %v6965_v14  ;;  %2175 = vmatpush.msrb.mxu2 %v6968_v58  ;;  %v6975_v16 = vld [vmem:[#allocation8 + $0x88] sm:$0xff]  ;;  %v7029_v40 = vld [vmem:[#allocation8 + $0x58] sm:$0xff] }
 0x2e3   :  { %9392 = vst [vmem:[#allocation128_spill] sm:$0xff] %v6968_v58  ;;  %2154 = vmatpush.msrb.mxu1 %v6972_v39  ;;  %2355 = vmatpush.msrb.mxu3 %v6409_v63  ;;  %v6985_v58 = vld [vmem:[#allocation8 + $0x68] sm:$0xff]  ;;  %v6998_v63 = vld [vmem:[#allocation8 + $0xd8] sm:$0xff] }
 0x2e4   :  { %9393 = vst [vmem:[#allocation116_spill] sm:$0xff] %v6975_v16  ;;  %2134 = vmatpush.msrb.mxu0 %v6975_v16  ;;  %2176 = vmatpush.msrb.mxu2 %v6978_v21  ;;  %v6992_v16 = vld [vmem:[#allocation8 + $0xb0] sm:$0xff] }
 0x2e5   :  { %9394 = vst [vmem:[#allocation127_spill] sm:$0xff] %v6978_v21  ;;  %2155 = vmatpush.msrb.mxu1 %v6982_v33  ;;  %2356 = vmatpush.msrb.mxu3 %v6417_v26  ;;  %v6995_v21 = vld [vmem:[#allocation8 + $0x48] sm:$0xff]  ;;  %v7008_v26 = vld [vmem:[#allocation8 + $0xb8] sm:$0xff] }
 0x2e6   :  { %9395 = vst [vmem:[#allocation131_spill] sm:$0xff] %v6985_v58  ;;  %2135 = vmatpush.msrb.mxu0 %v6985_v58  ;;  %2177 = vmatpush.msrb.mxu2 %v6988_v32  ;;  %v7002_v58 = vld [vmem:[#allocation8 + $0x90] sm:$0xff] }
 0x2e7   :  { %9396 = vst [vmem:[#allocation117_spill] sm:$0xff] %v6988_v32  ;;  %2156 = vmatpush.msrb.mxu1 %v6992_v16  ;;  %2357 = vmatpush.msrb.mxu3 %v6423_v24  ;;  %v7005_v32 = vld [vmem:[#allocation8 + $0x28] sm:$0xff]  ;;  %v7016_v24 = vld [vmem:[#allocation8 + $0x98] sm:$0xff] }
 0x2e8   :  { %9397 = vst [vmem:[#allocation134_spill] sm:$0xff] %v6995_v21  ;;  %2136 = vmatpush.msrb.mxu0 %v6995_v21  ;;  %2178 = vmatpush.msrb.mxu2 %v6998_v63  ;;  %v7013_v21 = vld [vmem:[#allocation8 + $0x8] sm:$0xff] }
 0x2e9   :  { %9398 = vst [vmem:[#allocation130_spill] sm:$0xff] %v6998_v63  ;;  %2157 = vmatpush.msrb.mxu1 %v7002_v58  ;;  %2358 = vmatpush.msrb.mxu3 %v6434_v47  ;;  %v1375_v47 = vpop.xlane.xlu1 %1374 }
 0x2ea   :  { %9399 = vst [vmem:[#allocation122_spill] sm:$0xff] %v7002_v58  ;;  %2137 = vmatpush.msrb.mxu0 %v7005_v32  ;;  %2179 = vmatpush.msrb.mxu2 %v7008_v26 }
 0x2eb   :  { %9400 = vst [vmem:[#allocation137_spill] sm:$0xff] %v7005_v32  ;;  %2359 = vmatpush.msrb.mxu3 %v6442_v3  ;;  %v7021_v32 = vld [vmem:[#allocation8 + $0x78] sm:$0xff]  ;;  %v7035_v3 = vld [vmem:[#allocation2] ss:$0 sm:$0xff] }
 0x2ec   :  { %9401 = vst [vmem:[#allocation133_spill] sm:$0xff] %v7008_v26  ;;  %2138 = vmatpush.msrb.mxu0 %v7013_v21  ;;  %2180 = vmatpush.msrb.mxu2 %v7016_v24  ;;  %v7024_v26 = vld [vmem:[#allocation8 + $0x70] sm:$0xff] }
 0x2ed   :  { %9402 = vst [vmem:[#allocation126_spill] sm:$0xff] %v7013_v21  ;;  %2158 = vmatpush.msrb.mxu1 %v7024_v26  ;;  %2360 = vmatpush.msrb.mxu3 %v6450_v7  ;;  %v7043_v7 = vld [vmem:[#allocation8 + $0x30] sm:$0xff] }
 0x2ee   :  { %9403 = vst [vmem:[#allocation136_spill] sm:$0xff] %v7016_v24  ;;  %2372 = vmatpush.msra.mxu0 %v6428_v35  ;;  %2181 = vmatpush.msrb.mxu2 %v7021_v32  ;;  %v7032_v35 = vld [vmem:[#allocation8 + $0x50] sm:$0xff] }
 0x2ef   :  { %9404 = vst [vmem:[#allocation129_spill] sm:$0xff] %v7021_v32  ;;  %2159 = vmatpush.msrb.mxu1 %v7032_v35  ;;  %v1378_v32 = vadd.f32 %v7035_v3, %v1375_v47  ;;  %2361 = vmatpush.msrb.mxu3 %v6459_v0  ;;  %v9427_v47 = vld [vmem:[#allocation31_spill] sm:$0xff] }
 0x2f0   :  { %9405 = vst [vmem:[#allocation132_spill] sm:$0xff] %v7024_v26  ;;  %2373 = vmatpush.msra.mxu0 %v6438_v56  ;;  %2182 = vmatpush.msrb.mxu2 %v7029_v40  ;;  %v7040_v56 = vld [vmem:[#allocation8 + $0x38] sm:$0xff] }
 0x2f1   :  { %9406 = vst [vmem:[#allocation139_spill] sm:$0xff] %v7029_v40  ;;  %2160 = vmatpush.msrb.mxu1 %v7043_v7  ;;  %1383 = vperm.xlu2 %3689, %v1378_v32   ;;  %v7083_v32 = vpop.f32.mrf.mxu3 }
 0x2f2   :  { %9407 = vst [vmem:[#allocation135_spill] sm:$0xff] %v7032_v35  ;;  %2374 = vmatpush.msra.mxu0 %v6446_v50  ;;  %2183 = vmatpush.msrb.mxu2 %v7040_v56  ;;  %v7047_v35 = vld [vmem:[#allocation8 + $0x18] sm:$0xff]  ;;  %v7054_v50 = vld [vmem:[#allocation8 + $0x10] sm:$0xff] }
 0x2f3   :  { %9408 = vst [vmem:[#allocation113_spill] sm:$0xff] %v7035_v3  ;;  %2362 = vmatpush.msrb.mxu3 %v6474_v6  ;;  %2161 = vmatpush.msrb.mxu1 %v7054_v50  ;;  %v9416_v6 = vld [vmem:[#allocation28_spill] sm:$0xff] }
 0x2f4   :  { %9409 = vst [vmem:[#allocation140_spill] sm:$0xff] %v7040_v56  ;;  %2375 = vmatpush.msra.mxu0 %v6454_v15  ;;  %2184 = vmatpush.msrb.mxu2 %v7047_v35  ;;  %v1377_v15 = vpop.xlane.xlu0 %1376  ;;  %v9446_v56 = vld [vmem:[#allocation30_spill] sm:$0xff] }
 0x2f5   :  { %9410 = vst [vmem:[#allocation138_spill] sm:$0xff] %v7043_v7  ;;  %2363 = vmatpush.msrb.mxu3 %v6489_v53  ;;  %2395 = vmatpush.msra.mxu1 %v6480_v37  ;;  %v1379_v0 = vadd.f32 %v7035_v3, %v1377_v15  ;;  %v9417_v37 = vld [vmem:[#allocation35_spill] sm:$0xff]  ;;  %v9420_v53 = vld [vmem:[#allocation21_spill] sm:$0xff]  ;;  %v9428_v15 = vld [vmem:[#allocation18_spill] sm:$0xff] }
 0x2f6   :  { %9411 = vst [vmem:[#allocation78_spill] sm:$0xff] %v7047_v35  ;;  %2376 = vmatpush.msra.mxu0 %v6463_v48  ;;  %2418 = vmatpush.msra.mxu2 %v6467_v9  ;;  %v9413_v48 = vld [vmem:[#allocation15_spill] sm:$0xff]  ;;  %v9414_v9 = vld [vmem:[#allocation36_spill] sm:$0xff] }
 0x2f7   :  { %9412 = vst [vmem:[#allocation82_spill] sm:$0xff] %v7054_v50  ;;  %2364 = vmatpush.msrb.mxu3 %v6501_v42  ;;  %2396 = vmatpush.msra.mxu1 %v6495_v36  ;;  %v9422_v36 = vld [vmem:[#allocation16_spill] sm:$0xff] }
 0x2f8   :  { %2377 = vmatpush.msra.mxu0 %v6471_v59  ;;  %2419 = vmatpush.msra.mxu2 %v6477_v43  ;;  %v9415_v59 = vld [vmem:[#allocation23_spill] sm:$0xff]  ;;  %v1546_v43 = vpop.f32.mrf.mxu1  ;;  %v9424_v42 = vld [vmem:[#allocation40_spill] sm:$0xff] }
 0x2f9   :  { %1388 = vperm.xlu1 %3688, %v1379_v0   ;;  %2397 = vmatpush.msra.mxu1 %v6507_v30  ;;  %v9426_v30 = vld [vmem:[#allocation44_spill] sm:$0xff]  ;;  %v9429_v0 = vld [vmem:[#allocation51_spill] sm:$0xff] }
 0x2fa   :  { %2378 = vmatpush.msra.mxu0 %v6483_v1  ;;  %2420 = vmatpush.msra.mxu2 %v6486_v4  ;;  %v9418_v1 = vld [vmem:[#allocation43_spill] sm:$0xff]  ;;  %v9419_v4 = vld [vmem:[#allocation17_spill] sm:$0xff] }
 0x2fb   :  { %2398 = vmatpush.msra.mxu1 %v9414_v9  ;;  %v9431_v9 = vld [vmem:[#allocation19_spill] sm:$0xff] }
 0x2fc   :  { %2379 = vmatpush.msra.mxu0 %v6492_v5  ;;  %2421 = vmatpush.msra.mxu2 %v6498_v41  ;;  %v9421_v5 = vld [vmem:[#allocation20_spill] sm:$0xff] }
 0x2fd   :  { %2399 = vmatpush.msra.mxu1 %v9417_v37  ;;  %v9423_v41 = vld [vmem:[#allocation32_spill] sm:$0xff] }
 0x2fe   :  { %2380 = vmatpush.msra.mxu0 %v6504_v57  ;;  %2422 = vmatpush.msra.mxu2 %v9413_v48  ;;  %v9425_v57 = vld [vmem:[#allocation47_spill] sm:$0xff]  ;;  %v9433_v37 = vld [vmem:[#allocation48_spill] sm:$0xff] }
 0x2ff   :  { %2400 = vmatpush.msra.mxu1 %v9420_v53  ;;  %v9430_v48 = vld [vmem:[#allocation39_spill] sm:$0xff]  ;;  %v9436_v53 = vld [vmem:[#allocation52_spill] sm:$0xff] }
 0x300   :  { %2381 = vmatpush.msra.mxu0 %v9415_v59  ;;  %2423 = vmatpush.msra.mxu2 %v9416_v6  ;;  %v1549_v59 = vpop.f32.mrf.mxu1  ;;  %v9432_v6 = vld [vmem:[#allocation29_spill] sm:$0xff] }
 0x301   :  { %2401 = vmatpush.msra.mxu1 %v9423_v41  ;;  %v9439_v41 = vld [vmem:[#allocation33_spill] sm:$0xff] }
 0x302   :  { %2382 = vmatpush.msra.mxu0 %v9418_v1  ;;  %2424 = vmatpush.msra.mxu2 %v9419_v4  ;;  %v9434_v1 = vld [vmem:[#allocation55_spill] sm:$0xff]  ;;  %v9435_v4 = vld [vmem:[#allocation22_spill] sm:$0xff] }
 0x303   :  { %2402 = vmatpush.msra.mxu1 %v9426_v30  ;;  %v9441_v30 = vld [vmem:[#allocation27_spill] sm:$0xff] }
 0x304   :  { %2383 = vmatpush.msra.mxu0 %v9421_v5  ;;  %2425 = vmatpush.msra.mxu2 %v9422_v36  ;;  %v9437_v5 = vld [vmem:[#allocation26_spill] sm:$0xff]  ;;  %v9438_v36 = vld [vmem:[#allocation56_spill] sm:$0xff] }
 0x305   :  { %2403 = vmatpush.msra.mxu1 %v9429_v0 }
 0x306   :  { %2384 = vmatpush.msra.mxu0 %v9424_v42  ;;  %2426 = vmatpush.msra.mxu2 %v9425_v57  ;;  %v7098_v42 = vpop.f32.mrf.mxu3  ;;  %v9440_v57 = vld [vmem:[#allocation59_spill] sm:$0xff] }
 0x307   :  { %2404 = vmatpush.msra.mxu1 %v9432_v6 }
 0x308   :  { %2385 = vmatpush.msra.mxu0 %v9427_v47  ;;  %2427 = vmatpush.msra.mxu2 %v9428_v15  ;;  %v9442_v47 = vld [vmem:[#allocation60_spill] sm:$0xff]  ;;  %v1615_v15 = vpop.f32.mrf.mxu0  ;;  %v1638_v0 = vpop.f32.mrf.mxu1 }
 0x309   :  { %2405 = vmatpush.msra.mxu1 %v9435_v4 }
 0x30a   :  { %2386 = vmatpush.msra.mxu0 %v9430_v48  ;;  %2428 = vmatpush.msra.mxu2 %v9431_v9  ;;  %v9443_v48 = vld [vmem:[#allocation37_spill] sm:$0xff]  ;;  %v9444_v9 = vld [vmem:[#allocation63_spill] sm:$0xff] }
 0x30b   :  { %2406 = vmatpush.msra.mxu1 %v9437_v5 }
 0x30c   :  { %2387 = vmatpush.msra.mxu0 %v9433_v37  ;;  %2429 = vmatpush.msra.mxu2 %v9434_v1  ;;  %v1569_v37 = vpop.f32.mrf.mxu2 }
 0x30d   :  { %2407 = vmatpush.msra.mxu1 %v9439_v41 }
 0x30e   :  { %2430 = vmatpush.msra.mxu2 %v9436_v53  ;;  %v1684_v6 = vpop.f32.mrf.mxu3  ;;  %v9445_v53 = vld [vmem:[#allocation86_spill] sm:$0xff] }
 0x30f   :  { %2408 = vmatpush.msra.mxu1 %v9441_v30  ;;  %v1813_v5 = vmul.f32 %v9445_v53, %v1615_v15  ;;  %v9447_v15 = vld [vmem:[#allocation14_spill] sm:$0xff] }
 0x310   :  { %2431 = vmatpush.msra.mxu2 %v9438_v36  ;;  %v1618_v1 = vpop.f32.mrf.mxu0  ;;  %v1641_v4 = vpop.f32.mrf.mxu1  ;;  %v1814_v36 = vmul.f32 %v9445_v53, %v1638_v0 }
 0x311   :  { %2409 = vmatpush.msra.mxu1 %v9443_v48  ;;  %v1819_v3 = vadd.f32 %v1813_v5, %v1546_v43  ;;  %v7110_v48 = vld [vmem:[%s8305_s5] ss:$0 sm:$0xff]  ;;  %v1816_v26 = vmul.f32 %v9447_v15, %v1618_v1  ;;  %v1817_v0 = vmul.f32 %v9447_v15, %v1641_v4 }
 0x312   :  { %2432 = vmatpush.msra.mxu2 %v9440_v57  ;;  %v1820_v30 = vadd.f32 %v1814_v36, %v1569_v37 }
 0x313   :  { %2410 = vmatpush.msra.mxu1 %v9444_v9  ;;  %v1822_v5 = vadd.f32 %v1816_v26, %v1549_v59 }
 0x314   :  { %2433 = vmatpush.msra.mxu2 %v9442_v47  ;;  %v1572_v57 = vpop.f32.mrf.mxu2 }
 0x315   :  { %v1823_v36 = vadd.f32 %v1817_v0, %v1572_v57 }
 0x316   :  { %v1687_v41 = vpop.f32.mrf.mxu3 }
 0x31a   :  { %v1707_v50 = vpop.f32.mrf.mxu0  ;;  %v1730_v47 = vpop.f32.mrf.mxu1 }
 0x31b   :  { %v1825_v35 = vadd.f32 %v1819_v3, %v1707_v50  ;;  %v1867_v7 = vadd.f32 %v1820_v30, %v1730_v47 }
 0x31c   :  { %v1661_v50 = vpop.f32.mrf.mxu2 }
 0x31d   :  { %v1827_v9 = vadd.f32 %v7110_v48, %v1825_v35  ;;  %v1869_v40 = vadd.f32 %v9446_v56, %v1867_v7 }
 0x31f   :  { %v3631_v24 = vmul.f32 -1.442695, %v1827_v9  ;;  %v3633_v43 = vmul.f32 -1.442695, %v1869_v40 }
 0x321   :  { %3760 = vpow2.f32 %v3631_v24  ;;  %v1776_v37 = vpop.f32.mrf.mxu3 }
 0x322   :  { %3762 = vpow2.f32 %v3633_v43  ;;  %v1782_v3 = vadd.f32 %v1776_v37, %v1684_v6 }
 0x324   :  { %v1710_v30 = vpop.f32.mrf.mxu0  ;;  %v1733_v47 = vpop.f32.mrf.mxu1  ;;  %1784 = vadd.xlane.f32.xlu2 %v1782_v3 }
 0x325   :  { %v1826_v21 = vadd.f32 %v1822_v5, %v1710_v30  ;;  %v1868_v35 = vadd.f32 %v1823_v36, %v1733_v47  ;;  %v1664_v59 = vpop.f32.mrf.mxu2 }
 0x327   :  { %v3761_v58 = vpop.eup %3760  ;;  %v1828_v7 = vadd.f32 %v7110_v48, %v1826_v21  ;;  %v1870_v1 = vadd.f32 %v9446_v56, %v1868_v35  ;;  %v1815_v56 = vmul.f32 %v9445_v53, %v1661_v50 }
 0x328   :  { %v3763_v4 = vpop.eup %3762  ;;  %v1835_v9 = vadd.f32 1.0, %v3761_v58 }
 0x329   :  { %v1877_v40 = vadd.f32 1.0, %v3763_v4  ;;  %v3632_v24 = vmul.f32 -1.442695, %v1828_v7  ;;  %v3634_v63 = vmul.f32 -1.442695, %v1870_v1  ;;  %v1821_v1 = vadd.f32 %v1815_v56, %v7083_v32 }
 0x32a   :  { %3764 = vrcp.f32 %v1835_v9  ;;  %v1848_v30 = vand.u32 2147483648, %v1835_v9  ;;  %vm1842_vm3 = vweird.f32 %v1835_v9 }
 0x32b   :  { %3766 = vrcp.f32 %v1877_v40  ;;  %v1779_v6 = vpop.f32.mrf.mxu3  ;;  %vm1884_vm7 = vweird.f32 %v1877_v40 }
 0x32c   :  { %3768 = vpow2.f32 %v3632_v24  ;;  %v1783_v26 = vadd.f32 %v1779_v6, %v1687_v41  ;;  %v1849_v53 = vor.u32 1.1754944e-38, %v1848_v30 }
 0x32d   :  { %3770 = vpow2.f32 %v3634_v63  ;;  %v1846_v63 = vand.u32 2147483647, %v1835_v9  ;;  %v1753_v7 = vpop.f32.mrf.mxu2 }
 0x32e   :  { %1786 = vadd.xlane.f32.xlu1 %v1783_v26  ;;  %v1911_v24 = vadd.f32 %v6630_v49, %v1753_v7 }
 0x32f   :  { %vm1847_vm5 = vcmp.eq.f32.partialorder %v1846_v63, 8.507059e+37 }
 0x330   :  { %v3765_v57 = vpop.eup %3764 }
 0x331   :  { %v3767_v0 = vpop.eup %3766  ;;  %v1838_v43 = vmul.f32 %v3765_v57, %v1835_v9  ;;  %vm1843_vm2 = vweird.f32 %v3765_v57  ;;  %v1818_v9 = vmul.f32 %v9447_v15, %v1664_v59 }
 0x332   :  { %v3769_v37 = vpop.eup %3768  ;;  %v1880_v21 = vmul.f32 %v3767_v0, %v1877_v40  ;;  %vm1844_vm4 = vmor %vm1842_vm3, %vm1843_vm2  ;;  %vm1885_vm6 = vweird.f32 %v3767_v0 }
 0x333   :  { %v3771_v3 = vpop.eup %3770  ;;  %v1839_v58 = vsub.f32 1.0, %v1838_v43  ;;  %v1836_v5 = vadd.f32 1.0, %v3769_v37  ;;  %v1909_v37 = vadd.f32 %v6636_v54, %v1821_v1  ;;  %vm1886_vm8 = vmor %vm1884_vm7, %vm1885_vm6 }
 0x334   :  { %v1881_v36 = vsub.f32 1.0, %v1880_v21  ;;  %v7119_v47 = vadd.f32 1.0, %v3771_v3  ;;  %v1890_v21 = vand.u32 2147483648, %v1877_v40 }
 0x335   :  { %v1840_v35 = vmul.f32 %v3765_v57, %v1839_v58  ;;  %3772 = vrcp.f32 %v1836_v5  ;;  %v1863_v7 = vand.u32 2147483648, %v1836_v5  ;;  %vm1857_vm11 = vweird.f32 %v1836_v5 }
 0x336   :  { %v1882_v41 = vmul.f32 %v3767_v0, %v1881_v36  ;;  %3774 = vrcp.f32 %v7119_v47  ;;  %v1888_v36 = vand.u32 2147483647, %v1877_v40  ;;  %v1891_v63 = vor.u32 1.1754944e-38, %v1890_v21 }
 0x337   :  { %v1841_v4 = vadd.f32 %v3765_v57, %v1840_v35  ;;  %v1864_v59 = vor.u32 1.1754944e-38, %v1863_v7  ;;  %vm1899_vm15 = vweird.f32 %v7119_v47  ;;  %v9467_v7 = vld [vmem:[#allocation76_spill] sm:$0xff] }
 0x338   :  { %v1883_v26 = vadd.f32 %v3767_v0, %v1882_v41  ;;  %vm1889_vm9 = vcmp.eq.f32.partialorder %v1888_v36, 8.507059e+37 }
 0x339   :  { %v1845_v50 = vsel %vm1844_vm4, %v3765_v57, %v1841_v4  ;;  %v1861_v4 = vand.u32 2147483647, %v1836_v5 }
 0x33a   :  { %v1850_v6 = vsel %vm1847_vm5, %v1849_v53, %v1845_v50  ;;  %v1887_v30 = vsel %vm1886_vm8, %v3767_v0, %v1883_v26  ;;  %v1824_v53 = vadd.f32 %v1818_v9, %v7098_v42  ;;  %v1905_v42 = vand.u32 2147483648, %v7119_v47 }
 0x33b   :  { %v3773_v43 = vpop.eup %3772  ;;  %v1913_v3 = vmul.f32 %v1911_v24, %v1850_v6  ;;  %v1892_v40 = vsel %vm1889_vm9, %v1891_v63, %v1887_v30  ;;  %v1756_v24 = vpop.f32.mrf.mxu2  ;;  %vm1862_vm13 = vcmp.eq.f32.partialorder %v1861_v4, 8.507059e+37  ;;  %v7197_v63 = vld [vmem:[%s8300_s0 + $0x58] sm:$0xff] }
 0x33c   :  { %v3775_v58 = vpop.eup %3774  ;;  %v1853_v32 = vmul.f32 %v3773_v43, %v1836_v5  ;;  %vm1858_vm10 = vweird.f32 %v3773_v43  ;;  %v1919_v6 = vsub.f32 1.0, %v1892_v40  ;;  %v1912_v26 = vadd.f32 %v6630_v49, %v1756_v24  ;;  %v9473_v24 = vld [vmem:[#allocation80_spill] sm:$0xff] }
 0x33d   :  { %v1915_v56 = vadd.f32 %v1913_v3, %v1909_v37  ;;  %v1895_v57 = vmul.f32 %v3775_v58, %v7119_v47  ;;  %vm1859_vm12 = vmor %vm1857_vm11, %vm1858_vm10  ;;  %v1910_v21 = vadd.f32 %v6636_v54, %v1824_v53  ;;  %vm1900_vm14 = vweird.f32 %v3775_v58  ;;  %v9470_v53 = vld [vmem:[#allocation54_spill] sm:$0xff] }
 0x33e   :  { %v1854_v35 = vsub.f32 1.0, %v1853_v32  ;;  %v1903_v5 = vand.u32 2147483647, %v7119_v47  ;;  %vm1901_vm2 = vmor %vm1899_vm15, %vm1900_vm14  ;;  %v1906_v30 = vor.u32 1.1754944e-38, %v1905_v42  ;;  %v9484_v42 = vld [vmem:[#allocation94_spill] sm:$0xff] }
 0x33f   :  { %3776 = vtanh.f32 %v1915_v56  ;;  %v1896_v41 = vsub.f32 1.0, %v1895_v57  ;;  %v1923_v56 = vmul.f32 %v1892_v40, %v6649_v46  ;;  %v9471_v40 = vld [vmem:[#allocation85_spill] sm:$0xff] }
 0x340   :  { %v1855_v1 = vmul.f32 %v3773_v43, %v1854_v35  ;;  %vm1904_vm3 = vcmp.eq.f32.partialorder %v1903_v5, 8.507059e+37  ;;  %v9487_v5 = vld [vmem:[#allocation84_spill] sm:$0xff] }
 0x341   :  { %v1897_v50 = vmul.f32 %v3775_v58, %v1896_v41  ;;  %v9466_v41 = vld [vmem:[#allocation81_spill] sm:$0xff] }
 0x342   :  { %v1856_v15 = vadd.f32 %v3773_v43, %v1855_v1  ;;  %v9468_v1 = vld [vmem:[#allocation46_spill] sm:$0xff] }
 0x343   :  { %v1898_v36 = vadd.f32 %v3775_v58, %v1897_v50  ;;  %v9472_v50 = vld [vmem:[#allocation50_spill] sm:$0xff] }
 0x344   :  { %v1860_v0 = vsel %vm1859_vm12, %v3773_v43, %v1856_v15  ;;  %v9474_v15 = vld [vmem:[#allocation58_spill] sm:$0xff] }
 0x345   :  { %v3777_v37 = vpop.eup %3776  ;;  %v1865_v3 = vsel %vm1862_vm13, %v1864_v59, %v1860_v0  ;;  %v1902_v49 = vsel %vm1901_vm2, %v3775_v58, %v1898_v36  ;;  %v9465_v58 = vld [vmem:[#allocation61_spill] sm:$0xff]  ;;  %v9482_v36 = vld [vmem:[#allocation95_spill] sm:$0xff] }
 0x346   :  { %v1921_v32 = vmul.f32 %v3777_v37, %v1919_v6  ;;  %v1914_v9 = vmul.f32 %v1912_v26, %v1865_v3  ;;  %v1907_v54 = vsel %vm1904_vm3, %v1906_v30, %v1902_v49  ;;  %v9475_v59 = vld [vmem:[#allocation97_spill] sm:$0xff]  ;;  %v9476_v6 = vld [vmem:[#allocation75_spill] sm:$0xff]  ;;  %v9479_v37 = vld [vmem:[#allocation100_spill] sm:$0xff] }
 0x347   :  { %v1920_v46 = vsub.f32 1.0, %v1907_v54  ;;  %v9477_v0 = vld [vmem:[#allocation77_spill] sm:$0xff]  ;;  %v9478_v26 = vld [vmem:[#allocation87_spill] sm:$0xff]  ;;  %v9481_v3 = vld [vmem:[#allocation88_spill] sm:$0xff] }
 0x348   :  { %v1916_v43 = vadd.f32 %v1914_v9, %v1910_v21  ;;  %v7134_v57 = vadd.f32 %v1923_v56, %v1921_v32  ;;  %v9480_v21 = vld [vmem:[#allocation79_spill] sm:$0xff]  ;;  %v9485_v9 = vld [vmem:[#allocation106_spill] sm:$0xff]  ;;  %v9486_v56 = vld [vmem:[#allocation96_spill] sm:$0xff] }
 0x349   :  { %v9483_v32 = vld [vmem:[#allocation83_spill] sm:$0xff] }
 0x34a   :  { %3778 = vtanh.f32 %v1916_v43  ;;  %2116 = vmatmul.f32.vlgmr.msra.gmra.mxu3 %v7134_v57  ;;  %2139 = vmatmul.f32.vlgmr.msrb.gmra.mxu0 %v7134_v57  ;;  %v9488_v43 = vld [vmem:[#allocation70_spill] sm:$0xff]  ;;  %v9489_v49 = vld [vmem:[#allocation99_spill] sm:$0xff] }
 0x34b   :  { %2162 = vmatmul.f32.vlgmr.msrb.gmra.mxu1 %v7134_v57  ;;  %2185 = vmatmul.f32.vlgmr.msrb.gmra.mxu2 %v7134_v57  ;;  %v9490_v30 = vld [vmem:[#allocation91_spill] sm:$0xff] }
 0x34c   :  { %2441 = vmatpush.msra.mxu3 %v6655_v11  ;;  %2464 = vmatpush.msrb.mxu0 %v6658_v20  ;;  %v1924_v20 = vmul.f32 %v1907_v54, %v6698_v27  ;;  %v9458_v27 = vld [vmem:[#allocation49_spill] sm:$0xff]  ;;  %v9491_v54 = vld [vmem:[#allocation66_spill] sm:$0xff] }
 0x34d   :  { %2487 = vmatpush.msrb.mxu1 %v6661_v28  ;;  %2510 = vmatpush.msrb.mxu2 %v6664_v51  ;;  %v9448_v51 = vld [vmem:[#allocation34_spill] sm:$0xff] }
 0x34e   :  { %2442 = vmatpush.msra.mxu3 %v6667_v34  ;;  %2465 = vmatpush.msrb.mxu0 %v6670_v8  ;;  %v9449_v34 = vld [vmem:[#allocation41_spill] sm:$0xff]  ;;  %v9450_v8 = vld [vmem:[#allocation67_spill] sm:$0xff] }
 0x34f   :  { %2488 = vmatpush.msrb.mxu1 %v6673_v44  ;;  %2511 = vmatpush.msrb.mxu2 %v6676_v19  ;;  %v9451_v44 = vld [vmem:[#allocation65_spill] sm:$0xff]  ;;  %v9452_v19 = vld [vmem:[#allocation42_spill] sm:$0xff] }
 0x350   :  { %v3779_v47 = vpop.eup %3778  ;;  %2443 = vmatpush.msra.mxu3 %v6679_v2  ;;  %2466 = vmatpush.msrb.mxu0 %v6682_v52  ;;  %v7174_v2 = vld [vmem:[%s8300_s0 + $0x50] sm:$0xff]  ;;  %v9453_v52 = vld [vmem:[#allocation68_spill] sm:$0xff] }
 0x351   :  { %v1922_v11 = vmul.f32 %v3779_v47, %v1920_v46  ;;  %2489 = vmatpush.msrb.mxu1 %v6686_v38  ;;  %2512 = vmatpush.msrb.mxu2 %v6689_v25  ;;  %v9454_v38 = vld [vmem:[#allocation38_spill] sm:$0xff]  ;;  %v9455_v25 = vld [vmem:[#allocation71_spill] sm:$0xff]  ;;  %v9492_v46 = vld [vmem:[#allocation93_spill] sm:$0xff] }
 0x352   :  { %2444 = vmatpush.msra.mxu3 %v6692_v62  ;;  %2467 = vmatpush.msrb.mxu0 %v6695_v17  ;;  %v9456_v62 = vld [vmem:[#allocation45_spill] sm:$0xff] }
 0x353   :  { %v7155_v28 = vadd.f32 %v1924_v20, %v1922_v11  ;;  %2490 = vmatpush.msrb.mxu1 %v6700_v22  ;;  %2513 = vmatpush.msrb.mxu2 %v6703_v45  ;;  %v9457_v17 = vld [vmem:[#allocation69_spill] sm:$0xff]  ;;  %v9460_v45 = vld [vmem:[#allocation72_spill] sm:$0xff]  ;;  %v9495_v20 = vld [vmem:[#allocation103_spill] sm:$0xff] }
 0x354   :  { %2445 = vmatpush.msra.mxu3 %v6712_v61  ;;  %2468 = vmatpush.msrb.mxu0 %v6715_v10  ;;  %v9459_v22 = vld [vmem:[#allocation73_spill] sm:$0xff]  ;;  %v9494_v11 = vld [vmem:[#allocation112_spill] sm:$0xff] }
 0x355   :  { %2119 = vmatmul.f32.gmra.mxu3 %v7155_v28  ;;  %2142 = vmatmul.f32.gmra.mxu0 %v7155_v28  ;;  %v9461_v61 = vld [vmem:[#allocation57_spill] sm:$0xff] }
 0x356   :  { %2165 = vmatmul.f32.gmra.mxu1 %v7155_v28  ;;  %2188 = vmatmul.f32.gmra.mxu2 %v7155_v28  ;;  %v9462_v10 = vld [vmem:[#allocation53_spill] sm:$0xff] }
 0x357   :  { %2446 = vmatpush.msra.mxu3 %v6724_v55  ;;  %2469 = vmatpush.msrb.mxu0 %v9448_v51  ;;  %v9463_v55 = vld [vmem:[#allocation62_spill] sm:$0xff]  ;;  %v9493_v47 = vld [vmem:[#allocation89_spill] sm:$0xff] }
 0x358   :  { %2491 = vmatpush.msrb.mxu1 %v9449_v34  ;;  %2514 = vmatpush.msrb.mxu2 %v9450_v8  ;;  %v9496_v51 = vld [vmem:[#allocation74_spill] sm:$0xff]  ;;  %v9497_v34 = vld [vmem:[#allocation115_spill] sm:$0xff] }
 0x359   :  { %2447 = vmatpush.msra.mxu3 %v9451_v44  ;;  %2470 = vmatpush.msrb.mxu0 %v9452_v19  ;;  %v9498_v8 = vld [vmem:[#allocation98_spill] sm:$0xff]  ;;  %v9499_v44 = vld [vmem:[#allocation107_spill] sm:$0xff] }
 0x35a   :  { %2492 = vmatpush.msrb.mxu1 %v9453_v52  ;;  %2515 = vmatpush.msrb.mxu2 %v9454_v38  ;;  %v9500_v19 = vld [vmem:[#allocation118_spill] sm:$0xff]  ;;  %v9501_v52 = vld [vmem:[#allocation101_spill] sm:$0xff] }
 0x35b   :  { %2448 = vmatpush.msra.mxu3 %v6758_v12  ;;  %2471 = vmatpush.msrb.mxu0 %v9455_v25  ;;  %v9464_v12 = vld [vmem:[#allocation64_spill] sm:$0xff]  ;;  %v9502_v38 = vld [vmem:[#allocation110_spill] sm:$0xff] }
 0x35c   :  { %2493 = vmatpush.msrb.mxu1 %v9456_v62  ;;  %2516 = vmatpush.msrb.mxu2 %v9457_v17  ;;  %vm1380_vm4 = vcmp.eq.s32.totalorder %v9464_v12, 2  ;;  %v9503_v25 = vld [vmem:[#allocation114_spill] sm:$0xff]  ;;  %v9505_v17 = vld [vmem:[#allocation121_spill] sm:$0xff] }
 0x35d   :  { %2365 = vmatmul.f32.vlgmr.msrb.gmra.mxu3 %v7174_v2  ;;  %2388 = vmatmul.f32.vlgmr.msra.gmra.mxu0 %v7174_v2  ;;  %v9504_v62 = vld [vmem:[#allocation102_spill] sm:$0xff] }
 0x35e   :  { %2434 = vmatmul.f32.vlgmr.msra.gmra.mxu2 %v7174_v2  ;;  %2449 = vmatpush.msra.mxu3 %v9458_v27  ;;  %v7251_v27 = vld [vmem:[#allocation6 + $0x348] sm:$0xff] }
 0x35f   :  { %2472 = vmatpush.msrb.mxu0 %v9459_v22  ;;  %2411 = vmatmul.f32.vlgmr.msra.gmra.mxu1 %v7174_v2  ;;  %v9506_v22 = vld [vmem:[#allocation105_spill] sm:$0xff] }
 0x360   :  { %2450 = vmatpush.msra.mxu3 %v9460_v45  ;;  %2494 = vmatpush.msrb.mxu1 %v9461_v61  ;;  %v9507_v45 = vld [vmem:[#allocation124_spill] sm:$0xff]  ;;  %v7257_v61 = vld [vmem:[#allocation6 + $0x310] sm:$0xff] }
 0x361   :  { %2473 = vmatpush.msrb.mxu0 %v9462_v10  ;;  %2517 = vmatpush.msrb.mxu2 %v9463_v55  ;;  %v9509_v10 = vld [vmem:[#allocation120_spill] sm:$0xff]  ;;  %v7263_v55 = vld [vmem:[#allocation6 + $0x2d8] sm:$0xff] }
 0x362   :  { %2451 = vmatpush.msra.mxu3 %v9465_v58  ;;  %2495 = vmatpush.msrb.mxu1 %v9466_v41  ;;  %v7269_v58 = vld [vmem:[#allocation6 + $0x2a0] sm:$0xff]  ;;  %v7275_v41 = vld [vmem:[#allocation6 + $0x268] sm:$0xff] }
 0x363   :  { %2474 = vmatpush.msrb.mxu0 %v9467_v7  ;;  %2518 = vmatpush.msrb.mxu2 %v9470_v53  ;;  %v9514_v7 = vld [vmem:[#allocation116_spill] sm:$0xff]  ;;  %v9517_v53 = vld [vmem:[#allocation117_spill] sm:$0xff] }
 0x364   :  { %2452 = vmatpush.msra.mxu3 %v9471_v40  ;;  %2496 = vmatpush.msrb.mxu1 %v9472_v50  ;;  %v7295_v40 = vld [vmem:[#allocation6 + $0x1c0] sm:$0xff]  ;;  %v9519_v50 = vld [vmem:[#allocation130_spill] sm:$0xff] }
 0x365   :  { %2475 = vmatpush.msrb.mxu0 %v9473_v24  ;;  %2368 = vmatmul.f32.gmra.mxu3 %v7197_v63  ;;  %v7301_v24 = vld [vmem:[#allocation6 + $0x188] sm:$0xff] }
 0x366   :  { %2391 = vmatmul.f32.gmra.mxu0 %v7197_v63  ;;  %2437 = vmatmul.f32.gmra.mxu2 %v7197_v63 }
 0x367   :  { %2453 = vmatpush.msra.mxu3 %v9474_v15  ;;  %2476 = vmatpush.msrb.mxu0 %v9475_v59  ;;  %v9521_v15 = vld [vmem:[#allocation137_spill] sm:$0xff] }
 0x368   :  { %2414 = vmatmul.f32.gmra.mxu1 %v7197_v63  ;;  %2519 = vmatpush.msrb.mxu2 %v9476_v6  ;;  %v9522_v59 = vld [vmem:[#allocation133_spill] sm:$0xff] }
 0x369   :  { %2454 = vmatpush.msra.mxu3 %v9477_v0  ;;  %2477 = vmatpush.msrb.mxu0 %v9478_v26  ;;  %v7307_v6 = vld [vmem:[#allocation6 + $0x150] sm:$0xff]  ;;  %v9524_v0 = vld [vmem:[#allocation136_spill] sm:$0xff] }
 0x36a   :  { %2497 = vmatpush.msrb.mxu1 %v9479_v37  ;;  %2520 = vmatpush.msrb.mxu2 %v9480_v21  ;;  %v7313_v26 = vld [vmem:[#allocation6 + $0x350] sm:$0xff]  ;;  %v7316_v37 = vld [vmem:[#allocation6 + $0x118] sm:$0xff] }
 0x36b   :  { %v1389_v35 = vpop.permute.xlu1 %1388  ;;  %2455 = vmatpush.msra.mxu3 %v9481_v3  ;;  %2478 = vmatpush.msrb.mxu0 %v9482_v36  ;;  %v9525_v3 = vld [vmem:[#allocation129_spill] sm:$0xff]  ;;  %v9526_v36 = vld [vmem:[#allocation132_spill] sm:$0xff] }
 0x36c   :  { %v7204_v4 = vsel %vm1380_vm4, %v1389_v35, %v9468_v1  ;;  %2498 = vmatpush.msrb.mxu1 %v9483_v32  ;;  %2521 = vmatpush.msrb.mxu2 %v9484_v42  ;;  %v9511_v35 = vld [vmem:[#allocation111_spill] sm:$0xff]  ;;  %v7323_v32 = vld [vmem:[#allocation6 + $0x318] sm:$0xff] }
 0x36d   :  { %9469 = vst [vmem:[#allocation15_spill] sm:$0xff] %v7204_v4  ;;  %2456 = vmatpush.msra.mxu3 %v9485_v9  ;;  %2479 = vmatpush.msrb.mxu0 %v9486_v56  ;;  %v9515_v1 = vld [vmem:[#allocation127_spill] sm:$0xff]  ;;  %v7463_v4 = vld [vmem:[#allocation6 + $0xf8] sm:$0xff] }
 0x36e   :  { %2457 = vmatmul.f32.vlgmr.msra.gmra.mxu3 %v7174_v2  ;;  %2480 = vmatmul.f32.vlgmr.msrb.gmra.mxu0 %v7174_v2  ;;  %v9527_v42 = vld [vmem:[#allocation139_spill] sm:$0xff]  ;;  %9560 = vst [vmem:[#allocation59_spill] sm:$0xff] %v7463_v4 }
 0x36f   :  { %2533 = vmatpush.msrb.mxu3 %v9487_v5  ;;  %2499 = vmatpush.msrb.mxu1 %v9488_v43  ;;  %v9528_v9 = vld [vmem:[#allocation135_spill] sm:$0xff]  ;;  %v7334_v5 = vld [vmem:[#allocation6 + $0xa8] sm:$0xff] }
 0x370   :  { %2522 = vmatpush.msrb.mxu2 %v9489_v49  ;;  %2556 = vmatpush.msra.mxu0 %v9490_v30  ;;  %v7331_v56 = vld [vmem:[#allocation6 + $0x2e0] sm:$0xff]  ;;  %v9529_v43 = vld [vmem:[#allocation140_spill] sm:$0xff]  ;;  %v9530_v49 = vld [vmem:[#allocation138_spill] sm:$0xff] }
 0x371   :  { %2534 = vmatpush.msrb.mxu3 %v9491_v54  ;;  %2500 = vmatpush.msrb.mxu1 %v9492_v46  ;;  %v7339_v30 = vld [vmem:[#allocation6 + $0x2a8] sm:$0xff]  ;;  %v7342_v54 = vld [vmem:[#allocation6 + $0x70] sm:$0xff]  ;;  %v9531_v46 = vld [vmem:[#allocation78_spill] sm:$0xff] }
 0x372   :  { %2523 = vmatpush.msrb.mxu2 %v9493_v47  ;;  %2557 = vmatpush.msra.mxu0 %v9494_v11  ;;  %v9532_v47 = vld [vmem:[#allocation82_spill] sm:$0xff]  ;;  %v7347_v11 = vld [vmem:[#allocation6 + $0x270] sm:$0xff] }
 0x373   :  { %2535 = vmatpush.msrb.mxu3 %v9495_v20  ;;  %2501 = vmatpush.msrb.mxu1 %v9496_v51  ;;  %v7350_v20 = vld [vmem:[#allocation6 + $0x360] sm:$0xff] }
 0x374   :  { %2524 = vmatpush.msrb.mxu2 %v9497_v34  ;;  %2558 = vmatpush.msra.mxu0 %v9498_v8  ;;  %v7353_v34 = vld [vmem:[#allocation6 + $0x38] sm:$0xff] }
 0x375   :  { %2536 = vmatpush.msrb.mxu3 %v9499_v44  ;;  %2502 = vmatpush.msrb.mxu1 %v9500_v19  ;;  %v7356_v8 = vld [vmem:[#allocation6 + $0x358] sm:$0xff]  ;;  %v9533_v44 = vld [vmem:[#allocation113_spill] sm:$0xff] }
 0x376   :  { %2460 = vmatmul.f32.gmra.mxu3 %v7197_v63  ;;  %2483 = vmatmul.f32.gmra.mxu0 %v7197_v63 }
 0x377   :  { %2537 = vmatpush.msrb.mxu3 %v9501_v52  ;;  %2579 = vmatpush.msra.mxu1 %v9502_v38  ;;  %v7360_v52 = vld [vmem:[#allocation6 + $0x238] sm:$0xff]  ;;  %v7363_v38 = vld [vmem:[#allocation6 + $0x328] sm:$0xff] }
 0x378   :  { %2525 = vmatpush.msrb.mxu2 %v9503_v25  ;;  %2559 = vmatpush.msra.mxu0 %v6914_v23  ;;  %v9508_v23 = vld [vmem:[#allocation108_spill] sm:$0xff]  ;;  %v7366_v25 = vld [vmem:[#allocation6] sm:$0xff] }
 0x379   :  { %2538 = vmatpush.msrb.mxu3 %v9504_v62  ;;  %2580 = vmatpush.msra.mxu1 %v9505_v17  ;;  %v7369_v62 = vld [vmem:[#allocation6 + $0x320] sm:$0xff] }
 0x37a   :  { %2759 = vmatpush.msra.mxu2 %v7251_v27  ;;  %2560 = vmatpush.msra.mxu0 %v6924_v13  ;;  %v9510_v13 = vld [vmem:[#allocation125_spill] sm:$0xff]  ;;  %9534 = vst [vmem:[#allocation36_spill] sm:$0xff] %v7369_v62  ;;  %v7372_v17 = vld [vmem:[#allocation6 + $0x200] sm:$0xff] }
 0x37b   :  { %2539 = vmatpush.msrb.mxu3 %v9506_v22  ;;  %2581 = vmatpush.msra.mxu1 %v9507_v45  ;;  %v7375_v22 = vld [vmem:[#allocation6 + $0x2f0] sm:$0xff]  ;;  %v7378_v45 = vld [vmem:[#allocation6 + $0x2e8] sm:$0xff] }
 0x37c   :  { %2760 = vmatpush.msra.mxu2 %v7257_v61  ;;  %2561 = vmatpush.msra.mxu0 %v6934_v29  ;;  %v9512_v29 = vld [vmem:[#allocation123_spill] sm:$0xff]  ;;  %9535 = vst [vmem:[#allocation23_spill] sm:$0xff] %v7378_v45 }
 0x37d   :  { %2540 = vmatpush.msrb.mxu3 %v9508_v23  ;;  %2582 = vmatpush.msra.mxu1 %v9509_v10  ;;  %v7381_v23 = vld [vmem:[#allocation6 + $0x1c8] sm:$0xff]  ;;  %v7384_v10 = vld [vmem:[#allocation6 + $0x2b8] sm:$0xff] }
 0x37e   :  { %2761 = vmatpush.msra.mxu2 %v7263_v55  ;;  %2562 = vmatpush.msra.mxu0 %v6944_v60  ;;  %v9513_v60 = vld [vmem:[#allocation128_spill] sm:$0xff]  ;;  %9536 = vst [vmem:[#allocation28_spill] sm:$0xff] %v7381_v23 }
 0x37f   :  { %2541 = vmatpush.msrb.mxu3 %v9510_v13  ;;  %2583 = vmatpush.msra.mxu1 %v6950_v18  ;;  %v7281_v18 = vld [vmem:[#allocation6 + $0x230] sm:$0xff] }
 0x380   :  { %2762 = vmatpush.msra.mxu2 %v7269_v58  ;;  %2563 = vmatpush.msra.mxu0 %v9511_v35  ;;  %v7387_v13 = vld [vmem:[#allocation6 + $0x2b0] sm:$0xff] }
 0x381   :  { %2542 = vmatpush.msrb.mxu3 %v9512_v29  ;;  %2584 = vmatpush.msra.mxu1 %v6960_v31  ;;  %v7287_v31 = vld [vmem:[#allocation6 + $0x1f8] sm:$0xff]  ;;  %9537 = vst [vmem:[#allocation35_spill] sm:$0xff] %v7387_v13  ;;  %v7390_v35 = vld [vmem:[#allocation6 + $0x190] sm:$0xff]  ;;  %v7393_v29 = vld [vmem:[#allocation6 + $0x280] sm:$0xff] }
 0x382   :  { %2763 = vmatpush.msra.mxu2 %v7275_v41  ;;  %2503 = vmatmul.f32.vlgmr.msrb.gmra.mxu1 %v7174_v2  ;;  %v7291_v2 = vpop.permute.xlu2 %973  ;;  %9538 = vst [vmem:[#allocation43_spill] sm:$0xff] %v7390_v35 }
 0x383   :  { %2543 = vmatpush.msrb.mxu3 %v6965_v14  ;;  %2585 = vmatpush.msra.mxu1 %v9513_v60  ;;  %v9516_v14 = vld [vmem:[#allocation131_spill] sm:$0xff]  ;;  %9539 = vst [vmem:[#allocation17_spill] sm:$0xff] %v7393_v29  ;;  %v7396_v60 = vld [vmem:[#allocation6 + $0x278] sm:$0xff] }
 0x384   :  { %2764 = vmatpush.msra.mxu2 %v7281_v18  ;;  %2564 = vmatpush.msra.mxu0 %v6972_v39  ;;  %v9518_v39 = vld [vmem:[#allocation134_spill] sm:$0xff]  ;;  %9540 = vst [vmem:[#allocation21_spill] sm:$0xff] %v7396_v60 }
 0x385   :  { %2544 = vmatpush.msrb.mxu3 %v9514_v7  ;;  %2586 = vmatpush.msra.mxu1 %v9515_v1  ;;  %v7399_v7 = vld [vmem:[#allocation6 + $0x158] sm:$0xff]  ;;  %v7402_v1 = vpop.f32.mrf.mxu0 }
 0x386   :  { %2765 = vmatpush.msra.mxu2 %v7287_v31  ;;  %2565 = vmatpush.msra.mxu0 %v6982_v33  ;;  %v9520_v33 = vld [vmem:[#allocation122_spill] sm:$0xff]  ;;  %9541 = vst [vmem:[#allocation20_spill] sm:$0xff] %v7399_v7 }
 0x387   :  { %2545 = vmatpush.msrb.mxu3 %v9516_v14  ;;  %2587 = vmatpush.msra.mxu1 %v9517_v53  ;;  %v7404_v14 = vld [vmem:[#allocation6 + $0x248] sm:$0xff]  ;;  %v7407_v53 = vld [vmem:[#allocation6 + $0x240] sm:$0xff] }
 0x388   :  { %2766 = vmatpush.msra.mxu2 %v7295_v40  ;;  %2566 = vmatpush.msra.mxu0 %v6992_v16  ;;  %v9523_v16 = vld [vmem:[#allocation126_spill] sm:$0xff]  ;;  %9542 = vst [vmem:[#allocation16_spill] sm:$0xff] %v7404_v14 }
 0x389   :  { %2546 = vmatpush.msrb.mxu3 %v9518_v39  ;;  %2588 = vmatpush.msra.mxu1 %v9519_v50  ;;  %9543 = vst [vmem:[#allocation32_spill] sm:$0xff] %v7407_v53  ;;  %v7410_v50 = vld [vmem:[#allocation6 + $0x120] sm:$0xff] }
 0x38a   :  { %2767 = vmatpush.msra.mxu2 %v7301_v24  ;;  %2567 = vmatpush.msra.mxu0 %v9520_v33  ;;  %v7319_v21 = vpop.permute.xlu2 %1383  ;;  %9544 = vst [vmem:[#allocation40_spill] sm:$0xff] %v7410_v50 }
 0x38b   :  { %2547 = vmatpush.msrb.mxu3 %v9521_v15  ;;  %2589 = vmatpush.msra.mxu1 %v9522_v59  ;;  %v7414_v15 = vld [vmem:[#allocation6 + $0x210] sm:$0xff]  ;;  %v7417_v59 = vld [vmem:[#allocation6 + $0x208] sm:$0xff] }
 0x38c   :  { %2768 = vmatpush.msra.mxu2 %v7307_v6  ;;  %2506 = vmatmul.f32.gmra.mxu1 %v7197_v63  ;;  %v7326_v63 = vld [vmem:[#allocation6 + $0xe0] sm:$0xff]  ;;  %9545 = vst [vmem:[#allocation47_spill] sm:$0xff] %v7414_v15 }
 0x38d   :  { %2548 = vmatpush.msrb.mxu3 %v9523_v16  ;;  %2590 = vmatpush.msra.mxu1 %v9524_v0  ;;  %9546 = vst [vmem:[#allocation44_spill] sm:$0xff] %v7417_v59  ;;  %v7420_v16 = vld [vmem:[#allocation6 + $0xe8] sm:$0xff]  ;;  %v7423_v0 = vld [vmem:[#allocation6 + $0x1d8] sm:$0xff] }
 0x38e   :  { %2769 = vmatpush.msra.mxu2 %v7316_v37  ;;  %2568 = vmatpush.msra.mxu0 %v9526_v36  ;;  %9547 = vst [vmem:[#allocation31_spill] sm:$0xff] %v7420_v16  ;;  %v7429_v36 = vld [vmem:[#allocation6 + $0x1d0] sm:$0xff] }
 0x38f   :  { %2782 = vmatpush.msra.mxu3 %v7313_v26  ;;  %2591 = vmatpush.msra.mxu1 %v9525_v3  ;;  %9548 = vst [vmem:[#allocation18_spill] sm:$0xff] %v7423_v0  ;;  %v7426_v3 = vld [vmem:[#allocation6 + $0xb0] sm:$0xff] }
 0x390   :  { %2770 = vmatpush.msra.mxu2 %v7326_v63  ;;  %2569 = vmatpush.msra.mxu0 %v9528_v9  ;;  %9549 = vst [vmem:[#allocation51_spill] sm:$0xff] %v7426_v3  ;;  %v7435_v9 = vpop.f32.mrf.mxu2 }
 0x391   :  { %2783 = vmatpush.msra.mxu3 %v7323_v32  ;;  %2592 = vmatpush.msra.mxu1 %v9527_v42  ;;  %9550 = vst [vmem:[#allocation39_spill] sm:$0xff] %v7429_v36  ;;  %v7432_v42 = vld [vmem:[#allocation6 + $0x1a0] sm:$0xff] }
 0x392   :  { %2771 = vmatpush.msra.mxu2 %v7334_v5  ;;  %2570 = vmatpush.msra.mxu0 %v9530_v49  ;;  %9551 = vst [vmem:[#allocation19_spill] sm:$0xff] %v7432_v42  ;;  %v7440_v49 = vld [vmem:[#allocation6 + $0x198] sm:$0xff] }
 0x393   :  { %2784 = vmatpush.msra.mxu3 %v7331_v56  ;;  %2593 = vmatpush.msra.mxu1 %v9529_v43  ;;  %v7437_v43 = vld [vmem:[#allocation6 + $0x78] sm:$0xff]  ;;  %9553 = vst [vmem:[#allocation48_spill] sm:$0xff] %v7440_v49 }
 0x394   :  { %2772 = vmatpush.msra.mxu2 %v7342_v54  ;;  %2571 = vmatpush.msra.mxu0 %v9532_v47  ;;  %9552 = vst [vmem:[#allocation29_spill] sm:$0xff] %v7437_v43  ;;  %v7446_v47 = vld [vmem:[#allocation6 + $0x40] sm:$0xff] }
 0x395   :  { %2785 = vmatpush.msra.mxu3 %v7339_v30  ;;  %2594 = vmatpush.msra.mxu1 %v9531_v46  ;;  %v7443_v46 = vld [vmem:[#allocation6 + $0x168] sm:$0xff]  ;;  %9555 = vst [vmem:[#allocation22_spill] sm:$0xff] %v7446_v47 }
 0x396   :  { %2773 = vmatpush.msra.mxu2 %v7353_v34  ;;  %2805 = vmatpush.msrb.mxu0 %v7356_v8  ;;  %9554 = vst [vmem:[#allocation55_spill] sm:$0xff] %v7443_v46 }
 0x397   :  { %2786 = vmatpush.msra.mxu3 %v7347_v11  ;;  %2828 = vmatpush.msrb.mxu1 %v7350_v20  ;;  %v1785_v51 = vpop.xlane.xlu2 %1784 }
 0x398   :  { %v1788_v19 = vadd.f32 %v9533_v44, %v1785_v51  ;;  %2774 = vmatpush.msra.mxu2 %v7366_v25  ;;  %2806 = vmatpush.msrb.mxu0 %v7369_v62  ;;  %v7449_v51 = vld [vmem:[#allocation6 + $0x160] sm:$0xff] }
 0x399   :  { %2787 = vmatpush.msra.mxu3 %v7360_v52  ;;  %2829 = vmatpush.msrb.mxu1 %v7363_v38  ;;  %9556 = vst [vmem:[#allocation52_spill] sm:$0xff] %v7449_v51 }
 0x39a   :  { %1793 = vperm.xlu0 %3687, %v1788_v19   ;;  %2807 = vmatpush.msrb.mxu0 %v7378_v45  ;;  %v7454_v19 = vld [vmem:[#allocation6 + $0x130] sm:$0xff] }
 0x39b   :  { %2788 = vmatpush.msra.mxu3 %v7372_v17  ;;  %2830 = vmatpush.msrb.mxu1 %v7375_v22  ;;  %9557 = vst [vmem:[#allocation26_spill] sm:$0xff] %v7454_v19 }
 0x39c   :  { %2808 = vmatpush.msrb.mxu0 %v7387_v13 }
 0x39d   :  { %2789 = vmatpush.msra.mxu3 %v7381_v23  ;;  %2831 = vmatpush.msrb.mxu1 %v7384_v10 }
 0x39e   :  { %2809 = vmatpush.msrb.mxu0 %v7396_v60 }
 0x39f   :  { %2790 = vmatpush.msra.mxu3 %v7390_v35  ;;  %2832 = vmatpush.msrb.mxu1 %v7393_v29 }
 0x3a0   :  { %2810 = vmatpush.msrb.mxu0 %v7407_v53 }
 0x3a1   :  { %2791 = vmatpush.msra.mxu3 %v7399_v7  ;;  %2833 = vmatpush.msrb.mxu1 %v7404_v14  ;;  %v1787_v39 = vpop.xlane.xlu1 %1786 }
 0x3a2   :  { %v1789_v33 = vadd.f32 %v9533_v44, %v1787_v39  ;;  %2811 = vmatpush.msrb.mxu0 %v7417_v59  ;;  %v7452_v44 = vpop.f32.mrf.mxu0  ;;  %v7457_v39 = vld [vmem:[#allocation6 + $0x8] sm:$0xff]  ;;  %v1979_v59 = vpop.f32.mrf.mxu1 }
 0x3a3   :  { %2792 = vmatpush.msra.mxu3 %v7410_v50  ;;  %2834 = vmatpush.msrb.mxu1 %v7414_v15  ;;  %9558 = vst [vmem:[#allocation56_spill] sm:$0xff] %v7457_v39 }
 0x3a4   :  { %1798 = vperm.xlu2 %3689, %v1789_v33   ;;  %2812 = vmatpush.msrb.mxu0 %v7429_v36  ;;  %v7460_v33 = vld [vmem:[#allocation6 + $0x128] sm:$0xff]  ;;  %v2025_v36 = vpop.f32.mrf.mxu3 }
 0x3a5   :  { %2793 = vmatpush.msra.mxu3 %v7420_v16  ;;  %2835 = vmatpush.msrb.mxu1 %v7423_v0  ;;  %9559 = vst [vmem:[#allocation33_spill] sm:$0xff] %v7460_v33 }
 0x3a6   :  { %2813 = vmatpush.msrb.mxu0 %v7440_v49  ;;  %v7472_v49 = vld [vmem:[#allocation6 + $0xb8] sm:$0xff] }
 0x3a7   :  { %2794 = vmatpush.msra.mxu3 %v7426_v3  ;;  %2836 = vmatpush.msrb.mxu1 %v7432_v42  ;;  %9563 = vst [vmem:[#allocation37_spill] sm:$0xff] %v7472_v49 }
 0x3a8   :  { %2814 = vmatpush.msrb.mxu0 %v7449_v51  ;;  %v7469_v51 = vld [vmem:[#allocation6 + $0xc0] sm:$0xff] }
 0x3a9   :  { %2795 = vmatpush.msra.mxu3 %v7437_v43  ;;  %2837 = vmatpush.msrb.mxu1 %v7443_v46  ;;  %9562 = vst [vmem:[#allocation60_spill] sm:$0xff] %v7469_v51  ;;  %v9570_v46 = vld [vmem:[#allocation90_spill] sm:$0xff] }
 0x3aa   :  { %2815 = vmatpush.msrb.mxu0 %v7460_v33  ;;  %v7478_v33 = vpop.f32.mrf.mxu2  ;;  %v1982_v15 = vpop.f32.mrf.mxu1 }
 0x3ab   :  { %2796 = vmatpush.msra.mxu3 %v7446_v47  ;;  %2838 = vmatpush.msrb.mxu1 %v7454_v19  ;;  %v7466_v47 = vld [vmem:[#allocation6 + $0xf0] sm:$0xff]  ;;  %v7480_v19 = vld [vmem:[#allocation6 + $0x80] sm:$0xff] }
 0x3ac   :  { %9561 = vst [vmem:[#allocation27_spill] sm:$0xff] %v7466_v47  ;;  %2816 = vmatpush.msrb.mxu0 %v7466_v47  ;;  %v7486_v47 = vld [vmem:[#allocation6 + $0x48] sm:$0xff]  ;;  %v2028_v42 = vpop.f32.mrf.mxu3 }
 0x3ad   :  { %2797 = vmatpush.msra.mxu3 %v7457_v39  ;;  %2839 = vmatpush.msrb.mxu1 %v7463_v4  ;;  %v7475_v39 = vld [vmem:[#allocation6 + $0x88] sm:$0xff]  ;;  %9565 = vst [vmem:[#allocation86_spill] sm:$0xff] %v7480_v19  ;;  %v7483_v4 = vld [vmem:[#allocation6 + $0x50] sm:$0xff] }
 0x3ae   :  { %2817 = vmatpush.msrb.mxu0 %v7472_v49  ;;  %9564 = vst [vmem:[#allocation63_spill] sm:$0xff] %v7475_v39  ;;  %v7489_v49 = vld [vmem:[#allocation6 + $0x18] sm:$0xff] }
 0x3af   :  { %2840 = vmatpush.msrb.mxu1 %v7469_v51  ;;  %9566 = vst [vmem:[#allocation30_spill] sm:$0xff] %v7483_v4  ;;  %v2048_v51 = vpop.f32.mrf.mxu0 }
 0x3b0   :  { %2818 = vmatpush.msrb.mxu0 %v7480_v19  ;;  %9567 = vst [vmem:[#allocation14_spill] sm:$0xff] %v7486_v47  ;;  %v2224_v3 = vmul.f32 %v9570_v46, %v2048_v51  ;;  %v9572_v51 = vld [vmem:[#allocation92_spill] sm:$0xff] }
 0x3b1   :  { %2841 = vmatpush.msrb.mxu1 %v7475_v39  ;;  %9568 = vst [vmem:[#allocation34_spill] sm:$0xff] %v7489_v49  ;;  %v7492_v39 = vld [vmem:[#allocation6 + $0x10] sm:$0xff]  ;;  %v2226_v45 = vmul.f32 %v9572_v51, %v2028_v42 }
 0x3b2   :  { %2819 = vmatpush.msrb.mxu0 %v7486_v47  ;;  %9569 = vst [vmem:[#allocation41_spill] sm:$0xff] %v7492_v39  ;;  %v2094_v43 = vpop.f32.mrf.mxu2  ;;  %v2230_v16 = vadd.f32 %v2224_v3, %v1979_v59  ;;  %v2223_v47 = vmul.f32 %v9570_v46, %v2025_v36 }
 0x3b3   :  { %2842 = vmatpush.msrb.mxu1 %v7483_v4 }
 0x3b4   :  { %2820 = vmatpush.msrb.mxu0 %v7492_v39  ;;  %v2229_v60 = vadd.f32 %v2223_v47, %v7402_v1 }
 0x3b5   :  { %2843 = vmatpush.msrb.mxu1 %v7489_v49  ;;  %v7500_v49 = vld [vmem:[%s8305_s5 + $0x1] ss:$0 sm:$0xff] }
 0x3b6   :  { %9571 = vst [vmem:[#allocation67_spill] sm:$0xff] %v7500_v49 }
 0x3b7   :  { %v2051_v19 = vpop.f32.mrf.mxu0 }
 0x3b8   :  { %v2227_v7 = vmul.f32 %v9572_v51, %v2051_v19  ;;  %v2071_v19 = vpop.f32.mrf.mxu1 }
 0x3ba   :  { %v2097_v4 = vpop.f32.mrf.mxu2 }
 0x3c7   :  { %v2140_v53 = vpop.f32.mrf.mxu0 }
 0x3c8   :  { %v2277_v0 = vadd.f32 %v2230_v16, %v2140_v53  ;;  %v2233_v16 = vadd.f32 %v2227_v7, %v1982_v15 }
 0x3ca   :  { %v2279_v39 = vadd.f32 %v7500_v49, %v2277_v0 }
 0x3cc   :  { %v3643_v50 = vmul.f32 -1.442695, %v2279_v39 }
 0x3cd   :  { %v2117_v13 = vpop.f32.mrf.mxu3 }
 0x3ce   :  { %3780 = vpow2.f32 %v3643_v50  ;;  %v2235_v59 = vadd.f32 %v2229_v60, %v2117_v13  ;;  %v2186_v3 = vpop.f32.mrf.mxu2  ;;  %v2232_v13 = vadd.f32 %v2226_v45, %v7452_v44  ;;  %v2074_v45 = vpop.f32.mrf.mxu1 }
 0x3cf   :  { %v2192_v14 = vadd.f32 %v2186_v3, %v2094_v43 }
 0x3d0   :  { %v2237_v53 = vadd.f32 %v7110_v48, %v2235_v59 }
 0x3d1   :  { %2194 = vadd.xlane.f32.xlu0 %v2192_v14 }
 0x3d2   :  { %v3641_v36 = vmul.f32 -1.442695, %v2237_v53  ;;  %v2143_v35 = vpop.f32.mrf.mxu0 }
 0x3d3   :  { %v2278_v0 = vadd.f32 %v2233_v16, %v2143_v35 }
 0x3d4   :  { %v3781_v39 = vpop.eup %3780  ;;  %3782 = vpow2.f32 %v3641_v36 }
 0x3d5   :  { %v7507_v1 = vadd.f32 1.0, %v3781_v39  ;;  %v2280_v47 = vadd.f32 %v7500_v49, %v2278_v0 }
 0x3d7   :  { %v3644_v50 = vmul.f32 -1.442695, %v2280_v47  ;;  %3784 = vrcp.f32 %v7507_v1  ;;  %v2225_v47 = vmul.f32 %v9570_v46, %v2071_v19  ;;  %v7524_v46 = vld [vmem:[%s8305_s5 + $0x3] ss:$0 sm:$0xff]  ;;  %vm2294_vm10 = vweird.f32 %v7507_v1 }
 0x3d8   :  { %v2120_v60 = vpop.f32.mrf.mxu3 }
 0x3d9   :  { %3786 = vpow2.f32 %v3644_v50  ;;  %v2236_v7 = vadd.f32 %v2232_v13, %v2120_v60  ;;  %v2189_v14 = vpop.f32.mrf.mxu2 }
 0x3da   :  { %v3783_v15 = vpop.eup %3782  ;;  %v2193_v43 = vadd.f32 %v2189_v14, %v2097_v4 }
 0x3db   :  { %v2245_v42 = vadd.f32 1.0, %v3783_v15  ;;  %v2238_v35 = vadd.f32 %v7110_v48, %v2236_v7  ;;  %v2163_v15 = vpop.f32.mrf.mxu1 }
 0x3dc   :  { %2196 = vadd.xlane.f32.xlu1 %v2193_v43  ;;  %v2321_v19 = vadd.f32 %v7524_v46, %v2163_v15 }
 0x3dd   :  { %3788 = vrcp.f32 %v2245_v42  ;;  %v3785_v59 = vpop.eup %3784  ;;  %v3642_v3 = vmul.f32 -1.442695, %v2238_v35  ;;  %v2258_v50 = vand.u32 2147483648, %v2245_v42  ;;  %v2256_v7 = vand.u32 2147483647, %v2245_v42 }
 0x3de   :  { %v2290_v44 = vmul.f32 %v3785_v59, %v7507_v1  ;;  %v2231_v35 = vadd.f32 %v2225_v47, %v7435_v9  ;;  %vm2252_vm6 = vweird.f32 %v2245_v42  ;;  %vm2295_vm9 = vweird.f32 %v3785_v59  ;;  %v7532_v9 = vld [vmem:[%s8305_s5 + $0x2] ss:$0 sm:$0xff] }
 0x3df   :  { %v3787_v53 = vpop.eup %3786  ;;  %3790 = vpow2.f32 %v3642_v3  ;;  %vm2257_vm8 = vcmp.eq.f32.partialorder %v2256_v7, 8.507059e+37  ;;  %v2300_v47 = vand.u32 2147483648, %v7507_v1  ;;  %vm2296_vm11 = vmor %vm2294_vm10, %vm2295_vm9 }
 0x3e0   :  { %v7513_v16 = vadd.f32 1.0, %v3787_v53  ;;  %v2291_v39 = vsub.f32 1.0, %v2290_v44  ;;  %v2259_v53 = vor.u32 1.1754944e-38, %v2258_v50 }
 0x3e2   :  { %3792 = vrcp.f32 %v7513_v16  ;;  %v2292_v14 = vmul.f32 %v3785_v59, %v2291_v39 }
 0x3e3   :  { %v3789_v36 = vpop.eup %3788  ;;  %v2166_v23 = vpop.f32.mrf.mxu1 }
 0x3e4   :  { %v2248_v0 = vmul.f32 %v3789_v36, %v2245_v42  ;;  %vm2253_vm5 = vweird.f32 %v3789_v36  ;;  %v2319_v42 = vadd.f32 %v7532_v9, %v2231_v35 }
 0x3e5   :  { %v3791_v4 = vpop.eup %3790  ;;  %vm2254_vm7 = vmor %vm2252_vm6, %vm2253_vm5  ;;  %vm2309_vm5 = vweird.f32 %v7513_v16 }
 0x3e6   :  { %v2249_v48 = vsub.f32 1.0, %v2248_v0  ;;  %v2246_v13 = vadd.f32 1.0, %v3791_v4  ;;  %v2293_v4 = vadd.f32 %v3785_v59, %v2292_v14 }
 0x3e8   :  { %v2250_v60 = vmul.f32 %v3789_v36, %v2249_v48  ;;  %3794 = vrcp.f32 %v2246_v13  ;;  %v7518_v43 = vpop.eup %3792  ;;  %v2297_v14 = vsel %vm2296_vm11, %v3785_v59, %v2293_v4  ;;  %v2273_v49 = vand.u32 2147483648, %v2246_v13 }
 0x3e9   :  { %v2305_v39 = vmul.f32 %v7518_v43, %v7513_v16  ;;  %vm2267_vm14 = vweird.f32 %v2246_v13  ;;  %vm2310_vm3 = vweird.f32 %v7518_v43 }
 0x3ea   :  { %v2251_v3 = vadd.f32 %v3789_v36, %v2250_v60  ;;  %v2274_v59 = vor.u32 1.1754944e-38, %v2273_v49  ;;  %vm2311_vm6 = vmor %vm2309_vm5, %vm2310_vm3 }
 0x3eb   :  { %v2306_v15 = vsub.f32 1.0, %v2305_v39 }
 0x3ec   :  { %v2255_v44 = vsel %vm2254_vm7, %v3789_v36, %v2251_v3  ;;  %v2298_v36 = vand.u32 2147483647, %v7507_v1  ;;  %v2228_v3 = vmul.f32 %v9572_v51, %v2074_v45  ;;  %v2322_v45 = vadd.f32 %v7524_v46, %v2166_v23 }
 0x3ed   :  { %v2260_v0 = vsel %vm2257_vm8, %v2259_v53, %v2255_v44  ;;  %v2301_v53 = vor.u32 1.1754944e-38, %v2300_v47  ;;  %v2307_v29 = vmul.f32 %v7518_v43, %v2306_v15  ;;  %v7562_v15 = vld [vmem:[#allocation6 + $0x378] sm:$0xff] }
 0x3ee   :  { %v2323_v48 = vmul.f32 %v2321_v19, %v2260_v0  ;;  %v3795_v50 = vpop.eup %3794  ;;  %vm2299_vm12 = vcmp.eq.f32.partialorder %v2298_v36, 8.507059e+37  ;;  %v2271_v19 = vand.u32 2147483647, %v2246_v13  ;;  %v2234_v1 = vadd.f32 %v2228_v3, %v7478_v33  ;;  %v7571_v3 = vld [vmem:[#allocation6 + $0x338] sm:$0xff] }
 0x3ef   :  { %v2263_v60 = vmul.f32 %v3795_v50, %v2246_v13  ;;  %vm2268_vm13 = vweird.f32 %v3795_v50  ;;  %v2302_v0 = vsel %vm2299_vm12, %v2301_v53, %v2297_v14  ;;  %v2308_v36 = vadd.f32 %v7518_v43, %v2307_v29  ;;  %v7568_v14 = vld [vmem:[#allocation6 + $0x330] sm:$0xff]  ;;  %v7574_v53 = vld [vmem:[#allocation6 + $0x340] sm:$0xff] }
 0x3f0   :  { %v2325_v7 = vadd.f32 %v2323_v48, %v2319_v42  ;;  %vm2269_vm15 = vmor %vm2267_vm14, %vm2268_vm13  ;;  %v2329_v39 = vsub.f32 1.0, %v2302_v0  ;;  %vm2272_vm2 = vcmp.eq.f32.partialorder %v2271_v19, 8.507059e+37  ;;  %v2333_v42 = vmul.f32 %v2302_v0, %v7134_v57  ;;  %v7583_v19 = vld [vmem:[#allocation6 + $0x300] sm:$0xff] }
 0x3f1   :  { %v2264_v44 = vsub.f32 1.0, %v2263_v60  ;;  %v2320_v33 = vadd.f32 %v7532_v9, %v2234_v1  ;;  %v2315_v13 = vand.u32 2147483648, %v7513_v16  ;;  %v2312_v57 = vsel %vm2311_vm6, %v7518_v43, %v2308_v36  ;;  %v7565_v43 = vld [vmem:[#allocation8 + $0x1e0] sm:$0xff] }
 0x3f2   :  { %3796 = vtanh.f32 %v2325_v7  ;;  %v7559_v7 = vld [vmem:[#allocation6 + $0x370] sm:$0xff] }
 0x3f3   :  { %v2265_v35 = vmul.f32 %v3795_v50, %v2264_v44  ;;  %v2316_v29 = vor.u32 1.1754944e-38, %v2315_v13  ;;  %v7577_v44 = vld [vmem:[#allocation8 + $0x1c0] sm:$0xff]  ;;  %v7610_v13 = vld [vmem:[#allocation6 + $0x290] sm:$0xff] }
 0x3f5   :  { %v2266_v62 = vadd.f32 %v3795_v50, %v2265_v35  ;;  %v7580_v35 = vld [vmem:[#allocation6 + $0x2f8] sm:$0xff] }
 0x3f7   :  { %v2270_v4 = vsel %vm2269_vm15, %v3795_v50, %v2266_v62  ;;  %v2313_v62 = vand.u32 2147483647, %v7513_v16  ;;  %v7556_v50 = vld [vmem:[#allocation6 + $0x368] sm:$0xff] }
 0x3f8   :  { %v3797_v51 = vpop.eup %3796  ;;  %v2275_v47 = vsel %vm2272_vm2, %v2274_v59, %v2270_v4  ;;  %v7586_v59 = vld [vmem:[#allocation6 + $0x308] sm:$0xff] }
 0x3f9   :  { %v2331_v48 = vmul.f32 %v3797_v51, %v2329_v39  ;;  %v2324_v60 = vmul.f32 %v2322_v45, %v2275_v47  ;;  %vm2314_vm7 = vcmp.eq.f32.partialorder %v2313_v62, 8.507059e+37  ;;  %v7589_v39 = vld [vmem:[#allocation8 + $0x1a0] sm:$0xff]  ;;  %v7595_v45 = vld [vmem:[#allocation6 + $0x2c8] sm:$0xff]  ;;  %v7599_v47 = vld [vmem:[#allocation6 + $0x2d0] sm:$0xff] }
 0x3fa   :  { %v2317_v16 = vsel %vm2314_vm7, %v2316_v29, %v2312_v57  ;;  %v7592_v51 = vld [vmem:[#allocation6 + $0x2c0] sm:$0xff]  ;;  %v9573_v62 = vld [vmem:[#allocation24_spill] sm:$0xff]  ;;  %v7629_v29 = vld [vmem:[#allocation6 + $0x250] sm:$0xff] }
 0x3fb   :  { %v7548_v49 = vadd.f32 %v2333_v42, %v2331_v48  ;;  %v2326_v23 = vadd.f32 %v2324_v60, %v2320_v33  ;;  %v2330_v0 = vsub.f32 1.0, %v2317_v16  ;;  %v2334_v42 = vmul.f32 %v2317_v16, %v7155_v28  ;;  %v7602_v48 = vld [vmem:[#allocation8 + $0x180] sm:$0xff]  ;;  %v7607_v33 = vld [vmem:[#allocation6 + $0x288] sm:$0xff]  ;;  %v7613_v60 = vld [vmem:[#allocation6 + $0x298] sm:$0xff] }
 0x3fc   :  { %v7616_v28 = vld [vmem:[#allocation8 + $0x160] sm:$0xff]  ;;  %v7632_v16 = vld [vmem:[#allocation6 + $0x258] sm:$0xff] }
 0x3fd   :  { %2526 = vmatmul.f32.vlgmr.msrb.gmra.mxu2 %v7548_v49  ;;  %2549 = vmatmul.f32.vlgmr.msrb.gmra.mxu3 %v7548_v49  ;;  %3798 = vtanh.f32 %v2326_v23  ;;  %v559_v23 = vsel %vm548_vm0, %v9573_v62, 0.0  ;;  %vm1790_vm0 = vcmp.eq.s32.totalorder %v9464_v12, 3  ;;  %v7648_v62 = vld [vmem:[#allocation6 + $0x220] sm:$0xff]  ;;  %v7669_v12 = vld [vmem:[#allocation6 + $0x1e8] sm:$0xff] }
 0x3fe   :  { %2572 = vmatmul.f32.vlgmr.msra.gmra.mxu0 %v7548_v49  ;;  %2595 = vmatmul.f32.vlgmr.msra.gmra.mxu1 %v7548_v49  ;;  %v981_v57 = vsel %vm970_vm1, %v7291_v2, %v559_v23  ;;  %v7642_v2 = vld [vmem:[#allocation8 + $0x140] sm:$0xff]  ;;  %v7658_v23 = vld [vmem:[%s8300_s0 + $0x60] sm:$0xff]  ;;  %9580 = vst [vmem:[#allocation69_spill] sm:$0xff] %v7669_v12 }
 0x3ff   :  { %2851 = vmatpush.msrb.mxu2 %v7556_v50  ;;  %2874 = vmatpush.msrb.mxu3 %v7559_v7  ;;  %9574 = vst [vmem:[#allocation65_spill] sm:$0xff] %v7642_v2 }
 0x400   :  { %2897 = vmatpush.msra.mxu0 %v7562_v15  ;;  %2920 = vmatpush.msra.mxu1 %v7565_v43 }
 0x401   :  { %2852 = vmatpush.msrb.mxu2 %v7568_v14  ;;  %2875 = vmatpush.msrb.mxu3 %v7571_v3 }
 0x402   :  { %2898 = vmatpush.msra.mxu0 %v7574_v53  ;;  %2921 = vmatpush.msra.mxu1 %v7577_v44 }
 0x403   :  { %2853 = vmatpush.msrb.mxu2 %v7580_v35  ;;  %2876 = vmatpush.msrb.mxu3 %v7583_v19  ;;  %v3799_v1 = vpop.eup %3798 }
 0x404   :  { %2899 = vmatpush.msra.mxu0 %v7586_v59  ;;  %2922 = vmatpush.msra.mxu1 %v7589_v39  ;;  %v2332_v4 = vmul.f32 %v3799_v1, %v2330_v0  ;;  %v1391_v0 = vsel %vm1380_vm4, %v7319_v21, %v981_v57  ;;  %v7660_v57 = vld [vmem:[#allocation6 + $0x228] sm:$0xff] }
 0x405   :  { %2854 = vmatpush.msrb.mxu2 %v7592_v51  ;;  %2877 = vmatpush.msrb.mxu3 %v7595_v45  ;;  %9577 = vst [vmem:[#allocation38_spill] sm:$0xff] %v7660_v57 }
 0x406   :  { %2900 = vmatpush.msra.mxu0 %v7599_v47  ;;  %2923 = vmatpush.msra.mxu1 %v7602_v48  ;;  %v7605_v36 = vadd.f32 %v2334_v42, %v2332_v4  ;;  %v7639_v4 = vld [vmem:[#allocation6 + $0x260] sm:$0xff]  ;;  %v7645_v42 = vld [vmem:[#allocation6 + $0x218] sm:$0xff] }
 0x407   :  { %2855 = vmatpush.msrb.mxu2 %v7607_v33  ;;  %2878 = vmatpush.msrb.mxu3 %v7610_v13  ;;  %9575 = vst [vmem:[#allocation42_spill] sm:$0xff] %v7645_v42 }
 0x408   :  { %2901 = vmatpush.msra.mxu0 %v7613_v60  ;;  %2924 = vmatpush.msra.mxu1 %v7616_v28 }
 0x409   :  { %2529 = vmatmul.f32.gmra.mxu2 %v7605_v36  ;;  %2552 = vmatmul.f32.gmra.mxu3 %v7605_v36 }
 0x40a   :  { %2575 = vmatmul.f32.gmra.mxu0 %v7605_v36  ;;  %2598 = vmatmul.f32.gmra.mxu1 %v7605_v36 }
 0x40b   :  { %2856 = vmatpush.msrb.mxu2 %v7629_v29  ;;  %2879 = vmatpush.msrb.mxu3 %v7632_v16 }
 0x40c   :  { %v1794_v1 = vpop.permute.xlu0 %1793  ;;  %2902 = vmatpush.msra.mxu0 %v7639_v4  ;;  %2925 = vmatpush.msra.mxu1 %v7642_v2  ;;  %v7663_v2 = vld [vmem:[#allocation8 + $0x120] sm:$0xff] }
 0x40d   :  { %2857 = vmatpush.msrb.mxu2 %v7645_v42  ;;  %2880 = vmatpush.msrb.mxu3 %v7648_v62  ;;  %v7653_v21 = vsel %vm1790_vm0, %v1794_v1, %v1391_v0  ;;  %9578 = vst [vmem:[#allocation71_spill] sm:$0xff] %v7663_v2  ;;  %v7666_v42 = vld [vmem:[#allocation6 + $0x1e0] sm:$0xff]  ;;  %v7672_v0 = vld [vmem:[#allocation6 + $0x1f0] sm:$0xff] }
 0x40e   :  { %9576 = vst [vmem:[#allocation68_spill] sm:$0xff] %v7653_v21  ;;  %2903 = vmatpush.msra.mxu0 %v7660_v57  ;;  %2926 = vmatpush.msra.mxu1 %v7663_v2  ;;  %v7675_v1 = vld [vmem:[#allocation8 + $0x100] sm:$0xff]  ;;  %v7681_v21 = vld [vmem:[#allocation6 + $0x1a8] sm:$0xff] }
 0x40f   :  { %9579 = vst [vmem:[#allocation45_spill] sm:$0xff] %v7666_v42  ;;  %2858 = vmatpush.msrb.mxu2 %v7666_v42  ;;  %2881 = vmatpush.msrb.mxu3 %v7669_v12  ;;  %v7684_v42 = vld [vmem:[#allocation6 + $0x1b0] sm:$0xff]  ;;  %v7694_v12 = vld [vmem:[#allocation6 + $0x178] sm:$0xff]  ;;  %v7697_v2 = vld [vmem:[#allocation8 + $0xe0] sm:$0xff] }
 0x410   :  { %9581 = vst [vmem:[#allocation49_spill] sm:$0xff] %v7672_v0  ;;  %2904 = vmatpush.msra.mxu0 %v7672_v0  ;;  %2927 = vmatpush.msra.mxu1 %v7675_v1  ;;  %v7688_v0 = vld [vmem:[#allocation6 + $0x170] sm:$0xff]  ;;  %v7723_v57 = vld [vmem:[#allocation6 + $0x108] sm:$0xff] }
 0x411   :  { %9582 = vst [vmem:[#allocation73_spill] sm:$0xff] %v7675_v1  ;;  %2775 = vmatmul.f32.vlgmr.msra.gmra.mxu2 %v7658_v23  ;;  %2798 = vmatmul.f32.vlgmr.msra.gmra.mxu3 %v7658_v23  ;;  %v7691_v1 = vld [vmem:[#allocation6 + $0x1b8] sm:$0xff] }
 0x412   :  { %2844 = vmatmul.f32.vlgmr.msrb.gmra.mxu1 %v7658_v23  ;;  %9583 = vst [vmem:[#allocation72_spill] sm:$0xff] %v7681_v21  ;;  %2859 = vmatpush.msrb.mxu2 %v7681_v21  ;;  %v7700_v21 = vld [vmem:[#allocation6 + $0x138] sm:$0xff] }
 0x413   :  { %9584 = vst [vmem:[#allocation57_spill] sm:$0xff] %v7684_v42  ;;  %2882 = vmatpush.msrb.mxu3 %v7684_v42  ;;  %2821 = vmatmul.f32.vlgmr.msrb.gmra.mxu0 %v7658_v23  ;;  %v7708_v42 = vld [vmem:[#allocation6 + $0x180] sm:$0xff] }
 0x414   :  { %9585 = vst [vmem:[#allocation53_spill] sm:$0xff] %v7688_v0  ;;  %2860 = vmatpush.msrb.mxu2 %v7688_v0  ;;  %2905 = vmatpush.msra.mxu0 %v7691_v1  ;;  %v7706_v0 = vld [vmem:[%s8300_s0 + $0x68] sm:$0xff] }
 0x415   :  { %9586 = vst [vmem:[#allocation62_spill] sm:$0xff] %v7691_v1  ;;  %2883 = vmatpush.msrb.mxu3 %v7694_v12  ;;  %2928 = vmatpush.msra.mxu1 %v7697_v2  ;;  %v7711_v1 = vld [vmem:[#allocation6 + $0x140] sm:$0xff] }
 0x416   :  { %9587 = vst [vmem:[#allocation61_spill] sm:$0xff] %v7694_v12  ;;  %2861 = vmatpush.msrb.mxu2 %v7700_v21  ;;  %2906 = vmatpush.msra.mxu0 %v7708_v42  ;;  %v7714_v12 = vld [vmem:[#allocation8 + $0xc0] sm:$0xff] }
 0x417   :  { %9588 = vst [vmem:[#allocation81_spill] sm:$0xff] %v7697_v2  ;;  %2884 = vmatpush.msrb.mxu3 %v7711_v1  ;;  %2929 = vmatpush.msra.mxu1 %v7714_v12  ;;  %v7717_v2 = vld [vmem:[#allocation6 + $0x100] sm:$0xff] }
 0x418   :  { %9589 = vst [vmem:[#allocation76_spill] sm:$0xff] %v7700_v21  ;;  %2862 = vmatpush.msrb.mxu2 %v7717_v2  ;;  %v7720_v21 = vld [vmem:[#allocation6 + $0x148] sm:$0xff] }
 0x419   :  { %9590 = vst [vmem:[#allocation46_spill] sm:$0xff] %v7708_v42  ;;  %2907 = vmatpush.msra.mxu0 %v7720_v21  ;;  %2885 = vmatpush.msrb.mxu3 %v7723_v57  ;;  %v7745_v42 = vld [vmem:[#allocation6 + $0x110] sm:$0xff] }
 0x41a   :  { %9591 = vst [vmem:[#allocation54_spill] sm:$0xff] %v7711_v1  ;;  %2778 = vmatmul.f32.gmra.mxu2 %v7706_v0  ;;  %2801 = vmatmul.f32.gmra.mxu3 %v7706_v0  ;;  %v7729_v1 = vld [vmem:[#allocation6 + $0xc8] sm:$0xff] }
 0x41b   :  { %9592 = vst [vmem:[#allocation85_spill] sm:$0xff] %v7714_v12  ;;  %2847 = vmatmul.f32.gmra.mxu1 %v7706_v0  ;;  %2863 = vmatpush.msrb.mxu2 %v7729_v1  ;;  %v7732_v12 = vld [vmem:[#allocation6 + $0xd0] sm:$0xff] }
 0x41c   :  { %9593 = vst [vmem:[#allocation50_spill] sm:$0xff] %v7717_v2  ;;  %2886 = vmatpush.msrb.mxu3 %v7732_v12  ;;  %2824 = vmatmul.f32.gmra.mxu0 %v7706_v0  ;;  %v7742_v2 = vld [vmem:[#allocation6 + $0x98] sm:$0xff] }
 0x41d   :  { %9594 = vst [vmem:[#allocation80_spill] sm:$0xff] %v7720_v21  ;;  %v7736_v21 = vld [vmem:[#allocation8 + $0xa0] sm:$0xff]  ;;  %2908 = vmatpush.msra.mxu0 %v7745_v42 }
 0x41e   :  { %9595 = vst [vmem:[#allocation58_spill] sm:$0xff] %v7723_v57  ;;  %2930 = vmatpush.msra.mxu1 %v7736_v21  ;;  %v7739_v57 = vld [vmem:[#allocation6 + $0x90] sm:$0xff]  ;;  %2887 = vmatpush.msrb.mxu3 %v7742_v2 }
 0x41f   :  { %9596 = vst [vmem:[#allocation97_spill] sm:$0xff] %v7729_v1  ;;  %2864 = vmatpush.msrb.mxu2 %v7739_v57  ;;  %v7748_v1 = vld [vmem:[#allocation8 + $0x80] sm:$0xff] }
 0x420   :  { %9597 = vst [vmem:[#allocation75_spill] sm:$0xff] %v7732_v12  ;;  %2931 = vmatpush.msra.mxu1 %v7748_v1  ;;  %v7751_v12 = vld [vmem:[#allocation6 + $0x58] sm:$0xff] }
 0x421   :  { %9598 = vst [vmem:[#allocation77_spill] sm:$0xff] %v7736_v21  ;;  %2865 = vmatpush.msrb.mxu2 %v7751_v12  ;;  %v7754_v21 = vld [vmem:[#allocation6 + $0x60] sm:$0xff] }
 0x422   :  { %9599 = vst [vmem:[#allocation87_spill] sm:$0xff] %v7739_v57  ;;  %2888 = vmatpush.msrb.mxu3 %v7754_v21  ;;  %v7757_v57 = vld [vmem:[#allocation6 + $0xd8] sm:$0xff] }
 0x423   :  { %9600 = vst [vmem:[#allocation100_spill] sm:$0xff] %v7742_v2  ;;  %2909 = vmatpush.msra.mxu0 %v7757_v57  ;;  %v7760_v2 = vld [vmem:[#allocation8 + $0x60] sm:$0xff] }
 0x424   :  { %9601 = vst [vmem:[#allocation79_spill] sm:$0xff] %v7745_v42  ;;  %2932 = vmatpush.msra.mxu1 %v7760_v2  ;;  %v7763_v42 = vld [vmem:[#allocation6 + $0x20] sm:$0xff] }
 0x425   :  { %9602 = vst [vmem:[#allocation88_spill] sm:$0xff] %v7748_v1  ;;  %2866 = vmatpush.msrb.mxu2 %v7763_v42  ;;  %v7766_v1 = vld [vmem:[#allocation6 + $0x28] sm:$0xff] }
 0x426   :  { %9603 = vst [vmem:[#allocation95_spill] sm:$0xff] %v7751_v12  ;;  %2889 = vmatpush.msrb.mxu3 %v7766_v1  ;;  %2867 = vmatmul.f32.vlgmr.msrb.gmra.mxu2 %v7658_v23  ;;  %v7786_v12 = vld [vmem:[#allocation6 + $0x68] sm:$0xff] }
 0x427   :  { %9604 = vst [vmem:[#allocation83_spill] sm:$0xff] %v7754_v21  ;;  %2890 = vmatmul.f32.vlgmr.msrb.gmra.mxu3 %v7658_v23  ;;  %v7771_v21 = vld [vmem:[#allocation8 + $0x1e8] sm:$0xff] }
 0x428   :  { %9605 = vst [vmem:[#allocation94_spill] sm:$0xff] %v7757_v57  ;;  %2943 = vmatpush.msra.mxu2 %v7771_v21  ;;  %v7774_v57 = vld [vmem:[#allocation6 + $0xa0] sm:$0xff] }
 0x429   :  { %9606 = vst [vmem:[#allocation106_spill] sm:$0xff] %v7760_v2  ;;  %2910 = vmatpush.msra.mxu0 %v7774_v57  ;;  %v7777_v2 = vld [vmem:[#allocation8 + $0x40] sm:$0xff] }
 0x42a   :  { %9607 = vst [vmem:[#allocation96_spill] sm:$0xff] %v7763_v42  ;;  %2933 = vmatpush.msra.mxu1 %v7777_v2  ;;  %v7780_v42 = vld [vmem:[#allocation8 + $0x1f0] sm:$0xff] }
 0x42b   :  { %9608 = vst [vmem:[#allocation84_spill] sm:$0xff] %v7766_v1  ;;  %2966 = vmatpush.msra.mxu3 %v7780_v42  ;;  %v7783_v1 = vld [vmem:[#allocation8 + $0x1c8] sm:$0xff]  ;;  %2911 = vmatpush.msra.mxu0 %v7786_v12 }
 0x42c   :  { %9609 = vst [vmem:[#allocation70_spill] sm:$0xff] %v7771_v21  ;;  %2944 = vmatpush.msra.mxu2 %v7783_v1  ;;  %v7789_v21 = vld [vmem:[#allocation8 + $0x20] sm:$0xff] }
 0x42d   :  { %9610 = vst [vmem:[#allocation99_spill] sm:$0xff] %v7774_v57  ;;  %2934 = vmatpush.msra.mxu1 %v7789_v21  ;;  %v7792_v57 = vld [vmem:[#allocation8 + $0x1d0] sm:$0xff] }
 0x42e   :  { %9611 = vst [vmem:[#allocation91_spill] sm:$0xff] %v7777_v2  ;;  %2967 = vmatpush.msra.mxu3 %v7792_v57  ;;  %v7795_v2 = vld [vmem:[#allocation8 + $0x1a8] sm:$0xff]  ;;  %2870 = vmatmul.f32.gmra.mxu2 %v7706_v0 }
 0x42f   :  { %9612 = vst [vmem:[#allocation66_spill] sm:$0xff] %v7780_v42  ;;  %2945 = vmatpush.msra.mxu2 %v7795_v2  ;;  %v7798_v42 = vld [vmem:[#allocation6 + $0x30] sm:$0xff]  ;;  %2893 = vmatmul.f32.gmra.mxu3 %v7706_v0 }
 0x430   :  { %9613 = vst [vmem:[#allocation93_spill] sm:$0xff] %v7783_v1  ;;  %2912 = vmatpush.msra.mxu0 %v7798_v42  ;;  %v7801_v1 = vld [vmem:[#allocation8 + $0x1f8] sm:$0xff] }
 0x431   :  { %9614 = vst [vmem:[#allocation89_spill] sm:$0xff] %v7786_v12  ;;  %v7804_v12 = vld [vmem:[#allocation8] sm:$0xff]  ;;  %2913 = vmatmul.f32.vlgmr.msra.gmra.mxu0 %v7658_v23  ;;  %v7894_v23 = vld [vmem:[#allocation8 + $0xd8] sm:$0xff] }
 0x432   :  { %9615 = vst [vmem:[#allocation112_spill] sm:$0xff] %v7789_v21  ;;  %2989 = vmatpush.msrb.mxu0 %v7801_v1  ;;  %2935 = vmatpush.msra.mxu1 %v7804_v12  ;;  %v7807_v21 = vld [vmem:[#allocation8 + $0x188] sm:$0xff] }
 0x433   :  { %9616 = vst [vmem:[#allocation103_spill] sm:$0xff] %v7795_v2  ;;  %2946 = vmatpush.msra.mxu2 %v7807_v21  ;;  %v7813_v2 = vld [vmem:[#allocation8 + $0x168] sm:$0xff] }
 0x434   :  { %9617 = vst [vmem:[#allocation74_spill] sm:$0xff] %v7798_v42  ;;  %3169 = vmatpush.msrb.mxu1 %v7251_v27  ;;  %v7816_v42 = vld [vmem:[#allocation8 + $0x1d8] sm:$0xff] }
 0x435   :  { %9618 = vst [vmem:[#allocation115_spill] sm:$0xff] %v7804_v12  ;;  %2947 = vmatpush.msra.mxu2 %v7813_v2  ;;  %2990 = vmatpush.msrb.mxu0 %v7816_v42  ;;  %v7820_v12 = vld [vmem:[#allocation8 + $0x1b0] sm:$0xff]  ;;  %v7826_v27 = vld [vmem:[#allocation8 + $0x1b8] sm:$0xff] }
 0x436   :  { %9619 = vst [vmem:[#allocation98_spill] sm:$0xff] %v7807_v21  ;;  %3170 = vmatpush.msrb.mxu1 %v7257_v61  ;;  %2968 = vmatpush.msra.mxu3 %v7820_v12  ;;  %v7823_v21 = vld [vmem:[#allocation8 + $0x148] sm:$0xff]  ;;  %v7836_v61 = vld [vmem:[#allocation8 + $0x198] sm:$0xff] }
 0x437   :  { %9620 = vst [vmem:[#allocation107_spill] sm:$0xff] %v7813_v2  ;;  %2948 = vmatpush.msra.mxu2 %v7823_v21  ;;  %2991 = vmatpush.msrb.mxu0 %v7826_v27  ;;  %v7830_v2 = vld [vmem:[#allocation8 + $0x190] sm:$0xff] }
 0x438   :  { %9621 = vst [vmem:[#allocation118_spill] sm:$0xff] %v7816_v42  ;;  %3171 = vmatpush.msrb.mxu1 %v7263_v55  ;;  %2969 = vmatpush.msra.mxu3 %v7830_v2  ;;  %v7833_v42 = vld [vmem:[#allocation8 + $0x128] sm:$0xff]  ;;  %v7846_v55 = vld [vmem:[#allocation8 + $0x178] sm:$0xff] }
 0x439   :  { %9622 = vst [vmem:[#allocation101_spill] sm:$0xff] %v7823_v21  ;;  %2949 = vmatpush.msra.mxu2 %v7833_v42  ;;  %2992 = vmatpush.msrb.mxu0 %v7836_v61  ;;  %v7840_v21 = vld [vmem:[#allocation8 + $0x170] sm:$0xff] }
 0x43a   :  { %9623 = vst [vmem:[#allocation110_spill] sm:$0xff] %v7826_v27  ;;  %3172 = vmatpush.msrb.mxu1 %v7269_v58  ;;  %2970 = vmatpush.msra.mxu3 %v7840_v21  ;;  %v7843_v27 = vld [vmem:[#allocation8 + $0x108] sm:$0xff]  ;;  %v7856_v58 = vld [vmem:[#allocation8 + $0x158] sm:$0xff] }
 0x43b   :  { %9624 = vst [vmem:[#allocation114_spill] sm:$0xff] %v7833_v42  ;;  %2950 = vmatpush.msra.mxu2 %v7843_v27  ;;  %2993 = vmatpush.msrb.mxu0 %v7846_v55  ;;  %v7850_v42 = vld [vmem:[#allocation8 + $0x150] sm:$0xff] }
 0x43c   :  { %9625 = vst [vmem:[#allocation102_spill] sm:$0xff] %v7836_v61  ;;  %3173 = vmatpush.msrb.mxu1 %v7275_v41  ;;  %2971 = vmatpush.msra.mxu3 %v7850_v42  ;;  %v7853_v61 = vld [vmem:[#allocation8 + $0xe8] sm:$0xff]  ;;  %v7866_v41 = vld [vmem:[#allocation8 + $0x138] sm:$0xff] }
 0x43d   :  { %9626 = vst [vmem:[#allocation121_spill] sm:$0xff] %v7843_v27  ;;  %2951 = vmatpush.msra.mxu2 %v7853_v61  ;;  %2994 = vmatpush.msrb.mxu0 %v7856_v58  ;;  %v7860_v27 = vld [vmem:[#allocation8 + $0x130] sm:$0xff] }
 0x43e   :  { %9627 = vst [vmem:[#allocation105_spill] sm:$0xff] %v7846_v55  ;;  %3174 = vmatpush.msrb.mxu1 %v7281_v18  ;;  %2972 = vmatpush.msra.mxu3 %v7860_v27  ;;  %v7863_v55 = vld [vmem:[#allocation8 + $0xc8] sm:$0xff]  ;;  %v7876_v18 = vld [vmem:[#allocation8 + $0x118] sm:$0xff] }
 0x43f   :  { %9628 = vst [vmem:[#allocation124_spill] sm:$0xff] %v7853_v61  ;;  %2952 = vmatpush.msra.mxu2 %v7863_v55  ;;  %2995 = vmatpush.msrb.mxu0 %v7866_v41  ;;  %v7870_v61 = vld [vmem:[#allocation8 + $0x110] sm:$0xff] }
 0x440   :  { %9629 = vst [vmem:[#allocation108_spill] sm:$0xff] %v7856_v58  ;;  %3175 = vmatpush.msrb.mxu1 %v7287_v31  ;;  %2973 = vmatpush.msra.mxu3 %v7870_v61  ;;  %v7873_v58 = vld [vmem:[#allocation8 + $0xa8] sm:$0xff]  ;;  %v7884_v31 = vld [vmem:[#allocation8 + $0xf8] sm:$0xff] }
 0x441   :  { %9630 = vst [vmem:[#allocation120_spill] sm:$0xff] %v7863_v55  ;;  %2953 = vmatpush.msra.mxu2 %v7873_v58  ;;  %2996 = vmatpush.msrb.mxu0 %v7876_v18  ;;  %v7881_v55 = vld [vmem:[#allocation8 + $0x88] sm:$0xff] }
 0x442   :  { %9631 = vst [vmem:[#allocation125_spill] sm:$0xff] %v7866_v41  ;;  %3176 = vmatpush.msrb.mxu1 %v7295_v40  ;;  %v7887_v41 = vld [vmem:[#allocation8 + $0xf0] sm:$0xff]  ;;  %2916 = vmatmul.f32.gmra.mxu0 %v7706_v0 }
 0x443   :  { %9632 = vst [vmem:[#allocation111_spill] sm:$0xff] %v7873_v58  ;;  %2954 = vmatpush.msra.mxu2 %v7881_v55  ;;  %2997 = vmatpush.msrb.mxu0 %v7884_v31  ;;  %v7891_v58 = vld [vmem:[#allocation8 + $0x68] sm:$0xff]  ;;  %v7897_v40 = vld [vmem:[#allocation8 + $0xd0] sm:$0xff] }
 0x444   :  { %9633 = vst [vmem:[#allocation123_spill] sm:$0xff] %v7876_v18  ;;  %2974 = vmatpush.msra.mxu3 %v7887_v41  ;;  %3177 = vmatpush.msrb.mxu1 %v7301_v24  ;;  %v7907_v24 = vld [vmem:[#allocation8 + $0xb0] sm:$0xff]  ;;  %v2195_v0 = vpop.xlane.xlu0 %2194 }
 0x445   :  { %9634 = vst [vmem:[#allocation128_spill] sm:$0xff] %v7881_v55  ;;  %2955 = vmatpush.msra.mxu2 %v7891_v58  ;;  %2998 = vmatpush.msrb.mxu0 %v7894_v23  ;;  %v7901_v55 = vld [vmem:[#allocation8 + $0x48] sm:$0xff] }
 0x446   :  { %9635 = vst [vmem:[#allocation116_spill] sm:$0xff] %v7884_v31  ;;  %2975 = vmatpush.msra.mxu3 %v7897_v40  ;;  %3178 = vmatpush.msrb.mxu1 %v7307_v6  ;;  %v7904_v31 = vld [vmem:[#allocation8 + $0xb8] sm:$0xff]  ;;  %v7917_v6 = vld [vmem:[#allocation8 + $0x90] sm:$0xff] }
 0x447   :  { %9636 = vst [vmem:[#allocation127_spill] sm:$0xff] %v7887_v41  ;;  %2956 = vmatpush.msra.mxu2 %v7901_v55  ;;  %2999 = vmatpush.msrb.mxu0 %v7904_v31 }
 0x448   :  { %9637 = vst [vmem:[#allocation131_spill] sm:$0xff] %v7891_v58  ;;  %2976 = vmatpush.msra.mxu3 %v7907_v24  ;;  %3179 = vmatpush.msrb.mxu1 %v7316_v37  ;;  %v7911_v58 = vld [vmem:[#allocation8 + $0x28] sm:$0xff]  ;;  %v7929_v37 = vld [vmem:[#allocation8 + $0x58] sm:$0xff] }
 0x449   :  { %9638 = vst [vmem:[#allocation117_spill] sm:$0xff] %v7894_v23  ;;  %2957 = vmatpush.msra.mxu2 %v7911_v58  ;;  %v7914_v23 = vld [vmem:[#allocation8 + $0x98] sm:$0xff] }
 0x44a   :  { %9639 = vst [vmem:[#allocation134_spill] sm:$0xff] %v7897_v40  ;;  %3000 = vmatpush.msrb.mxu0 %v7914_v23  ;;  %2977 = vmatpush.msra.mxu3 %v7917_v6 }
 0x44b   :  { %9640 = vst [vmem:[#allocation130_spill] sm:$0xff] %v7901_v55  ;;  %v7921_v55 = vld [vmem:[#allocation8 + $0x8] sm:$0xff]  ;;  %3180 = vmatpush.msrb.mxu1 %v7326_v63  ;;  %v7943_v63 = vld [vmem:[#allocation8 + $0x50] sm:$0xff] }
 0x44c   :  { %9641 = vst [vmem:[#allocation122_spill] sm:$0xff] %v7904_v31  ;;  %2958 = vmatpush.msra.mxu2 %v7921_v55  ;;  %v7924_v31 = vld [vmem:[#allocation8 + $0x78] sm:$0xff] }
 0x44d   :  { %9642 = vst [vmem:[#allocation137_spill] sm:$0xff] %v7907_v24  ;;  %3001 = vmatpush.msrb.mxu0 %v7924_v31  ;;  %3181 = vmatpush.msrb.mxu1 %v7334_v5  ;;  %v7953_v5 = vld [vmem:[#allocation8 + $0x30] sm:$0xff] }
 0x44e   :  { %9643 = vst [vmem:[#allocation133_spill] sm:$0xff] %v7911_v58  ;;  %3192 = vmatpush.msrb.mxu2 %v7313_v26  ;;  %v7932_v58 = vld [vmem:[#allocation8 + $0x70] sm:$0xff]  ;;  %v7940_v26 = vld [vmem:[#allocation8 + $0x38] sm:$0xff] }
 0x44f   :  { %9644 = vst [vmem:[#allocation126_spill] sm:$0xff] %v7914_v23  ;;  %3002 = vmatpush.msrb.mxu0 %v7929_v37  ;;  %2978 = vmatpush.msra.mxu3 %v7932_v58 }
 0x450   :  { %9645 = vst [vmem:[#allocation136_spill] sm:$0xff] %v7917_v6  ;;  %3193 = vmatpush.msrb.mxu2 %v7323_v32  ;;  %3182 = vmatpush.msrb.mxu1 %v7342_v54  ;;  %v7948_v32 = vld [vmem:[#allocation8 + $0x18] sm:$0xff]  ;;  %v9656_v54 = vld [vmem:[#allocation36_spill] sm:$0xff] }
 0x451   :  { %9646 = vst [vmem:[#allocation129_spill] sm:$0xff] %v7921_v55  ;;  %v7937_v55 = vld [vmem:[#allocation2] ss:$0 sm:$0xff]  ;;  %3003 = vmatpush.msrb.mxu0 %v7940_v26  ;;  %2979 = vmatpush.msra.mxu3 %v7943_v63 }
 0x452   :  { %9647 = vst [vmem:[#allocation132_spill] sm:$0xff] %v7924_v31  ;;  %v2198_v31 = vadd.f32 %v7937_v55, %v2195_v0  ;;  %3194 = vmatpush.msrb.mxu2 %v7331_v56  ;;  %3183 = vmatpush.msrb.mxu1 %v7353_v34  ;;  %v7959_v56 = vld [vmem:[#allocation8 + $0x10] sm:$0xff]  ;;  %v9666_v0 = vld [vmem:[#allocation40_spill] sm:$0xff] }
 0x453   :  { %9648 = vst [vmem:[#allocation139_spill] sm:$0xff] %v7929_v37  ;;  %3004 = vmatpush.msrb.mxu0 %v7948_v32  ;;  %2980 = vmatpush.msra.mxu3 %v7953_v5  ;;  %v9658_v34 = vld [vmem:[#allocation17_spill] sm:$0xff]  ;;  %v8014_v6 = vld [vmem:[%s8305_s5] ss:$0 sm:$0xff] }
 0x454   :  { %9649 = vst [vmem:[#allocation135_spill] sm:$0xff] %v7932_v58  ;;  %2203 = vperm.xlu2 %3689, %v2198_v31   ;;  %3195 = vmatpush.msrb.mxu2 %v7339_v30  ;;  %v2197_v30 = vpop.xlane.xlu1 %2196  ;;  %v9665_v31 = vld [vmem:[#allocation21_spill] sm:$0xff] }
 0x455   :  { %9650 = vst [vmem:[#allocation140_spill] sm:$0xff] %v7937_v55  ;;  %3238 = vmatpush.msra.mxu0 %v7350_v20  ;;  %2981 = vmatpush.msra.mxu3 %v7959_v56  ;;  %v9657_v20 = vld [vmem:[#allocation28_spill] sm:$0xff]  ;;  %v9692_v37 = vld [vmem:[#allocation13_spill] sm:$0xff] }
 0x456   :  { %9651 = vst [vmem:[#allocation138_spill] sm:$0xff] %v7940_v26  ;;  %3196 = vmatpush.msrb.mxu2 %v7347_v11  ;;  %3184 = vmatpush.msrb.mxu1 %v7366_v25  ;;  %v2199_v11 = vadd.f32 %v7937_v55, %v2197_v30  ;;  %v9661_v25 = vld [vmem:[#allocation16_spill] sm:$0xff]  ;;  %v9667_v30 = vld [vmem:[#allocation18_spill] sm:$0xff] }
 0x457   :  { %9652 = vst [vmem:[#allocation78_spill] sm:$0xff] %v7943_v63  ;;  %3239 = vmatpush.msra.mxu0 %v7363_v38  ;;  %3215 = vmatpush.msrb.mxu3 %v7356_v8  ;;  %v9659_v38 = vld [vmem:[#allocation23_spill] sm:$0xff] }
 0x458   :  { %9653 = vst [vmem:[#allocation82_spill] sm:$0xff] %v7948_v32  ;;  %3197 = vmatpush.msrb.mxu2 %v7360_v52  ;;  %2208 = vperm.xlu1 %3688, %v2199_v11   ;;  %v9660_v52 = vld [vmem:[#allocation43_spill] sm:$0xff]  ;;  %v9688_v32 = vld [vmem:[#allocation34_spill] sm:$0xff] }
 0x459   :  { %9654 = vst [vmem:[#allocation113_spill] sm:$0xff] %v7953_v5  ;;  %3240 = vmatpush.msra.mxu0 %v7375_v22  ;;  %3216 = vmatpush.msrb.mxu3 %v9656_v54  ;;  %v9662_v8 = vld [vmem:[#allocation35_spill] sm:$0xff]  ;;  %v7977_v22 = vpop.f32.mrf.mxu1  ;;  %v9668_v54 = vld [vmem:[#allocation32_spill] sm:$0xff] }
 0x45a   :  { %9655 = vst [vmem:[#allocation90_spill] sm:$0xff] %v7959_v56  ;;  %3198 = vmatpush.msrb.mxu2 %v7372_v17  ;;  %v9663_v17 = vld [vmem:[#allocation20_spill] sm:$0xff]  ;;  %v9669_v11 = vld [vmem:[#allocation31_spill] sm:$0xff] }
 0x45b   :  { %3241 = vmatpush.msra.mxu0 %v7384_v10  ;;  %3217 = vmatpush.msrb.mxu3 %v9659_v38  ;;  %v9664_v10 = vld [vmem:[#allocation47_spill] sm:$0xff]  ;;  %v2366_v38 = vpop.f32.mrf.mxu3  ;;  %9693 = vst [vmem:[#allocation92_spill] sm:$0xff] %v8014_v6 }
 0x45c   :  { %3199 = vmatpush.msrb.mxu2 %v9657_v20  ;;  %v9670_v20 = vld [vmem:[#allocation19_spill] sm:$0xff] }
 0x45d   :  { %3242 = vmatpush.msra.mxu0 %v9658_v34  ;;  %3218 = vmatpush.msrb.mxu3 %v9662_v8  ;;  %v9671_v34 = vld [vmem:[#allocation44_spill] sm:$0xff]  ;;  %v9674_v8 = vld [vmem:[#allocation39_spill] sm:$0xff] }
 0x45e   :  { %3200 = vmatpush.msrb.mxu2 %v9660_v52  ;;  %v9672_v52 = vld [vmem:[#allocation51_spill] sm:$0xff] }
 0x45f   :  { %3243 = vmatpush.msra.mxu0 %v9661_v25  ;;  %3219 = vmatpush.msrb.mxu3 %v9665_v31  ;;  %v9673_v25 = vld [vmem:[#allocation55_spill] sm:$0xff]  ;;  %v9677_v31 = vld [vmem:[#allocation48_spill] sm:$0xff] }
 0x460   :  { %3201 = vmatpush.msrb.mxu2 %v9663_v17  ;;  %v9675_v17 = vld [vmem:[#allocation29_spill] sm:$0xff] }
 0x461   :  { %3244 = vmatpush.msra.mxu0 %v9664_v10  ;;  %3220 = vmatpush.msrb.mxu3 %v9668_v54  ;;  %v9676_v10 = vld [vmem:[#allocation26_spill] sm:$0xff]  ;;  %v9679_v54 = vld [vmem:[#allocation59_spill] sm:$0xff] }
 0x462   :  { %3202 = vmatpush.msrb.mxu2 %v9666_v0  ;;  %v9678_v0 = vld [vmem:[#allocation22_spill] sm:$0xff] }
 0x463   :  { %3245 = vmatpush.msra.mxu0 %v9667_v30  ;;  %3221 = vmatpush.msrb.mxu3 %v9671_v34  ;;  %v7994_v30 = vpop.f32.mrf.mxu1  ;;  %v9682_v34 = vld [vmem:[#allocation60_spill] sm:$0xff] }
 0x464   :  { %3203 = vmatpush.msrb.mxu2 %v9669_v11  ;;  %v9680_v11 = vld [vmem:[#allocation52_spill] sm:$0xff] }
 0x465   :  { %3246 = vmatpush.msra.mxu0 %v9670_v20  ;;  %3222 = vmatpush.msrb.mxu3 %v9674_v8  ;;  %v9681_v20 = vld [vmem:[#allocation56_spill] sm:$0xff]  ;;  %v9685_v8 = vld [vmem:[#allocation27_spill] sm:$0xff] }
 0x466   :  { %3204 = vmatpush.msrb.mxu2 %v9672_v52  ;;  %v9683_v52 = vld [vmem:[#allocation33_spill] sm:$0xff] }
 0x467   :  { %3247 = vmatpush.msra.mxu0 %v9673_v25  ;;  %3223 = vmatpush.msrb.mxu3 %v9677_v31  ;;  %v9684_v25 = vld [vmem:[#allocation63_spill] sm:$0xff]  ;;  %v9687_v31 = vld [vmem:[#allocation37_spill] sm:$0xff] }
 0x468   :  { %3205 = vmatpush.msrb.mxu2 %v9675_v17  ;;  %v2369_v17 = vpop.f32.mrf.mxu3 }
 0x469   :  { %3248 = vmatpush.msra.mxu0 %v9676_v10  ;;  %3224 = vmatpush.msrb.mxu3 %v9680_v11  ;;  %v9686_v10 = vld [vmem:[#allocation30_spill] sm:$0xff] }
 0x46a   :  { %3206 = vmatpush.msrb.mxu2 %v9678_v0  ;;  %v9690_v11 = vld [vmem:[#allocation14_spill] sm:$0xff] }
 0x46b   :  { %3249 = vmatpush.msra.mxu0 %v9679_v54  ;;  %3225 = vmatpush.msrb.mxu3 %v9683_v52  ;;  %v2504_v0 = vpop.f32.mrf.mxu1  ;;  %v9689_v54 = vld [vmem:[#allocation86_spill] sm:$0xff] }
 0x46c   :  { %3207 = vmatpush.msrb.mxu2 %v9681_v20  ;;  %v9691_v20 = vld [vmem:[#allocation41_spill] sm:$0xff] }
 0x46d   :  { %3250 = vmatpush.msra.mxu0 %v9682_v34  ;;  %3226 = vmatpush.msrb.mxu3 %v9685_v8  ;;  %v2435_v34 = vpop.f32.mrf.mxu2 }
 0x46e   :  { %v2633_v5 = vmul.f32 %v9692_v37, %v2435_v34  ;;  %v9694_v34 = vld [vmem:[#allocation67_spill] sm:$0xff] }
 0x46f   :  { %3251 = vmatpush.msra.mxu0 %v9684_v25  ;;  %3227 = vmatpush.msrb.mxu3 %v9687_v31  ;;  %v2389_v25 = vpop.f32.mrf.mxu0 }
 0x470   :  { %v2458_v52 = vpop.f32.mrf.mxu3  ;;  %v2639_v23 = vadd.f32 %v2633_v5, %v2366_v38 }
 0x471   :  { %3252 = vmatpush.msra.mxu0 %v9686_v10  ;;  %3228 = vmatpush.msrb.mxu3 %v9689_v54  ;;  %v2634_v10 = vmul.f32 %v9692_v37, %v2458_v52 }
 0x473   :  { %3253 = vmatpush.msra.mxu0 %v9688_v32  ;;  %3229 = vmatpush.msrb.mxu3 %v9690_v11  ;;  %v2507_v26 = vpop.f32.mrf.mxu1  ;;  %v2640_v54 = vadd.f32 %v2634_v10, %v2389_v25 }
 0x475   :  { %3230 = vmatpush.msrb.mxu3 %v9691_v20  ;;  %v2438_v56 = vpop.f32.mrf.mxu2 }
 0x477   :  { %v2392_v32 = vpop.f32.mrf.mxu0 }
 0x478   :  { %v2461_v8 = vpop.f32.mrf.mxu3 }
 0x47b   :  { %v2596_v31 = vpop.f32.mrf.mxu1 }
 0x47c   :  { %v2602_v63 = vadd.f32 %v2596_v31, %v2504_v0  ;;  %v9695_v0 = vld [vmem:[#allocation109_spill] sm:$0xff] }
 0x47d   :  { %v2637_v5 = vmul.f32 %v9695_v0, %v2461_v8 }
 0x47e   :  { %2604 = vadd.xlane.f32.xlu2 %v2602_v63  ;;  %v2636_v63 = vmul.f32 %v9695_v0, %v2438_v56 }
 0x47f   :  { %v2643_v10 = vadd.f32 %v2637_v5, %v2392_v32 }
 0x480   :  { %v2527_v55 = vpop.f32.mrf.mxu2  ;;  %v2550_v11 = vpop.f32.mrf.mxu3  ;;  %v2642_v25 = vadd.f32 %v2636_v63, %v2369_v17 }
 0x481   :  { %v2645_v58 = vadd.f32 %v2639_v23, %v2527_v55  ;;  %v2687_v20 = vadd.f32 %v2640_v54, %v2550_v11  ;;  %v2481_v23 = vpop.f32.mrf.mxu0 }
 0x483   :  { %v2647_v24 = vadd.f32 %v8014_v6, %v2645_v58  ;;  %v2689_v40 = vadd.f32 %v9694_v34, %v2687_v20 }
 0x485   :  { %v3651_v52 = vmul.f32 -1.442695, %v2647_v24  ;;  %v3653_v18 = vmul.f32 -1.442695, %v2689_v40 }
 0x487   :  { %3800 = vpow2.f32 %v3651_v52  ;;  %v2599_v38 = vpop.f32.mrf.mxu1 }
 0x488   :  { %3802 = vpow2.f32 %v3653_v18  ;;  %v2603_v55 = vadd.f32 %v2599_v38, %v2507_v26 }
 0x489   :  { %v2484_v52 = vpop.f32.mrf.mxu0 }
 0x48a   :  { %2606 = vadd.xlane.f32.xlu0 %v2603_v55  ;;  %v2635_v55 = vmul.f32 %v9692_v37, %v2481_v23 }
 0x48c   :  { %v2530_v31 = vpop.f32.mrf.mxu2  ;;  %v2553_v54 = vpop.f32.mrf.mxu3 }
 0x48d   :  { %v3801_v11 = vpop.eup %3800  ;;  %v2646_v58 = vadd.f32 %v2642_v25, %v2530_v31  ;;  %v2688_v41 = vadd.f32 %v2643_v10, %v2553_v54 }
 0x48e   :  { %v3803_v20 = vpop.eup %3802  ;;  %v2655_v24 = vadd.f32 1.0, %v3801_v11 }
 0x48f   :  { %v2697_v40 = vadd.f32 1.0, %v3803_v20  ;;  %v2648_v56 = vadd.f32 %v8014_v6, %v2646_v58  ;;  %v2690_v8 = vadd.f32 %v9694_v34, %v2688_v41 }
 0x490   :  { %3804 = vrcp.f32 %v2655_v24  ;;  %v2668_v31 = vand.u32 2147483648, %v2655_v24  ;;  %v2666_v34 = vand.u32 2147483647, %v2655_v24  ;;  %vm2662_vm4 = vweird.f32 %v2655_v24 }
 0x491   :  { %3806 = vrcp.f32 %v2697_v40  ;;  %v3652_v18 = vmul.f32 -1.442695, %v2648_v56  ;;  %v3654_v26 = vmul.f32 -1.442695, %v2690_v8  ;;  %v2573_v20 = vpop.f32.mrf.mxu0  ;;  %v2641_v8 = vadd.f32 %v2635_v55, %v7977_v22 }
 0x492   :  { %v2669_v37 = vor.u32 1.1754944e-38, %v2668_v31  ;;  %v2731_v23 = vadd.f32 %v7524_v46, %v2573_v20  ;;  %vm2667_vm9 = vcmp.eq.f32.partialorder %v2666_v34, 8.507059e+37  ;;  %vm2704_vm11 = vweird.f32 %v2697_v40 }
 0x493   :  { %3808 = vpow2.f32 %v3652_v18  ;;  %v2708_v22 = vand.u32 2147483647, %v2697_v40  ;;  %v2638_v20 = vmul.f32 %v9695_v0, %v2484_v52 }
 0x494   :  { %3810 = vpow2.f32 %v3654_v26 }
 0x495   :  { %vm2709_vm13 = vcmp.eq.f32.partialorder %v2708_v22, 8.507059e+37 }
 0x496   :  { %v3805_v17 = vpop.eup %3804 }
 0x497   :  { %v3807_v32 = vpop.eup %3806  ;;  %v2658_v63 = vmul.f32 %v3805_v17, %v2655_v24  ;;  %vm2663_vm1 = vweird.f32 %v3805_v17 }
 0x498   :  { %v2700_v5 = vmul.f32 %v3807_v32, %v2697_v40  ;;  %vm2664_vm8 = vmor %vm2662_vm4, %vm2663_vm1  ;;  %vm2705_vm10 = vweird.f32 %v3807_v32 }
 0x499   :  { %v3809_v38 = vpop.eup %3808  ;;  %v2659_v25 = vsub.f32 1.0, %v2658_v63  ;;  %vm8029_vm12 = vmor %vm2704_vm11, %vm2705_vm10 }
 0x49a   :  { %v3811_v10 = vpop.eup %3810  ;;  %v2701_v54 = vsub.f32 1.0, %v2700_v5  ;;  %v2656_v11 = vadd.f32 1.0, %v3809_v38  ;;  %v2729_v38 = vadd.f32 %v7532_v9, %v2641_v8 }
 0x49b   :  { %v2660_v41 = vmul.f32 %v3805_v17, %v2659_v25  ;;  %v8023_v58 = vadd.f32 1.0, %v3811_v10  ;;  %v2710_v10 = vand.u32 2147483648, %v2697_v40 }
 0x49c   :  { %v2702_v56 = vmul.f32 %v3807_v32, %v2701_v54  ;;  %3812 = vrcp.f32 %v2656_v11  ;;  %vm2677_vm15 = vweird.f32 %v2656_v11 }
 0x49d   :  { %v2661_v18 = vadd.f32 %v3805_v17, %v2660_v41  ;;  %3814 = vrcp.f32 %v8023_v58  ;;  %vm2719_vm6 = vweird.f32 %v8023_v58 }
 0x49e   :  { %v2703_v5 = vadd.f32 %v3807_v32, %v2702_v56  ;;  %v2711_v56 = vor.u32 1.1754944e-38, %v2710_v10 }
 0x49f   :  { %v2665_v26 = vsel %vm2664_vm8, %v3805_v17, %v2661_v18  ;;  %v2683_v18 = vand.u32 2147483648, %v2656_v11 }
 0x4a0   :  { %v2670_v63 = vsel %vm2667_vm9, %v2669_v37, %v2665_v26  ;;  %v2707_v34 = vsel %vm8029_vm12, %v3807_v32, %v2703_v5 }
 0x4a1   :  { %v2733_v25 = vmul.f32 %v2731_v23, %v2670_v63  ;;  %v2681_v23 = vand.u32 2147483647, %v2656_v11  ;;  %v2712_v26 = vsel %vm2709_vm13, %v2711_v56, %v2707_v34  ;;  %v2576_v63 = vpop.f32.mrf.mxu0  ;;  %v2684_v32 = vor.u32 1.1754944e-38, %v2683_v18  ;;  %v9719_v56 = vld [vmem:[#allocation97_spill] sm:$0xff] }
 0x4a2   :  { %v3813_v54 = vpop.eup %3812  ;;  %v2739_v5 = vsub.f32 1.0, %v2712_v26  ;;  %v2732_v52 = vadd.f32 %v7524_v46, %v2576_v63  ;;  %v2743_v22 = vmul.f32 %v2712_v26, %v7548_v49  ;;  %v9721_v18 = vld [vmem:[#allocation77_spill] sm:$0xff]  ;;  %v9725_v26 = vld [vmem:[#allocation88_spill] sm:$0xff]  ;;  %v9726_v63 = vld [vmem:[#allocation95_spill] sm:$0xff] }
 0x4a3   :  { %v3815_v55 = vpop.eup %3814  ;;  %v2673_v31 = vmul.f32 %v3813_v54, %v2656_v11  ;;  %v2735_v41 = vadd.f32 %v2733_v25, %v2729_v38  ;;  %vm2678_vm14 = vweird.f32 %v3813_v54  ;;  %v2644_v38 = vadd.f32 %v2638_v20, %v7994_v30 }
 0x4a4   :  { %v2715_v17 = vmul.f32 %v3815_v55, %v8023_v58  ;;  %vm2679_vm2 = vmor %vm2677_vm15, %vm2678_vm14  ;;  %vm2682_vm3 = vcmp.eq.f32.partialorder %v2681_v23, 8.507059e+37  ;;  %vm2720_vm5 = vweird.f32 %v3815_v55  ;;  %v2725_v30 = vand.u32 2147483648, %v8023_v58  ;;  %v9724_v23 = vld [vmem:[#allocation79_spill] sm:$0xff] }
 0x4a5   :  { %v2674_v8 = vsub.f32 1.0, %v2673_v31  ;;  %3816 = vtanh.f32 %v2735_v41  ;;  %v2723_v20 = vand.u32 2147483647, %v8023_v58  ;;  %vm2721_vm7 = vmor %vm2719_vm6, %vm2720_vm5  ;;  %v9717_v58 = vld [vmem:[#allocation80_spill] sm:$0xff] }
 0x4a6   :  { %v2716_v37 = vsub.f32 1.0, %v2715_v17  ;;  %v2730_v17 = vadd.f32 %v7532_v9, %v2644_v38  ;;  %v9727_v38 = vld [vmem:[#allocation83_spill] sm:$0xff] }
 0x4a7   :  { %v2675_v40 = vmul.f32 %v3813_v54, %v2674_v8  ;;  %vm2724_vm1 = vcmp.eq.f32.partialorder %v2723_v20, 8.507059e+37  ;;  %v9720_v8 = vld [vmem:[#allocation75_spill] sm:$0xff]  ;;  %v9741_v20 = vld [vmem:[#allocation98_spill] sm:$0xff] }
 0x4a8   :  { %v2717_v6 = vmul.f32 %v3815_v55, %v2716_v37  ;;  %v9722_v37 = vld [vmem:[#allocation87_spill] sm:$0xff] }
 0x4a9   :  { %v2676_v25 = vadd.f32 %v3813_v54, %v2675_v40  ;;  %v9723_v40 = vld [vmem:[#allocation100_spill] sm:$0xff] }
 0x4aa   :  { %v2718_v41 = vadd.f32 %v3815_v55, %v2717_v6  ;;  %v9716_v6 = vld [vmem:[#allocation50_spill] sm:$0xff] }
 0x4ab   :  { %v3817_v0 = vpop.eup %3816  ;;  %v2680_v10 = vsel %vm2679_vm2, %v3813_v54, %v2676_v25  ;;  %v2726_v54 = vor.u32 1.1754944e-38, %v2725_v30  ;;  %v9728_v25 = vld [vmem:[#allocation94_spill] sm:$0xff]  ;;  %v9740_v30 = vld [vmem:[#allocation103_spill] sm:$0xff] }
 0x4ac   :  { %v2685_v24 = vsel %vm2682_vm3, %v2684_v32, %v2680_v10  ;;  %v2741_v31 = vmul.f32 %v3817_v0, %v2739_v5  ;;  %v2722_v49 = vsel %vm2721_vm7, %v3815_v55, %v2718_v41  ;;  %v9718_v55 = vld [vmem:[#allocation58_spill] sm:$0xff]  ;;  %v9730_v5 = vld [vmem:[#allocation96_spill] sm:$0xff]  ;;  %v9737_v41 = vld [vmem:[#allocation93_spill] sm:$0xff] }
 0x4ad   :  { %v2734_v34 = vmul.f32 %v2732_v52, %v2685_v24  ;;  %v2727_v9 = vsel %vm2724_vm1, %v2726_v54, %v2722_v49  ;;  %v9729_v32 = vld [vmem:[#allocation106_spill] sm:$0xff]  ;;  %v9731_v0 = vld [vmem:[#allocation84_spill] sm:$0xff]  ;;  %v9732_v52 = vld [vmem:[#allocation99_spill] sm:$0xff] }
 0x4ae   :  { %v8043_v11 = vadd.f32 %v2743_v22, %v2741_v31  ;;  %v9733_v10 = vld [vmem:[#allocation70_spill] sm:$0xff]  ;;  %v9735_v24 = vld [vmem:[#allocation91_spill] sm:$0xff]  ;;  %v9736_v31 = vld [vmem:[#allocation89_spill] sm:$0xff] }
 0x4af   :  { %v2736_v46 = vadd.f32 %v2734_v34, %v2730_v17  ;;  %v9734_v22 = vld [vmem:[#allocation66_spill] sm:$0xff]  ;;  %v9738_v17 = vld [vmem:[#allocation112_spill] sm:$0xff]  ;;  %v9744_v49 = vld [vmem:[#allocation115_spill] sm:$0xff] }
 0x4b0   :  { %2936 = vmatmul.f32.vlgmr.msra.gmra.mxu1 %v8043_v11  ;;  %2959 = vmatmul.f32.vlgmr.msra.gmra.mxu2 %v8043_v11  ;;  %v9739_v34 = vld [vmem:[#allocation74_spill] sm:$0xff] }
 0x4b1   :  { %2982 = vmatmul.f32.vlgmr.msra.gmra.mxu3 %v8043_v11  ;;  %3005 = vmatmul.f32.vlgmr.msrb.gmra.mxu0 %v8043_v11  ;;  %3818 = vtanh.f32 %v2736_v46  ;;  %v9742_v46 = vld [vmem:[#allocation118_spill] sm:$0xff] }
 0x4b2   :  { %3261 = vmatpush.msra.mxu1 %v7556_v50  ;;  %3284 = vmatpush.msra.mxu2 %v7559_v7  ;;  %v2740_v50 = vsub.f32 1.0, %v2727_v9  ;;  %v9745_v54 = vld [vmem:[#allocation110_spill] sm:$0xff] }
 0x4b3   :  { %3307 = vmatpush.msra.mxu3 %v7562_v15  ;;  %3330 = vmatpush.msrb.mxu0 %v7565_v43  ;;  %v2744_v43 = vmul.f32 %v2727_v9, %v7605_v36  ;;  %v9708_v36 = vld [vmem:[#allocation53_spill] sm:$0xff]  ;;  %v9747_v9 = vld [vmem:[#allocation102_spill] sm:$0xff] }
 0x4b4   :  { %3262 = vmatpush.msra.mxu1 %v7568_v14  ;;  %3285 = vmatpush.msra.mxu2 %v7571_v3  ;;  %v9698_v3 = vld [vmem:[#allocation65_spill] sm:$0xff] }
 0x4b5   :  { %3308 = vmatpush.msra.mxu3 %v7574_v53  ;;  %3331 = vmatpush.msrb.mxu0 %v7577_v44  ;;  %v9699_v53 = vld [vmem:[#allocation42_spill] sm:$0xff] }
 0x4b6   :  { %3263 = vmatpush.msra.mxu1 %v7580_v35  ;;  %3286 = vmatpush.msra.mxu2 %v7583_v19  ;;  %v3665_v44 = vld [vmem:[%s8300_s0 + $0x70] sm:$0xff] }
 0x4b7   :  { %v3819_v7 = vpop.eup %3818  ;;  %3309 = vmatpush.msra.mxu3 %v7586_v59  ;;  %3332 = vmatpush.msrb.mxu0 %v7589_v39  ;;  %v9700_v35 = vld [vmem:[#allocation38_spill] sm:$0xff]  ;;  %v9701_v19 = vld [vmem:[#allocation71_spill] sm:$0xff]  ;;  %v9702_v59 = vld [vmem:[#allocation45_spill] sm:$0xff] }
 0x4b8   :  { %3264 = vmatpush.msra.mxu1 %v7592_v51  ;;  %3287 = vmatpush.msra.mxu2 %v7595_v45  ;;  %v2742_v15 = vmul.f32 %v3819_v7, %v2740_v50  ;;  %v9703_v39 = vld [vmem:[#allocation69_spill] sm:$0xff]  ;;  %v9748_v50 = vld [vmem:[#allocation114_spill] sm:$0xff] }
 0x4b9   :  { %3310 = vmatpush.msra.mxu3 %v7599_v47  ;;  %3333 = vmatpush.msrb.mxu0 %v7602_v48  ;;  %v9704_v51 = vld [vmem:[#allocation49_spill] sm:$0xff]  ;;  %v9706_v47 = vld [vmem:[#allocation72_spill] sm:$0xff] }
 0x4ba   :  { %v8067_v14 = vadd.f32 %v2744_v43, %v2742_v15  ;;  %3265 = vmatpush.msra.mxu1 %v7607_v33  ;;  %3288 = vmatpush.msra.mxu2 %v7610_v13  ;;  %v9705_v45 = vld [vmem:[#allocation73_spill] sm:$0xff]  ;;  %v9709_v33 = vld [vmem:[#allocation62_spill] sm:$0xff]  ;;  %v9751_v15 = vld [vmem:[#allocation108_spill] sm:$0xff] }
 0x4bb   :  { %3311 = vmatpush.msra.mxu3 %v7613_v60  ;;  %3334 = vmatpush.msrb.mxu0 %v7616_v28  ;;  %v9707_v48 = vld [vmem:[#allocation57_spill] sm:$0xff]  ;;  %v9712_v28 = vld [vmem:[#allocation76_spill] sm:$0xff] }
 0x4bc   :  { %2939 = vmatmul.f32.gmra.mxu1 %v8067_v14  ;;  %2962 = vmatmul.f32.gmra.mxu2 %v8067_v14  ;;  %v9710_v13 = vld [vmem:[#allocation61_spill] sm:$0xff] }
 0x4bd   :  { %2985 = vmatmul.f32.gmra.mxu3 %v8067_v14  ;;  %3008 = vmatmul.f32.gmra.mxu0 %v8067_v14  ;;  %v9711_v60 = vld [vmem:[#allocation81_spill] sm:$0xff] }
 0x4be   :  { %3266 = vmatpush.msra.mxu1 %v7629_v29  ;;  %3289 = vmatpush.msra.mxu2 %v7632_v16  ;;  %v3666_v29 = vld [vmem:[%s8300_s0 + $0x78] sm:$0xff]  ;;  %v9713_v16 = vld [vmem:[#allocation46_spill] sm:$0xff]  ;;  %v9749_v7 = vld [vmem:[#allocation105_spill] sm:$0xff] }
 0x4bf   :  { %3312 = vmatpush.msra.mxu3 %v7639_v4  ;;  %3335 = vmatpush.msrb.mxu0 %v9698_v3  ;;  %v9714_v4 = vld [vmem:[#allocation54_spill] sm:$0xff]  ;;  %v9753_v43 = vld [vmem:[#allocation125_spill] sm:$0xff]  ;;  %v9754_v3 = vld [vmem:[#allocation127_spill] sm:$0xff] }
 0x4c0   :  { %3267 = vmatpush.msra.mxu1 %v9699_v53  ;;  %3290 = vmatpush.msra.mxu2 %v7648_v62  ;;  %v9715_v62 = vld [vmem:[#allocation85_spill] sm:$0xff]  ;;  %v9755_v53 = vld [vmem:[#allocation120_spill] sm:$0xff] }
 0x4c1   :  { %3313 = vmatpush.msra.mxu3 %v9700_v35  ;;  %3336 = vmatpush.msrb.mxu0 %v9701_v19  ;;  %v9758_v35 = vld [vmem:[#allocation111_spill] sm:$0xff]  ;;  %v9759_v19 = vld [vmem:[#allocation116_spill] sm:$0xff] }
 0x4c2   :  { %3268 = vmatpush.msra.mxu1 %v9702_v59  ;;  %3291 = vmatpush.msra.mxu2 %v9703_v39  ;;  %v9760_v59 = vld [vmem:[#allocation137_spill] sm:$0xff] }
 0x4c3   :  { %3314 = vmatpush.msra.mxu3 %v9704_v51  ;;  %3337 = vmatpush.msrb.mxu0 %v9705_v45  ;;  %v9762_v39 = vld [vmem:[#allocation117_spill] sm:$0xff]  ;;  %v9763_v51 = vld [vmem:[#allocation136_spill] sm:$0xff]  ;;  %v9764_v45 = vld [vmem:[#allocation131_spill] sm:$0xff] }
 0x4c4   :  { %3185 = vmatmul.f32.vlgmr.msrb.gmra.mxu1 %v3665_v44  ;;  %3208 = vmatmul.f32.vlgmr.msrb.gmra.mxu2 %v3665_v44 }
 0x4c5   :  { %3254 = vmatmul.f32.vlgmr.msra.gmra.mxu0 %v3665_v44  ;;  %3269 = vmatpush.msra.mxu1 %v9706_v47  ;;  %v9765_v47 = vld [vmem:[#allocation122_spill] sm:$0xff] }
 0x4c6   :  { %3292 = vmatpush.msra.mxu2 %v9707_v48  ;;  %3231 = vmatmul.f32.vlgmr.msrb.gmra.mxu3 %v3665_v44  ;;  %v9766_v48 = vld [vmem:[#allocation135_spill] sm:$0xff] }
 0x4c7   :  { %3270 = vmatpush.msra.mxu1 %v9708_v36  ;;  %3315 = vmatpush.msra.mxu3 %v9709_v33  ;;  %v9767_v33 = vld [vmem:[#allocation130_spill] sm:$0xff] }
 0x4c8   :  { %3293 = vmatpush.msra.mxu2 %v9710_v13  ;;  %3338 = vmatpush.msrb.mxu0 %v9711_v60  ;;  %v9768_v13 = vld [vmem:[#allocation140_spill] sm:$0xff] }
 0x4c9   :  { %3271 = vmatpush.msra.mxu1 %v9712_v28  ;;  %3316 = vmatpush.msra.mxu3 %v9713_v16  ;;  %v9769_v28 = vld [vmem:[#allocation126_spill] sm:$0xff]  ;;  %v9771_v16 = vld [vmem:[#allocation133_spill] sm:$0xff] }
 0x4ca   :  { %3294 = vmatpush.msra.mxu2 %v9714_v4  ;;  %3339 = vmatpush.msrb.mxu0 %v9715_v62  ;;  %v9772_v4 = vld [vmem:[#allocation132_spill] sm:$0xff]  ;;  %v9773_v62 = vld [vmem:[#allocation113_spill] sm:$0xff] }
 0x4cb   :  { %3272 = vmatpush.msra.mxu1 %v9716_v6  ;;  %3317 = vmatpush.msra.mxu3 %v9717_v58  ;;  %v9774_v6 = vld [vmem:[#allocation129_spill] sm:$0xff]  ;;  %v9775_v58 = vld [vmem:[#allocation139_spill] sm:$0xff] }
 0x4cc   :  { %3295 = vmatpush.msra.mxu2 %v9718_v55  ;;  %3188 = vmatmul.f32.gmra.mxu1 %v3666_v29  ;;  %v9776_v55 = vld [vmem:[#allocation90_spill] sm:$0xff] }
 0x4cd   :  { %3211 = vmatmul.f32.gmra.mxu2 %v3666_v29  ;;  %3257 = vmatmul.f32.gmra.mxu0 %v3666_v29 }
 0x4ce   :  { %3273 = vmatpush.msra.mxu1 %v9719_v56  ;;  %3296 = vmatpush.msra.mxu2 %v9720_v8  ;;  %v9777_v56 = vld [vmem:[#allocation138_spill] sm:$0xff] }
 0x4cf   :  { %3234 = vmatmul.f32.gmra.mxu3 %v3666_v29  ;;  %3340 = vmatpush.msrb.mxu0 %v9721_v18  ;;  %v9778_v8 = vld [vmem:[#allocation82_spill] sm:$0xff] }
 0x4d0   :  { %3274 = vmatpush.msra.mxu1 %v9722_v37  ;;  %3297 = vmatpush.msra.mxu2 %v9723_v40  ;;  %v8181_v40 = vpop.f32.mrf.mxu0 }
 0x4d1   :  { %3318 = vmatpush.msra.mxu3 %v9724_v23  ;;  %3341 = vmatpush.msrb.mxu0 %v9725_v26  ;;  %v2776_v23 = vpop.f32.mrf.mxu2 }
 0x4d2   :  { %3275 = vmatpush.msra.mxu1 %v9726_v63  ;;  %3298 = vmatpush.msra.mxu2 %v9727_v38 }
 0x4d3   :  { %3319 = vmatpush.msra.mxu3 %v9728_v25  ;;  %3342 = vmatpush.msrb.mxu0 %v9729_v32  ;;  %v2845_v25 = vpop.f32.mrf.mxu1 }
 0x4d4   :  { %3276 = vmatpush.msra.mxu1 %v9730_v5  ;;  %3299 = vmatpush.msra.mxu2 %v9731_v0  ;;  %v2799_v5 = vpop.f32.mrf.mxu3 }
 0x4d5   :  { %3277 = vmatmul.f32.vlgmr.msra.gmra.mxu1 %v3665_v44  ;;  %3300 = vmatmul.f32.vlgmr.msra.gmra.mxu2 %v3665_v44 }
 0x4d6   :  { %3320 = vmatpush.msra.mxu3 %v9732_v52  ;;  %3353 = vmatpush.msrb.mxu1 %v9733_v10  ;;  %v9779_v10 = vld [vmem:[#allocation104_spill] sm:$0xff] }
 0x4d7   :  { %3376 = vmatpush.msrb.mxu2 %v9734_v22  ;;  %3343 = vmatpush.msrb.mxu0 %v9735_v24  ;;  %v3043_v22 = vmul.f32 %v9779_v10, %v2845_v25 }
 0x4d8   :  { %3321 = vmatpush.msra.mxu3 %v9736_v31  ;;  %3354 = vmatpush.msrb.mxu1 %v9737_v41  ;;  %v8183_v26 = vpop.f32.mrf.mxu0 }
 0x4d9   :  { %3377 = vmatpush.msrb.mxu2 %v7792_v57  ;;  %3344 = vmatpush.msrb.mxu0 %v9738_v17  ;;  %v9743_v57 = vld [vmem:[#allocation107_spill] sm:$0xff]  ;;  %v2779_v63 = vpop.f32.mrf.mxu2  ;;  %v3049_v31 = vadd.f32 %v3043_v22, %v2776_v23  ;;  %v8203_v22 = vld [vmem:[%s8305_s5 + $0x3] ss:$0 sm:$0xff] }
 0x4da   :  { %3322 = vmatpush.msra.mxu3 %v9739_v34  ;;  %3355 = vmatpush.msrb.mxu1 %v9740_v30 }
 0x4db   :  { %3378 = vmatpush.msrb.mxu2 %v7820_v12  ;;  %3323 = vmatmul.f32.vlgmr.msra.gmra.mxu3 %v3665_v44  ;;  %v9746_v12 = vld [vmem:[#allocation101_spill] sm:$0xff]  ;;  %v9756_v44 = vld [vmem:[#allocation123_spill] sm:$0xff]  ;;  %v2848_v52 = vpop.f32.mrf.mxu1 }
 0x4dc   :  { %3399 = vmatpush.msrb.mxu3 %v7801_v1  ;;  %3356 = vmatpush.msrb.mxu1 %v9741_v20  ;;  %v8140_v1 = vpop.permute.xlu2 %1798  ;;  %v2802_v41 = vpop.f32.mrf.mxu3 }
 0x4dd   :  { %3280 = vmatmul.f32.gmra.mxu1 %v3666_v29  ;;  %3303 = vmatmul.f32.gmra.mxu2 %v3666_v29 }
 0x4de   :  { %3400 = vmatpush.msrb.mxu3 %v9742_v46  ;;  %3379 = vmatpush.msrb.mxu2 %v7830_v2  ;;  %v9750_v2 = vld [vmem:[#allocation121_spill] sm:$0xff] }
 0x4df   :  { %3357 = vmatpush.msrb.mxu1 %v9743_v57  ;;  %3345 = vmatpush.msrb.mxu0 %v9744_v49  ;;  %v9780_v57 = vld [vmem:[#allocation92_spill] sm:$0xff] }
 0x4e0   :  { %3401 = vmatpush.msrb.mxu3 %v9745_v54  ;;  %3380 = vmatpush.msrb.mxu2 %v7840_v21  ;;  %v9752_v21 = vld [vmem:[#allocation124_spill] sm:$0xff]  ;;  %v2914_v38 = vpop.f32.mrf.mxu0 }
 0x4e1   :  { %3358 = vmatpush.msrb.mxu1 %v9746_v12  ;;  %v2868_v32 = vpop.f32.mrf.mxu2 }
 0x4e2   :  { %3402 = vmatpush.msrb.mxu3 %v9747_v9  ;;  %3381 = vmatpush.msrb.mxu2 %v7850_v42  ;;  %v3044_v34 = vmul.f32 %v9779_v10, %v2868_v32 }
 0x4e3   :  { %3359 = vmatpush.msrb.mxu1 %v9748_v50  ;;  %3326 = vmatmul.f32.gmra.mxu3 %v3666_v29  ;;  %v9770_v29 = vld [vmem:[#allocation78_spill] sm:$0xff] }
 0x4e4   :  { %3403 = vmatpush.msrb.mxu3 %v9749_v7  ;;  %3382 = vmatpush.msrb.mxu2 %v7860_v27  ;;  %v8154_v42 = vpop.permute.xlu2 %2203  ;;  %v9757_v27 = vld [vmem:[#allocation134_spill] sm:$0xff]  ;;  %v3050_v12 = vadd.f32 %v3044_v34, %v2799_v5  ;;  %v9781_v7 = vld [vmem:[#allocation25_spill] sm:$0xff] }
 0x4e5   :  { %3360 = vmatpush.msrb.mxu1 %v9750_v2  ;;  %v3046_v2 = vmul.f32 %v9781_v7, %v2848_v52 }
 0x4e6   :  { %3404 = vmatpush.msrb.mxu3 %v9751_v15  ;;  %3383 = vmatpush.msrb.mxu2 %v7870_v61  ;;  %v9761_v61 = vld [vmem:[#allocation128_spill] sm:$0xff]  ;;  %v8192_v15 = vld [vmem:[%s8305_s5 + $0x1] ss:$0 sm:$0xff] }
 0x4e7   :  { %3361 = vmatpush.msrb.mxu1 %v9752_v21 }
 0x4e8   :  { %3405 = vmatpush.msrb.mxu3 %v9753_v43  ;;  %3384 = vmatpush.msrb.mxu2 %v9754_v3  ;;  %v2917_v0 = vpop.f32.mrf.mxu0  ;;  %v2891_v43 = vpop.f32.mrf.mxu3  ;;  %v3052_v3 = vadd.f32 %v3046_v2, %v2779_v63 }
 0x4e9   :  { %3362 = vmatpush.msrb.mxu1 %v9755_v53  ;;  %v2871_v24 = vpop.f32.mrf.mxu2 }
 0x4ea   :  { %3406 = vmatpush.msrb.mxu3 %v9756_v44  ;;  %3385 = vmatpush.msrb.mxu2 %v9757_v27 }
 0x4eb   :  { %3363 = vmatpush.msrb.mxu1 %v9758_v35  ;;  %v3047_v35 = vmul.f32 %v9781_v7, %v2871_v24 }
 0x4ec   :  { %3407 = vmatpush.msrb.mxu3 %v9759_v19  ;;  %3386 = vmatpush.msrb.mxu2 %v9760_v59 }
 0x4ed   :  { %3364 = vmatpush.msrb.mxu1 %v9761_v61 }
 0x4ee   :  { %3408 = vmatpush.msrb.mxu3 %v9762_v39  ;;  %3387 = vmatpush.msrb.mxu2 %v9763_v51 }
 0x4ef   :  { %3365 = vmatpush.msrb.mxu1 %v9764_v45 }
 0x4f0   :  { %3409 = vmatpush.msrb.mxu3 %v9765_v47  ;;  %3388 = vmatpush.msrb.mxu2 %v9766_v48  ;;  %v3053_v47 = vadd.f32 %v3047_v35, %v2802_v41 }
 0x4f1   :  { %v2605_v36 = vpop.xlane.xlu2 %2604  ;;  %3366 = vmatpush.msrb.mxu1 %v9767_v33 }
 0x4f2   :  { %v2608_v60 = vadd.f32 %v9768_v13, %v2605_v36  ;;  %3410 = vmatpush.msrb.mxu3 %v9769_v28  ;;  %3389 = vmatpush.msrb.mxu2 %v9770_v29 }
 0x4f3   :  { %3367 = vmatpush.msrb.mxu1 %v9771_v16 }
 0x4f4   :  { %2613 = vperm.xlu1 %3688, %v2608_v60   ;;  %3411 = vmatpush.msrb.mxu3 %v9772_v4  ;;  %v2894_v60 = vpop.f32.mrf.mxu3 }
 0x4f5   :  { %3390 = vmatpush.msrb.mxu2 %v9773_v62  ;;  %3368 = vmatpush.msrb.mxu1 %v9774_v6  ;;  %v3045_v6 = vmul.f32 %v9779_v10, %v2891_v43 }
 0x4f6   :  { %3412 = vmatpush.msrb.mxu3 %v9775_v58 }
 0x4f7   :  { %3391 = vmatpush.msrb.mxu2 %v9776_v55  ;;  %v3051_v63 = vadd.f32 %v3045_v6, %v8181_v40  ;;  %v8209_v40 = vld [vmem:[%s8305_s5 + $0x2] ss:$0 sm:$0xff]  ;;  %s4518_s5 = smov [#allocation9]  }
 0x4f8   :  { %3413 = vmatpush.msrb.mxu3 %v9777_v56  ;;  %s3578_s2 = sshll.u32 %s4518_s5, 4  ;;  %s3579_s2 = int_to_ptr.vmem [resolvable:$true] %s3578_s2 }
 0x4fa   :  { %3414 = vmatpush.msrb.mxu3 %v9778_v8 }
 0x4fd   :  { %v2607_v18 = vpop.xlane.xlu0 %2606 }
 0x4fe   :  { %v2609_v37 = vadd.f32 %v9768_v13, %v2607_v18 }
 0x500   :  { %2618 = vperm.xlu2 %3689, %v2609_v37  }
 0x52d   :  { %v2937_v17 = vpop.f32.mrf.mxu1 }
 0x52e   :  { %v3055_v30 = vadd.f32 %v3049_v31, %v2937_v17  ;;  %v3006_v20 = vpop.f32.mrf.mxu0  ;;  %v3139_v31 = vadd.f32 %v8209_v40, %v3051_v63 }
 0x52f   :  { %v3012_v46 = vadd.f32 %v3006_v20, %v2914_v38 }
 0x530   :  { %v3057_v49 = vadd.f32 %v9780_v57, %v3055_v30 }
 0x531   :  { %3014 = vadd.xlane.f32.xlu1 %v3012_v46 }
 0x532   :  { %v3661_v54 = vmul.f32 -1.442695, %v3057_v49 }
 0x533   :  { %v2960_v9 = vpop.f32.mrf.mxu2 }
 0x534   :  { %3820 = vpow2.f32 %v3661_v54  ;;  %v3097_v50 = vadd.f32 %v3050_v12, %v2960_v9  ;;  %v2983_v38 = vpop.f32.mrf.mxu3 }
 0x535   :  { %v3141_v24 = vadd.f32 %v8203_v22, %v2983_v38 }
 0x536   :  { %v3099_v21 = vadd.f32 %v8192_v15, %v3097_v50  ;;  %v3048_v50 = vmul.f32 %v9781_v7, %v2894_v60 }
 0x538   :  { %v3663_v53 = vmul.f32 -1.442695, %v3099_v21 }
 0x539   :  { %v2940_v44 = vpop.f32.mrf.mxu1 }
 0x53a   :  { %v3821_v27 = vpop.eup %3820  ;;  %3822 = vpow2.f32 %v3663_v53  ;;  %v3056_v19 = vadd.f32 %v3052_v3, %v2940_v44  ;;  %v3009_v59 = vpop.f32.mrf.mxu0 }
 0x53b   :  { %v3065_v61 = vadd.f32 1.0, %v3821_v27  ;;  %v3013_v39 = vadd.f32 %v3009_v59, %v2917_v0 }
 0x53c   :  { %v3058_v51 = vadd.f32 %v9780_v57, %v3056_v19  ;;  %v3054_v19 = vadd.f32 %v3048_v50, %v8183_v26 }
 0x53d   :  { %3824 = vrcp.f32 %v3065_v61  ;;  %3016 = vadd.xlane.f32.xlu2 %v3013_v39  ;;  %v3078_v56 = vand.u32 2147483648, %v3065_v61  ;;  %v3076_v37 = vand.u32 2147483647, %v3065_v61  ;;  %vm3072_vm8 = vweird.f32 %v3065_v61 }
 0x53e   :  { %v3662_v45 = vmul.f32 -1.442695, %v3058_v51 }
 0x53f   :  { %v2963_v48 = vpop.f32.mrf.mxu2  ;;  %v3079_v5 = vor.u32 1.1754944e-38, %v3078_v56  ;;  %vm3077_vm10 = vcmp.eq.f32.partialorder %v3076_v37, 8.507059e+37  ;;  %v8221_v56 = vpop.permute.xlu1 %2208  ;;  %v9782_v37 = vld [vmem:[#allocation64_spill] sm:$0xff] }
 0x540   :  { %v3823_v36 = vpop.eup %3822  ;;  %3826 = vpow2.f32 %v3662_v45  ;;  %v3098_v33 = vadd.f32 %v3053_v47, %v2963_v48  ;;  %v2986_v59 = vpop.f32.mrf.mxu3 }
 0x541   :  { %v3107_v28 = vadd.f32 1.0, %v3823_v36  ;;  %v3142_v36 = vadd.f32 %v8203_v22, %v2986_v59 }
 0x542   :  { %v3100_v29 = vadd.f32 %v8192_v15, %v3098_v33  ;;  %v3140_v33 = vadd.f32 %v8209_v40, %v3054_v19 }
 0x543   :  { %v3825_v16 = vpop.eup %3824  ;;  %3828 = vrcp.f32 %v3107_v28  ;;  %v3120_v30 = vand.u32 2147483648, %v3107_v28  ;;  %v3118_v49 = vand.u32 2147483647, %v3107_v28  ;;  %vm3114_vm12 = vweird.f32 %v3107_v28 }
 0x544   :  { %v3068_v4 = vmul.f32 %v3825_v16, %v3065_v61  ;;  %v3664_v62 = vmul.f32 -1.442695, %v3100_v29  ;;  %vm3073_vm4 = vweird.f32 %v3825_v16 }
 0x545   :  { %vm3074_vm9 = vmor %vm3072_vm8, %vm3073_vm4  ;;  %v3121_v2 = vor.u32 1.1754944e-38, %v3120_v30  ;;  %vm3119_vm14 = vcmp.eq.f32.partialorder %v3118_v49, 8.507059e+37  ;;  %vm2200_vm8 = vcmp.eq.s32.totalorder %v9782_v37, 4 }
 0x546   :  { %v3827_v58 = vpop.eup %3826  ;;  %v3069_v55 = vsub.f32 1.0, %v3068_v4  ;;  %3830 = vpow2.f32 %v3664_v62 }
 0x547   :  { %v3066_v8 = vadd.f32 1.0, %v3827_v58 }
 0x548   :  { %v3070_v18 = vmul.f32 %v3825_v16, %v3069_v55 }
 0x549   :  { %v3829_v23 = vpop.eup %3828  ;;  %3832 = vrcp.f32 %v3066_v8  ;;  %v3093_v3 = vand.u32 2147483648, %v3066_v8  ;;  %v3091_v27 = vand.u32 2147483647, %v3066_v8  ;;  %vm3087_vm2 = vweird.f32 %v3066_v8 }
 0x54a   :  { %v3110_v25 = vmul.f32 %v3829_v23, %v3107_v28  ;;  %v3071_v32 = vadd.f32 %v3825_v16, %v3070_v18  ;;  %vm3115_vm11 = vweird.f32 %v3829_v23 }
 0x54b   :  { %vm3116_vm13 = vmor %vm3114_vm12, %vm3115_vm11  ;;  %v3094_v7 = vor.u32 1.1754944e-38, %v3093_v3  ;;  %vm3092_vm5 = vcmp.eq.f32.partialorder %v3091_v27, 8.507059e+37 }
 0x54c   :  { %v3831_v0 = vpop.eup %3830  ;;  %v3111_v52 = vsub.f32 1.0, %v3110_v25  ;;  %v3075_v10 = vsel %vm3074_vm9, %v3825_v16, %v3071_v32  ;;  %v9783_v32 = vld [vmem:[#allocation68_spill] sm:$0xff]  ;;  %vm2610_vm9 = vcmp.eq.s32.totalorder %v9782_v37, 5 }
 0x54d   :  { %v3080_v41 = vsel %vm3077_vm10, %v3079_v5, %v3075_v10  ;;  %v3108_v17 = vadd.f32 1.0, %v3831_v0  ;;  %v2211_v5 = vsel %vm2200_vm8, %v8154_v42, %v9783_v32 }
 0x54e   :  { %v3112_v34 = vmul.f32 %v3829_v23, %v3111_v52  ;;  %v3143_v20 = vmul.f32 %v3141_v24, %v3080_v41  ;;  %v3186_v24 = vpop.f32.mrf.mxu1 }
 0x54f   :  { %v3833_v46 = vpop.eup %3832  ;;  %3834 = vrcp.f32 %v3108_v17  ;;  %v3135_v16 = vand.u32 2147483648, %v3108_v17  ;;  %v3133_v62 = vand.u32 2147483647, %v3108_v17  ;;  %vm3129_vm7 = vweird.f32 %v3108_v17 }
 0x550   :  { %v3113_v54 = vadd.f32 %v3829_v23, %v3112_v34  ;;  %v3145_v12 = vadd.f32 %v3143_v20, %v3139_v31  ;;  %v3083_v9 = vmul.f32 %v3833_v46, %v3066_v8  ;;  %vm3088_vm15 = vweird.f32 %v3833_v46  ;;  %v8243_v31 = vpop.f32.mrf.mxu3  ;;  %v3255_v34 = vpop.f32.mrf.mxu0 }
 0x551   :  { %vm3089_vm3 = vmor %vm3087_vm2, %vm3088_vm15  ;;  %v3136_v8 = vor.u32 1.1754944e-38, %v3135_v16  ;;  %vm3134_vm4 = vcmp.eq.f32.partialorder %v3133_v62, 8.507059e+37 }
 0x552   :  { %v3117_v21 = vsel %vm3116_vm13, %v3829_v23, %v3113_v54  ;;  %3836 = vtanh.f32 %v3145_v12  ;;  %v3084_v43 = vsub.f32 1.0, %v3083_v9  ;;  %v9784_v12 = vld [vmem:[#allocation119_spill] sm:$0xff] }
 0x553   :  { %v3122_v53 = vsel %vm3119_vm14, %v3121_v2, %v3117_v21  ;;  %v3693_v9 = vunpack.i.l.bf16 %v9784_v12 }
 0x554   :  { %v3085_v44 = vmul.f32 %v3833_v46, %v3084_v43  ;;  %v3149_v51 = vsub.f32 1.0, %v3122_v53  ;;  %v3153_v29 = vmul.f32 %v3122_v53, %v8043_v11 }
 0x555   :  { %v3835_v35 = vpop.eup %3834  ;;  %v3453_v50 = vmul.f32 %v3693_v9, %v3255_v34 }
 0x556   :  { %v3125_v61 = vmul.f32 %v3835_v35, %v3108_v17  ;;  %v3086_v39 = vadd.f32 %v3833_v46, %v3085_v44  ;;  %vm3130_vm6 = vweird.f32 %v3835_v35  ;;  %v3189_v41 = vpop.f32.mrf.mxu1 }
 0x557   :  { %vm3131_vm1 = vmor %vm3129_vm7, %vm3130_vm6 }
 0x558   :  { %v3837_v45 = vpop.eup %3836  ;;  %v3126_v47 = vsub.f32 1.0, %v3125_v61  ;;  %v3090_v48 = vsel %vm3089_vm3, %v3833_v46, %v3086_v39  ;;  %v8245_v17 = vpop.f32.mrf.mxu3  ;;  %v8251_v61 = vunpack.i.h.bf16 %v9784_v12 }
 0x559   :  { %v3151_v60 = vmul.f32 %v3837_v45, %v3149_v51  ;;  %v3095_v28 = vsel %vm3092_vm5, %v3094_v7, %v3090_v48  ;;  %v3209_v46 = vpop.f32.mrf.mxu2  ;;  %v3258_v49 = vpop.f32.mrf.mxu0 }
 0x55a   :  { %v3127_v26 = vmul.f32 %v3835_v35, %v3126_v47  ;;  %v3144_v4 = vmul.f32 %v3142_v36, %v3095_v28  ;;  %v3456_v7 = vmul.f32 %v8251_v61, %v3258_v49 }
 0x55b   :  { %v8217_v6 = vadd.f32 %v3153_v29, %v3151_v60 }
 0x55c   :  { %v3128_v58 = vadd.f32 %v3835_v35, %v3127_v26  ;;  %v3146_v55 = vadd.f32 %v3144_v4, %v3140_v33  ;;  %v3462_v33 = vadd.f32 %v3456_v7, %v3189_v41 }
 0x55d   :  { %3346 = vmatmul.f32.vlgmr.msrb.gmra.mxu0 %v8217_v6  ;;  %3369 = vmatmul.f32.vlgmr.msrb.gmra.mxu1 %v8217_v6 }
 0x55e   :  { %v3132_v18 = vsel %vm3131_vm1, %v3835_v35, %v3128_v58  ;;  %3838 = vtanh.f32 %v3146_v55  ;;  %3392 = vmatmul.f32.vlgmr.msrb.gmra.mxu2 %v8217_v6  ;;  %3415 = vmatmul.f32.vlgmr.msrb.gmra.mxu3 %v8217_v6  ;;  %v3278_v30 = vpop.f32.mrf.mxu1 }
 0x55f   :  { %v3137_v11 = vsel %vm3134_vm4, %v3136_v8, %v3132_v18  ;;  %v3454_v2 = vmul.f32 %v3693_v9, %v3278_v30 }
 0x560   :  { %v3150_v23 = vsub.f32 1.0, %v3137_v11  ;;  %v3154_v25 = vmul.f32 %v3137_v11, %v8067_v14  ;;  %v3324_v20 = vpop.f32.mrf.mxu3 }
 0x561   :  { %v3212_v43 = vpop.f32.mrf.mxu2  ;;  %v3460_v3 = vadd.f32 %v3454_v2, %v3209_v46 }
 0x564   :  { %v3839_v63 = vpop.eup %3838 }
 0x565   :  { %v3152_v38 = vmul.f32 %v3839_v63, %v3150_v23 }
 0x566   :  { %v2614_v0 = vpop.permute.xlu1 %2613  ;;  %v3281_v54 = vpop.f32.mrf.mxu1 }
 0x567   :  { %v8234_v52 = vsel %vm2610_vm9, %v2614_v0, %v2211_v5  ;;  %v8236_v10 = vadd.f32 %v3154_v25, %v3152_v38  ;;  %v3457_v45 = vmul.f32 %v8251_v61, %v3281_v54 }
 0x568   :  { %v3327_v21 = vpop.f32.mrf.mxu3 }
 0x569   :  { %3349 = vmatmul.f32.gmra.mxu0 %v8236_v10  ;;  %3372 = vmatmul.f32.gmra.mxu1 %v8236_v10  ;;  %v3301_v36 = vpop.f32.mrf.mxu2  ;;  %v3463_v60 = vadd.f32 %v3457_v45, %v3212_v43 }
 0x56a   :  { %3395 = vmatmul.f32.gmra.mxu2 %v8236_v10  ;;  %3418 = vmatmul.f32.gmra.mxu3 %v8236_v10 }
 0x571   :  { %v3304_v38 = vpop.f32.mrf.mxu2 }
 0x5a4   :  { %v3015_v14 = vpop.xlane.xlu1 %3014 }
 0x5a5   :  { %v3018_v42 = vadd.f32 %v9768_v13, %v3015_v14  ;;  %v3459_v13 = vadd.f32 %v3453_v50, %v3186_v24 }
 0x5a7   :  { %3023 = vperm.xlu1 %3688, %v3018_v42   ;;  %v3455_v42 = vmul.f32 %v3693_v9, %v3301_v36 }
 0x5a9   :  { %v3461_v50 = vadd.f32 %v3455_v42, %v8243_v31 }
 0x5da   :  { %v3347_v53 = vpop.f32.mrf.mxu0  ;;  %v3370_v44 = vpop.f32.mrf.mxu1 }
 0x5db   :  { %v3465_v27 = vadd.f32 %v3459_v13, %v3347_v53  ;;  %v3507_v35 = vadd.f32 %v3460_v3, %v3370_v44  ;;  %v8262_v13 = vpop.permute.xlu2 %2618  ;;  %v3549_v44 = vadd.f32 %v8209_v40, %v3461_v50 }
 0x5dd   :  { %v3467_v19 = vadd.f32 %v9780_v57, %v3465_v27  ;;  %v3509_v59 = vadd.f32 %v8192_v15, %v3507_v35 }
 0x5df   :  { %v3671_v39 = vmul.f32 -1.442695, %v3467_v19  ;;  %v3673_v51 = vmul.f32 -1.442695, %v3509_v59 }
 0x5e1   :  { %3840 = vpow2.f32 %v3671_v39  ;;  %v3416_v47 = vpop.f32.mrf.mxu3  ;;  %v3393_v54 = vpop.f32.mrf.mxu2 }
 0x5e2   :  { %3842 = vpow2.f32 %v3673_v51  ;;  %v3422_v48 = vadd.f32 %v3416_v47, %v3324_v20  ;;  %v3551_v43 = vadd.f32 %v8203_v22, %v3393_v54 }
 0x5e4   :  { %3424 = vadd.xlane.f32.xlu0 %v3422_v48  ;;  %v3458_v48 = vmul.f32 %v8251_v61, %v3304_v38 }
 0x5e6   :  { %v3350_v28 = vpop.f32.mrf.mxu0  ;;  %v3373_v29 = vpop.f32.mrf.mxu1 }
 0x5e7   :  { %v3841_v26 = vpop.eup %3840  ;;  %v3466_v16 = vadd.f32 %v3462_v33, %v3350_v28  ;;  %v3508_v4 = vadd.f32 %v3463_v60, %v3373_v29  ;;  %v3017_v29 = vpop.xlane.xlu2 %3016 }
 0x5e8   :  { %v3843_v62 = vpop.eup %3842  ;;  %v3475_v58 = vadd.f32 1.0, %v3841_v26 }
 0x5e9   :  { %v3517_v55 = vadd.f32 1.0, %v3843_v62  ;;  %v3468_v8 = vadd.f32 %v9780_v57, %v3466_v16  ;;  %v3510_v18 = vadd.f32 %v8192_v15, %v3508_v4 }
 0x5ea   :  { %3844 = vrcp.f32 %v3475_v58  ;;  %v3488_v34 = vand.u32 2147483648, %v3475_v58  ;;  %v3486_v20 = vand.u32 2147483647, %v3475_v58  ;;  %vm3482_vm11 = vweird.f32 %v3475_v58 }
 0x5eb   :  { %3846 = vrcp.f32 %v3517_v55  ;;  %v3672_v11 = vmul.f32 -1.442695, %v3468_v8  ;;  %v3674_v23 = vmul.f32 -1.442695, %v3510_v18  ;;  %v3530_v27 = vand.u32 2147483648, %v3517_v55 }
 0x5ec   :  { %v3489_v9 = vor.u32 1.1754944e-38, %v3488_v34  ;;  %vm3487_vm13 = vcmp.eq.f32.partialorder %v3486_v20, 8.507059e+37  ;;  %vm3524_vm15 = vweird.f32 %v3517_v55  ;;  %v3528_v35 = vand.u32 2147483647, %v3517_v55 }
 0x5ed   :  { %v3419_v63 = vpop.f32.mrf.mxu3  ;;  %3848 = vpow2.f32 %v3672_v11  ;;  %v3531_v45 = vor.u32 1.1754944e-38, %v3530_v27  ;;  %v3396_v26 = vpop.f32.mrf.mxu2  ;;  %v4404_v11 = vld [vmem:[#allocation2] ss:$0 sm:$0xff] }
 0x5ee   :  { %v3423_v25 = vadd.f32 %v3419_v63, %v3327_v21  ;;  %3850 = vpow2.f32 %v3674_v23  ;;  %vm3529_vm3 = vcmp.eq.f32.partialorder %v3528_v35, 8.507059e+37  ;;  %v3019_v23 = vadd.f32 %v4404_v11, %v3017_v29 }
 0x5ef   :  { %v3552_v63 = vadd.f32 %v8203_v22, %v3396_v26 }
 0x5f0   :  { %v3845_v32 = vpop.eup %3844  ;;  %3426 = vadd.xlane.f32.xlu2 %v3423_v25 }
 0x5f1   :  { %v3847_v5 = vpop.eup %3846  ;;  %v3478_v0 = vmul.f32 %v3845_v32, %v3475_v58  ;;  %vm3483_vm10 = vweird.f32 %v3845_v32  ;;  %v3464_v58 = vadd.f32 %v3458_v48, %v8245_v17 }
 0x5f2   :  { %v3520_v14 = vmul.f32 %v3847_v5, %v3517_v55  ;;  %vm3484_vm12 = vmor %vm3482_vm11, %vm3483_vm10  ;;  %vm3525_vm14 = vweird.f32 %v3847_v5 }
 0x5f3   :  { %v3479_v24 = vsub.f32 1.0, %v3478_v0  ;;  %v3849_v41 = vpop.eup %3848  ;;  %vm3526_vm2 = vmor %vm3524_vm15, %vm3525_vm14  ;;  %v3550_v17 = vadd.f32 %v8209_v40, %v3464_v58  ;;  %vm3430_vm14 = vcmp.eq.s32.totalorder %v9782_v37, 7  ;;  %vm3569_vm15 = vcmask 64512  }
 0x5f4   :  { %v3521_v57 = vsub.f32 1.0, %v3520_v14  ;;  %v3851_v15 = vpop.eup %3850  ;;  %v3476_v46 = vadd.f32 1.0, %v3849_v41 }
 0x5f5   :  { %v3480_v30 = vmul.f32 %v3845_v32, %v3479_v24  ;;  %v8257_v12 = vadd.f32 1.0, %v3851_v15 }
 0x5f6   :  { %v3522_v49 = vmul.f32 %v3847_v5, %v3521_v57  ;;  %3852 = vrcp.f32 %v3476_v46  ;;  %v3503_v28 = vand.u32 2147483648, %v3476_v46  ;;  %v3501_v4 = vand.u32 2147483647, %v3476_v46 }
 0x5f7   :  { %v3481_v2 = vadd.f32 %v3845_v32, %v3480_v30  ;;  %3854 = vrcp.f32 %v8257_v12  ;;  %vm3497_vm6 = vweird.f32 %v3476_v46  ;;  %v3545_v14 = vand.u32 2147483648, %v8257_v12 }
 0x5f8   :  { %v3523_v53 = vadd.f32 %v3847_v5, %v3522_v49  ;;  %v3504_v61 = vor.u32 1.1754944e-38, %v3503_v28  ;;  %vm3502_vm1 = vcmp.eq.f32.partialorder %v3501_v4, 8.507059e+37  ;;  %vm3539_vm10 = vweird.f32 %v8257_v12 }
 0x5f9   :  { %v3485_v21 = vsel %vm3484_vm12, %v3845_v32, %v3481_v2  ;;  %v3543_v41 = vand.u32 2147483647, %v8257_v12  ;;  %v3546_v34 = vor.u32 1.1754944e-38, %v3545_v14 }
 0x5fa   :  { %v3490_v3 = vsel %vm3487_vm13, %v3489_v9, %v3485_v21  ;;  %v3527_v51 = vsel %vm3526_vm2, %v3847_v5, %v3523_v53  ;;  %vm3020_vm13 = vcmp.eq.s32.totalorder %v9782_v37, 6 }
 0x5fb   :  { %v3553_v31 = vmul.f32 %v3551_v43, %v3490_v3  ;;  %v3532_v33 = vsel %vm3529_vm3, %v3531_v45, %v3527_v51  ;;  %vm3544_vm12 = vcmp.eq.f32.partialorder %v3543_v41, 8.507059e+37  ;;  %v9785_v3 = vld [vmem:[#allocation15_spill] sm:$0xff] }
 0x5fc   :  { %v3853_v19 = vpop.eup %3852  ;;  %v3559_v55 = vsub.f32 1.0, %v3532_v33  ;;  %v3563_v32 = vmul.f32 %v3532_v33, %v8217_v6  ;;  %v1802_v53 = vsel %vm1790_vm0, %v8140_v1, %v9785_v3 }
 0x5fd   :  { %v3555_v59 = vadd.f32 %v3553_v31, %v3549_v44  ;;  %v3855_v39 = vpop.eup %3854  ;;  %v3493_v7 = vmul.f32 %v3853_v19, %v3476_v46  ;;  %vm3498_vm5 = vweird.f32 %v3853_v19  ;;  %v2212_v44 = vsel %vm2200_vm8, %v8221_v56, %v1802_v53 }
 0x5fe   :  { %v3535_v47 = vmul.f32 %v3855_v39, %v8257_v12  ;;  %vm3499_vm7 = vmor %vm3497_vm6, %vm3498_vm5  ;;  %vm3540_vm4 = vweird.f32 %v3855_v39  ;;  %v2622_v27 = vsel %vm2610_vm9, %v8262_v13, %v2212_v44 }
 0x5ff   :  { %3856 = vtanh.f32 %v3555_v59  ;;  %v3494_v36 = vsub.f32 1.0, %v3493_v7  ;;  %vm3541_vm11 = vmor %vm3539_vm10, %vm3540_vm4 }
 0x600   :  { %v3536_v60 = vsub.f32 1.0, %v3535_v47 }
 0x601   :  { %v3495_v16 = vmul.f32 %v3853_v19, %v3494_v36 }
 0x602   :  { %v3537_v62 = vmul.f32 %v3855_v39, %v3536_v60 }
 0x603   :  { %v3496_v8 = vadd.f32 %v3853_v19, %v3495_v16 }
 0x604   :  { %v3538_v0 = vadd.f32 %v3855_v39, %v3537_v62 }
 0x605   :  { %v3857_v18 = vpop.eup %3856  ;;  %v3500_v25 = vsel %vm3499_vm7, %v3853_v19, %v3496_v8 }
 0x606   :  { %v3561_v38 = vmul.f32 %v3857_v18, %v3559_v55  ;;  %v3505_v5 = vsel %vm3502_vm1, %v3504_v61, %v3500_v25  ;;  %v3542_v57 = vsel %vm3541_vm11, %v3855_v39, %v3538_v0 }
 0x607   :  { %v3554_v42 = vmul.f32 %v3552_v63, %v3505_v5  ;;  %v3547_v6 = vsel %vm3544_vm12, %v3546_v34, %v3542_v57 }
 0x608   :  { %3028 = vperm.xlu2 %3689, %v3019_v23   ;;  %v3565_v24 = vadd.f32 %v3563_v32, %v3561_v38  ;;  %v3560_v15 = vsub.f32 1.0, %v3547_v6  ;;  %v3564_v20 = vmul.f32 %v3547_v6, %v8236_v10 }
 0x609   :  { %v3556_v22 = vadd.f32 %v3554_v42, %v3550_v17 }
 0x60a   :  { %3567 = vst [vmem:[#allocation9] sm:$0xff] %v3565_v24 }
 0x60b   :  { %3858 = vtanh.f32 %v3556_v22 }
 0x611   :  { %v3859_v30 = vpop.eup %3858 }
 0x612   :  { %v3562_v40 = vmul.f32 %v3859_v30, %v3560_v15 }
 0x614   :  { %v3566_v46 = vadd.f32 %v3564_v20, %v3562_v40 }
 0x616   :  { %3568 = vst [vmem:[#allocation9 + $0x8] sm:$0xff] %v3566_v46 }
 0x617   :  { %3586 = dma.vmem_to_hbm [thread:$0]  %s3579_s2, 256, %s3581_s1, [#allocation5], %s4511_s18, %s4511_s18, %s4512_s19  }
 0x619   :  { %v3024_v2 = vpop.permute.xlu1 %3023 }
 0x61a   :  { %v3031_v9 = vsel %vm3020_vm13, %v3024_v2, %v8234_v52 }
 0x657   :  { %v3425_v49 = vpop.xlane.xlu0 %3424 }
 0x658   :  { %v3428_v54 = vadd.f32 %v4404_v11, %v3425_v49 }
 0x65a   :  { %3433 = vperm.xlu2 %3689, %v3428_v54  }
 0x663   :  { %v3427_v12 = vpop.xlane.xlu2 %3426 }
 0x664   :  { %v3429_v50 = vadd.f32 %v4404_v11, %v3427_v12 }
 0x666   :  { %3438 = vperm.xlu0 %3687, %v3429_v50  }
 0x66b   :  { %v3029_v10 = vpop.permute.xlu2 %3028 }
 0x66c   :  { %v3032_v52 = vsel %vm3020_vm13, %v3029_v10, %v2622_v27 }
 0x6b4   :  { %v3434_v21 = vpop.permute.xlu2 %3433 }
 0x6b5   :  { %v3441_v43 = vsel %vm3430_vm14, %v3434_v21, %v3031_v9 }
 0x6b6   :  { %3570 = vst.msk [vmem:[%s8307_s7] sm:$0xff] %vm3569_vm15, %v3441_v43 }
 0x6d8   :  { %v3439_v31 = vpop.permute.xlu0 %3438 }
 0x6d9   :  { %v3442_v35 = vsel %vm3430_vm14, %v3439_v31, %v3032_v52 }
 0x6da   :  { %3571 = vst.msk [vmem:[%s8307_s7 + $0x8] sm:$0xff] %vm3569_vm15, %v3442_v35 }
 0x6db   :  { %4505 = dma.done.wait [#allocation5], 256  }
 0x6dc   :  { %4506 = vsyncadd [#allocation5], 4294967040 }
 0x6dd   :  { %3593 = vsyncpa [#allocation4], 1 }
 0x6de   :  { %3594 = vsyncpa [#allocation7], 1 }
 0x6df   :  { %3595 = vsyncpa [#allocation5], 1 }

</bundles_post_ra>
